<compile_context>
chip_gen: v6e
topology: v6e:2x2x1
jax: 0.10.0
libtpu: 0.0.40
codegen_flags: <defaults>
</compile_context>

<pallas_src>
import jax
import jax.numpy as jnp
from jax.experimental import pallas as pl
from jax.experimental.pallas import tpu as pltpu

EMBED = 512  # the module hard-codes 512 for both branches


def _mm_embed_kernel(text_sref, video_ref, wv_ref, bv_ref, table_hbm,
                     out_ref, rowbuf, sems):
    """One batch tile: Linear on the MXU + gather-mean EmbeddingBag.

    text_sref : (B_pad, seq) int32 in SMEM (scalar prefetch)
    video_ref : (TB, Dv) f32 VMEM tile
    wv_ref    : (Dv, 512) f32 (pre-transposed Linear weight)
    bv_ref    : (1, 512)  f32 bias
    table_hbm : (vocab, 512) f32, raw HBM ref (memory_space=pl.ANY)
    out_ref   : (TB, 1024) f32 output tile
    rowbuf    : (2, seq, 512) f32 VMEM scratch (double-buffered gather target)
    sems      : (2, seq) DMA semaphores
    """
    TB = out_ref.shape[0]
    seq = rowbuf.shape[1]
    b = pl.program_id(0)

    # ---- video branch: (TB, Dv) @ (Dv, 512) on the MXU, bias folded into the
    #      lane-aligned half-width store (offset 0, width 512 = 4*128 lanes).
    out_ref[:, :EMBED] = (
        jnp.dot(video_ref[...], wv_ref[...], preferred_element_type=jnp.float32)
        + bv_ref[...]
    ).astype(out_ref.dtype)

    # ---- text branch: EmbeddingBag(mode='mean') as an HBM row gather + VPU mean.
    def fetch_bag(r, slot):
        # Issue the `seq` 2-KiB row DMAs for bag (b*TB + r) into rowbuf[slot].
        row = b * TB + r
        for t in range(seq):  # seq is small and static: fully unrolled
            idx = text_sref[row, t]
            pltpu.make_async_copy(
                table_hbm.at[pl.ds(idx, 1), :],
                rowbuf.at[slot, pl.ds(t, 1), :],
                sems.at[slot, t],
            ).start()

    def wait_bag(slot):
        for t in range(seq):
            pltpu.make_async_copy(
                table_hbm.at[pl.ds(0, 1), :],          # shape-only; waits on sem
                rowbuf.at[slot, pl.ds(t, 1), :],
                sems.at[slot, t],
            ).wait()

    inv_seq = 1.0 / float(seq)

    fetch_bag(0, 0)
    for r in range(TB):                      # TB static & small: unrolled
        slot = r & 1
        if r + 1 < TB:
            fetch_bag(r + 1, 1 - slot)       # prefetch next bag before waiting
        wait_bag(slot)
        bag_sum = jnp.sum(rowbuf[slot], axis=0, keepdims=True)      # (1, 512)
        out_ref[r:r + 1, EMBED:] = (bag_sum * inv_seq).astype(out_ref.dtype)


def multi_modal_embedding(video, text, wv_t, b_video, text_table, *, batch_tile=8):
    """video: (B, Dv) f32; text: (B, seq) int ids; wv_t: (Dv, 512) f32 (W^T);
    b_video: (512,) f32; text_table: (vocab, 512) f32.  Returns (B, 1024) f32."""
    B, Dv = video.shape
    _, seq = text.shape
    vocab, E = text_table.shape
    assert E == EMBED and wv_t.shape == (Dv, EMBED)

    # Pad the batch to a multiple of the batch tile (sublane-aligned blocks).
    TB = batch_tile
    B_pad = ((B + TB - 1) // TB) * TB
    if B_pad != B:
        video = jnp.pad(video, ((0, B_pad - B), (0, 0)))
        text = jnp.pad(text, ((0, B_pad - B), (0, 0)))  # pad id 0: valid row, sliced off

    text = text.astype(jnp.int32)
    bv2d = b_video.reshape(1, EMBED)

    grid_spec = pltpu.PrefetchScalarGridSpec(
        num_scalar_prefetch=1,                # token ids -> SMEM
        grid=(B_pad // TB,),                  # batch tiles; "parallel" for megacore
        in_specs=[
            pl.BlockSpec((TB, Dv), lambda b, ids: (b, 0)),       # video tile
            pl.BlockSpec((Dv, EMBED), lambda b, ids: (0, 0)),    # W^T (resident)
            pl.BlockSpec((1, EMBED), lambda b, ids: (0, 0)),     # bias (resident)
            pl.BlockSpec(memory_space=pl.ANY),                   # table stays in HBM
        ],
        out_specs=pl.BlockSpec((TB, 2 * EMBED), lambda b, ids: (b, 0)),
        scratch_shapes=[
            pltpu.VMEM((2, seq, EMBED), jnp.float32),            # gather double buffer
            pltpu.SemaphoreType.DMA((2, seq)),
        ],
    )

    out = pl.pallas_call(
        _mm_embed_kernel,
        out_shape=jax.ShapeDtypeStruct((B_pad, 2 * EMBED), jnp.float32),
        grid_spec=grid_spec,
        compiler_params=pltpu.CompilerParams(
            dimension_semantics=("parallel",),
        ),
    )(text, video, wv_t, bv2d, text_table)
    return out[:B]


if __name__ == "__main__":
    key = jax.random.PRNGKey(0)
    k_v, k_t, k_w, k_b, k_e = jax.random.split(key, 5)

    B = 2          # batch
    video_dim = 32
    text_dim = 16  # vocab size
    seq = 8        # tokens per bag (one bag per batch row, no offsets)

    video = jax.random.normal(k_v, (B, video_dim), dtype=jnp.float32)
    text = jax.random.randint(k_t, (B, seq), 0, text_dim, dtype=jnp.int32)

    # Parameters. The Linear weight is kept pre-transposed as (Dv, 512) so no
    # wrapper-side transpose pass is ever emitted (wv_t == W^T of nn.Linear).
    wv_t = jax.random.normal(k_w, (video_dim, EMBED), dtype=jnp.float32) * 0.02
    b_video = jax.random.normal(k_b, (EMBED,), dtype=jnp.float32) * 0.02
    text_table = jax.random.normal(k_e, (text_dim, EMBED), dtype=jnp.float32) * 0.02

    out = multi_modal_embedding(video, text, wv_t, b_video, text_table)
    out = jax.block_until_ready(out)

    # Pure-JAX reference.
    ref_vid = video @ wv_t + b_video
    ref_txt = jnp.mean(text_table[text], axis=1)   # EmbeddingBag(mode='mean'), 2D input
    ref = jnp.concatenate([ref_vid, ref_txt], axis=-1)

    assert out.shape == (B, 2 * EMBED)
    assert jnp.allclose(out, ref, atol=1e-4, rtol=1e-4)

    print("KERNEL_OK")
</pallas_src>

<mosaic_0001>
module attributes {stable_mosaic.version = 11 : i64} {
  func.func @_mm_embed_kernel(%arg0: i32, %arg1: memref<8x8xi32, #tpu.memory_space<smem>>, %arg2: memref<8x32xf32, #tpu.memory_space<vmem>>, %arg3: memref<32x512xf32, #tpu.memory_space<vmem>>, %arg4: memref<1x512xf32, #tpu.memory_space<vmem>>, %arg5: memref<16x512xf32, #tpu.memory_space<any>>, %arg6: memref<8x1024xf32, #tpu.memory_space<vmem>>, %arg7: memref<2x8x512xf32, #tpu.memory_space<vmem>>, %arg8: memref<2x8x!tpu.dma_semaphore, #tpu.memory_space<semaphore_mem>>) attributes {dimension_semantics = [#tpu.dimension_semantics<parallel>], iteration_bounds = array<i64: 1>, scalar_prefetch = 1 : i64, scratch_operands = 2 : i64, tpu.core_type = #tpu.core_type<tc>, window_params = [{transform_indices = @transform_0, window_bounds = array<i64: 8, 32>}, {pipeline_mode = #tpu.pipeline_mode<synchronous>, transform_indices = @transform_1, window_bounds = array<i64: 32, 512>}, {pipeline_mode = #tpu.pipeline_mode<synchronous>, transform_indices = @transform_2, window_bounds = array<i64: 1, 512>}, {}, {transform_indices = @transform_4, window_bounds = array<i64: 8, 1024>}]} {
    %c0 = arith.constant 0 : index
    %c0_0 = arith.constant 0 : index
    %0 = vector.load %arg2[%c0, %c0_0] : memref<8x32xf32, #tpu.memory_space<vmem>>, vector<8x32xf32>
    %c0_1 = arith.constant 0 : index
    %c0_2 = arith.constant 0 : index
    %1 = vector.load %arg3[%c0_1, %c0_2] : memref<32x512xf32, #tpu.memory_space<vmem>>, vector<32x512xf32>
    %cst = arith.constant dense<0.000000e+00> : vector<8x512xf32>
    %2 = tpu.matmul %0, %1, %cst {dimension_numbers = #tpu.dot_dimension_numbers<[1], [0], [0], [1], [0, 0, 1, 1], [], []>} : vector<8x32xf32>, vector<32x512xf32>, vector<8x512xf32> -> vector<8x512xf32>
    %c0_3 = arith.constant 0 : index
    %c0_4 = arith.constant 0 : index
    %3 = vector.load %arg4[%c0_3, %c0_4] : memref<1x512xf32, #tpu.memory_space<vmem>>, vector<1x512xf32>
    %4 = vector.broadcast %3 : vector<1x512xf32> to vector<8x512xf32>
    %5 = arith.addf %2, %4 : vector<8x512xf32>
    %c0_5 = arith.constant 0 : index
    %c0_6 = arith.constant 0 : index
    %6 = vector.load %arg6[%c0_5, %c0_6] : memref<8x1024xf32, #tpu.memory_space<vmem>>, vector<8x512xf32>
    tpu.vector_store %arg6[%c0_5, %c0_6], %5 {strides = array<i32>} : memref<8x1024xf32, #tpu.memory_space<vmem>>, vector<8x512xf32>,
    %c8_i32 = arith.constant 8 : i32
    %7 = arith.muli %arg0, %c8_i32 : i32
    %c0_i32 = arith.constant 0 : i32
    %8 = arith.addi %7, %c0_i32 : i32
    %9 = arith.index_cast %8 : i32 to index
    %c0_7 = arith.constant 0 : index
    %10 = memref.load %arg1[%9, %c0_7] : memref<8x8xi32, #tpu.memory_space<smem>>
    %c0_i32_8 = arith.constant 0 : i32
    %c0_i32_9 = arith.constant 0 : i32
    %c0_i32_10 = arith.constant 0 : i32
    %c0_i32_11 = arith.constant 0 : i32
    %11 = tpu.memref_slice %arg5[%10, %c0_i32_11] : memref<16x512xf32, #tpu.memory_space<any>> -> memref<1x512xf32, #tpu.memory_space<any>>
    %c0_i32_12 = arith.constant 0 : i32
    %c0_i32_13 = arith.constant 0 : i32
    %12 = tpu.memref_slice %arg7[%c0_i32_8, %c0_i32_12, %c0_i32_13] : memref<2x8x512xf32, #tpu.memory_space<vmem>> -> memref<1x1x512xf32, #tpu.memory_space<vmem>>
    %13 = tpu.memref_squeeze %12 : memref<1x1x512xf32, #tpu.memory_space<vmem>> -> memref<1x512xf32, #tpu.memory_space<vmem>>
    %14 = tpu.memref_slice %arg8[%c0_i32_9, %c0_i32_10] : memref<2x8x!tpu.dma_semaphore, #tpu.memory_space<semaphore_mem>> -> memref<1x1x!tpu.dma_semaphore, #tpu.memory_space<semaphore_mem>>
    %15 = tpu.memref_squeeze %14 : memref<1x1x!tpu.dma_semaphore, #tpu.memory_space<semaphore_mem>> -> memref<!tpu.dma_semaphore, #tpu.memory_space<semaphore_mem>>
    tpu.enqueue_dma source(%11 : memref<1x512xf32, #tpu.memory_space<any>>) target(%13 : memref<1x512xf32, #tpu.memory_space<vmem>>) target_semaphore(%15 : memref<!tpu.dma_semaphore, #tpu.memory_space<semaphore_mem>>)
    %16 = arith.index_cast %8 : i32 to index
    %c1 = arith.constant 1 : index
    %17 = memref.load %arg1[%16, %c1] : memref<8x8xi32, #tpu.memory_space<smem>>
    %c0_i32_14 = arith.constant 0 : i32
    %c0_i32_15 = arith.constant 0 : i32
    %c1_i32 = arith.constant 1 : i32
    %c0_i32_16 = arith.constant 0 : i32
    %18 = tpu.memref_slice %arg5[%17, %c0_i32_16] : memref<16x512xf32, #tpu.memory_space<any>> -> memref<1x512xf32, #tpu.memory_space<any>>
    %c1_i32_17 = arith.constant 1 : i32
    %c0_i32_18 = arith.constant 0 : i32
    %19 = tpu.memref_slice %arg7[%c0_i32_14, %c1_i32_17, %c0_i32_18] : memref<2x8x512xf32, #tpu.memory_space<vmem>> -> memref<1x1x512xf32, #tpu.memory_space<vmem>>
    %20 = tpu.memref_squeeze %19 : memref<1x1x512xf32, #tpu.memory_space<vmem>> -> memref<1x512xf32, #tpu.memory_space<vmem>>
    %21 = tpu.memref_slice %arg8[%c0_i32_15, %c1_i32] : memref<2x8x!tpu.dma_semaphore, #tpu.memory_space<semaphore_mem>> -> memref<1x1x!tpu.dma_semaphore, #tpu.memory_space<semaphore_mem>>
    %22 = tpu.memref_squeeze %21 : memref<1x1x!tpu.dma_semaphore, #tpu.memory_space<semaphore_mem>> -> memref<!tpu.dma_semaphore, #tpu.memory_space<semaphore_mem>>
    tpu.enqueue_dma source(%18 : memref<1x512xf32, #tpu.memory_space<any>>) target(%20 : memref<1x512xf32, #tpu.memory_space<vmem>>) target_semaphore(%22 : memref<!tpu.dma_semaphore, #tpu.memory_space<semaphore_mem>>)
    %23 = arith.index_cast %8 : i32 to index
    %c2 = arith.constant 2 : index
    %24 = memref.load %arg1[%23, %c2] : memref<8x8xi32, #tpu.memory_space<smem>>
    %c0_i32_19 = arith.constant 0 : i32
    %c0_i32_20 = arith.constant 0 : i32
    %c2_i32 = arith.constant 2 : i32
    %c0_i32_21 = arith.constant 0 : i32
    %25 = tpu.memref_slice %arg5[%24, %c0_i32_21] : memref<16x512xf32, #tpu.memory_space<any>> -> memref<1x512xf32, #tpu.memory_space<any>>
    %c2_i32_22 = arith.constant 2 : i32
    %c0_i32_23 = arith.constant 0 : i32
    %26 = tpu.memref_slice %arg7[%c0_i32_19, %c2_i32_22, %c0_i32_23] : memref<2x8x512xf32, #tpu.memory_space<vmem>> -> memref<1x1x512xf32, #tpu.memory_space<vmem>>
    %27 = tpu.memref_squeeze %26 : memref<1x1x512xf32, #tpu.memory_space<vmem>> -> memref<1x512xf32, #tpu.memory_space<vmem>>
    %28 = tpu.memref_slice %arg8[%c0_i32_20, %c2_i32] : memref<2x8x!tpu.dma_semaphore, #tpu.memory_space<semaphore_mem>> -> memref<1x1x!tpu.dma_semaphore, #tpu.memory_space<semaphore_mem>>
    %29 = tpu.memref_squeeze %28 : memref<1x1x!tpu.dma_semaphore, #tpu.memory_space<semaphore_mem>> -> memref<!tpu.dma_semaphore, #tpu.memory_space<semaphore_mem>>
    tpu.enqueue_dma source(%25 : memref<1x512xf32, #tpu.memory_space<any>>) target(%27 : memref<1x512xf32, #tpu.memory_space<vmem>>) target_semaphore(%29 : memref<!tpu.dma_semaphore, #tpu.memory_space<semaphore_mem>>)
    %30 = arith.index_cast %8 : i32 to index
    %c3 = arith.constant 3 : index
    %31 = memref.load %arg1[%30, %c3] : memref<8x8xi32, #tpu.memory_space<smem>>
    %c0_i32_24 = arith.constant 0 : i32
    %c0_i32_25 = arith.constant 0 : i32
    %c3_i32 = arith.constant 3 : i32
    %c0_i32_26 = arith.constant 0 : i32
    %32 = tpu.memref_slice %arg5[%31, %c0_i32_26] : memref<16x512xf32, #tpu.memory_space<any>> -> memref<1x512xf32, #tpu.memory_space<any>>
    %c3_i32_27 = arith.constant 3 : i32
    %c0_i32_28 = arith.constant 0 : i32
    %33 = tpu.memref_slice %arg7[%c0_i32_24, %c3_i32_27, %c0_i32_28] : memref<2x8x512xf32, #tpu.memory_space<vmem>> -> memref<1x1x512xf32, #tpu.memory_space<vmem>>
    %34 = tpu.memref_squeeze %33 : memref<1x1x512xf32, #tpu.memory_space<vmem>> -> memref<1x512xf32, #tpu.memory_space<vmem>>
    %35 = tpu.memref_slice %arg8[%c0_i32_25, %c3_i32] : memref<2x8x!tpu.dma_semaphore, #tpu.memory_space<semaphore_mem>> -> memref<1x1x!tpu.dma_semaphore, #tpu.memory_space<semaphore_mem>>
    %36 = tpu.memref_squeeze %35 : memref<1x1x!tpu.dma_semaphore, #tpu.memory_space<semaphore_mem>> -> memref<!tpu.dma_semaphore, #tpu.memory_space<semaphore_mem>>
    tpu.enqueue_dma source(%32 : memref<1x512xf32, #tpu.memory_space<any>>) target(%34 : memref<1x512xf32, #tpu.memory_space<vmem>>) target_semaphore(%36 : memref<!tpu.dma_semaphore, #tpu.memory_space<semaphore_mem>>)
    %37 = arith.index_cast %8 : i32 to index
    %c4 = arith.constant 4 : index
    %38 = memref.load %arg1[%37, %c4] : memref<8x8xi32, #tpu.memory_space<smem>>
    %c0_i32_29 = arith.constant 0 : i32
    %c0_i32_30 = arith.constant 0 : i32
    %c4_i32 = arith.constant 4 : i32
    %c0_i32_31 = arith.constant 0 : i32
    %39 = tpu.memref_slice %arg5[%38, %c0_i32_31] : memref<16x512xf32, #tpu.memory_space<any>> -> memref<1x512xf32, #tpu.memory_space<any>>
    %c4_i32_32 = arith.constant 4 : i32
    %c0_i32_33 = arith.constant 0 : i32
    %40 = tpu.memref_slice %arg7[%c0_i32_29, %c4_i32_32, %c0_i32_33] : memref<2x8x512xf32, #tpu.memory_space<vmem>> -> memref<1x1x512xf32, #tpu.memory_space<vmem>>
    %41 = tpu.memref_squeeze %40 : memref<1x1x512xf32, #tpu.memory_space<vmem>> -> memref<1x512xf32, #tpu.memory_space<vmem>>
    %42 = tpu.memref_slice %arg8[%c0_i32_30, %c4_i32] : memref<2x8x!tpu.dma_semaphore, #tpu.memory_space<semaphore_mem>> -> memref<1x1x!tpu.dma_semaphore, #tpu.memory_space<semaphore_mem>>
    %43 = tpu.memref_squeeze %42 : memref<1x1x!tpu.dma_semaphore, #tpu.memory_space<semaphore_mem>> -> memref<!tpu.dma_semaphore, #tpu.memory_space<semaphore_mem>>
    tpu.enqueue_dma source(%39 : memref<1x512xf32, #tpu.memory_space<any>>) target(%41 : memref<1x512xf32, #tpu.memory_space<vmem>>) target_semaphore(%43 : memref<!tpu.dma_semaphore, #tpu.memory_space<semaphore_mem>>)
    %44 = arith.index_cast %8 : i32 to index
    %c5 = arith.constant 5 : index
    %45 = memref.load %arg1[%44, %c5] : memref<8x8xi32, #tpu.memory_space<smem>>
    %c0_i32_34 = arith.constant 0 : i32
    %c0_i32_35 = arith.constant 0 : i32
    %c5_i32 = arith.constant 5 : i32
    %c0_i32_36 = arith.constant 0 : i32
    %46 = tpu.memref_slice %arg5[%45, %c0_i32_36] : memref<16x512xf32, #tpu.memory_space<any>> -> memref<1x512xf32, #tpu.memory_space<any>>
    %c5_i32_37 = arith.constant 5 : i32
    %c0_i32_38 = arith.constant 0 : i32
    %47 = tpu.memref_slice %arg7[%c0_i32_34, %c5_i32_37, %c0_i32_38] : memref<2x8x512xf32, #tpu.memory_space<vmem>> -> memref<1x1x512xf32, #tpu.memory_space<vmem>>
    %48 = tpu.memref_squeeze %47 : memref<1x1x512xf32, #tpu.memory_space<vmem>> -> memref<1x512xf32, #tpu.memory_space<vmem>>
    %49 = tpu.memref_slice %arg8[%c0_i32_35, %c5_i32] : memref<2x8x!tpu.dma_semaphore, #tpu.memory_space<semaphore_mem>> -> memref<1x1x!tpu.dma_semaphore, #tpu.memory_space<semaphore_mem>>
    %50 = tpu.memref_squeeze %49 : memref<1x1x!tpu.dma_semaphore, #tpu.memory_space<semaphore_mem>> -> memref<!tpu.dma_semaphore, #tpu.memory_space<semaphore_mem>>
    tpu.enqueue_dma source(%46 : memref<1x512xf32, #tpu.memory_space<any>>) target(%48 : memref<1x512xf32, #tpu.memory_space<vmem>>) target_semaphore(%50 : memref<!tpu.dma_semaphore, #tpu.memory_space<semaphore_mem>>)
    %51 = arith.index_cast %8 : i32 to index
    %c6 = arith.constant 6 : index
    %52 = memref.load %arg1[%51, %c6] : memref<8x8xi32, #tpu.memory_space<smem>>
    %c0_i32_39 = arith.constant 0 : i32
    %c0_i32_40 = arith.constant 0 : i32
    %c6_i32 = arith.constant 6 : i32
    %c0_i32_41 = arith.constant 0 : i32
    %53 = tpu.memref_slice %arg5[%52, %c0_i32_41] : memref<16x512xf32, #tpu.memory_space<any>> -> memref<1x512xf32, #tpu.memory_space<any>>
    %c6_i32_42 = arith.constant 6 : i32
    %c0_i32_43 = arith.constant 0 : i32
    %54 = tpu.memref_slice %arg7[%c0_i32_39, %c6_i32_42, %c0_i32_43] : memref<2x8x512xf32, #tpu.memory_space<vmem>> -> memref<1x1x512xf32, #tpu.memory_space<vmem>>
    %55 = tpu.memref_squeeze %54 : memref<1x1x512xf32, #tpu.memory_space<vmem>> -> memref<1x512xf32, #tpu.memory_space<vmem>>
    %56 = tpu.memref_slice %arg8[%c0_i32_40, %c6_i32] : memref<2x8x!tpu.dma_semaphore, #tpu.memory_space<semaphore_mem>> -> memref<1x1x!tpu.dma_semaphore, #tpu.memory_space<semaphore_mem>>
    %57 = tpu.memref_squeeze %56 : memref<1x1x!tpu.dma_semaphore, #tpu.memory_space<semaphore_mem>> -> memref<!tpu.dma_semaphore, #tpu.memory_space<semaphore_mem>>
    tpu.enqueue_dma source(%53 : memref<1x512xf32, #tpu.memory_space<any>>) target(%55 : memref<1x512xf32, #tpu.memory_space<vmem>>) target_semaphore(%57 : memref<!tpu.dma_semaphore, #tpu.memory_space<semaphore_mem>>)
    %58 = arith.index_cast %8 : i32 to index
    %c7 = arith.constant 7 : index
    %59 = memref.load %arg1[%58, %c7] : memref<8x8xi32, #tpu.memory_space<smem>>
    %c0_i32_44 = arith.constant 0 : i32
    %c0_i32_45 = arith.constant 0 : i32
    %c7_i32 = arith.constant 7 : i32
    %c0_i32_46 = arith.constant 0 : i32
    %60 = tpu.memref_slice %arg5[%59, %c0_i32_46] : memref<16x512xf32, #tpu.memory_space<any>> -> memref<1x512xf32, #tpu.memory_space<any>>
    %c7_i32_47 = arith.constant 7 : i32
    %c0_i32_48 = arith.constant 0 : i32
    %61 = tpu.memref_slice %arg7[%c0_i32_44, %c7_i32_47, %c0_i32_48] : memref<2x8x512xf32, #tpu.memory_space<vmem>> -> memref<1x1x512xf32, #tpu.memory_space<vmem>>
    %62 = tpu.memref_squeeze %61 : memref<1x1x512xf32, #tpu.memory_space<vmem>> -> memref<1x512xf32, #tpu.memory_space<vmem>>
    %63 = tpu.memref_slice %arg8[%c0_i32_45, %c7_i32] : memref<2x8x!tpu.dma_semaphore, #tpu.memory_space<semaphore_mem>> -> memref<1x1x!tpu.dma_semaphore, #tpu.memory_space<semaphore_mem>>
    %64 = tpu.memref_squeeze %63 : memref<1x1x!tpu.dma_semaphore, #tpu.memory_space<semaphore_mem>> -> memref<!tpu.dma_semaphore, #tpu.memory_space<semaphore_mem>>
    tpu.enqueue_dma source(%60 : memref<1x512xf32, #tpu.memory_space<any>>) target(%62 : memref<1x512xf32, #tpu.memory_space<vmem>>) target_semaphore(%64 : memref<!tpu.dma_semaphore, #tpu.memory_space<semaphore_mem>>)
    %c8_i32_49 = arith.constant 8 : i32
    %65 = arith.muli %arg0, %c8_i32_49 : i32
    %c1_i32_50 = arith.constant 1 : i32
    %66 = arith.addi %65, %c1_i32_50 : i32
    %67 = arith.index_cast %66 : i32 to index
    %c0_51 = arith.constant 0 : index
    %68 = memref.load %arg1[%67, %c0_51] : memref<8x8xi32, #tpu.memory_space<smem>>
    %c1_i32_52 = arith.constant 1 : i32
    %c1_i32_53 = arith.constant 1 : i32
    %c0_i32_54 = arith.constant 0 : i32
    %c0_i32_55 = arith.constant 0 : i32
    %69 = tpu.memref_slice %arg5[%68, %c0_i32_55] : memref<16x512xf32, #tpu.memory_space<any>> -> memref<1x512xf32, #tpu.memory_space<any>>
    %c0_i32_56 = arith.constant 0 : i32
    %c0_i32_57 = arith.constant 0 : i32
    %70 = tpu.memref_slice %arg7[%c1_i32_52, %c0_i32_56, %c0_i32_57] : memref<2x8x512xf32, #tpu.memory_space<vmem>> -> memref<1x1x512xf32, #tpu.memory_space<vmem>>
    %71 = tpu.memref_squeeze %70 : memref<1x1x512xf32, #tpu.memory_space<vmem>> -> memref<1x512xf32, #tpu.memory_space<vmem>>
    %72 = tpu.memref_slice %arg8[%c1_i32_53, %c0_i32_54] : memref<2x8x!tpu.dma_semaphore, #tpu.memory_space<semaphore_mem>> -> memref<1x1x!tpu.dma_semaphore, #tpu.memory_space<semaphore_mem>>
    %73 = tpu.memref_squeeze %72 : memref<1x1x!tpu.dma_semaphore, #tpu.memory_space<semaphore_mem>> -> memref<!tpu.dma_semaphore, #tpu.memory_space<semaphore_mem>>
    tpu.enqueue_dma source(%69 : memref<1x512xf32, #tpu.memory_space<any>>) target(%71 : memref<1x512xf32, #tpu.memory_space<vmem>>) target_semaphore(%73 : memref<!tpu.dma_semaphore, #tpu.memory_space<semaphore_mem>>)
    %74 = arith.index_cast %66 : i32 to index
    %c1_58 = arith.constant 1 : index
    %75 = memref.load %arg1[%74, %c1_58] : memref<8x8xi32, #tpu.memory_space<smem>>
    %c1_i32_59 = arith.constant 1 : i32
    %c1_i32_60 = arith.constant 1 : i32
    %c1_i32_61 = arith.constant 1 : i32
    %c0_i32_62 = arith.constant 0 : i32
    %76 = tpu.memref_slice %arg5[%75, %c0_i32_62] : memref<16x512xf32, #tpu.memory_space<any>> -> memref<1x512xf32, #tpu.memory_space<any>>
    %c1_i32_63 = arith.constant 1 : i32
    %c0_i32_64 = arith.constant 0 : i32
    %77 = tpu.memref_slice %arg7[%c1_i32_59, %c1_i32_63, %c0_i32_64] : memref<2x8x512xf32, #tpu.memory_space<vmem>> -> memref<1x1x512xf32, #tpu.memory_space<vmem>>
    %78 = tpu.memref_squeeze %77 : memref<1x1x512xf32, #tpu.memory_space<vmem>> -> memref<1x512xf32, #tpu.memory_space<vmem>>
    %79 = tpu.memref_slice %arg8[%c1_i32_60, %c1_i32_61] : memref<2x8x!tpu.dma_semaphore, #tpu.memory_space<semaphore_mem>> -> memref<1x1x!tpu.dma_semaphore, #tpu.memory_space<semaphore_mem>>
    %80 = tpu.memref_squeeze %79 : memref<1x1x!tpu.dma_semaphore, #tpu.memory_space<semaphore_mem>> -> memref<!tpu.dma_semaphore, #tpu.memory_space<semaphore_mem>>
    tpu.enqueue_dma source(%76 : memref<1x512xf32, #tpu.memory_space<any>>) target(%78 : memref<1x512xf32, #tpu.memory_space<vmem>>) target_semaphore(%80 : memref<!tpu.dma_semaphore, #tpu.memory_space<semaphore_mem>>)
    %81 = arith.index_cast %66 : i32 to index
    %c2_65 = arith.constant 2 : index
    %82 = memref.load %arg1[%81, %c2_65] : memref<8x8xi32, #tpu.memory_space<smem>>
    %c1_i32_66 = arith.constant 1 : i32
    %c1_i32_67 = arith.constant 1 : i32
    %c2_i32_68 = arith.constant 2 : i32
    %c0_i32_69 = arith.constant 0 : i32
    %83 = tpu.memref_slice %arg5[%82, %c0_i32_69] : memref<16x512xf32, #tpu.memory_space<any>> -> memref<1x512xf32, #tpu.memory_space<any>>
    %c2_i32_70 = arith.constant 2 : i32
    %c0_i32_71 = arith.constant 0 : i32
    %84 = tpu.memref_slice %arg7[%c1_i32_66, %c2_i32_70, %c0_i32_71] : memref<2x8x512xf32, #tpu.memory_space<vmem>> -> memref<1x1x512xf32, #tpu.memory_space<vmem>>
    %85 = tpu.memref_squeeze %84 : memref<1x1x512xf32, #tpu.memory_space<vmem>> -> memref<1x512xf32, #tpu.memory_space<vmem>>
    %86 = tpu.memref_slice %arg8[%c1_i32_67, %c2_i32_68] : memref<2x8x!tpu.dma_semaphore, #tpu.memory_space<semaphore_mem>> -> memref<1x1x!tpu.dma_semaphore, #tpu.memory_space<semaphore_mem>>
    %87 = tpu.memref_squeeze %86 : memref<1x1x!tpu.dma_semaphore, #tpu.memory_space<semaphore_mem>> -> memref<!tpu.dma_semaphore, #tpu.memory_space<semaphore_mem>>
    tpu.enqueue_dma source(%83 : memref<1x512xf32, #tpu.memory_space<any>>) target(%85 : memref<1x512xf32, #tpu.memory_space<vmem>>) target_semaphore(%87 : memref<!tpu.dma_semaphore, #tpu.memory_space<semaphore_mem>>)
    %88 = arith.index_cast %66 : i32 to index
    %c3_72 = arith.constant 3 : index
    %89 = memref.load %arg1[%88, %c3_72] : memref<8x8xi32, #tpu.memory_space<smem>>
    %c1_i32_73 = arith.constant 1 : i32
    %c1_i32_74 = arith.constant 1 : i32
    %c3_i32_75 = arith.constant 3 : i32
    %c0_i32_76 = arith.constant 0 : i32
    %90 = tpu.memref_slice %arg5[%89, %c0_i32_76] : memref<16x512xf32, #tpu.memory_space<any>> -> memref<1x512xf32, #tpu.memory_space<any>>
    %c3_i32_77 = arith.constant 3 : i32
    %c0_i32_78 = arith.constant 0 : i32
    %91 = tpu.memref_slice %arg7[%c1_i32_73, %c3_i32_77, %c0_i32_78] : memref<2x8x512xf32, #tpu.memory_space<vmem>> -> memref<1x1x512xf32, #tpu.memory_space<vmem>>
    %92 = tpu.memref_squeeze %91 : memref<1x1x512xf32, #tpu.memory_space<vmem>> -> memref<1x512xf32, #tpu.memory_space<vmem>>
    %93 = tpu.memref_slice %arg8[%c1_i32_74, %c3_i32_75] : memref<2x8x!tpu.dma_semaphore, #tpu.memory_space<semaphore_mem>> -> memref<1x1x!tpu.dma_semaphore, #tpu.memory_space<semaphore_mem>>
    %94 = tpu.memref_squeeze %93 : memref<1x1x!tpu.dma_semaphore, #tpu.memory_space<semaphore_mem>> -> memref<!tpu.dma_semaphore, #tpu.memory_space<semaphore_mem>>
    tpu.enqueue_dma source(%90 : memref<1x512xf32, #tpu.memory_space<any>>) target(%92 : memref<1x512xf32, #tpu.memory_space<vmem>>) target_semaphore(%94 : memref<!tpu.dma_semaphore, #tpu.memory_space<semaphore_mem>>)
    %95 = arith.index_cast %66 : i32 to index
    %c4_79 = arith.constant 4 : index
    %96 = memref.load %arg1[%95, %c4_79] : memref<8x8xi32, #tpu.memory_space<smem>>
    %c1_i32_80 = arith.constant 1 : i32
    %c1_i32_81 = arith.constant 1 : i32
    %c4_i32_82 = arith.constant 4 : i32
    %c0_i32_83 = arith.constant 0 : i32
    %97 = tpu.memref_slice %arg5[%96, %c0_i32_83] : memref<16x512xf32, #tpu.memory_space<any>> -> memref<1x512xf32, #tpu.memory_space<any>>
    %c4_i32_84 = arith.constant 4 : i32
    %c0_i32_85 = arith.constant 0 : i32
    %98 = tpu.memref_slice %arg7[%c1_i32_80, %c4_i32_84, %c0_i32_85] : memref<2x8x512xf32, #tpu.memory_space<vmem>> -> memref<1x1x512xf32, #tpu.memory_space<vmem>>
    %99 = tpu.memref_squeeze %98 : memref<1x1x512xf32, #tpu.memory_space<vmem>> -> memref<1x512xf32, #tpu.memory_space<vmem>>
    %100 = tpu.memref_slice %arg8[%c1_i32_81, %c4_i32_82] : memref<2x8x!tpu.dma_semaphore, #tpu.memory_space<semaphore_mem>> -> memref<1x1x!tpu.dma_semaphore, #tpu.memory_space<semaphore_mem>>
    %101 = tpu.memref_squeeze %100 : memref<1x1x!tpu.dma_semaphore, #tpu.memory_space<semaphore_mem>> -> memref<!tpu.dma_semaphore, #tpu.memory_space<semaphore_mem>>
    tpu.enqueue_dma source(%97 : memref<1x512xf32, #tpu.memory_space<any>>) target(%99 : memref<1x512xf32, #tpu.memory_space<vmem>>) target_semaphore(%101 : memref<!tpu.dma_semaphore, #tpu.memory_space<semaphore_mem>>)
    %102 = arith.index_cast %66 : i32 to index
    %c5_86 = arith.constant 5 : index
    %103 = memref.load %arg1[%102, %c5_86] : memref<8x8xi32, #tpu.memory_space<smem>>
    %c1_i32_87 = arith.constant 1 : i32
    %c1_i32_88 = arith.constant 1 : i32
    %c5_i32_89 = arith.constant 5 : i32
    %c0_i32_90 = arith.constant 0 : i32
    %104 = tpu.memref_slice %arg5[%103, %c0_i32_90] : memref<16x512xf32, #tpu.memory_space<any>> -> memref<1x512xf32, #tpu.memory_space<any>>
    %c5_i32_91 = arith.constant 5 : i32
    %c0_i32_92 = arith.constant 0 : i32
    %105 = tpu.memref_slice %arg7[%c1_i32_87, %c5_i32_91, %c0_i32_92] : memref<2x8x512xf32, #tpu.memory_space<vmem>> -> memref<1x1x512xf32, #tpu.memory_space<vmem>>
    %106 = tpu.memref_squeeze %105 : memref<1x1x512xf32, #tpu.memory_space<vmem>> -> memref<1x512xf32, #tpu.memory_space<vmem>>
    %107 = tpu.memref_slice %arg8[%c1_i32_88, %c5_i32_89] : memref<2x8x!tpu.dma_semaphore, #tpu.memory_space<semaphore_mem>> -> memref<1x1x!tpu.dma_semaphore, #tpu.memory_space<semaphore_mem>>
    %108 = tpu.memref_squeeze %107 : memref<1x1x!tpu.dma_semaphore, #tpu.memory_space<semaphore_mem>> -> memref<!tpu.dma_semaphore, #tpu.memory_space<semaphore_mem>>
    tpu.enqueue_dma source(%104 : memref<1x512xf32, #tpu.memory_space<any>>) target(%106 : memref<1x512xf32, #tpu.memory_space<vmem>>) target_semaphore(%108 : memref<!tpu.dma_semaphore, #tpu.memory_space<semaphore_mem>>)
    %109 = arith.index_cast %66 : i32 to index
    %c6_93 = arith.constant 6 : index
    %110 = memref.load %arg1[%109, %c6_93] : memref<8x8xi32, #tpu.memory_space<smem>>
    %c1_i32_94 = arith.constant 1 : i32
    %c1_i32_95 = arith.constant 1 : i32
    %c6_i32_96 = arith.constant 6 : i32
    %c0_i32_97 = arith.constant 0 : i32
    %111 = tpu.memref_slice %arg5[%110, %c0_i32_97] : memref<16x512xf32, #tpu.memory_space<any>> -> memref<1x512xf32, #tpu.memory_space<any>>
    %c6_i32_98 = arith.constant 6 : i32
    %c0_i32_99 = arith.constant 0 : i32
    %112 = tpu.memref_slice %arg7[%c1_i32_94, %c6_i32_98, %c0_i32_99] : memref<2x8x512xf32, #tpu.memory_space<vmem>> -> memref<1x1x512xf32, #tpu.memory_space<vmem>>
    %113 = tpu.memref_squeeze %112 : memref<1x1x512xf32, #tpu.memory_space<vmem>> -> memref<1x512xf32, #tpu.memory_space<vmem>>
    %114 = tpu.memref_slice %arg8[%c1_i32_95, %c6_i32_96] : memref<2x8x!tpu.dma_semaphore, #tpu.memory_space<semaphore_mem>> -> memref<1x1x!tpu.dma_semaphore, #tpu.memory_space<semaphore_mem>>
    %115 = tpu.memref_squeeze %114 : memref<1x1x!tpu.dma_semaphore, #tpu.memory_space<semaphore_mem>> -> memref<!tpu.dma_semaphore, #tpu.memory_space<semaphore_mem>>
    tpu.enqueue_dma source(%111 : memref<1x512xf32, #tpu.memory_space<any>>) target(%113 : memref<1x512xf32, #tpu.memory_space<vmem>>) target_semaphore(%115 : memref<!tpu.dma_semaphore, #tpu.memory_space<semaphore_mem>>)
    %116 = arith.index_cast %66 : i32 to index
    %c7_100 = arith.constant 7 : index
    %117 = memref.load %arg1[%116, %c7_100] : memref<8x8xi32, #tpu.memory_space<smem>>
    %c1_i32_101 = arith.constant 1 : i32
    %c1_i32_102 = arith.constant 1 : i32
    %c7_i32_103 = arith.constant 7 : i32
    %c0_i32_104 = arith.constant 0 : i32
    %118 = tpu.memref_slice %arg5[%117, %c0_i32_104] : memref<16x512xf32, #tpu.memory_space<any>> -> memref<1x512xf32, #tpu.memory_space<any>>
    %c7_i32_105 = arith.constant 7 : i32
    %c0_i32_106 = arith.constant 0 : i32
    %119 = tpu.memref_slice %arg7[%c1_i32_101, %c7_i32_105, %c0_i32_106] : memref<2x8x512xf32, #tpu.memory_space<vmem>> -> memref<1x1x512xf32, #tpu.memory_space<vmem>>
    %120 = tpu.memref_squeeze %119 : memref<1x1x512xf32, #tpu.memory_space<vmem>> -> memref<1x512xf32, #tpu.memory_space<vmem>>
    %121 = tpu.memref_slice %arg8[%c1_i32_102, %c7_i32_103] : memref<2x8x!tpu.dma_semaphore, #tpu.memory_space<semaphore_mem>> -> memref<1x1x!tpu.dma_semaphore, #tpu.memory_space<semaphore_mem>>
    %122 = tpu.memref_squeeze %121 : memref<1x1x!tpu.dma_semaphore, #tpu.memory_space<semaphore_mem>> -> memref<!tpu.dma_semaphore, #tpu.memory_space<semaphore_mem>>
    tpu.enqueue_dma source(%118 : memref<1x512xf32, #tpu.memory_space<any>>) target(%120 : memref<1x512xf32, #tpu.memory_space<vmem>>) target_semaphore(%122 : memref<!tpu.dma_semaphore, #tpu.memory_space<semaphore_mem>>)
    %c0_i32_107 = arith.constant 0 : i32
    %c0_i32_108 = arith.constant 0 : i32
    %c0_i32_109 = arith.constant 0 : i32
    %c0_i32_110 = arith.constant 0 : i32
    %c0_i32_111 = arith.constant 0 : i32
    %123 = tpu.memref_slice %arg5[%c0_i32_110, %c0_i32_111] : memref<16x512xf32, #tpu.memory_space<any>> -> memref<1x512xf32, #tpu.memory_space<any>>
    %c0_i32_112 = arith.constant 0 : i32
    %c0_i32_113 = arith.constant 0 : i32
    %124 = tpu.memref_slice %arg7[%c0_i32_107, %c0_i32_112, %c0_i32_113] : memref<2x8x512xf32, #tpu.memory_space<vmem>> -> memref<1x1x512xf32, #tpu.memory_space<vmem>>
    %125 = tpu.memref_squeeze %124 : memref<1x1x512xf32, #tpu.memory_space<vmem>> -> memref<1x512xf32, #tpu.memory_space<vmem>>
    %126 = tpu.memref_slice %arg8[%c0_i32_108, %c0_i32_109] : memref<2x8x!tpu.dma_semaphore, #tpu.memory_space<semaphore_mem>> -> memref<1x1x!tpu.dma_semaphore, #tpu.memory_space<semaphore_mem>>
    %127 = tpu.memref_squeeze %126 : memref<1x1x!tpu.dma_semaphore, #tpu.memory_space<semaphore_mem>> -> memref<!tpu.dma_semaphore, #tpu.memory_space<semaphore_mem>>
    tpu.wait_dma2 semaphore(%127 : memref<!tpu.dma_semaphore, #tpu.memory_space<semaphore_mem>>) src(%123 : memref<1x512xf32, #tpu.memory_space<any>>) dst(%125 : memref<1x512xf32, #tpu.memory_space<vmem>>)
    %c0_i32_114 = arith.constant 0 : i32
    %c0_i32_115 = arith.constant 0 : i32
    %c1_i32_116 = arith.constant 1 : i32
    %c0_i32_117 = arith.constant 0 : i32
    %c0_i32_118 = arith.constant 0 : i32
    %128 = tpu.memref_slice %arg5[%c0_i32_117, %c0_i32_118] : memref<16x512xf32, #tpu.memory_space<any>> -> memref<1x512xf32, #tpu.memory_space<any>>
    %c1_i32_119 = arith.constant 1 : i32
    %c0_i32_120 = arith.constant 0 : i32
    %129 = tpu.memref_slice %arg7[%c0_i32_114, %c1_i32_119, %c0_i32_120] : memref<2x8x512xf32, #tpu.memory_space<vmem>> -> memref<1x1x512xf32, #tpu.memory_space<vmem>>
    %130 = tpu.memref_squeeze %129 : memref<1x1x512xf32, #tpu.memory_space<vmem>> -> memref<1x512xf32, #tpu.memory_space<vmem>>
    %131 = tpu.memref_slice %arg8[%c0_i32_115, %c1_i32_116] : memref<2x8x!tpu.dma_semaphore, #tpu.memory_space<semaphore_mem>> -> memref<1x1x!tpu.dma_semaphore, #tpu.memory_space<semaphore_mem>>
    %132 = tpu.memref_squeeze %131 : memref<1x1x!tpu.dma_semaphore, #tpu.memory_space<semaphore_mem>> -> memref<!tpu.dma_semaphore, #tpu.memory_space<semaphore_mem>>
    tpu.wait_dma2 semaphore(%132 : memref<!tpu.dma_semaphore, #tpu.memory_space<semaphore_mem>>) src(%128 : memref<1x512xf32, #tpu.memory_space<any>>) dst(%130 : memref<1x512xf32, #tpu.memory_space<vmem>>)
    %c0_i32_121 = arith.constant 0 : i32
    %c0_i32_122 = arith.constant 0 : i32
    %c2_i32_123 = arith.constant 2 : i32
    %c0_i32_124 = arith.constant 0 : i32
    %c0_i32_125 = arith.constant 0 : i32
    %133 = tpu.memref_slice %arg5[%c0_i32_124, %c0_i32_125] : memref<16x512xf32, #tpu.memory_space<any>> -> memref<1x512xf32, #tpu.memory_space<any>>
    %c2_i32_126 = arith.constant 2 : i32
    %c0_i32_127 = arith.constant 0 : i32
    %134 = tpu.memref_slice %arg7[%c0_i32_121, %c2_i32_126, %c0_i32_127] : memref<2x8x512xf32, #tpu.memory_space<vmem>> -> memref<1x1x512xf32, #tpu.memory_space<vmem>>
    %135 = tpu.memref_squeeze %134 : memref<1x1x512xf32, #tpu.memory_space<vmem>> -> memref<1x512xf32, #tpu.memory_space<vmem>>
    %136 = tpu.memref_slice %arg8[%c0_i32_122, %c2_i32_123] : memref<2x8x!tpu.dma_semaphore, #tpu.memory_space<semaphore_mem>> -> memref<1x1x!tpu.dma_semaphore, #tpu.memory_space<semaphore_mem>>
    %137 = tpu.memref_squeeze %136 : memref<1x1x!tpu.dma_semaphore, #tpu.memory_space<semaphore_mem>> -> memref<!tpu.dma_semaphore, #tpu.memory_space<semaphore_mem>>
    tpu.wait_dma2 semaphore(%137 : memref<!tpu.dma_semaphore, #tpu.memory_space<semaphore_mem>>) src(%133 : memref<1x512xf32, #tpu.memory_space<any>>) dst(%135 : memref<1x512xf32, #tpu.memory_space<vmem>>)
    %c0_i32_128 = arith.constant 0 : i32
    %c0_i32_129 = arith.constant 0 : i32
    %c3_i32_130 = arith.constant 3 : i32
    %c0_i32_131 = arith.constant 0 : i32
    %c0_i32_132 = arith.constant 0 : i32
    %138 = tpu.memref_slice %arg5[%c0_i32_131, %c0_i32_132] : memref<16x512xf32, #tpu.memory_space<any>> -> memref<1x512xf32, #tpu.memory_space<any>>
    %c3_i32_133 = arith.constant 3 : i32
    %c0_i32_134 = arith.constant 0 : i32
    %139 = tpu.memref_slice %arg7[%c0_i32_128, %c3_i32_133, %c0_i32_134] : memref<2x8x512xf32, #tpu.memory_space<vmem>> -> memref<1x1x512xf32, #tpu.memory_space<vmem>>
    %140 = tpu.memref_squeeze %139 : memref<1x1x512xf32, #tpu.memory_space<vmem>> -> memref<1x512xf32, #tpu.memory_space<vmem>>
    %141 = tpu.memref_slice %arg8[%c0_i32_129, %c3_i32_130] : memref<2x8x!tpu.dma_semaphore, #tpu.memory_space<semaphore_mem>> -> memref<1x1x!tpu.dma_semaphore, #tpu.memory_space<semaphore_mem>>
    %142 = tpu.memref_squeeze %141 : memref<1x1x!tpu.dma_semaphore, #tpu.memory_space<semaphore_mem>> -> memref<!tpu.dma_semaphore, #tpu.memory_space<semaphore_mem>>
    tpu.wait_dma2 semaphore(%142 : memref<!tpu.dma_semaphore, #tpu.memory_space<semaphore_mem>>) src(%138 : memref<1x512xf32, #tpu.memory_space<any>>) dst(%140 : memref<1x512xf32, #tpu.memory_space<vmem>>)
    %c0_i32_135 = arith.constant 0 : i32
    %c0_i32_136 = arith.constant 0 : i32
    %c4_i32_137 = arith.constant 4 : i32
    %c0_i32_138 = arith.constant 0 : i32
    %c0_i32_139 = arith.constant 0 : i32
    %143 = tpu.memref_slice %arg5[%c0_i32_138, %c0_i32_139] : memref<16x512xf32, #tpu.memory_space<any>> -> memref<1x512xf32, #tpu.memory_space<any>>
    %c4_i32_140 = arith.constant 4 : i32
    %c0_i32_141 = arith.constant 0 : i32
    %144 = tpu.memref_slice %arg7[%c0_i32_135, %c4_i32_140, %c0_i32_141] : memref<2x8x512xf32, #tpu.memory_space<vmem>> -> memref<1x1x512xf32, #tpu.memory_space<vmem>>
    %145 = tpu.memref_squeeze %144 : memref<1x1x512xf32, #tpu.memory_space<vmem>> -> memref<1x512xf32, #tpu.memory_space<vmem>>
    %146 = tpu.memref_slice %arg8[%c0_i32_136, %c4_i32_137] : memref<2x8x!tpu.dma_semaphore, #tpu.memory_space<semaphore_mem>> -> memref<1x1x!tpu.dma_semaphore, #tpu.memory_space<semaphore_mem>>
    %147 = tpu.memref_squeeze %146 : memref<1x1x!tpu.dma_semaphore, #tpu.memory_space<semaphore_mem>> -> memref<!tpu.dma_semaphore, #tpu.memory_space<semaphore_mem>>
    tpu.wait_dma2 semaphore(%147 : memref<!tpu.dma_semaphore, #tpu.memory_space<semaphore_mem>>) src(%143 : memref<1x512xf32, #tpu.memory_space<any>>) dst(%145 : memref<1x512xf32, #tpu.memory_space<vmem>>)
    %c0_i32_142 = arith.constant 0 : i32
    %c0_i32_143 = arith.constant 0 : i32
    %c5_i32_144 = arith.constant 5 : i32
    %c0_i32_145 = arith.constant 0 : i32
    %c0_i32_146 = arith.constant 0 : i32
    %148 = tpu.memref_slice %arg5[%c0_i32_145, %c0_i32_146] : memref<16x512xf32, #tpu.memory_space<any>> -> memref<1x512xf32, #tpu.memory_space<any>>
    %c5_i32_147 = arith.constant 5 : i32
    %c0_i32_148 = arith.constant 0 : i32
    %149 = tpu.memref_slice %arg7[%c0_i32_142, %c5_i32_147, %c0_i32_148] : memref<2x8x512xf32, #tpu.memory_space<vmem>> -> memref<1x1x512xf32, #tpu.memory_space<vmem>>
    %150 = tpu.memref_squeeze %149 : memref<1x1x512xf32, #tpu.memory_space<vmem>> -> memref<1x512xf32, #tpu.memory_space<vmem>>
    %151 = tpu.memref_slice %arg8[%c0_i32_143, %c5_i32_144] : memref<2x8x!tpu.dma_semaphore, #tpu.memory_space<semaphore_mem>> -> memref<1x1x!tpu.dma_semaphore, #tpu.memory_space<semaphore_mem>>
    %152 = tpu.memref_squeeze %151 : memref<1x1x!tpu.dma_semaphore, #tpu.memory_space<semaphore_mem>> -> memref<!tpu.dma_semaphore, #tpu.memory_space<semaphore_mem>>
    tpu.wait_dma2 semaphore(%152 : memref<!tpu.dma_semaphore, #tpu.memory_space<semaphore_mem>>) src(%148 : memref<1x512xf32, #tpu.memory_space<any>>) dst(%150 : memref<1x512xf32, #tpu.memory_space<vmem>>)
    %c0_i32_149 = arith.constant 0 : i32
    %c0_i32_150 = arith.constant 0 : i32
    %c6_i32_151 = arith.constant 6 : i32
    %c0_i32_152 = arith.constant 0 : i32
    %c0_i32_153 = arith.constant 0 : i32
    %153 = tpu.memref_slice %arg5[%c0_i32_152, %c0_i32_153] : memref<16x512xf32, #tpu.memory_space<any>> -> memref<1x512xf32, #tpu.memory_space<any>>
    %c6_i32_154 = arith.constant 6 : i32
    %c0_i32_155 = arith.constant 0 : i32
    %154 = tpu.memref_slice %arg7[%c0_i32_149, %c6_i32_154, %c0_i32_155] : memref<2x8x512xf32, #tpu.memory_space<vmem>> -> memref<1x1x512xf32, #tpu.memory_space<vmem>>
    %155 = tpu.memref_squeeze %154 : memref<1x1x512xf32, #tpu.memory_space<vmem>> -> memref<1x512xf32, #tpu.memory_space<vmem>>
    %156 = tpu.memref_slice %arg8[%c0_i32_150, %c6_i32_151] : memref<2x8x!tpu.dma_semaphore, #tpu.memory_space<semaphore_mem>> -> memref<1x1x!tpu.dma_semaphore, #tpu.memory_space<semaphore_mem>>
    %157 = tpu.memref_squeeze %156 : memref<1x1x!tpu.dma_semaphore, #tpu.memory_space<semaphore_mem>> -> memref<!tpu.dma_semaphore, #tpu.memory_space<semaphore_mem>>
    tpu.wait_dma2 semaphore(%157 : memref<!tpu.dma_semaphore, #tpu.memory_space<semaphore_mem>>) src(%153 : memref<1x512xf32, #tpu.memory_space<any>>) dst(%155 : memref<1x512xf32, #tpu.memory_space<vmem>>)
    %c0_i32_156 = arith.constant 0 : i32
    %c0_i32_157 = arith.constant 0 : i32
    %c7_i32_158 = arith.constant 7 : i32
    %c0_i32_159 = arith.constant 0 : i32
    %c0_i32_160 = arith.constant 0 : i32
    %158 = tpu.memref_slice %arg5[%c0_i32_159, %c0_i32_160] : memref<16x512xf32, #tpu.memory_space<any>> -> memref<1x512xf32, #tpu.memory_space<any>>
    %c7_i32_161 = arith.constant 7 : i32
    %c0_i32_162 = arith.constant 0 : i32
    %159 = tpu.memref_slice %arg7[%c0_i32_156, %c7_i32_161, %c0_i32_162] : memref<2x8x512xf32, #tpu.memory_space<vmem>> -> memref<1x1x512xf32, #tpu.memory_space<vmem>>
    %160 = tpu.memref_squeeze %159 : memref<1x1x512xf32, #tpu.memory_space<vmem>> -> memref<1x512xf32, #tpu.memory_space<vmem>>
    %161 = tpu.memref_slice %arg8[%c0_i32_157, %c7_i32_158] : memref<2x8x!tpu.dma_semaphore, #tpu.memory_space<semaphore_mem>> -> memref<1x1x!tpu.dma_semaphore, #tpu.memory_space<semaphore_mem>>
    %162 = tpu.memref_squeeze %161 : memref<1x1x!tpu.dma_semaphore, #tpu.memory_space<semaphore_mem>> -> memref<!tpu.dma_semaphore, #tpu.memory_space<semaphore_mem>>
    tpu.wait_dma2 semaphore(%162 : memref<!tpu.dma_semaphore, #tpu.memory_space<semaphore_mem>>) src(%158 : memref<1x512xf32, #tpu.memory_space<any>>) dst(%160 : memref<1x512xf32, #tpu.memory_space<vmem>>)
    %c0_163 = arith.constant 0 : index
    %c0_164 = arith.constant 0 : index
    %c0_165 = arith.constant 0 : index
    %163 = vector.load %arg7[%c0_163, %c0_164, %c0_165] : memref<2x8x512xf32, #tpu.memory_space<vmem>>, vector<1x8x512xf32>
    %164 = vector.shape_cast %163 : vector<1x8x512xf32> to vector<8x512xf32>
    %cst_166 = arith.constant dense<0.000000e+00> : vector<512xf32>
    %165 = vector.multi_reduction <add>, %164, %cst_166 [0] : vector<8x512xf32> to vector<512xf32>
    %166 = vector.shape_cast %165 : vector<512xf32> to vector<1x512xf32>
    %cst_167 = arith.constant 1.250000e-01 : f32
    %167 = vector.broadcast %cst_167 : f32 to vector<1x512xf32>
    %168 = arith.mulf %166, %167 : vector<1x512xf32>
    %c0_168 = arith.constant 0 : index
    %c512 = arith.constant 512 : index
    %169 = vector.load %arg6[%c0_168, %c512] : memref<8x1024xf32, #tpu.memory_space<vmem>>, vector<1x512xf32>
    tpu.vector_store %arg6[%c0_168, %c512], %168 {strides = array<i32>} : memref<8x1024xf32, #tpu.memory_space<vmem>>, vector<1x512xf32>,
    %c8_i32_169 = arith.constant 8 : i32
    %170 = arith.muli %arg0, %c8_i32_169 : i32
    %c2_i32_170 = arith.constant 2 : i32
    %171 = arith.addi %170, %c2_i32_170 : i32
    %172 = arith.index_cast %171 : i32 to index
    %c0_171 = arith.constant 0 : index
    %173 = memref.load %arg1[%172, %c0_171] : memref<8x8xi32, #tpu.memory_space<smem>>
    %c0_i32_172 = arith.constant 0 : i32
    %c0_i32_173 = arith.constant 0 : i32
    %c0_i32_174 = arith.constant 0 : i32
    %c0_i32_175 = arith.constant 0 : i32
    %174 = tpu.memref_slice %arg5[%173, %c0_i32_175] : memref<16x512xf32, #tpu.memory_space<any>> -> memref<1x512xf32, #tpu.memory_space<any>>
    %c0_i32_176 = arith.constant 0 : i32
    %c0_i32_177 = arith.constant 0 : i32
    %175 = tpu.memref_slice %arg7[%c0_i32_172, %c0_i32_176, %c0_i32_177] : memref<2x8x512xf32, #tpu.memory_space<vmem>> -> memref<1x1x512xf32, #tpu.memory_space<vmem>>
    %176 = tpu.memref_squeeze %175 : memref<1x1x512xf32, #tpu.memory_space<vmem>> -> memref<1x512xf32, #tpu.memory_space<vmem>>
    %177 = tpu.memref_slice %arg8[%c0_i32_173, %c0_i32_174] : memref<2x8x!tpu.dma_semaphore, #tpu.memory_space<semaphore_mem>> -> memref<1x1x!tpu.dma_semaphore, #tpu.memory_space<semaphore_mem>>
    %178 = tpu.memref_squeeze %177 : memref<1x1x!tpu.dma_semaphore, #tpu.memory_space<semaphore_mem>> -> memref<!tpu.dma_semaphore, #tpu.memory_space<semaphore_mem>>
    tpu.enqueue_dma source(%174 : memref<1x512xf32, #tpu.memory_space<any>>) target(%176 : memref<1x512xf32, #tpu.memory_space<vmem>>) target_semaphore(%178 : memref<!tpu.dma_semaphore, #tpu.memory_space<semaphore_mem>>)
    %179 = arith.index_cast %171 : i32 to index
    %c1_178 = arith.constant 1 : index
    %180 = memref.load %arg1[%179, %c1_178] : memref<8x8xi32, #tpu.memory_space<smem>>
    %c0_i32_179 = arith.constant 0 : i32
    %c0_i32_180 = arith.constant 0 : i32
    %c1_i32_181 = arith.constant 1 : i32
    %c0_i32_182 = arith.constant 0 : i32
    %181 = tpu.memref_slice %arg5[%180, %c0_i32_182] : memref<16x512xf32, #tpu.memory_space<any>> -> memref<1x512xf32, #tpu.memory_space<any>>
    %c1_i32_183 = arith.constant 1 : i32
    %c0_i32_184 = arith.constant 0 : i32
    %182 = tpu.memref_slice %arg7[%c0_i32_179, %c1_i32_183, %c0_i32_184] : memref<2x8x512xf32, #tpu.memory_space<vmem>> -> memref<1x1x512xf32, #tpu.memory_space<vmem>>
    %183 = tpu.memref_squeeze %182 : memref<1x1x512xf32, #tpu.memory_space<vmem>> -> memref<1x512xf32, #tpu.memory_space<vmem>>
    %184 = tpu.memref_slice %arg8[%c0_i32_180, %c1_i32_181] : memref<2x8x!tpu.dma_semaphore, #tpu.memory_space<semaphore_mem>> -> memref<1x1x!tpu.dma_semaphore, #tpu.memory_space<semaphore_mem>>
    %185 = tpu.memref_squeeze %184 : memref<1x1x!tpu.dma_semaphore, #tpu.memory_space<semaphore_mem>> -> memref<!tpu.dma_semaphore, #tpu.memory_space<semaphore_mem>>
    tpu.enqueue_dma source(%181 : memref<1x512xf32, #tpu.memory_space<any>>) target(%183 : memref<1x512xf32, #tpu.memory_space<vmem>>) target_semaphore(%185 : memref<!tpu.dma_semaphore, #tpu.memory_space<semaphore_mem>>)
    %186 = arith.index_cast %171 : i32 to index
    %c2_185 = arith.constant 2 : index
    %187 = memref.load %arg1[%186, %c2_185] : memref<8x8xi32, #tpu.memory_space<smem>>
    %c0_i32_186 = arith.constant 0 : i32
    %c0_i32_187 = arith.constant 0 : i32
    %c2_i32_188 = arith.constant 2 : i32
    %c0_i32_189 = arith.constant 0 : i32
    %188 = tpu.memref_slice %arg5[%187, %c0_i32_189] : memref<16x512xf32, #tpu.memory_space<any>> -> memref<1x512xf32, #tpu.memory_space<any>>
    %c2_i32_190 = arith.constant 2 : i32
    %c0_i32_191 = arith.constant 0 : i32
    %189 = tpu.memref_slice %arg7[%c0_i32_186, %c2_i32_190, %c0_i32_191] : memref<2x8x512xf32, #tpu.memory_space<vmem>> -> memref<1x1x512xf32, #tpu.memory_space<vmem>>
    %190 = tpu.memref_squeeze %189 : memref<1x1x512xf32, #tpu.memory_space<vmem>> -> memref<1x512xf32, #tpu.memory_space<vmem>>
    %191 = tpu.memref_slice %arg8[%c0_i32_187, %c2_i32_188] : memref<2x8x!tpu.dma_semaphore, #tpu.memory_space<semaphore_mem>> -> memref<1x1x!tpu.dma_semaphore, #tpu.memory_space<semaphore_mem>>
    %192 = tpu.memref_squeeze %191 : memref<1x1x!tpu.dma_semaphore, #tpu.memory_space<semaphore_mem>> -> memref<!tpu.dma_semaphore, #tpu.memory_space<semaphore_mem>>
    tpu.enqueue_dma source(%188 : memref<1x512xf32, #tpu.memory_space<any>>) target(%190 : memref<1x512xf32, #tpu.memory_space<vmem>>) target_semaphore(%192 : memref<!tpu.dma_semaphore, #tpu.memory_space<semaphore_mem>>)
    %193 = arith.index_cast %171 : i32 to index
    %c3_192 = arith.constant 3 : index
    %194 = memref.load %arg1[%193, %c3_192] : memref<8x8xi32, #tpu.memory_space<smem>>
    %c0_i32_193 = arith.constant 0 : i32
    %c0_i32_194 = arith.constant 0 : i32
    %c3_i32_195 = arith.constant 3 : i32
    %c0_i32_196 = arith.constant 0 : i32
    %195 = tpu.memref_slice %arg5[%194, %c0_i32_196] : memref<16x512xf32, #tpu.memory_space<any>> -> memref<1x512xf32, #tpu.memory_space<any>>
    %c3_i32_197 = arith.constant 3 : i32
    %c0_i32_198 = arith.constant 0 : i32
    %196 = tpu.memref_slice %arg7[%c0_i32_193, %c3_i32_197, %c0_i32_198] : memref<2x8x512xf32, #tpu.memory_space<vmem>> -> memref<1x1x512xf32, #tpu.memory_space<vmem>>
    %197 = tpu.memref_squeeze %196 : memref<1x1x512xf32, #tpu.memory_space<vmem>> -> memref<1x512xf32, #tpu.memory_space<vmem>>
    %198 = tpu.memref_slice %arg8[%c0_i32_194, %c3_i32_195] : memref<2x8x!tpu.dma_semaphore, #tpu.memory_space<semaphore_mem>> -> memref<1x1x!tpu.dma_semaphore, #tpu.memory_space<semaphore_mem>>
    %199 = tpu.memref_squeeze %198 : memref<1x1x!tpu.dma_semaphore, #tpu.memory_space<semaphore_mem>> -> memref<!tpu.dma_semaphore, #tpu.memory_space<semaphore_mem>>
    tpu.enqueue_dma source(%195 : memref<1x512xf32, #tpu.memory_space<any>>) target(%197 : memref<1x512xf32, #tpu.memory_space<vmem>>) target_semaphore(%199 : memref<!tpu.dma_semaphore, #tpu.memory_space<semaphore_mem>>)
    %200 = arith.index_cast %171 : i32 to index
    %c4_199 = arith.constant 4 : index
    %201 = memref.load %arg1[%200, %c4_199] : memref<8x8xi32, #tpu.memory_space<smem>>
    %c0_i32_200 = arith.constant 0 : i32
    %c0_i32_201 = arith.constant 0 : i32
    %c4_i32_202 = arith.constant 4 : i32
    %c0_i32_203 = arith.constant 0 : i32
    %202 = tpu.memref_slice %arg5[%201, %c0_i32_203] : memref<16x512xf32, #tpu.memory_space<any>> -> memref<1x512xf32, #tpu.memory_space<any>>
    %c4_i32_204 = arith.constant 4 : i32
    %c0_i32_205 = arith.constant 0 : i32
    %203 = tpu.memref_slice %arg7[%c0_i32_200, %c4_i32_204, %c0_i32_205] : memref<2x8x512xf32, #tpu.memory_space<vmem>> -> memref<1x1x512xf32, #tpu.memory_space<vmem>>
    %204 = tpu.memref_squeeze %203 : memref<1x1x512xf32, #tpu.memory_space<vmem>> -> memref<1x512xf32, #tpu.memory_space<vmem>>
    %205 = tpu.memref_slice %arg8[%c0_i32_201, %c4_i32_202] : memref<2x8x!tpu.dma_semaphore, #tpu.memory_space<semaphore_mem>> -> memref<1x1x!tpu.dma_semaphore, #tpu.memory_space<semaphore_mem>>
    %206 = tpu.memref_squeeze %205 : memref<1x1x!tpu.dma_semaphore, #tpu.memory_space<semaphore_mem>> -> memref<!tpu.dma_semaphore, #tpu.memory_space<semaphore_mem>>
    tpu.enqueue_dma source(%202 : memref<1x512xf32, #tpu.memory_space<any>>) target(%204 : memref<1x512xf32, #tpu.memory_space<vmem>>) target_semaphore(%206 : memref<!tpu.dma_semaphore, #tpu.memory_space<semaphore_mem>>)
    %207 = arith.index_cast %171 : i32 to index
    %c5_206 = arith.constant 5 : index
    %208 = memref.load %arg1[%207, %c5_206] : memref<8x8xi32, #tpu.memory_space<smem>>
    %c0_i32_207 = arith.constant 0 : i32
    %c0_i32_208 = arith.constant 0 : i32
    %c5_i32_209 = arith.constant 5 : i32
    %c0_i32_210 = arith.constant 0 : i32
    %209 = tpu.memref_slice %arg5[%208, %c0_i32_210] : memref<16x512xf32, #tpu.memory_space<any>> -> memref<1x512xf32, #tpu.memory_space<any>>
    %c5_i32_211 = arith.constant 5 : i32
    %c0_i32_212 = arith.constant 0 : i32
    %210 = tpu.memref_slice %arg7[%c0_i32_207, %c5_i32_211, %c0_i32_212] : memref<2x8x512xf32, #tpu.memory_space<vmem>> -> memref<1x1x512xf32, #tpu.memory_space<vmem>>
    %211 = tpu.memref_squeeze %210 : memref<1x1x512xf32, #tpu.memory_space<vmem>> -> memref<1x512xf32, #tpu.memory_space<vmem>>
    %212 = tpu.memref_slice %arg8[%c0_i32_208, %c5_i32_209] : memref<2x8x!tpu.dma_semaphore, #tpu.memory_space<semaphore_mem>> -> memref<1x1x!tpu.dma_semaphore, #tpu.memory_space<semaphore_mem>>
    %213 = tpu.memref_squeeze %212 : memref<1x1x!tpu.dma_semaphore, #tpu.memory_space<semaphore_mem>> -> memref<!tpu.dma_semaphore, #tpu.memory_space<semaphore_mem>>
    tpu.enqueue_dma source(%209 : memref<1x512xf32, #tpu.memory_space<any>>) target(%211 : memref<1x512xf32, #tpu.memory_space<vmem>>) target_semaphore(%213 : memref<!tpu.dma_semaphore, #tpu.memory_space<semaphore_mem>>)
    %214 = arith.index_cast %171 : i32 to index
    %c6_213 = arith.constant 6 : index
    %215 = memref.load %arg1[%214, %c6_213] : memref<8x8xi32, #tpu.memory_space<smem>>
    %c0_i32_214 = arith.constant 0 : i32
    %c0_i32_215 = arith.constant 0 : i32
    %c6_i32_216 = arith.constant 6 : i32
    %c0_i32_217 = arith.constant 0 : i32
    %216 = tpu.memref_slice %arg5[%215, %c0_i32_217] : memref<16x512xf32, #tpu.memory_space<any>> -> memref<1x512xf32, #tpu.memory_space<any>>
    %c6_i32_218 = arith.constant 6 : i32
    %c0_i32_219 = arith.constant 0 : i32
    %217 = tpu.memref_slice %arg7[%c0_i32_214, %c6_i32_218, %c0_i32_219] : memref<2x8x512xf32, #tpu.memory_space<vmem>> -> memref<1x1x512xf32, #tpu.memory_space<vmem>>
    %218 = tpu.memref_squeeze %217 : memref<1x1x512xf32, #tpu.memory_space<vmem>> -> memref<1x512xf32, #tpu.memory_space<vmem>>
    %219 = tpu.memref_slice %arg8[%c0_i32_215, %c6_i32_216] : memref<2x8x!tpu.dma_semaphore, #tpu.memory_space<semaphore_mem>> -> memref<1x1x!tpu.dma_semaphore, #tpu.memory_space<semaphore_mem>>
    %220 = tpu.memref_squeeze %219 : memref<1x1x!tpu.dma_semaphore, #tpu.memory_space<semaphore_mem>> -> memref<!tpu.dma_semaphore, #tpu.memory_space<semaphore_mem>>
    tpu.enqueue_dma source(%216 : memref<1x512xf32, #tpu.memory_space<any>>) target(%218 : memref<1x512xf32, #tpu.memory_space<vmem>>) target_semaphore(%220 : memref<!tpu.dma_semaphore, #tpu.memory_space<semaphore_mem>>)
    %221 = arith.index_cast %171 : i32 to index
    %c7_220 = arith.constant 7 : index
    %222 = memref.load %arg1[%221, %c7_220] : memref<8x8xi32, #tpu.memory_space<smem>>
    %c0_i32_221 = arith.constant 0 : i32
    %c0_i32_222 = arith.constant 0 : i32
    %c7_i32_223 = arith.constant 7 : i32
    %c0_i32_224 = arith.constant 0 : i32
    %223 = tpu.memref_slice %arg5[%222, %c0_i32_224] : memref<16x512xf32, #tpu.memory_space<any>> -> memref<1x512xf32, #tpu.memory_space<any>>
    %c7_i32_225 = arith.constant 7 : i32
    %c0_i32_226 = arith.constant 0 : i32
    %224 = tpu.memref_slice %arg7[%c0_i32_221, %c7_i32_225, %c0_i32_226] : memref<2x8x512xf32, #tpu.memory_space<vmem>> -> memref<1x1x512xf32, #tpu.memory_space<vmem>>
    %225 = tpu.memref_squeeze %224 : memref<1x1x512xf32, #tpu.memory_space<vmem>> -> memref<1x512xf32, #tpu.memory_space<vmem>>
    %226 = tpu.memref_slice %arg8[%c0_i32_222, %c7_i32_223] : memref<2x8x!tpu.dma_semaphore, #tpu.memory_space<semaphore_mem>> -> memref<1x1x!tpu.dma_semaphore, #tpu.memory_space<semaphore_mem>>
    %227 = tpu.memref_squeeze %226 : memref<1x1x!tpu.dma_semaphore, #tpu.memory_space<semaphore_mem>> -> memref<!tpu.dma_semaphore, #tpu.memory_space<semaphore_mem>>
    tpu.enqueue_dma source(%223 : memref<1x512xf32, #tpu.memory_space<any>>) target(%225 : memref<1x512xf32, #tpu.memory_space<vmem>>) target_semaphore(%227 : memref<!tpu.dma_semaphore, #tpu.memory_space<semaphore_mem>>)
    %c1_i32_227 = arith.constant 1 : i32
    %c1_i32_228 = arith.constant 1 : i32
    %c0_i32_229 = arith.constant 0 : i32
    %c0_i32_230 = arith.constant 0 : i32
    %c0_i32_231 = arith.constant 0 : i32
    %228 = tpu.memref_slice %arg5[%c0_i32_230, %c0_i32_231] : memref<16x512xf32, #tpu.memory_space<any>> -> memref<1x512xf32, #tpu.memory_space<any>>
    %c0_i32_232 = arith.constant 0 : i32
    %c0_i32_233 = arith.constant 0 : i32
    %229 = tpu.memref_slice %arg7[%c1_i32_227, %c0_i32_232, %c0_i32_233] : memref<2x8x512xf32, #tpu.memory_space<vmem>> -> memref<1x1x512xf32, #tpu.memory_space<vmem>>
    %230 = tpu.memref_squeeze %229 : memref<1x1x512xf32, #tpu.memory_space<vmem>> -> memref<1x512xf32, #tpu.memory_space<vmem>>
    %231 = tpu.memref_slice %arg8[%c1_i32_228, %c0_i32_229] : memref<2x8x!tpu.dma_semaphore, #tpu.memory_space<semaphore_mem>> -> memref<1x1x!tpu.dma_semaphore, #tpu.memory_space<semaphore_mem>>
    %232 = tpu.memref_squeeze %231 : memref<1x1x!tpu.dma_semaphore, #tpu.memory_space<semaphore_mem>> -> memref<!tpu.dma_semaphore, #tpu.memory_space<semaphore_mem>>
    tpu.wait_dma2 semaphore(%232 : memref<!tpu.dma_semaphore, #tpu.memory_space<semaphore_mem>>) src(%228 : memref<1x512xf32, #tpu.memory_space<any>>) dst(%230 : memref<1x512xf32, #tpu.memory_space<vmem>>)
    %c1_i32_234 = arith.constant 1 : i32
    %c1_i32_235 = arith.constant 1 : i32
    %c1_i32_236 = arith.constant 1 : i32
    %c0_i32_237 = arith.constant 0 : i32
    %c0_i32_238 = arith.constant 0 : i32
    %233 = tpu.memref_slice %arg5[%c0_i32_237, %c0_i32_238] : memref<16x512xf32, #tpu.memory_space<any>> -> memref<1x512xf32, #tpu.memory_space<any>>
    %c1_i32_239 = arith.constant 1 : i32
    %c0_i32_240 = arith.constant 0 : i32
    %234 = tpu.memref_slice %arg7[%c1_i32_234, %c1_i32_239, %c0_i32_240] : memref<2x8x512xf32, #tpu.memory_space<vmem>> -> memref<1x1x512xf32, #tpu.memory_space<vmem>>
    %235 = tpu.memref_squeeze %234 : memref<1x1x512xf32, #tpu.memory_space<vmem>> -> memref<1x512xf32, #tpu.memory_space<vmem>>
    %236 = tpu.memref_slice %arg8[%c1_i32_235, %c1_i32_236] : memref<2x8x!tpu.dma_semaphore, #tpu.memory_space<semaphore_mem>> -> memref<1x1x!tpu.dma_semaphore, #tpu.memory_space<semaphore_mem>>
    %237 = tpu.memref_squeeze %236 : memref<1x1x!tpu.dma_semaphore, #tpu.memory_space<semaphore_mem>> -> memref<!tpu.dma_semaphore, #tpu.memory_space<semaphore_mem>>
    tpu.wait_dma2 semaphore(%237 : memref<!tpu.dma_semaphore, #tpu.memory_space<semaphore_mem>>) src(%233 : memref<1x512xf32, #tpu.memory_space<any>>) dst(%235 : memref<1x512xf32, #tpu.memory_space<vmem>>)
    %c1_i32_241 = arith.constant 1 : i32
    %c1_i32_242 = arith.constant 1 : i32
    %c2_i32_243 = arith.constant 2 : i32
    %c0_i32_244 = arith.constant 0 : i32
    %c0_i32_245 = arith.constant 0 : i32
    %238 = tpu.memref_slice %arg5[%c0_i32_244, %c0_i32_245] : memref<16x512xf32, #tpu.memory_space<any>> -> memref<1x512xf32, #tpu.memory_space<any>>
    %c2_i32_246 = arith.constant 2 : i32
    %c0_i32_247 = arith.constant 0 : i32
    %239 = tpu.memref_slice %arg7[%c1_i32_241, %c2_i32_246, %c0_i32_247] : memref<2x8x512xf32, #tpu.memory_space<vmem>> -> memref<1x1x512xf32, #tpu.memory_space<vmem>>
    %240 = tpu.memref_squeeze %239 : memref<1x1x512xf32, #tpu.memory_space<vmem>> -> memref<1x512xf32, #tpu.memory_space<vmem>>
    %241 = tpu.memref_slice %arg8[%c1_i32_242, %c2_i32_243] : memref<2x8x!tpu.dma_semaphore, #tpu.memory_space<semaphore_mem>> -> memref<1x1x!tpu.dma_semaphore, #tpu.memory_space<semaphore_mem>>
    %242 = tpu.memref_squeeze %241 : memref<1x1x!tpu.dma_semaphore, #tpu.memory_space<semaphore_mem>> -> memref<!tpu.dma_semaphore, #tpu.memory_space<semaphore_mem>>
    tpu.wait_dma2 semaphore(%242 : memref<!tpu.dma_semaphore, #tpu.memory_space<semaphore_mem>>) src(%238 : memref<1x512xf32, #tpu.memory_space<any>>) dst(%240 : memref<1x512xf32, #tpu.memory_space<vmem>>)
    %c1_i32_248 = arith.constant 1 : i32
    %c1_i32_249 = arith.constant 1 : i32
    %c3_i32_250 = arith.constant 3 : i32
    %c0_i32_251 = arith.constant 0 : i32
    %c0_i32_252 = arith.constant 0 : i32
    %243 = tpu.memref_slice %arg5[%c0_i32_251, %c0_i32_252] : memref<16x512xf32, #tpu.memory_space<any>> -> memref<1x512xf32, #tpu.memory_space<any>>
    %c3_i32_253 = arith.constant 3 : i32
    %c0_i32_254 = arith.constant 0 : i32
    %244 = tpu.memref_slice %arg7[%c1_i32_248, %c3_i32_253, %c0_i32_254] : memref<2x8x512xf32, #tpu.memory_space<vmem>> -> memref<1x1x512xf32, #tpu.memory_space<vmem>>
    %245 = tpu.memref_squeeze %244 : memref<1x1x512xf32, #tpu.memory_space<vmem>> -> memref<1x512xf32, #tpu.memory_space<vmem>>
    %246 = tpu.memref_slice %arg8[%c1_i32_249, %c3_i32_250] : memref<2x8x!tpu.dma_semaphore, #tpu.memory_space<semaphore_mem>> -> memref<1x1x!tpu.dma_semaphore, #tpu.memory_space<semaphore_mem>>
    %247 = tpu.memref_squeeze %246 : memref<1x1x!tpu.dma_semaphore, #tpu.memory_space<semaphore_mem>> -> memref<!tpu.dma_semaphore, #tpu.memory_space<semaphore_mem>>
    tpu.wait_dma2 semaphore(%247 : memref<!tpu.dma_semaphore, #tpu.memory_space<semaphore_mem>>) src(%243 : memref<1x512xf32, #tpu.memory_space<any>>) dst(%245 : memref<1x512xf32, #tpu.memory_space<vmem>>)
    %c1_i32_255 = arith.constant 1 : i32
    %c1_i32_256 = arith.constant 1 : i32
    %c4_i32_257 = arith.constant 4 : i32
    %c0_i32_258 = arith.constant 0 : i32
    %c0_i32_259 = arith.constant 0 : i32
    %248 = tpu.memref_slice %arg5[%c0_i32_258, %c0_i32_259] : memref<16x512xf32, #tpu.memory_space<any>> -> memref<1x512xf32, #tpu.memory_space<any>>
    %c4_i32_260 = arith.constant 4 : i32
    %c0_i32_261 = arith.constant 0 : i32
    %249 = tpu.memref_slice %arg7[%c1_i32_255, %c4_i32_260, %c0_i32_261] : memref<2x8x512xf32, #tpu.memory_space<vmem>> -> memref<1x1x512xf32, #tpu.memory_space<vmem>>
    %250 = tpu.memref_squeeze %249 : memref<1x1x512xf32, #tpu.memory_space<vmem>> -> memref<1x512xf32, #tpu.memory_space<vmem>>
    %251 = tpu.memref_slice %arg8[%c1_i32_256, %c4_i32_257] : memref<2x8x!tpu.dma_semaphore, #tpu.memory_space<semaphore_mem>> -> memref<1x1x!tpu.dma_semaphore, #tpu.memory_space<semaphore_mem>>
    %252 = tpu.memref_squeeze %251 : memref<1x1x!tpu.dma_semaphore, #tpu.memory_space<semaphore_mem>> -> memref<!tpu.dma_semaphore, #tpu.memory_space<semaphore_mem>>
    tpu.wait_dma2 semaphore(%252 : memref<!tpu.dma_semaphore, #tpu.memory_space<semaphore_mem>>) src(%248 : memref<1x512xf32, #tpu.memory_space<any>>) dst(%250 : memref<1x512xf32, #tpu.memory_space<vmem>>)
    %c1_i32_262 = arith.constant 1 : i32
    %c1_i32_263 = arith.constant 1 : i32
    %c5_i32_264 = arith.constant 5 : i32
    %c0_i32_265 = arith.constant 0 : i32
    %c0_i32_266 = arith.constant 0 : i32
    %253 = tpu.memref_slice %arg5[%c0_i32_265, %c0_i32_266] : memref<16x512xf32, #tpu.memory_space<any>> -> memref<1x512xf32, #tpu.memory_space<any>>
    %c5_i32_267 = arith.constant 5 : i32
    %c0_i32_268 = arith.constant 0 : i32
    %254 = tpu.memref_slice %arg7[%c1_i32_262, %c5_i32_267, %c0_i32_268] : memref<2x8x512xf32, #tpu.memory_space<vmem>> -> memref<1x1x512xf32, #tpu.memory_space<vmem>>
    %255 = tpu.memref_squeeze %254 : memref<1x1x512xf32, #tpu.memory_space<vmem>> -> memref<1x512xf32, #tpu.memory_space<vmem>>
    %256 = tpu.memref_slice %arg8[%c1_i32_263, %c5_i32_264] : memref<2x8x!tpu.dma_semaphore, #tpu.memory_space<semaphore_mem>> -> memref<1x1x!tpu.dma_semaphore, #tpu.memory_space<semaphore_mem>>
    %257 = tpu.memref_squeeze %256 : memref<1x1x!tpu.dma_semaphore, #tpu.memory_space<semaphore_mem>> -> memref<!tpu.dma_semaphore, #tpu.memory_space<semaphore_mem>>
    tpu.wait_dma2 semaphore(%257 : memref<!tpu.dma_semaphore, #tpu.memory_space<semaphore_mem>>) src(%253 : memref<1x512xf32, #tpu.memory_space<any>>) dst(%255 : memref<1x512xf32, #tpu.memory_space<vmem>>)
    %c1_i32_269 = arith.constant 1 : i32
    %c1_i32_270 = arith.constant 1 : i32
    %c6_i32_271 = arith.constant 6 : i32
    %c0_i32_272 = arith.constant 0 : i32
    %c0_i32_273 = arith.constant 0 : i32
    %258 = tpu.memref_slice %arg5[%c0_i32_272, %c0_i32_273] : memref<16x512xf32, #tpu.memory_space<any>> -> memref<1x512xf32, #tpu.memory_space<any>>
    %c6_i32_274 = arith.constant 6 : i32
    %c0_i32_275 = arith.constant 0 : i32
    %259 = tpu.memref_slice %arg7[%c1_i32_269, %c6_i32_274, %c0_i32_275] : memref<2x8x512xf32, #tpu.memory_space<vmem>> -> memref<1x1x512xf32, #tpu.memory_space<vmem>>
    %260 = tpu.memref_squeeze %259 : memref<1x1x512xf32, #tpu.memory_space<vmem>> -> memref<1x512xf32, #tpu.memory_space<vmem>>
    %261 = tpu.memref_slice %arg8[%c1_i32_270, %c6_i32_271] : memref<2x8x!tpu.dma_semaphore, #tpu.memory_space<semaphore_mem>> -> memref<1x1x!tpu.dma_semaphore, #tpu.memory_space<semaphore_mem>>
    %262 = tpu.memref_squeeze %261 : memref<1x1x!tpu.dma_semaphore, #tpu.memory_space<semaphore_mem>> -> memref<!tpu.dma_semaphore, #tpu.memory_space<semaphore_mem>>
    tpu.wait_dma2 semaphore(%262 : memref<!tpu.dma_semaphore, #tpu.memory_space<semaphore_mem>>) src(%258 : memref<1x512xf32, #tpu.memory_space<any>>) dst(%260 : memref<1x512xf32, #tpu.memory_space<vmem>>)
    %c1_i32_276 = arith.constant 1 : i32
    %c1_i32_277 = arith.constant 1 : i32
    %c7_i32_278 = arith.constant 7 : i32
    %c0_i32_279 = arith.constant 0 : i32
    %c0_i32_280 = arith.constant 0 : i32
    %263 = tpu.memref_slice %arg5[%c0_i32_279, %c0_i32_280] : memref<16x512xf32, #tpu.memory_space<any>> -> memref<1x512xf32, #tpu.memory_space<any>>
    %c7_i32_281 = arith.constant 7 : i32
    %c0_i32_282 = arith.constant 0 : i32
    %264 = tpu.memref_slice %arg7[%c1_i32_276, %c7_i32_281, %c0_i32_282] : memref<2x8x512xf32, #tpu.memory_space<vmem>> -> memref<1x1x512xf32, #tpu.memory_space<vmem>>
    %265 = tpu.memref_squeeze %264 : memref<1x1x512xf32, #tpu.memory_space<vmem>> -> memref<1x512xf32, #tpu.memory_space<vmem>>
    %266 = tpu.memref_slice %arg8[%c1_i32_277, %c7_i32_278] : memref<2x8x!tpu.dma_semaphore, #tpu.memory_space<semaphore_mem>> -> memref<1x1x!tpu.dma_semaphore, #tpu.memory_space<semaphore_mem>>
    %267 = tpu.memref_squeeze %266 : memref<1x1x!tpu.dma_semaphore, #tpu.memory_space<semaphore_mem>> -> memref<!tpu.dma_semaphore, #tpu.memory_space<semaphore_mem>>
    tpu.wait_dma2 semaphore(%267 : memref<!tpu.dma_semaphore, #tpu.memory_space<semaphore_mem>>) src(%263 : memref<1x512xf32, #tpu.memory_space<any>>) dst(%265 : memref<1x512xf32, #tpu.memory_space<vmem>>)
    %c1_283 = arith.constant 1 : index
    %c0_284 = arith.constant 0 : index
    %c0_285 = arith.constant 0 : index
    %268 = vector.load %arg7[%c1_283, %c0_284, %c0_285] : memref<2x8x512xf32, #tpu.memory_space<vmem>>, vector<1x8x512xf32>
    %269 = vector.shape_cast %268 : vector<1x8x512xf32> to vector<8x512xf32>
    %cst_286 = arith.constant dense<0.000000e+00> : vector<512xf32>
    %270 = vector.multi_reduction <add>, %269, %cst_286 [0] : vector<8x512xf32> to vector<512xf32>
    %271 = vector.shape_cast %270 : vector<512xf32> to vector<1x512xf32>
    %cst_287 = arith.constant 1.250000e-01 : f32
    %272 = vector.broadcast %cst_287 : f32 to vector<1x512xf32>
    %273 = arith.mulf %271, %272 : vector<1x512xf32>
    %c1_288 = arith.constant 1 : index
    %c512_289 = arith.constant 512 : index
    %274 = vector.load %arg6[%c1_288, %c512_289] : memref<8x1024xf32, #tpu.memory_space<vmem>>, vector<1x512xf32>
    tpu.vector_store %arg6[%c1_288, %c512_289], %273 {strides = array<i32>} : memref<8x1024xf32, #tpu.memory_space<vmem>>, vector<1x512xf32>,
    %c8_i32_290 = arith.constant 8 : i32
    %275 = arith.muli %arg0, %c8_i32_290 : i32
    %c3_i32_291 = arith.constant 3 : i32
    %276 = arith.addi %275, %c3_i32_291 : i32
    %277 = arith.index_cast %276 : i32 to index
    %c0_292 = arith.constant 0 : index
    %278 = memref.load %arg1[%277, %c0_292] : memref<8x8xi32, #tpu.memory_space<smem>>
    %c1_i32_293 = arith.constant 1 : i32
    %c1_i32_294 = arith.constant 1 : i32
    %c0_i32_295 = arith.constant 0 : i32
    %c0_i32_296 = arith.constant 0 : i32
    %279 = tpu.memref_slice %arg5[%278, %c0_i32_296] : memref<16x512xf32, #tpu.memory_space<any>> -> memref<1x512xf32, #tpu.memory_space<any>>
    %c0_i32_297 = arith.constant 0 : i32
    %c0_i32_298 = arith.constant 0 : i32
    %280 = tpu.memref_slice %arg7[%c1_i32_293, %c0_i32_297, %c0_i32_298] : memref<2x8x512xf32, #tpu.memory_space<vmem>> -> memref<1x1x512xf32, #tpu.memory_space<vmem>>
    %281 = tpu.memref_squeeze %280 : memref<1x1x512xf32, #tpu.memory_space<vmem>> -> memref<1x512xf32, #tpu.memory_space<vmem>>
    %282 = tpu.memref_slice %arg8[%c1_i32_294, %c0_i32_295] : memref<2x8x!tpu.dma_semaphore, #tpu.memory_space<semaphore_mem>> -> memref<1x1x!tpu.dma_semaphore, #tpu.memory_space<semaphore_mem>>
    %283 = tpu.memref_squeeze %282 : memref<1x1x!tpu.dma_semaphore, #tpu.memory_space<semaphore_mem>> -> memref<!tpu.dma_semaphore, #tpu.memory_space<semaphore_mem>>
    tpu.enqueue_dma source(%279 : memref<1x512xf32, #tpu.memory_space<any>>) target(%281 : memref<1x512xf32, #tpu.memory_space<vmem>>) target_semaphore(%283 : memref<!tpu.dma_semaphore, #tpu.memory_space<semaphore_mem>>)
    %284 = arith.index_cast %276 : i32 to index
    %c1_299 = arith.constant 1 : index
    %285 = memref.load %arg1[%284, %c1_299] : memref<8x8xi32, #tpu.memory_space<smem>>
    %c1_i32_300 = arith.constant 1 : i32
    %c1_i32_301 = arith.constant 1 : i32
    %c1_i32_302 = arith.constant 1 : i32
    %c0_i32_303 = arith.constant 0 : i32
    %286 = tpu.memref_slice %arg5[%285, %c0_i32_303] : memref<16x512xf32, #tpu.memory_space<any>> -> memref<1x512xf32, #tpu.memory_space<any>>
    %c1_i32_304 = arith.constant 1 : i32
    %c0_i32_305 = arith.constant 0 : i32
    %287 = tpu.memref_slice %arg7[%c1_i32_300, %c1_i32_304, %c0_i32_305] : memref<2x8x512xf32, #tpu.memory_space<vmem>> -> memref<1x1x512xf32, #tpu.memory_space<vmem>>
    %288 = tpu.memref_squeeze %287 : memref<1x1x512xf32, #tpu.memory_space<vmem>> -> memref<1x512xf32, #tpu.memory_space<vmem>>
    %289 = tpu.memref_slice %arg8[%c1_i32_301, %c1_i32_302] : memref<2x8x!tpu.dma_semaphore, #tpu.memory_space<semaphore_mem>> -> memref<1x1x!tpu.dma_semaphore, #tpu.memory_space<semaphore_mem>>
    %290 = tpu.memref_squeeze %289 : memref<1x1x!tpu.dma_semaphore, #tpu.memory_space<semaphore_mem>> -> memref<!tpu.dma_semaphore, #tpu.memory_space<semaphore_mem>>
    tpu.enqueue_dma source(%286 : memref<1x512xf32, #tpu.memory_space<any>>) target(%288 : memref<1x512xf32, #tpu.memory_space<vmem>>) target_semaphore(%290 : memref<!tpu.dma_semaphore, #tpu.memory_space<semaphore_mem>>)
    %291 = arith.index_cast %276 : i32 to index
    %c2_306 = arith.constant 2 : index
    %292 = memref.load %arg1[%291, %c2_306] : memref<8x8xi32, #tpu.memory_space<smem>>
    %c1_i32_307 = arith.constant 1 : i32
    %c1_i32_308 = arith.constant 1 : i32
    %c2_i32_309 = arith.constant 2 : i32
    %c0_i32_310 = arith.constant 0 : i32
    %293 = tpu.memref_slice %arg5[%292, %c0_i32_310] : memref<16x512xf32, #tpu.memory_space<any>> -> memref<1x512xf32, #tpu.memory_space<any>>
    %c2_i32_311 = arith.constant 2 : i32
    %c0_i32_312 = arith.constant 0 : i32
    %294 = tpu.memref_slice %arg7[%c1_i32_307, %c2_i32_311, %c0_i32_312] : memref<2x8x512xf32, #tpu.memory_space<vmem>> -> memref<1x1x512xf32, #tpu.memory_space<vmem>>
    %295 = tpu.memref_squeeze %294 : memref<1x1x512xf32, #tpu.memory_space<vmem>> -> memref<1x512xf32, #tpu.memory_space<vmem>>
    %296 = tpu.memref_slice %arg8[%c1_i32_308, %c2_i32_309] : memref<2x8x!tpu.dma_semaphore, #tpu.memory_space<semaphore_mem>> -> memref<1x1x!tpu.dma_semaphore, #tpu.memory_space<semaphore_mem>>
    %297 = tpu.memref_squeeze %296 : memref<1x1x!tpu.dma_semaphore, #tpu.memory_space<semaphore_mem>> -> memref<!tpu.dma_semaphore, #tpu.memory_space<semaphore_mem>>
    tpu.enqueue_dma source(%293 : memref<1x512xf32, #tpu.memory_space<any>>) target(%295 : memref<1x512xf32, #tpu.memory_space<vmem>>) target_semaphore(%297 : memref<!tpu.dma_semaphore, #tpu.memory_space<semaphore_mem>>)
    %298 = arith.index_cast %276 : i32 to index
    %c3_313 = arith.constant 3 : index
    %299 = memref.load %arg1[%298, %c3_313] : memref<8x8xi32, #tpu.memory_space<smem>>
    %c1_i32_314 = arith.constant 1 : i32
    %c1_i32_315 = arith.constant 1 : i32
    %c3_i32_316 = arith.constant 3 : i32
    %c0_i32_317 = arith.constant 0 : i32
    %300 = tpu.memref_slice %arg5[%299, %c0_i32_317] : memref<16x512xf32, #tpu.memory_space<any>> -> memref<1x512xf32, #tpu.memory_space<any>>
    %c3_i32_318 = arith.constant 3 : i32
    %c0_i32_319 = arith.constant 0 : i32
    %301 = tpu.memref_slice %arg7[%c1_i32_314, %c3_i32_318, %c0_i32_319] : memref<2x8x512xf32, #tpu.memory_space<vmem>> -> memref<1x1x512xf32, #tpu.memory_space<vmem>>
    %302 = tpu.memref_squeeze %301 : memref<1x1x512xf32, #tpu.memory_space<vmem>> -> memref<1x512xf32, #tpu.memory_space<vmem>>
    %303 = tpu.memref_slice %arg8[%c1_i32_315, %c3_i32_316] : memref<2x8x!tpu.dma_semaphore, #tpu.memory_space<semaphore_mem>> -> memref<1x1x!tpu.dma_semaphore, #tpu.memory_space<semaphore_mem>>
    %304 = tpu.memref_squeeze %303 : memref<1x1x!tpu.dma_semaphore, #tpu.memory_space<semaphore_mem>> -> memref<!tpu.dma_semaphore, #tpu.memory_space<semaphore_mem>>
    tpu.enqueue_dma source(%300 : memref<1x512xf32, #tpu.memory_space<any>>) target(%302 : memref<1x512xf32, #tpu.memory_space<vmem>>) target_semaphore(%304 : memref<!tpu.dma_semaphore, #tpu.memory_space<semaphore_mem>>)
    %305 = arith.index_cast %276 : i32 to index
    %c4_320 = arith.constant 4 : index
    %306 = memref.load %arg1[%305, %c4_320] : memref<8x8xi32, #tpu.memory_space<smem>>
    %c1_i32_321 = arith.constant 1 : i32
    %c1_i32_322 = arith.constant 1 : i32
    %c4_i32_323 = arith.constant 4 : i32
    %c0_i32_324 = arith.constant 0 : i32
    %307 = tpu.memref_slice %arg5[%306, %c0_i32_324] : memref<16x512xf32, #tpu.memory_space<any>> -> memref<1x512xf32, #tpu.memory_space<any>>
    %c4_i32_325 = arith.constant 4 : i32
    %c0_i32_326 = arith.constant 0 : i32
    %308 = tpu.memref_slice %arg7[%c1_i32_321, %c4_i32_325, %c0_i32_326] : memref<2x8x512xf32, #tpu.memory_space<vmem>> -> memref<1x1x512xf32, #tpu.memory_space<vmem>>
    %309 = tpu.memref_squeeze %308 : memref<1x1x512xf32, #tpu.memory_space<vmem>> -> memref<1x512xf32, #tpu.memory_space<vmem>>
    %310 = tpu.memref_slice %arg8[%c1_i32_322, %c4_i32_323] : memref<2x8x!tpu.dma_semaphore, #tpu.memory_space<semaphore_mem>> -> memref<1x1x!tpu.dma_semaphore, #tpu.memory_space<semaphore_mem>>
    %311 = tpu.memref_squeeze %310 : memref<1x1x!tpu.dma_semaphore, #tpu.memory_space<semaphore_mem>> -> memref<!tpu.dma_semaphore, #tpu.memory_space<semaphore_mem>>
    tpu.enqueue_dma source(%307 : memref<1x512xf32, #tpu.memory_space<any>>) target(%309 : memref<1x512xf32, #tpu.memory_space<vmem>>) target_semaphore(%311 : memref<!tpu.dma_semaphore, #tpu.memory_space<semaphore_mem>>)
    %312 = arith.index_cast %276 : i32 to index
    %c5_327 = arith.constant 5 : index
    %313 = memref.load %arg1[%312, %c5_327] : memref<8x8xi32, #tpu.memory_space<smem>>
    %c1_i32_328 = arith.constant 1 : i32
    %c1_i32_329 = arith.constant 1 : i32
    %c5_i32_330 = arith.constant 5 : i32
    %c0_i32_331 = arith.constant 0 : i32
    %314 = tpu.memref_slice %arg5[%313, %c0_i32_331] : memref<16x512xf32, #tpu.memory_space<any>> -> memref<1x512xf32, #tpu.memory_space<any>>
    %c5_i32_332 = arith.constant 5 : i32
    %c0_i32_333 = arith.constant 0 : i32
    %315 = tpu.memref_slice %arg7[%c1_i32_328, %c5_i32_332, %c0_i32_333] : memref<2x8x512xf32, #tpu.memory_space<vmem>> -> memref<1x1x512xf32, #tpu.memory_space<vmem>>
    %316 = tpu.memref_squeeze %315 : memref<1x1x512xf32, #tpu.memory_space<vmem>> -> memref<1x512xf32, #tpu.memory_space<vmem>>
    %317 = tpu.memref_slice %arg8[%c1_i32_329, %c5_i32_330] : memref<2x8x!tpu.dma_semaphore, #tpu.memory_space<semaphore_mem>> -> memref<1x1x!tpu.dma_semaphore, #tpu.memory_space<semaphore_mem>>
    %318 = tpu.memref_squeeze %317 : memref<1x1x!tpu.dma_semaphore, #tpu.memory_space<semaphore_mem>> -> memref<!tpu.dma_semaphore, #tpu.memory_space<semaphore_mem>>
    tpu.enqueue_dma source(%314 : memref<1x512xf32, #tpu.memory_space<any>>) target(%316 : memref<1x512xf32, #tpu.memory_space<vmem>>) target_semaphore(%318 : memref<!tpu.dma_semaphore, #tpu.memory_space<semaphore_mem>>)
    %319 = arith.index_cast %276 : i32 to index
    %c6_334 = arith.constant 6 : index
    %320 = memref.load %arg1[%319, %c6_334] : memref<8x8xi32, #tpu.memory_space<smem>>
    %c1_i32_335 = arith.constant 1 : i32
    %c1_i32_336 = arith.constant 1 : i32
    %c6_i32_337 = arith.constant 6 : i32
    %c0_i32_338 = arith.constant 0 : i32
    %321 = tpu.memref_slice %arg5[%320, %c0_i32_338] : memref<16x512xf32, #tpu.memory_space<any>> -> memref<1x512xf32, #tpu.memory_space<any>>
    %c6_i32_339 = arith.constant 6 : i32
    %c0_i32_340 = arith.constant 0 : i32
    %322 = tpu.memref_slice %arg7[%c1_i32_335, %c6_i32_339, %c0_i32_340] : memref<2x8x512xf32, #tpu.memory_space<vmem>> -> memref<1x1x512xf32, #tpu.memory_space<vmem>>
    %323 = tpu.memref_squeeze %322 : memref<1x1x512xf32, #tpu.memory_space<vmem>> -> memref<1x512xf32, #tpu.memory_space<vmem>>
    %324 = tpu.memref_slice %arg8[%c1_i32_336, %c6_i32_337] : memref<2x8x!tpu.dma_semaphore, #tpu.memory_space<semaphore_mem>> -> memref<1x1x!tpu.dma_semaphore, #tpu.memory_space<semaphore_mem>>
    %325 = tpu.memref_squeeze %324 : memref<1x1x!tpu.dma_semaphore, #tpu.memory_space<semaphore_mem>> -> memref<!tpu.dma_semaphore, #tpu.memory_space<semaphore_mem>>
    tpu.enqueue_dma source(%321 : memref<1x512xf32, #tpu.memory_space<any>>) target(%323 : memref<1x512xf32, #tpu.memory_space<vmem>>) target_semaphore(%325 : memref<!tpu.dma_semaphore, #tpu.memory_space<semaphore_mem>>)
    %326 = arith.index_cast %276 : i32 to index
    %c7_341 = arith.constant 7 : index
    %327 = memref.load %arg1[%326, %c7_341] : memref<8x8xi32, #tpu.memory_space<smem>>
    %c1_i32_342 = arith.constant 1 : i32
    %c1_i32_343 = arith.constant 1 : i32
    %c7_i32_344 = arith.constant 7 : i32
    %c0_i32_345 = arith.constant 0 : i32
    %328 = tpu.memref_slice %arg5[%327, %c0_i32_345] : memref<16x512xf32, #tpu.memory_space<any>> -> memref<1x512xf32, #tpu.memory_space<any>>
    %c7_i32_346 = arith.constant 7 : i32
    %c0_i32_347 = arith.constant 0 : i32
    %329 = tpu.memref_slice %arg7[%c1_i32_342, %c7_i32_346, %c0_i32_347] : memref<2x8x512xf32, #tpu.memory_space<vmem>> -> memref<1x1x512xf32, #tpu.memory_space<vmem>>
    %330 = tpu.memref_squeeze %329 : memref<1x1x512xf32, #tpu.memory_space<vmem>> -> memref<1x512xf32, #tpu.memory_space<vmem>>
    %331 = tpu.memref_slice %arg8[%c1_i32_343, %c7_i32_344] : memref<2x8x!tpu.dma_semaphore, #tpu.memory_space<semaphore_mem>> -> memref<1x1x!tpu.dma_semaphore, #tpu.memory_space<semaphore_mem>>
    %332 = tpu.memref_squeeze %331 : memref<1x1x!tpu.dma_semaphore, #tpu.memory_space<semaphore_mem>> -> memref<!tpu.dma_semaphore, #tpu.memory_space<semaphore_mem>>
    tpu.enqueue_dma source(%328 : memref<1x512xf32, #tpu.memory_space<any>>) target(%330 : memref<1x512xf32, #tpu.memory_space<vmem>>) target_semaphore(%332 : memref<!tpu.dma_semaphore, #tpu.memory_space<semaphore_mem>>)
    %c0_i32_348 = arith.constant 0 : i32
    %c0_i32_349 = arith.constant 0 : i32
    %c0_i32_350 = arith.constant 0 : i32
    %c0_i32_351 = arith.constant 0 : i32
    %c0_i32_352 = arith.constant 0 : i32
    %333 = tpu.memref_slice %arg5[%c0_i32_351, %c0_i32_352] : memref<16x512xf32, #tpu.memory_space<any>> -> memref<1x512xf32, #tpu.memory_space<any>>
    %c0_i32_353 = arith.constant 0 : i32
    %c0_i32_354 = arith.constant 0 : i32
    %334 = tpu.memref_slice %arg7[%c0_i32_348, %c0_i32_353, %c0_i32_354] : memref<2x8x512xf32, #tpu.memory_space<vmem>> -> memref<1x1x512xf32, #tpu.memory_space<vmem>>
    %335 = tpu.memref_squeeze %334 : memref<1x1x512xf32, #tpu.memory_space<vmem>> -> memref<1x512xf32, #tpu.memory_space<vmem>>
    %336 = tpu.memref_slice %arg8[%c0_i32_349, %c0_i32_350] : memref<2x8x!tpu.dma_semaphore, #tpu.memory_space<semaphore_mem>> -> memref<1x1x!tpu.dma_semaphore, #tpu.memory_space<semaphore_mem>>
    %337 = tpu.memref_squeeze %336 : memref<1x1x!tpu.dma_semaphore, #tpu.memory_space<semaphore_mem>> -> memref<!tpu.dma_semaphore, #tpu.memory_space<semaphore_mem>>
    tpu.wait_dma2 semaphore(%337 : memref<!tpu.dma_semaphore, #tpu.memory_space<semaphore_mem>>) src(%333 : memref<1x512xf32, #tpu.memory_space<any>>) dst(%335 : memref<1x512xf32, #tpu.memory_space<vmem>>)
    %c0_i32_355 = arith.constant 0 : i32
    %c0_i32_356 = arith.constant 0 : i32
    %c1_i32_357 = arith.constant 1 : i32
    %c0_i32_358 = arith.constant 0 : i32
    %c0_i32_359 = arith.constant 0 : i32
    %338 = tpu.memref_slice %arg5[%c0_i32_358, %c0_i32_359] : memref<16x512xf32, #tpu.memory_space<any>> -> memref<1x512xf32, #tpu.memory_space<any>>
    %c1_i32_360 = arith.constant 1 : i32
    %c0_i32_361 = arith.constant 0 : i32
    %339 = tpu.memref_slice %arg7[%c0_i32_355, %c1_i32_360, %c0_i32_361] : memref<2x8x512xf32, #tpu.memory_space<vmem>> -> memref<1x1x512xf32, #tpu.memory_space<vmem>>
    %340 = tpu.memref_squeeze %339 : memref<1x1x512xf32, #tpu.memory_space<vmem>> -> memref<1x512xf32, #tpu.memory_space<vmem>>
    %341 = tpu.memref_slice %arg8[%c0_i32_356, %c1_i32_357] : memref<2x8x!tpu.dma_semaphore, #tpu.memory_space<semaphore_mem>> -> memref<1x1x!tpu.dma_semaphore, #tpu.memory_space<semaphore_mem>>
    %342 = tpu.memref_squeeze %341 : memref<1x1x!tpu.dma_semaphore, #tpu.memory_space<semaphore_mem>> -> memref<!tpu.dma_semaphore, #tpu.memory_space<semaphore_mem>>
    tpu.wait_dma2 semaphore(%342 : memref<!tpu.dma_semaphore, #tpu.memory_space<semaphore_mem>>) src(%338 : memref<1x512xf32, #tpu.memory_space<any>>) dst(%340 : memref<1x512xf32, #tpu.memory_space<vmem>>)
    %c0_i32_362 = arith.constant 0 : i32
    %c0_i32_363 = arith.constant 0 : i32
    %c2_i32_364 = arith.constant 2 : i32
    %c0_i32_365 = arith.constant 0 : i32
    %c0_i32_366 = arith.constant 0 : i32
    %343 = tpu.memref_slice %arg5[%c0_i32_365, %c0_i32_366] : memref<16x512xf32, #tpu.memory_space<any>> -> memref<1x512xf32, #tpu.memory_space<any>>
    %c2_i32_367 = arith.constant 2 : i32
    %c0_i32_368 = arith.constant 0 : i32
    %344 = tpu.memref_slice %arg7[%c0_i32_362, %c2_i32_367, %c0_i32_368] : memref<2x8x512xf32, #tpu.memory_space<vmem>> -> memref<1x1x512xf32, #tpu.memory_space<vmem>>
    %345 = tpu.memref_squeeze %344 : memref<1x1x512xf32, #tpu.memory_space<vmem>> -> memref<1x512xf32, #tpu.memory_space<vmem>>
    %346 = tpu.memref_slice %arg8[%c0_i32_363, %c2_i32_364] : memref<2x8x!tpu.dma_semaphore, #tpu.memory_space<semaphore_mem>> -> memref<1x1x!tpu.dma_semaphore, #tpu.memory_space<semaphore_mem>>
    %347 = tpu.memref_squeeze %346 : memref<1x1x!tpu.dma_semaphore, #tpu.memory_space<semaphore_mem>> -> memref<!tpu.dma_semaphore, #tpu.memory_space<semaphore_mem>>
    tpu.wait_dma2 semaphore(%347 : memref<!tpu.dma_semaphore, #tpu.memory_space<semaphore_mem>>) src(%343 : memref<1x512xf32, #tpu.memory_space<any>>) dst(%345 : memref<1x512xf32, #tpu.memory_space<vmem>>)
    %c0_i32_369 = arith.constant 0 : i32
    %c0_i32_370 = arith.constant 0 : i32
    %c3_i32_371 = arith.constant 3 : i32
    %c0_i32_372 = arith.constant 0 : i32
    %c0_i32_373 = arith.constant 0 : i32
    %348 = tpu.memref_slice %arg5[%c0_i32_372, %c0_i32_373] : memref<16x512xf32, #tpu.memory_space<any>> -> memref<1x512xf32, #tpu.memory_space<any>>
    %c3_i32_374 = arith.constant 3 : i32
    %c0_i32_375 = arith.constant 0 : i32
    %349 = tpu.memref_slice %arg7[%c0_i32_369, %c3_i32_374, %c0_i32_375] : memref<2x8x512xf32, #tpu.memory_space<vmem>> -> memref<1x1x512xf32, #tpu.memory_space<vmem>>
    %350 = tpu.memref_squeeze %349 : memref<1x1x512xf32, #tpu.memory_space<vmem>> -> memref<1x512xf32, #tpu.memory_space<vmem>>
    %351 = tpu.memref_slice %arg8[%c0_i32_370, %c3_i32_371] : memref<2x8x!tpu.dma_semaphore, #tpu.memory_space<semaphore_mem>> -> memref<1x1x!tpu.dma_semaphore, #tpu.memory_space<semaphore_mem>>
    %352 = tpu.memref_squeeze %351 : memref<1x1x!tpu.dma_semaphore, #tpu.memory_space<semaphore_mem>> -> memref<!tpu.dma_semaphore, #tpu.memory_space<semaphore_mem>>
    tpu.wait_dma2 semaphore(%352 : memref<!tpu.dma_semaphore, #tpu.memory_space<semaphore_mem>>) src(%348 : memref<1x512xf32, #tpu.memory_space<any>>) dst(%350 : memref<1x512xf32, #tpu.memory_space<vmem>>)
    %c0_i32_376 = arith.constant 0 : i32
    %c0_i32_377 = arith.constant 0 : i32
    %c4_i32_378 = arith.constant 4 : i32
    %c0_i32_379 = arith.constant 0 : i32
    %c0_i32_380 = arith.constant 0 : i32
    %353 = tpu.memref_slice %arg5[%c0_i32_379, %c0_i32_380] : memref<16x512xf32, #tpu.memory_space<any>> -> memref<1x512xf32, #tpu.memory_space<any>>
    %c4_i32_381 = arith.constant 4 : i32
    %c0_i32_382 = arith.constant 0 : i32
    %354 = tpu.memref_slice %arg7[%c0_i32_376, %c4_i32_381, %c0_i32_382] : memref<2x8x512xf32, #tpu.memory_space<vmem>> -> memref<1x1x512xf32, #tpu.memory_space<vmem>>
    %355 = tpu.memref_squeeze %354 : memref<1x1x512xf32, #tpu.memory_space<vmem>> -> memref<1x512xf32, #tpu.memory_space<vmem>>
    %356 = tpu.memref_slice %arg8[%c0_i32_377, %c4_i32_378] : memref<2x8x!tpu.dma_semaphore, #tpu.memory_space<semaphore_mem>> -> memref<1x1x!tpu.dma_semaphore, #tpu.memory_space<semaphore_mem>>
    %357 = tpu.memref_squeeze %356 : memref<1x1x!tpu.dma_semaphore, #tpu.memory_space<semaphore_mem>> -> memref<!tpu.dma_semaphore, #tpu.memory_space<semaphore_mem>>
    tpu.wait_dma2 semaphore(%357 : memref<!tpu.dma_semaphore, #tpu.memory_space<semaphore_mem>>) src(%353 : memref<1x512xf32, #tpu.memory_space<any>>) dst(%355 : memref<1x512xf32, #tpu.memory_space<vmem>>)
    %c0_i32_383 = arith.constant 0 : i32
    %c0_i32_384 = arith.constant 0 : i32
    %c5_i32_385 = arith.constant 5 : i32
    %c0_i32_386 = arith.constant 0 : i32
    %c0_i32_387 = arith.constant 0 : i32
    %358 = tpu.memref_slice %arg5[%c0_i32_386, %c0_i32_387] : memref<16x512xf32, #tpu.memory_space<any>> -> memref<1x512xf32, #tpu.memory_space<any>>
    %c5_i32_388 = arith.constant 5 : i32
    %c0_i32_389 = arith.constant 0 : i32
    %359 = tpu.memref_slice %arg7[%c0_i32_383, %c5_i32_388, %c0_i32_389] : memref<2x8x512xf32, #tpu.memory_space<vmem>> -> memref<1x1x512xf32, #tpu.memory_space<vmem>>
    %360 = tpu.memref_squeeze %359 : memref<1x1x512xf32, #tpu.memory_space<vmem>> -> memref<1x512xf32, #tpu.memory_space<vmem>>
    %361 = tpu.memref_slice %arg8[%c0_i32_384, %c5_i32_385] : memref<2x8x!tpu.dma_semaphore, #tpu.memory_space<semaphore_mem>> -> memref<1x1x!tpu.dma_semaphore, #tpu.memory_space<semaphore_mem>>
    %362 = tpu.memref_squeeze %361 : memref<1x1x!tpu.dma_semaphore, #tpu.memory_space<semaphore_mem>> -> memref<!tpu.dma_semaphore, #tpu.memory_space<semaphore_mem>>
    tpu.wait_dma2 semaphore(%362 : memref<!tpu.dma_semaphore, #tpu.memory_space<semaphore_mem>>) src(%358 : memref<1x512xf32, #tpu.memory_space<any>>) dst(%360 : memref<1x512xf32, #tpu.memory_space<vmem>>)
    %c0_i32_390 = arith.constant 0 : i32
    %c0_i32_391 = arith.constant 0 : i32
    %c6_i32_392 = arith.constant 6 : i32
    %c0_i32_393 = arith.constant 0 : i32
    %c0_i32_394 = arith.constant 0 : i32
    %363 = tpu.memref_slice %arg5[%c0_i32_393, %c0_i32_394] : memref<16x512xf32, #tpu.memory_space<any>> -> memref<1x512xf32, #tpu.memory_space<any>>
    %c6_i32_395 = arith.constant 6 : i32
    %c0_i32_396 = arith.constant 0 : i32
    %364 = tpu.memref_slice %arg7[%c0_i32_390, %c6_i32_395, %c0_i32_396] : memref<2x8x512xf32, #tpu.memory_space<vmem>> -> memref<1x1x512xf32, #tpu.memory_space<vmem>>
    %365 = tpu.memref_squeeze %364 : memref<1x1x512xf32, #tpu.memory_space<vmem>> -> memref<1x512xf32, #tpu.memory_space<vmem>>
    %366 = tpu.memref_slice %arg8[%c0_i32_391, %c6_i32_392] : memref<2x8x!tpu.dma_semaphore, #tpu.memory_space<semaphore_mem>> -> memref<1x1x!tpu.dma_semaphore, #tpu.memory_space<semaphore_mem>>
    %367 = tpu.memref_squeeze %366 : memref<1x1x!tpu.dma_semaphore, #tpu.memory_space<semaphore_mem>> -> memref<!tpu.dma_semaphore, #tpu.memory_space<semaphore_mem>>
    tpu.wait_dma2 semaphore(%367 : memref<!tpu.dma_semaphore, #tpu.memory_space<semaphore_mem>>) src(%363 : memref<1x512xf32, #tpu.memory_space<any>>) dst(%365 : memref<1x512xf32, #tpu.memory_space<vmem>>)
    %c0_i32_397 = arith.constant 0 : i32
    %c0_i32_398 = arith.constant 0 : i32
    %c7_i32_399 = arith.constant 7 : i32
    %c0_i32_400 = arith.constant 0 : i32
    %c0_i32_401 = arith.constant 0 : i32
    %368 = tpu.memref_slice %arg5[%c0_i32_400, %c0_i32_401] : memref<16x512xf32, #tpu.memory_space<any>> -> memref<1x512xf32, #tpu.memory_space<any>>
    %c7_i32_402 = arith.constant 7 : i32
    %c0_i32_403 = arith.constant 0 : i32
    %369 = tpu.memref_slice %arg7[%c0_i32_397, %c7_i32_402, %c0_i32_403] : memref<2x8x512xf32, #tpu.memory_space<vmem>> -> memref<1x1x512xf32, #tpu.memory_space<vmem>>
    %370 = tpu.memref_squeeze %369 : memref<1x1x512xf32, #tpu.memory_space<vmem>> -> memref<1x512xf32, #tpu.memory_space<vmem>>
    %371 = tpu.memref_slice %arg8[%c0_i32_398, %c7_i32_399] : memref<2x8x!tpu.dma_semaphore, #tpu.memory_space<semaphore_mem>> -> memref<1x1x!tpu.dma_semaphore, #tpu.memory_space<semaphore_mem>>
    %372 = tpu.memref_squeeze %371 : memref<1x1x!tpu.dma_semaphore, #tpu.memory_space<semaphore_mem>> -> memref<!tpu.dma_semaphore, #tpu.memory_space<semaphore_mem>>
    tpu.wait_dma2 semaphore(%372 : memref<!tpu.dma_semaphore, #tpu.memory_space<semaphore_mem>>) src(%368 : memref<1x512xf32, #tpu.memory_space<any>>) dst(%370 : memref<1x512xf32, #tpu.memory_space<vmem>>)
    %c0_404 = arith.constant 0 : index
    %c0_405 = arith.constant 0 : index
    %c0_406 = arith.constant 0 : index
    %373 = vector.load %arg7[%c0_404, %c0_405, %c0_406] : memref<2x8x512xf32, #tpu.memory_space<vmem>>, vector<1x8x512xf32>
    %374 = vector.shape_cast %373 : vector<1x8x512xf32> to vector<8x512xf32>
    %cst_407 = arith.constant dense<0.000000e+00> : vector<512xf32>
    %375 = vector.multi_reduction <add>, %374, %cst_407 [0] : vector<8x512xf32> to vector<512xf32>
    %376 = vector.shape_cast %375 : vector<512xf32> to vector<1x512xf32>
    %cst_408 = arith.constant 1.250000e-01 : f32
    %377 = vector.broadcast %cst_408 : f32 to vector<1x512xf32>
    %378 = arith.mulf %376, %377 : vector<1x512xf32>
    %c2_409 = arith.constant 2 : index
    %c512_410 = arith.constant 512 : index
    %379 = vector.load %arg6[%c2_409, %c512_410] : memref<8x1024xf32, #tpu.memory_space<vmem>>, vector<1x512xf32>
    tpu.vector_store %arg6[%c2_409, %c512_410], %378 {strides = array<i32>} : memref<8x1024xf32, #tpu.memory_space<vmem>>, vector<1x512xf32>,
    %c8_i32_411 = arith.constant 8 : i32
    %380 = arith.muli %arg0, %c8_i32_411 : i32
    %c4_i32_412 = arith.constant 4 : i32
    %381 = arith.addi %380, %c4_i32_412 : i32
    %382 = arith.index_cast %381 : i32 to index
    %c0_413 = arith.constant 0 : index
    %383 = memref.load %arg1[%382, %c0_413] : memref<8x8xi32, #tpu.memory_space<smem>>
    %c0_i32_414 = arith.constant 0 : i32
    %c0_i32_415 = arith.constant 0 : i32
    %c0_i32_416 = arith.constant 0 : i32
    %c0_i32_417 = arith.constant 0 : i32
    %384 = tpu.memref_slice %arg5[%383, %c0_i32_417] : memref<16x512xf32, #tpu.memory_space<any>> -> memref<1x512xf32, #tpu.memory_space<any>>
    %c0_i32_418 = arith.constant 0 : i32
    %c0_i32_419 = arith.constant 0 : i32
    %385 = tpu.memref_slice %arg7[%c0_i32_414, %c0_i32_418, %c0_i32_419] : memref<2x8x512xf32, #tpu.memory_space<vmem>> -> memref<1x1x512xf32, #tpu.memory_space<vmem>>
    %386 = tpu.memref_squeeze %385 : memref<1x1x512xf32, #tpu.memory_space<vmem>> -> memref<1x512xf32, #tpu.memory_space<vmem>>
    %387 = tpu.memref_slice %arg8[%c0_i32_415, %c0_i32_416] : memref<2x8x!tpu.dma_semaphore, #tpu.memory_space<semaphore_mem>> -> memref<1x1x!tpu.dma_semaphore, #tpu.memory_space<semaphore_mem>>
    %388 = tpu.memref_squeeze %387 : memref<1x1x!tpu.dma_semaphore, #tpu.memory_space<semaphore_mem>> -> memref<!tpu.dma_semaphore, #tpu.memory_space<semaphore_mem>>
    tpu.enqueue_dma source(%384 : memref<1x512xf32, #tpu.memory_space<any>>) target(%386 : memref<1x512xf32, #tpu.memory_space<vmem>>) target_semaphore(%388 : memref<!tpu.dma_semaphore, #tpu.memory_space<semaphore_mem>>)
    %389 = arith.index_cast %381 : i32 to index
    %c1_420 = arith.constant 1 : index
    %390 = memref.load %arg1[%389, %c1_420] : memref<8x8xi32, #tpu.memory_space<smem>>
    %c0_i32_421 = arith.constant 0 : i32
    %c0_i32_422 = arith.constant 0 : i32
    %c1_i32_423 = arith.constant 1 : i32
    %c0_i32_424 = arith.constant 0 : i32
    %391 = tpu.memref_slice %arg5[%390, %c0_i32_424] : memref<16x512xf32, #tpu.memory_space<any>> -> memref<1x512xf32, #tpu.memory_space<any>>
    %c1_i32_425 = arith.constant 1 : i32
    %c0_i32_426 = arith.constant 0 : i32
    %392 = tpu.memref_slice %arg7[%c0_i32_421, %c1_i32_425, %c0_i32_426] : memref<2x8x512xf32, #tpu.memory_space<vmem>> -> memref<1x1x512xf32, #tpu.memory_space<vmem>>
    %393 = tpu.memref_squeeze %392 : memref<1x1x512xf32, #tpu.memory_space<vmem>> -> memref<1x512xf32, #tpu.memory_space<vmem>>
    %394 = tpu.memref_slice %arg8[%c0_i32_422, %c1_i32_423] : memref<2x8x!tpu.dma_semaphore, #tpu.memory_space<semaphore_mem>> -> memref<1x1x!tpu.dma_semaphore, #tpu.memory_space<semaphore_mem>>
    %395 = tpu.memref_squeeze %394 : memref<1x1x!tpu.dma_semaphore, #tpu.memory_space<semaphore_mem>> -> memref<!tpu.dma_semaphore, #tpu.memory_space<semaphore_mem>>
    tpu.enqueue_dma source(%391 : memref<1x512xf32, #tpu.memory_space<any>>) target(%393 : memref<1x512xf32, #tpu.memory_space<vmem>>) target_semaphore(%395 : memref<!tpu.dma_semaphore, #tpu.memory_space<semaphore_mem>>)
    %396 = arith.index_cast %381 : i32 to index
    %c2_427 = arith.constant 2 : index
    %397 = memref.load %arg1[%396, %c2_427] : memref<8x8xi32, #tpu.memory_space<smem>>
    %c0_i32_428 = arith.constant 0 : i32
    %c0_i32_429 = arith.constant 0 : i32
    %c2_i32_430 = arith.constant 2 : i32
    %c0_i32_431 = arith.constant 0 : i32
    %398 = tpu.memref_slice %arg5[%397, %c0_i32_431] : memref<16x512xf32, #tpu.memory_space<any>> -> memref<1x512xf32, #tpu.memory_space<any>>
    %c2_i32_432 = arith.constant 2 : i32
    %c0_i32_433 = arith.constant 0 : i32
    %399 = tpu.memref_slice %arg7[%c0_i32_428, %c2_i32_432, %c0_i32_433] : memref<2x8x512xf32, #tpu.memory_space<vmem>> -> memref<1x1x512xf32, #tpu.memory_space<vmem>>
    %400 = tpu.memref_squeeze %399 : memref<1x1x512xf32, #tpu.memory_space<vmem>> -> memref<1x512xf32, #tpu.memory_space<vmem>>
    %401 = tpu.memref_slice %arg8[%c0_i32_429, %c2_i32_430] : memref<2x8x!tpu.dma_semaphore, #tpu.memory_space<semaphore_mem>> -> memref<1x1x!tpu.dma_semaphore, #tpu.memory_space<semaphore_mem>>
    %402 = tpu.memref_squeeze %401 : memref<1x1x!tpu.dma_semaphore, #tpu.memory_space<semaphore_mem>> -> memref<!tpu.dma_semaphore, #tpu.memory_space<semaphore_mem>>
    tpu.enqueue_dma source(%398 : memref<1x512xf32, #tpu.memory_space<any>>) target(%400 : memref<1x512xf32, #tpu.memory_space<vmem>>) target_semaphore(%402 : memref<!tpu.dma_semaphore, #tpu.memory_space<semaphore_mem>>)
    %403 = arith.index_cast %381 : i32 to index
    %c3_434 = arith.constant 3 : index
    %404 = memref.load %arg1[%403, %c3_434] : memref<8x8xi32, #tpu.memory_space<smem>>
    %c0_i32_435 = arith.constant 0 : i32
    %c0_i32_436 = arith.constant 0 : i32
    %c3_i32_437 = arith.constant 3 : i32
    %c0_i32_438 = arith.constant 0 : i32
    %405 = tpu.memref_slice %arg5[%404, %c0_i32_438] : memref<16x512xf32, #tpu.memory_space<any>> -> memref<1x512xf32, #tpu.memory_space<any>>
    %c3_i32_439 = arith.constant 3 : i32
    %c0_i32_440 = arith.constant 0 : i32
    %406 = tpu.memref_slice %arg7[%c0_i32_435, %c3_i32_439, %c0_i32_440] : memref<2x8x512xf32, #tpu.memory_space<vmem>> -> memref<1x1x512xf32, #tpu.memory_space<vmem>>
    %407 = tpu.memref_squeeze %406 : memref<1x1x512xf32, #tpu.memory_space<vmem>> -> memref<1x512xf32, #tpu.memory_space<vmem>>
    %408 = tpu.memref_slice %arg8[%c0_i32_436, %c3_i32_437] : memref<2x8x!tpu.dma_semaphore, #tpu.memory_space<semaphore_mem>> -> memref<1x1x!tpu.dma_semaphore, #tpu.memory_space<semaphore_mem>>
    %409 = tpu.memref_squeeze %408 : memref<1x1x!tpu.dma_semaphore, #tpu.memory_space<semaphore_mem>> -> memref<!tpu.dma_semaphore, #tpu.memory_space<semaphore_mem>>
    tpu.enqueue_dma source(%405 : memref<1x512xf32, #tpu.memory_space<any>>) target(%407 : memref<1x512xf32, #tpu.memory_space<vmem>>) target_semaphore(%409 : memref<!tpu.dma_semaphore, #tpu.memory_space<semaphore_mem>>)
    %410 = arith.index_cast %381 : i32 to index
    %c4_441 = arith.constant 4 : index
    %411 = memref.load %arg1[%410, %c4_441] : memref<8x8xi32, #tpu.memory_space<smem>>
    %c0_i32_442 = arith.constant 0 : i32
    %c0_i32_443 = arith.constant 0 : i32
    %c4_i32_444 = arith.constant 4 : i32
    %c0_i32_445 = arith.constant 0 : i32
    %412 = tpu.memref_slice %arg5[%411, %c0_i32_445] : memref<16x512xf32, #tpu.memory_space<any>> -> memref<1x512xf32, #tpu.memory_space<any>>
    %c4_i32_446 = arith.constant 4 : i32
    %c0_i32_447 = arith.constant 0 : i32
    %413 = tpu.memref_slice %arg7[%c0_i32_442, %c4_i32_446, %c0_i32_447] : memref<2x8x512xf32, #tpu.memory_space<vmem>> -> memref<1x1x512xf32, #tpu.memory_space<vmem>>
    %414 = tpu.memref_squeeze %413 : memref<1x1x512xf32, #tpu.memory_space<vmem>> -> memref<1x512xf32, #tpu.memory_space<vmem>>
    %415 = tpu.memref_slice %arg8[%c0_i32_443, %c4_i32_444] : memref<2x8x!tpu.dma_semaphore, #tpu.memory_space<semaphore_mem>> -> memref<1x1x!tpu.dma_semaphore, #tpu.memory_space<semaphore_mem>>
    %416 = tpu.memref_squeeze %415 : memref<1x1x!tpu.dma_semaphore, #tpu.memory_space<semaphore_mem>> -> memref<!tpu.dma_semaphore, #tpu.memory_space<semaphore_mem>>
    tpu.enqueue_dma source(%412 : memref<1x512xf32, #tpu.memory_space<any>>) target(%414 : memref<1x512xf32, #tpu.memory_space<vmem>>) target_semaphore(%416 : memref<!tpu.dma_semaphore, #tpu.memory_space<semaphore_mem>>)
    %417 = arith.index_cast %381 : i32 to index
    %c5_448 = arith.constant 5 : index
    %418 = memref.load %arg1[%417, %c5_448] : memref<8x8xi32, #tpu.memory_space<smem>>
    %c0_i32_449 = arith.constant 0 : i32
    %c0_i32_450 = arith.constant 0 : i32
    %c5_i32_451 = arith.constant 5 : i32
    %c0_i32_452 = arith.constant 0 : i32
    %419 = tpu.memref_slice %arg5[%418, %c0_i32_452] : memref<16x512xf32, #tpu.memory_space<any>> -> memref<1x512xf32, #tpu.memory_space<any>>
    %c5_i32_453 = arith.constant 5 : i32
    %c0_i32_454 = arith.constant 0 : i32
    %420 = tpu.memref_slice %arg7[%c0_i32_449, %c5_i32_453, %c0_i32_454] : memref<2x8x512xf32, #tpu.memory_space<vmem>> -> memref<1x1x512xf32, #tpu.memory_space<vmem>>
    %421 = tpu.memref_squeeze %420 : memref<1x1x512xf32, #tpu.memory_space<vmem>> -> memref<1x512xf32, #tpu.memory_space<vmem>>
    %422 = tpu.memref_slice %arg8[%c0_i32_450, %c5_i32_451] : memref<2x8x!tpu.dma_semaphore, #tpu.memory_space<semaphore_mem>> -> memref<1x1x!tpu.dma_semaphore, #tpu.memory_space<semaphore_mem>>
    %423 = tpu.memref_squeeze %422 : memref<1x1x!tpu.dma_semaphore, #tpu.memory_space<semaphore_mem>> -> memref<!tpu.dma_semaphore, #tpu.memory_space<semaphore_mem>>
    tpu.enqueue_dma source(%419 : memref<1x512xf32, #tpu.memory_space<any>>) target(%421 : memref<1x512xf32, #tpu.memory_space<vmem>>) target_semaphore(%423 : memref<!tpu.dma_semaphore, #tpu.memory_space<semaphore_mem>>)
    %424 = arith.index_cast %381 : i32 to index
    %c6_455 = arith.constant 6 : index
    %425 = memref.load %arg1[%424, %c6_455] : memref<8x8xi32, #tpu.memory_space<smem>>
    %c0_i32_456 = arith.constant 0 : i32
    %c0_i32_457 = arith.constant 0 : i32
    %c6_i32_458 = arith.constant 6 : i32
    %c0_i32_459 = arith.constant 0 : i32
    %426 = tpu.memref_slice %arg5[%425, %c0_i32_459] : memref<16x512xf32, #tpu.memory_space<any>> -> memref<1x512xf32, #tpu.memory_space<any>>
    %c6_i32_460 = arith.constant 6 : i32
    %c0_i32_461 = arith.constant 0 : i32
    %427 = tpu.memref_slice %arg7[%c0_i32_456, %c6_i32_460, %c0_i32_461] : memref<2x8x512xf32, #tpu.memory_space<vmem>> -> memref<1x1x512xf32, #tpu.memory_space<vmem>>
    %428 = tpu.memref_squeeze %427 : memref<1x1x512xf32, #tpu.memory_space<vmem>> -> memref<1x512xf32, #tpu.memory_space<vmem>>
    %429 = tpu.memref_slice %arg8[%c0_i32_457, %c6_i32_458] : memref<2x8x!tpu.dma_semaphore, #tpu.memory_space<semaphore_mem>> -> memref<1x1x!tpu.dma_semaphore, #tpu.memory_space<semaphore_mem>>
    %430 = tpu.memref_squeeze %429 : memref<1x1x!tpu.dma_semaphore, #tpu.memory_space<semaphore_mem>> -> memref<!tpu.dma_semaphore, #tpu.memory_space<semaphore_mem>>
    tpu.enqueue_dma source(%426 : memref<1x512xf32, #tpu.memory_space<any>>) target(%428 : memref<1x512xf32, #tpu.memory_space<vmem>>) target_semaphore(%430 : memref<!tpu.dma_semaphore, #tpu.memory_space<semaphore_mem>>)
    %431 = arith.index_cast %381 : i32 to index
    %c7_462 = arith.constant 7 : index
    %432 = memref.load %arg1[%431, %c7_462] : memref<8x8xi32, #tpu.memory_space<smem>>
    %c0_i32_463 = arith.constant 0 : i32
    %c0_i32_464 = arith.constant 0 : i32
    %c7_i32_465 = arith.constant 7 : i32
    %c0_i32_466 = arith.constant 0 : i32
    %433 = tpu.memref_slice %arg5[%432, %c0_i32_466] : memref<16x512xf32, #tpu.memory_space<any>> -> memref<1x512xf32, #tpu.memory_space<any>>
    %c7_i32_467 = arith.constant 7 : i32
    %c0_i32_468 = arith.constant 0 : i32
    %434 = tpu.memref_slice %arg7[%c0_i32_463, %c7_i32_467, %c0_i32_468] : memref<2x8x512xf32, #tpu.memory_space<vmem>> -> memref<1x1x512xf32, #tpu.memory_space<vmem>>
    %435 = tpu.memref_squeeze %434 : memref<1x1x512xf32, #tpu.memory_space<vmem>> -> memref<1x512xf32, #tpu.memory_space<vmem>>
    %436 = tpu.memref_slice %arg8[%c0_i32_464, %c7_i32_465] : memref<2x8x!tpu.dma_semaphore, #tpu.memory_space<semaphore_mem>> -> memref<1x1x!tpu.dma_semaphore, #tpu.memory_space<semaphore_mem>>
    %437 = tpu.memref_squeeze %436 : memref<1x1x!tpu.dma_semaphore, #tpu.memory_space<semaphore_mem>> -> memref<!tpu.dma_semaphore, #tpu.memory_space<semaphore_mem>>
    tpu.enqueue_dma source(%433 : memref<1x512xf32, #tpu.memory_space<any>>) target(%435 : memref<1x512xf32, #tpu.memory_space<vmem>>) target_semaphore(%437 : memref<!tpu.dma_semaphore, #tpu.memory_space<semaphore_mem>>)
    %c1_i32_469 = arith.constant 1 : i32
    %c1_i32_470 = arith.constant 1 : i32
    %c0_i32_471 = arith.constant 0 : i32
    %c0_i32_472 = arith.constant 0 : i32
    %c0_i32_473 = arith.constant 0 : i32
    %438 = tpu.memref_slice %arg5[%c0_i32_472, %c0_i32_473] : memref<16x512xf32, #tpu.memory_space<any>> -> memref<1x512xf32, #tpu.memory_space<any>>
    %c0_i32_474 = arith.constant 0 : i32
    %c0_i32_475 = arith.constant 0 : i32
    %439 = tpu.memref_slice %arg7[%c1_i32_469, %c0_i32_474, %c0_i32_475] : memref<2x8x512xf32, #tpu.memory_space<vmem>> -> memref<1x1x512xf32, #tpu.memory_space<vmem>>
    %440 = tpu.memref_squeeze %439 : memref<1x1x512xf32, #tpu.memory_space<vmem>> -> memref<1x512xf32, #tpu.memory_space<vmem>>
    %441 = tpu.memref_slice %arg8[%c1_i32_470, %c0_i32_471] : memref<2x8x!tpu.dma_semaphore, #tpu.memory_space<semaphore_mem>> -> memref<1x1x!tpu.dma_semaphore, #tpu.memory_space<semaphore_mem>>
    %442 = tpu.memref_squeeze %441 : memref<1x1x!tpu.dma_semaphore, #tpu.memory_space<semaphore_mem>> -> memref<!tpu.dma_semaphore, #tpu.memory_space<semaphore_mem>>
    tpu.wait_dma2 semaphore(%442 : memref<!tpu.dma_semaphore, #tpu.memory_space<semaphore_mem>>) src(%438 : memref<1x512xf32, #tpu.memory_space<any>>) dst(%440 : memref<1x512xf32, #tpu.memory_space<vmem>>)
    %c1_i32_476 = arith.constant 1 : i32
    %c1_i32_477 = arith.constant 1 : i32
    %c1_i32_478 = arith.constant 1 : i32
    %c0_i32_479 = arith.constant 0 : i32
    %c0_i32_480 = arith.constant 0 : i32
    %443 = tpu.memref_slice %arg5[%c0_i32_479, %c0_i32_480] : memref<16x512xf32, #tpu.memory_space<any>> -> memref<1x512xf32, #tpu.memory_space<any>>
    %c1_i32_481 = arith.constant 1 : i32
    %c0_i32_482 = arith.constant 0 : i32
    %444 = tpu.memref_slice %arg7[%c1_i32_476, %c1_i32_481, %c0_i32_482] : memref<2x8x512xf32, #tpu.memory_space<vmem>> -> memref<1x1x512xf32, #tpu.memory_space<vmem>>
    %445 = tpu.memref_squeeze %444 : memref<1x1x512xf32, #tpu.memory_space<vmem>> -> memref<1x512xf32, #tpu.memory_space<vmem>>
    %446 = tpu.memref_slice %arg8[%c1_i32_477, %c1_i32_478] : memref<2x8x!tpu.dma_semaphore, #tpu.memory_space<semaphore_mem>> -> memref<1x1x!tpu.dma_semaphore, #tpu.memory_space<semaphore_mem>>
    %447 = tpu.memref_squeeze %446 : memref<1x1x!tpu.dma_semaphore, #tpu.memory_space<semaphore_mem>> -> memref<!tpu.dma_semaphore, #tpu.memory_space<semaphore_mem>>
    tpu.wait_dma2 semaphore(%447 : memref<!tpu.dma_semaphore, #tpu.memory_space<semaphore_mem>>) src(%443 : memref<1x512xf32, #tpu.memory_space<any>>) dst(%445 : memref<1x512xf32, #tpu.memory_space<vmem>>)
    %c1_i32_483 = arith.constant 1 : i32
    %c1_i32_484 = arith.constant 1 : i32
    %c2_i32_485 = arith.constant 2 : i32
    %c0_i32_486 = arith.constant 0 : i32
    %c0_i32_487 = arith.constant 0 : i32
    %448 = tpu.memref_slice %arg5[%c0_i32_486, %c0_i32_487] : memref<16x512xf32, #tpu.memory_space<any>> -> memref<1x512xf32, #tpu.memory_space<any>>
    %c2_i32_488 = arith.constant 2 : i32
    %c0_i32_489 = arith.constant 0 : i32
    %449 = tpu.memref_slice %arg7[%c1_i32_483, %c2_i32_488, %c0_i32_489] : memref<2x8x512xf32, #tpu.memory_space<vmem>> -> memref<1x1x512xf32, #tpu.memory_space<vmem>>
    %450 = tpu.memref_squeeze %449 : memref<1x1x512xf32, #tpu.memory_space<vmem>> -> memref<1x512xf32, #tpu.memory_space<vmem>>
    %451 = tpu.memref_slice %arg8[%c1_i32_484, %c2_i32_485] : memref<2x8x!tpu.dma_semaphore, #tpu.memory_space<semaphore_mem>> -> memref<1x1x!tpu.dma_semaphore, #tpu.memory_space<semaphore_mem>>
    %452 = tpu.memref_squeeze %451 : memref<1x1x!tpu.dma_semaphore, #tpu.memory_space<semaphore_mem>> -> memref<!tpu.dma_semaphore, #tpu.memory_space<semaphore_mem>>
    tpu.wait_dma2 semaphore(%452 : memref<!tpu.dma_semaphore, #tpu.memory_space<semaphore_mem>>) src(%448 : memref<1x512xf32, #tpu.memory_space<any>>) dst(%450 : memref<1x512xf32, #tpu.memory_space<vmem>>)
    %c1_i32_490 = arith.constant 1 : i32
    %c1_i32_491 = arith.constant 1 : i32
    %c3_i32_492 = arith.constant 3 : i32
    %c0_i32_493 = arith.constant 0 : i32
    %c0_i32_494 = arith.constant 0 : i32
    %453 = tpu.memref_slice %arg5[%c0_i32_493, %c0_i32_494] : memref<16x512xf32, #tpu.memory_space<any>> -> memref<1x512xf32, #tpu.memory_space<any>>
    %c3_i32_495 = arith.constant 3 : i32
    %c0_i32_496 = arith.constant 0 : i32
    %454 = tpu.memref_slice %arg7[%c1_i32_490, %c3_i32_495, %c0_i32_496] : memref<2x8x512xf32, #tpu.memory_space<vmem>> -> memref<1x1x512xf32, #tpu.memory_space<vmem>>
    %455 = tpu.memref_squeeze %454 : memref<1x1x512xf32, #tpu.memory_space<vmem>> -> memref<1x512xf32, #tpu.memory_space<vmem>>
    %456 = tpu.memref_slice %arg8[%c1_i32_491, %c3_i32_492] : memref<2x8x!tpu.dma_semaphore, #tpu.memory_space<semaphore_mem>> -> memref<1x1x!tpu.dma_semaphore, #tpu.memory_space<semaphore_mem>>
    %457 = tpu.memref_squeeze %456 : memref<1x1x!tpu.dma_semaphore, #tpu.memory_space<semaphore_mem>> -> memref<!tpu.dma_semaphore, #tpu.memory_space<semaphore_mem>>
    tpu.wait_dma2 semaphore(%457 : memref<!tpu.dma_semaphore, #tpu.memory_space<semaphore_mem>>) src(%453 : memref<1x512xf32, #tpu.memory_space<any>>) dst(%455 : memref<1x512xf32, #tpu.memory_space<vmem>>)
    %c1_i32_497 = arith.constant 1 : i32
    %c1_i32_498 = arith.constant 1 : i32
    %c4_i32_499 = arith.constant 4 : i32
    %c0_i32_500 = arith.constant 0 : i32
    %c0_i32_501 = arith.constant 0 : i32
    %458 = tpu.memref_slice %arg5[%c0_i32_500, %c0_i32_501] : memref<16x512xf32, #tpu.memory_space<any>> -> memref<1x512xf32, #tpu.memory_space<any>>
    %c4_i32_502 = arith.constant 4 : i32
    %c0_i32_503 = arith.constant 0 : i32
    %459 = tpu.memref_slice %arg7[%c1_i32_497, %c4_i32_502, %c0_i32_503] : memref<2x8x512xf32, #tpu.memory_space<vmem>> -> memref<1x1x512xf32, #tpu.memory_space<vmem>>
    %460 = tpu.memref_squeeze %459 : memref<1x1x512xf32, #tpu.memory_space<vmem>> -> memref<1x512xf32, #tpu.memory_space<vmem>>
    %461 = tpu.memref_slice %arg8[%c1_i32_498, %c4_i32_499] : memref<2x8x!tpu.dma_semaphore, #tpu.memory_space<semaphore_mem>> -> memref<1x1x!tpu.dma_semaphore, #tpu.memory_space<semaphore_mem>>
    %462 = tpu.memref_squeeze %461 : memref<1x1x!tpu.dma_semaphore, #tpu.memory_space<semaphore_mem>> -> memref<!tpu.dma_semaphore, #tpu.memory_space<semaphore_mem>>
    tpu.wait_dma2 semaphore(%462 : memref<!tpu.dma_semaphore, #tpu.memory_space<semaphore_mem>>) src(%458 : memref<1x512xf32, #tpu.memory_space<any>>) dst(%460 : memref<1x512xf32, #tpu.memory_space<vmem>>)
    %c1_i32_504 = arith.constant 1 : i32
    %c1_i32_505 = arith.constant 1 : i32
    %c5_i32_506 = arith.constant 5 : i32
    %c0_i32_507 = arith.constant 0 : i32
    %c0_i32_508 = arith.constant 0 : i32
    %463 = tpu.memref_slice %arg5[%c0_i32_507, %c0_i32_508] : memref<16x512xf32, #tpu.memory_space<any>> -> memref<1x512xf32, #tpu.memory_space<any>>
    %c5_i32_509 = arith.constant 5 : i32
    %c0_i32_510 = arith.constant 0 : i32
    %464 = tpu.memref_slice %arg7[%c1_i32_504, %c5_i32_509, %c0_i32_510] : memref<2x8x512xf32, #tpu.memory_space<vmem>> -> memref<1x1x512xf32, #tpu.memory_space<vmem>>
    %465 = tpu.memref_squeeze %464 : memref<1x1x512xf32, #tpu.memory_space<vmem>> -> memref<1x512xf32, #tpu.memory_space<vmem>>
    %466 = tpu.memref_slice %arg8[%c1_i32_505, %c5_i32_506] : memref<2x8x!tpu.dma_semaphore, #tpu.memory_space<semaphore_mem>> -> memref<1x1x!tpu.dma_semaphore, #tpu.memory_space<semaphore_mem>>
    %467 = tpu.memref_squeeze %466 : memref<1x1x!tpu.dma_semaphore, #tpu.memory_space<semaphore_mem>> -> memref<!tpu.dma_semaphore, #tpu.memory_space<semaphore_mem>>
    tpu.wait_dma2 semaphore(%467 : memref<!tpu.dma_semaphore, #tpu.memory_space<semaphore_mem>>) src(%463 : memref<1x512xf32, #tpu.memory_space<any>>) dst(%465 : memref<1x512xf32, #tpu.memory_space<vmem>>)
    %c1_i32_511 = arith.constant 1 : i32
    %c1_i32_512 = arith.constant 1 : i32
    %c6_i32_513 = arith.constant 6 : i32
    %c0_i32_514 = arith.constant 0 : i32
    %c0_i32_515 = arith.constant 0 : i32
    %468 = tpu.memref_slice %arg5[%c0_i32_514, %c0_i32_515] : memref<16x512xf32, #tpu.memory_space<any>> -> memref<1x512xf32, #tpu.memory_space<any>>
    %c6_i32_516 = arith.constant 6 : i32
    %c0_i32_517 = arith.constant 0 : i32
    %469 = tpu.memref_slice %arg7[%c1_i32_511, %c6_i32_516, %c0_i32_517] : memref<2x8x512xf32, #tpu.memory_space<vmem>> -> memref<1x1x512xf32, #tpu.memory_space<vmem>>
    %470 = tpu.memref_squeeze %469 : memref<1x1x512xf32, #tpu.memory_space<vmem>> -> memref<1x512xf32, #tpu.memory_space<vmem>>
    %471 = tpu.memref_slice %arg8[%c1_i32_512, %c6_i32_513] : memref<2x8x!tpu.dma_semaphore, #tpu.memory_space<semaphore_mem>> -> memref<1x1x!tpu.dma_semaphore, #tpu.memory_space<semaphore_mem>>
    %472 = tpu.memref_squeeze %471 : memref<1x1x!tpu.dma_semaphore, #tpu.memory_space<semaphore_mem>> -> memref<!tpu.dma_semaphore, #tpu.memory_space<semaphore_mem>>
    tpu.wait_dma2 semaphore(%472 : memref<!tpu.dma_semaphore, #tpu.memory_space<semaphore_mem>>) src(%468 : memref<1x512xf32, #tpu.memory_space<any>>) dst(%470 : memref<1x512xf32, #tpu.memory_space<vmem>>)
    %c1_i32_518 = arith.constant 1 : i32
    %c1_i32_519 = arith.constant 1 : i32
    %c7_i32_520 = arith.constant 7 : i32
    %c0_i32_521 = arith.constant 0 : i32
    %c0_i32_522 = arith.constant 0 : i32
    %473 = tpu.memref_slice %arg5[%c0_i32_521, %c0_i32_522] : memref<16x512xf32, #tpu.memory_space<any>> -> memref<1x512xf32, #tpu.memory_space<any>>
    %c7_i32_523 = arith.constant 7 : i32
    %c0_i32_524 = arith.constant 0 : i32
    %474 = tpu.memref_slice %arg7[%c1_i32_518, %c7_i32_523, %c0_i32_524] : memref<2x8x512xf32, #tpu.memory_space<vmem>> -> memref<1x1x512xf32, #tpu.memory_space<vmem>>
    %475 = tpu.memref_squeeze %474 : memref<1x1x512xf32, #tpu.memory_space<vmem>> -> memref<1x512xf32, #tpu.memory_space<vmem>>
    %476 = tpu.memref_slice %arg8[%c1_i32_519, %c7_i32_520] : memref<2x8x!tpu.dma_semaphore, #tpu.memory_space<semaphore_mem>> -> memref<1x1x!tpu.dma_semaphore, #tpu.memory_space<semaphore_mem>>
    %477 = tpu.memref_squeeze %476 : memref<1x1x!tpu.dma_semaphore, #tpu.memory_space<semaphore_mem>> -> memref<!tpu.dma_semaphore, #tpu.memory_space<semaphore_mem>>
    tpu.wait_dma2 semaphore(%477 : memref<!tpu.dma_semaphore, #tpu.memory_space<semaphore_mem>>) src(%473 : memref<1x512xf32, #tpu.memory_space<any>>) dst(%475 : memref<1x512xf32, #tpu.memory_space<vmem>>)
    %c1_525 = arith.constant 1 : index
    %c0_526 = arith.constant 0 : index
    %c0_527 = arith.constant 0 : index
    %478 = vector.load %arg7[%c1_525, %c0_526, %c0_527] : memref<2x8x512xf32, #tpu.memory_space<vmem>>, vector<1x8x512xf32>
    %479 = vector.shape_cast %478 : vector<1x8x512xf32> to vector<8x512xf32>
    %cst_528 = arith.constant dense<0.000000e+00> : vector<512xf32>
    %480 = vector.multi_reduction <add>, %479, %cst_528 [0] : vector<8x512xf32> to vector<512xf32>
    %481 = vector.shape_cast %480 : vector<512xf32> to vector<1x512xf32>
    %cst_529 = arith.constant 1.250000e-01 : f32
    %482 = vector.broadcast %cst_529 : f32 to vector<1x512xf32>
    %483 = arith.mulf %481, %482 : vector<1x512xf32>
    %c3_530 = arith.constant 3 : index
    %c512_531 = arith.constant 512 : index
    %484 = vector.load %arg6[%c3_530, %c512_531] : memref<8x1024xf32, #tpu.memory_space<vmem>>, vector<1x512xf32>
    tpu.vector_store %arg6[%c3_530, %c512_531], %483 {strides = array<i32>} : memref<8x1024xf32, #tpu.memory_space<vmem>>, vector<1x512xf32>,
    %c8_i32_532 = arith.constant 8 : i32
    %485 = arith.muli %arg0, %c8_i32_532 : i32
    %c5_i32_533 = arith.constant 5 : i32
    %486 = arith.addi %485, %c5_i32_533 : i32
    %487 = arith.index_cast %486 : i32 to index
    %c0_534 = arith.constant 0 : index
    %488 = memref.load %arg1[%487, %c0_534] : memref<8x8xi32, #tpu.memory_space<smem>>
    %c1_i32_535 = arith.constant 1 : i32
    %c1_i32_536 = arith.constant 1 : i32
    %c0_i32_537 = arith.constant 0 : i32
    %c0_i32_538 = arith.constant 0 : i32
    %489 = tpu.memref_slice %arg5[%488, %c0_i32_538] : memref<16x512xf32, #tpu.memory_space<any>> -> memref<1x512xf32, #tpu.memory_space<any>>
    %c0_i32_539 = arith.constant 0 : i32
    %c0_i32_540 = arith.constant 0 : i32
    %490 = tpu.memref_slice %arg7[%c1_i32_535, %c0_i32_539, %c0_i32_540] : memref<2x8x512xf32, #tpu.memory_space<vmem>> -> memref<1x1x512xf32, #tpu.memory_space<vmem>>
    %491 = tpu.memref_squeeze %490 : memref<1x1x512xf32, #tpu.memory_space<vmem>> -> memref<1x512xf32, #tpu.memory_space<vmem>>
    %492 = tpu.memref_slice %arg8[%c1_i32_536, %c0_i32_537] : memref<2x8x!tpu.dma_semaphore, #tpu.memory_space<semaphore_mem>> -> memref<1x1x!tpu.dma_semaphore, #tpu.memory_space<semaphore_mem>>
    %493 = tpu.memref_squeeze %492 : memref<1x1x!tpu.dma_semaphore, #tpu.memory_space<semaphore_mem>> -> memref<!tpu.dma_semaphore, #tpu.memory_space<semaphore_mem>>
    tpu.enqueue_dma source(%489 : memref<1x512xf32, #tpu.memory_space<any>>) target(%491 : memref<1x512xf32, #tpu.memory_space<vmem>>) target_semaphore(%493 : memref<!tpu.dma_semaphore, #tpu.memory_space<semaphore_mem>>)
    %494 = arith.index_cast %486 : i32 to index
    %c1_541 = arith.constant 1 : index
    %495 = memref.load %arg1[%494, %c1_541] : memref<8x8xi32, #tpu.memory_space<smem>>
    %c1_i32_542 = arith.constant 1 : i32
    %c1_i32_543 = arith.constant 1 : i32
    %c1_i32_544 = arith.constant 1 : i32
    %c0_i32_545 = arith.constant 0 : i32
    %496 = tpu.memref_slice %arg5[%495, %c0_i32_545] : memref<16x512xf32, #tpu.memory_space<any>> -> memref<1x512xf32, #tpu.memory_space<any>>
    %c1_i32_546 = arith.constant 1 : i32
    %c0_i32_547 = arith.constant 0 : i32
    %497 = tpu.memref_slice %arg7[%c1_i32_542, %c1_i32_546, %c0_i32_547] : memref<2x8x512xf32, #tpu.memory_space<vmem>> -> memref<1x1x512xf32, #tpu.memory_space<vmem>>
    %498 = tpu.memref_squeeze %497 : memref<1x1x512xf32, #tpu.memory_space<vmem>> -> memref<1x512xf32, #tpu.memory_space<vmem>>
    %499 = tpu.memref_slice %arg8[%c1_i32_543, %c1_i32_544] : memref<2x8x!tpu.dma_semaphore, #tpu.memory_space<semaphore_mem>> -> memref<1x1x!tpu.dma_semaphore, #tpu.memory_space<semaphore_mem>>
    %500 = tpu.memref_squeeze %499 : memref<1x1x!tpu.dma_semaphore, #tpu.memory_space<semaphore_mem>> -> memref<!tpu.dma_semaphore, #tpu.memory_space<semaphore_mem>>
    tpu.enqueue_dma source(%496 : memref<1x512xf32, #tpu.memory_space<any>>) target(%498 : memref<1x512xf32, #tpu.memory_space<vmem>>) target_semaphore(%500 : memref<!tpu.dma_semaphore, #tpu.memory_space<semaphore_mem>>)
    %501 = arith.index_cast %486 : i32 to index
    %c2_548 = arith.constant 2 : index
    %502 = memref.load %arg1[%501, %c2_548] : memref<8x8xi32, #tpu.memory_space<smem>>
    %c1_i32_549 = arith.constant 1 : i32
    %c1_i32_550 = arith.constant 1 : i32
    %c2_i32_551 = arith.constant 2 : i32
    %c0_i32_552 = arith.constant 0 : i32
    %503 = tpu.memref_slice %arg5[%502, %c0_i32_552] : memref<16x512xf32, #tpu.memory_space<any>> -> memref<1x512xf32, #tpu.memory_space<any>>
    %c2_i32_553 = arith.constant 2 : i32
    %c0_i32_554 = arith.constant 0 : i32
    %504 = tpu.memref_slice %arg7[%c1_i32_549, %c2_i32_553, %c0_i32_554] : memref<2x8x512xf32, #tpu.memory_space<vmem>> -> memref<1x1x512xf32, #tpu.memory_space<vmem>>
    %505 = tpu.memref_squeeze %504 : memref<1x1x512xf32, #tpu.memory_space<vmem>> -> memref<1x512xf32, #tpu.memory_space<vmem>>
    %506 = tpu.memref_slice %arg8[%c1_i32_550, %c2_i32_551] : memref<2x8x!tpu.dma_semaphore, #tpu.memory_space<semaphore_mem>> -> memref<1x1x!tpu.dma_semaphore, #tpu.memory_space<semaphore_mem>>
    %507 = tpu.memref_squeeze %506 : memref<1x1x!tpu.dma_semaphore, #tpu.memory_space<semaphore_mem>> -> memref<!tpu.dma_semaphore, #tpu.memory_space<semaphore_mem>>
    tpu.enqueue_dma source(%503 : memref<1x512xf32, #tpu.memory_space<any>>) target(%505 : memref<1x512xf32, #tpu.memory_space<vmem>>) target_semaphore(%507 : memref<!tpu.dma_semaphore, #tpu.memory_space<semaphore_mem>>)
    %508 = arith.index_cast %486 : i32 to index
    %c3_555 = arith.constant 3 : index
    %509 = memref.load %arg1[%508, %c3_555] : memref<8x8xi32, #tpu.memory_space<smem>>
    %c1_i32_556 = arith.constant 1 : i32
    %c1_i32_557 = arith.constant 1 : i32
    %c3_i32_558 = arith.constant 3 : i32
    %c0_i32_559 = arith.constant 0 : i32
    %510 = tpu.memref_slice %arg5[%509, %c0_i32_559] : memref<16x512xf32, #tpu.memory_space<any>> -> memref<1x512xf32, #tpu.memory_space<any>>
    %c3_i32_560 = arith.constant 3 : i32
    %c0_i32_561 = arith.constant 0 : i32
    %511 = tpu.memref_slice %arg7[%c1_i32_556, %c3_i32_560, %c0_i32_561] : memref<2x8x512xf32, #tpu.memory_space<vmem>> -> memref<1x1x512xf32, #tpu.memory_space<vmem>>
    %512 = tpu.memref_squeeze %511 : memref<1x1x512xf32, #tpu.memory_space<vmem>> -> memref<1x512xf32, #tpu.memory_space<vmem>>
    %513 = tpu.memref_slice %arg8[%c1_i32_557, %c3_i32_558] : memref<2x8x!tpu.dma_semaphore, #tpu.memory_space<semaphore_mem>> -> memref<1x1x!tpu.dma_semaphore, #tpu.memory_space<semaphore_mem>>
    %514 = tpu.memref_squeeze %513 : memref<1x1x!tpu.dma_semaphore, #tpu.memory_space<semaphore_mem>> -> memref<!tpu.dma_semaphore, #tpu.memory_space<semaphore_mem>>
    tpu.enqueue_dma source(%510 : memref<1x512xf32, #tpu.memory_space<any>>) target(%512 : memref<1x512xf32, #tpu.memory_space<vmem>>) target_semaphore(%514 : memref<!tpu.dma_semaphore, #tpu.memory_space<semaphore_mem>>)
    %515 = arith.index_cast %486 : i32 to index
    %c4_562 = arith.constant 4 : index
    %516 = memref.load %arg1[%515, %c4_562] : memref<8x8xi32, #tpu.memory_space<smem>>
    %c1_i32_563 = arith.constant 1 : i32
    %c1_i32_564 = arith.constant 1 : i32
    %c4_i32_565 = arith.constant 4 : i32
    %c0_i32_566 = arith.constant 0 : i32
    %517 = tpu.memref_slice %arg5[%516, %c0_i32_566] : memref<16x512xf32, #tpu.memory_space<any>> -> memref<1x512xf32, #tpu.memory_space<any>>
    %c4_i32_567 = arith.constant 4 : i32
    %c0_i32_568 = arith.constant 0 : i32
    %518 = tpu.memref_slice %arg7[%c1_i32_563, %c4_i32_567, %c0_i32_568] : memref<2x8x512xf32, #tpu.memory_space<vmem>> -> memref<1x1x512xf32, #tpu.memory_space<vmem>>
    %519 = tpu.memref_squeeze %518 : memref<1x1x512xf32, #tpu.memory_space<vmem>> -> memref<1x512xf32, #tpu.memory_space<vmem>>
    %520 = tpu.memref_slice %arg8[%c1_i32_564, %c4_i32_565] : memref<2x8x!tpu.dma_semaphore, #tpu.memory_space<semaphore_mem>> -> memref<1x1x!tpu.dma_semaphore, #tpu.memory_space<semaphore_mem>>
    %521 = tpu.memref_squeeze %520 : memref<1x1x!tpu.dma_semaphore, #tpu.memory_space<semaphore_mem>> -> memref<!tpu.dma_semaphore, #tpu.memory_space<semaphore_mem>>
    tpu.enqueue_dma source(%517 : memref<1x512xf32, #tpu.memory_space<any>>) target(%519 : memref<1x512xf32, #tpu.memory_space<vmem>>) target_semaphore(%521 : memref<!tpu.dma_semaphore, #tpu.memory_space<semaphore_mem>>)
    %522 = arith.index_cast %486 : i32 to index
    %c5_569 = arith.constant 5 : index
    %523 = memref.load %arg1[%522, %c5_569] : memref<8x8xi32, #tpu.memory_space<smem>>
    %c1_i32_570 = arith.constant 1 : i32
    %c1_i32_571 = arith.constant 1 : i32
    %c5_i32_572 = arith.constant 5 : i32
    %c0_i32_573 = arith.constant 0 : i32
    %524 = tpu.memref_slice %arg5[%523, %c0_i32_573] : memref<16x512xf32, #tpu.memory_space<any>> -> memref<1x512xf32, #tpu.memory_space<any>>
    %c5_i32_574 = arith.constant 5 : i32
    %c0_i32_575 = arith.constant 0 : i32
    %525 = tpu.memref_slice %arg7[%c1_i32_570, %c5_i32_574, %c0_i32_575] : memref<2x8x512xf32, #tpu.memory_space<vmem>> -> memref<1x1x512xf32, #tpu.memory_space<vmem>>
    %526 = tpu.memref_squeeze %525 : memref<1x1x512xf32, #tpu.memory_space<vmem>> -> memref<1x512xf32, #tpu.memory_space<vmem>>
    %527 = tpu.memref_slice %arg8[%c1_i32_571, %c5_i32_572] : memref<2x8x!tpu.dma_semaphore, #tpu.memory_space<semaphore_mem>> -> memref<1x1x!tpu.dma_semaphore, #tpu.memory_space<semaphore_mem>>
    %528 = tpu.memref_squeeze %527 : memref<1x1x!tpu.dma_semaphore, #tpu.memory_space<semaphore_mem>> -> memref<!tpu.dma_semaphore, #tpu.memory_space<semaphore_mem>>
    tpu.enqueue_dma source(%524 : memref<1x512xf32, #tpu.memory_space<any>>) target(%526 : memref<1x512xf32, #tpu.memory_space<vmem>>) target_semaphore(%528 : memref<!tpu.dma_semaphore, #tpu.memory_space<semaphore_mem>>)
    %529 = arith.index_cast %486 : i32 to index
    %c6_576 = arith.constant 6 : index
    %530 = memref.load %arg1[%529, %c6_576] : memref<8x8xi32, #tpu.memory_space<smem>>
    %c1_i32_577 = arith.constant 1 : i32
    %c1_i32_578 = arith.constant 1 : i32
    %c6_i32_579 = arith.constant 6 : i32
    %c0_i32_580 = arith.constant 0 : i32
    %531 = tpu.memref_slice %arg5[%530, %c0_i32_580] : memref<16x512xf32, #tpu.memory_space<any>> -> memref<1x512xf32, #tpu.memory_space<any>>
    %c6_i32_581 = arith.constant 6 : i32
    %c0_i32_582 = arith.constant 0 : i32
    %532 = tpu.memref_slice %arg7[%c1_i32_577, %c6_i32_581, %c0_i32_582] : memref<2x8x512xf32, #tpu.memory_space<vmem>> -> memref<1x1x512xf32, #tpu.memory_space<vmem>>
    %533 = tpu.memref_squeeze %532 : memref<1x1x512xf32, #tpu.memory_space<vmem>> -> memref<1x512xf32, #tpu.memory_space<vmem>>
    %534 = tpu.memref_slice %arg8[%c1_i32_578, %c6_i32_579] : memref<2x8x!tpu.dma_semaphore, #tpu.memory_space<semaphore_mem>> -> memref<1x1x!tpu.dma_semaphore, #tpu.memory_space<semaphore_mem>>
    %535 = tpu.memref_squeeze %534 : memref<1x1x!tpu.dma_semaphore, #tpu.memory_space<semaphore_mem>> -> memref<!tpu.dma_semaphore, #tpu.memory_space<semaphore_mem>>
    tpu.enqueue_dma source(%531 : memref<1x512xf32, #tpu.memory_space<any>>) target(%533 : memref<1x512xf32, #tpu.memory_space<vmem>>) target_semaphore(%535 : memref<!tpu.dma_semaphore, #tpu.memory_space<semaphore_mem>>)
    %536 = arith.index_cast %486 : i32 to index
    %c7_583 = arith.constant 7 : index
    %537 = memref.load %arg1[%536, %c7_583] : memref<8x8xi32, #tpu.memory_space<smem>>
    %c1_i32_584 = arith.constant 1 : i32
    %c1_i32_585 = arith.constant 1 : i32
    %c7_i32_586 = arith.constant 7 : i32
    %c0_i32_587 = arith.constant 0 : i32
    %538 = tpu.memref_slice %arg5[%537, %c0_i32_587] : memref<16x512xf32, #tpu.memory_space<any>> -> memref<1x512xf32, #tpu.memory_space<any>>
    %c7_i32_588 = arith.constant 7 : i32
    %c0_i32_589 = arith.constant 0 : i32
    %539 = tpu.memref_slice %arg7[%c1_i32_584, %c7_i32_588, %c0_i32_589] : memref<2x8x512xf32, #tpu.memory_space<vmem>> -> memref<1x1x512xf32, #tpu.memory_space<vmem>>
    %540 = tpu.memref_squeeze %539 : memref<1x1x512xf32, #tpu.memory_space<vmem>> -> memref<1x512xf32, #tpu.memory_space<vmem>>
    %541 = tpu.memref_slice %arg8[%c1_i32_585, %c7_i32_586] : memref<2x8x!tpu.dma_semaphore, #tpu.memory_space<semaphore_mem>> -> memref<1x1x!tpu.dma_semaphore, #tpu.memory_space<semaphore_mem>>
    %542 = tpu.memref_squeeze %541 : memref<1x1x!tpu.dma_semaphore, #tpu.memory_space<semaphore_mem>> -> memref<!tpu.dma_semaphore, #tpu.memory_space<semaphore_mem>>
    tpu.enqueue_dma source(%538 : memref<1x512xf32, #tpu.memory_space<any>>) target(%540 : memref<1x512xf32, #tpu.memory_space<vmem>>) target_semaphore(%542 : memref<!tpu.dma_semaphore, #tpu.memory_space<semaphore_mem>>)
    %c0_i32_590 = arith.constant 0 : i32
    %c0_i32_591 = arith.constant 0 : i32
    %c0_i32_592 = arith.constant 0 : i32
    %c0_i32_593 = arith.constant 0 : i32
    %c0_i32_594 = arith.constant 0 : i32
    %543 = tpu.memref_slice %arg5[%c0_i32_593, %c0_i32_594] : memref<16x512xf32, #tpu.memory_space<any>> -> memref<1x512xf32, #tpu.memory_space<any>>
    %c0_i32_595 = arith.constant 0 : i32
    %c0_i32_596 = arith.constant 0 : i32
    %544 = tpu.memref_slice %arg7[%c0_i32_590, %c0_i32_595, %c0_i32_596] : memref<2x8x512xf32, #tpu.memory_space<vmem>> -> memref<1x1x512xf32, #tpu.memory_space<vmem>>
    %545 = tpu.memref_squeeze %544 : memref<1x1x512xf32, #tpu.memory_space<vmem>> -> memref<1x512xf32, #tpu.memory_space<vmem>>
    %546 = tpu.memref_slice %arg8[%c0_i32_591, %c0_i32_592] : memref<2x8x!tpu.dma_semaphore, #tpu.memory_space<semaphore_mem>> -> memref<1x1x!tpu.dma_semaphore, #tpu.memory_space<semaphore_mem>>
    %547 = tpu.memref_squeeze %546 : memref<1x1x!tpu.dma_semaphore, #tpu.memory_space<semaphore_mem>> -> memref<!tpu.dma_semaphore, #tpu.memory_space<semaphore_mem>>
    tpu.wait_dma2 semaphore(%547 : memref<!tpu.dma_semaphore, #tpu.memory_space<semaphore_mem>>) src(%543 : memref<1x512xf32, #tpu.memory_space<any>>) dst(%545 : memref<1x512xf32, #tpu.memory_space<vmem>>)
    %c0_i32_597 = arith.constant 0 : i32
    %c0_i32_598 = arith.constant 0 : i32
    %c1_i32_599 = arith.constant 1 : i32
    %c0_i32_600 = arith.constant 0 : i32
    %c0_i32_601 = arith.constant 0 : i32
    %548 = tpu.memref_slice %arg5[%c0_i32_600, %c0_i32_601] : memref<16x512xf32, #tpu.memory_space<any>> -> memref<1x512xf32, #tpu.memory_space<any>>
    %c1_i32_602 = arith.constant 1 : i32
    %c0_i32_603 = arith.constant 0 : i32
    %549 = tpu.memref_slice %arg7[%c0_i32_597, %c1_i32_602, %c0_i32_603] : memref<2x8x512xf32, #tpu.memory_space<vmem>> -> memref<1x1x512xf32, #tpu.memory_space<vmem>>
    %550 = tpu.memref_squeeze %549 : memref<1x1x512xf32, #tpu.memory_space<vmem>> -> memref<1x512xf32, #tpu.memory_space<vmem>>
    %551 = tpu.memref_slice %arg8[%c0_i32_598, %c1_i32_599] : memref<2x8x!tpu.dma_semaphore, #tpu.memory_space<semaphore_mem>> -> memref<1x1x!tpu.dma_semaphore, #tpu.memory_space<semaphore_mem>>
    %552 = tpu.memref_squeeze %551 : memref<1x1x!tpu.dma_semaphore, #tpu.memory_space<semaphore_mem>> -> memref<!tpu.dma_semaphore, #tpu.memory_space<semaphore_mem>>
    tpu.wait_dma2 semaphore(%552 : memref<!tpu.dma_semaphore, #tpu.memory_space<semaphore_mem>>) src(%548 : memref<1x512xf32, #tpu.memory_space<any>>) dst(%550 : memref<1x512xf32, #tpu.memory_space<vmem>>)
    %c0_i32_604 = arith.constant 0 : i32
    %c0_i32_605 = arith.constant 0 : i32
    %c2_i32_606 = arith.constant 2 : i32
    %c0_i32_607 = arith.constant 0 : i32
    %c0_i32_608 = arith.constant 0 : i32
    %553 = tpu.memref_slice %arg5[%c0_i32_607, %c0_i32_608] : memref<16x512xf32, #tpu.memory_space<any>> -> memref<1x512xf32, #tpu.memory_space<any>>
    %c2_i32_609 = arith.constant 2 : i32
    %c0_i32_610 = arith.constant 0 : i32
    %554 = tpu.memref_slice %arg7[%c0_i32_604, %c2_i32_609, %c0_i32_610] : memref<2x8x512xf32, #tpu.memory_space<vmem>> -> memref<1x1x512xf32, #tpu.memory_space<vmem>>
    %555 = tpu.memref_squeeze %554 : memref<1x1x512xf32, #tpu.memory_space<vmem>> -> memref<1x512xf32, #tpu.memory_space<vmem>>
    %556 = tpu.memref_slice %arg8[%c0_i32_605, %c2_i32_606] : memref<2x8x!tpu.dma_semaphore, #tpu.memory_space<semaphore_mem>> -> memref<1x1x!tpu.dma_semaphore, #tpu.memory_space<semaphore_mem>>
    %557 = tpu.memref_squeeze %556 : memref<1x1x!tpu.dma_semaphore, #tpu.memory_space<semaphore_mem>> -> memref<!tpu.dma_semaphore, #tpu.memory_space<semaphore_mem>>
    tpu.wait_dma2 semaphore(%557 : memref<!tpu.dma_semaphore, #tpu.memory_space<semaphore_mem>>) src(%553 : memref<1x512xf32, #tpu.memory_space<any>>) dst(%555 : memref<1x512xf32, #tpu.memory_space<vmem>>)
    %c0_i32_611 = arith.constant 0 : i32
    %c0_i32_612 = arith.constant 0 : i32
    %c3_i32_613 = arith.constant 3 : i32
    %c0_i32_614 = arith.constant 0 : i32
    %c0_i32_615 = arith.constant 0 : i32
    %558 = tpu.memref_slice %arg5[%c0_i32_614, %c0_i32_615] : memref<16x512xf32, #tpu.memory_space<any>> -> memref<1x512xf32, #tpu.memory_space<any>>
    %c3_i32_616 = arith.constant 3 : i32
    %c0_i32_617 = arith.constant 0 : i32
    %559 = tpu.memref_slice %arg7[%c0_i32_611, %c3_i32_616, %c0_i32_617] : memref<2x8x512xf32, #tpu.memory_space<vmem>> -> memref<1x1x512xf32, #tpu.memory_space<vmem>>
    %560 = tpu.memref_squeeze %559 : memref<1x1x512xf32, #tpu.memory_space<vmem>> -> memref<1x512xf32, #tpu.memory_space<vmem>>
    %561 = tpu.memref_slice %arg8[%c0_i32_612, %c3_i32_613] : memref<2x8x!tpu.dma_semaphore, #tpu.memory_space<semaphore_mem>> -> memref<1x1x!tpu.dma_semaphore, #tpu.memory_space<semaphore_mem>>
    %562 = tpu.memref_squeeze %561 : memref<1x1x!tpu.dma_semaphore, #tpu.memory_space<semaphore_mem>> -> memref<!tpu.dma_semaphore, #tpu.memory_space<semaphore_mem>>
    tpu.wait_dma2 semaphore(%562 : memref<!tpu.dma_semaphore, #tpu.memory_space<semaphore_mem>>) src(%558 : memref<1x512xf32, #tpu.memory_space<any>>) dst(%560 : memref<1x512xf32, #tpu.memory_space<vmem>>)
    %c0_i32_618 = arith.constant 0 : i32
    %c0_i32_619 = arith.constant 0 : i32
    %c4_i32_620 = arith.constant 4 : i32
    %c0_i32_621 = arith.constant 0 : i32
    %c0_i32_622 = arith.constant 0 : i32
    %563 = tpu.memref_slice %arg5[%c0_i32_621, %c0_i32_622] : memref<16x512xf32, #tpu.memory_space<any>> -> memref<1x512xf32, #tpu.memory_space<any>>
    %c4_i32_623 = arith.constant 4 : i32
    %c0_i32_624 = arith.constant 0 : i32
    %564 = tpu.memref_slice %arg7[%c0_i32_618, %c4_i32_623, %c0_i32_624] : memref<2x8x512xf32, #tpu.memory_space<vmem>> -> memref<1x1x512xf32, #tpu.memory_space<vmem>>
    %565 = tpu.memref_squeeze %564 : memref<1x1x512xf32, #tpu.memory_space<vmem>> -> memref<1x512xf32, #tpu.memory_space<vmem>>
    %566 = tpu.memref_slice %arg8[%c0_i32_619, %c4_i32_620] : memref<2x8x!tpu.dma_semaphore, #tpu.memory_space<semaphore_mem>> -> memref<1x1x!tpu.dma_semaphore, #tpu.memory_space<semaphore_mem>>
    %567 = tpu.memref_squeeze %566 : memref<1x1x!tpu.dma_semaphore, #tpu.memory_space<semaphore_mem>> -> memref<!tpu.dma_semaphore, #tpu.memory_space<semaphore_mem>>
    tpu.wait_dma2 semaphore(%567 : memref<!tpu.dma_semaphore, #tpu.memory_space<semaphore_mem>>) src(%563 : memref<1x512xf32, #tpu.memory_space<any>>) dst(%565 : memref<1x512xf32, #tpu.memory_space<vmem>>)
    %c0_i32_625 = arith.constant 0 : i32
    %c0_i32_626 = arith.constant 0 : i32
    %c5_i32_627 = arith.constant 5 : i32
    %c0_i32_628 = arith.constant 0 : i32
    %c0_i32_629 = arith.constant 0 : i32
    %568 = tpu.memref_slice %arg5[%c0_i32_628, %c0_i32_629] : memref<16x512xf32, #tpu.memory_space<any>> -> memref<1x512xf32, #tpu.memory_space<any>>
    %c5_i32_630 = arith.constant 5 : i32
    %c0_i32_631 = arith.constant 0 : i32
    %569 = tpu.memref_slice %arg7[%c0_i32_625, %c5_i32_630, %c0_i32_631] : memref<2x8x512xf32, #tpu.memory_space<vmem>> -> memref<1x1x512xf32, #tpu.memory_space<vmem>>
    %570 = tpu.memref_squeeze %569 : memref<1x1x512xf32, #tpu.memory_space<vmem>> -> memref<1x512xf32, #tpu.memory_space<vmem>>
    %571 = tpu.memref_slice %arg8[%c0_i32_626, %c5_i32_627] : memref<2x8x!tpu.dma_semaphore, #tpu.memory_space<semaphore_mem>> -> memref<1x1x!tpu.dma_semaphore, #tpu.memory_space<semaphore_mem>>
    %572 = tpu.memref_squeeze %571 : memref<1x1x!tpu.dma_semaphore, #tpu.memory_space<semaphore_mem>> -> memref<!tpu.dma_semaphore, #tpu.memory_space<semaphore_mem>>
    tpu.wait_dma2 semaphore(%572 : memref<!tpu.dma_semaphore, #tpu.memory_space<semaphore_mem>>) src(%568 : memref<1x512xf32, #tpu.memory_space<any>>) dst(%570 : memref<1x512xf32, #tpu.memory_space<vmem>>)
    %c0_i32_632 = arith.constant 0 : i32
    %c0_i32_633 = arith.constant 0 : i32
    %c6_i32_634 = arith.constant 6 : i32
    %c0_i32_635 = arith.constant 0 : i32
    %c0_i32_636 = arith.constant 0 : i32
    %573 = tpu.memref_slice %arg5[%c0_i32_635, %c0_i32_636] : memref<16x512xf32, #tpu.memory_space<any>> -> memref<1x512xf32, #tpu.memory_space<any>>
    %c6_i32_637 = arith.constant 6 : i32
    %c0_i32_638 = arith.constant 0 : i32
    %574 = tpu.memref_slice %arg7[%c0_i32_632, %c6_i32_637, %c0_i32_638] : memref<2x8x512xf32, #tpu.memory_space<vmem>> -> memref<1x1x512xf32, #tpu.memory_space<vmem>>
    %575 = tpu.memref_squeeze %574 : memref<1x1x512xf32, #tpu.memory_space<vmem>> -> memref<1x512xf32, #tpu.memory_space<vmem>>
    %576 = tpu.memref_slice %arg8[%c0_i32_633, %c6_i32_634] : memref<2x8x!tpu.dma_semaphore, #tpu.memory_space<semaphore_mem>> -> memref<1x1x!tpu.dma_semaphore, #tpu.memory_space<semaphore_mem>>
    %577 = tpu.memref_squeeze %576 : memref<1x1x!tpu.dma_semaphore, #tpu.memory_space<semaphore_mem>> -> memref<!tpu.dma_semaphore, #tpu.memory_space<semaphore_mem>>
    tpu.wait_dma2 semaphore(%577 : memref<!tpu.dma_semaphore, #tpu.memory_space<semaphore_mem>>) src(%573 : memref<1x512xf32, #tpu.memory_space<any>>) dst(%575 : memref<1x512xf32, #tpu.memory_space<vmem>>)
    %c0_i32_639 = arith.constant 0 : i32
    %c0_i32_640 = arith.constant 0 : i32
    %c7_i32_641 = arith.constant 7 : i32
    %c0_i32_642 = arith.constant 0 : i32
    %c0_i32_643 = arith.constant 0 : i32
    %578 = tpu.memref_slice %arg5[%c0_i32_642, %c0_i32_643] : memref<16x512xf32, #tpu.memory_space<any>> -> memref<1x512xf32, #tpu.memory_space<any>>
    %c7_i32_644 = arith.constant 7 : i32
    %c0_i32_645 = arith.constant 0 : i32
    %579 = tpu.memref_slice %arg7[%c0_i32_639, %c7_i32_644, %c0_i32_645] : memref<2x8x512xf32, #tpu.memory_space<vmem>> -> memref<1x1x512xf32, #tpu.memory_space<vmem>>
    %580 = tpu.memref_squeeze %579 : memref<1x1x512xf32, #tpu.memory_space<vmem>> -> memref<1x512xf32, #tpu.memory_space<vmem>>
    %581 = tpu.memref_slice %arg8[%c0_i32_640, %c7_i32_641] : memref<2x8x!tpu.dma_semaphore, #tpu.memory_space<semaphore_mem>> -> memref<1x1x!tpu.dma_semaphore, #tpu.memory_space<semaphore_mem>>
    %582 = tpu.memref_squeeze %581 : memref<1x1x!tpu.dma_semaphore, #tpu.memory_space<semaphore_mem>> -> memref<!tpu.dma_semaphore, #tpu.memory_space<semaphore_mem>>
    tpu.wait_dma2 semaphore(%582 : memref<!tpu.dma_semaphore, #tpu.memory_space<semaphore_mem>>) src(%578 : memref<1x512xf32, #tpu.memory_space<any>>) dst(%580 : memref<1x512xf32, #tpu.memory_space<vmem>>)
    %c0_646 = arith.constant 0 : index
    %c0_647 = arith.constant 0 : index
    %c0_648 = arith.constant 0 : index
    %583 = vector.load %arg7[%c0_646, %c0_647, %c0_648] : memref<2x8x512xf32, #tpu.memory_space<vmem>>, vector<1x8x512xf32>
    %584 = vector.shape_cast %583 : vector<1x8x512xf32> to vector<8x512xf32>
    %cst_649 = arith.constant dense<0.000000e+00> : vector<512xf32>
    %585 = vector.multi_reduction <add>, %584, %cst_649 [0] : vector<8x512xf32> to vector<512xf32>
    %586 = vector.shape_cast %585 : vector<512xf32> to vector<1x512xf32>
    %cst_650 = arith.constant 1.250000e-01 : f32
    %587 = vector.broadcast %cst_650 : f32 to vector<1x512xf32>
    %588 = arith.mulf %586, %587 : vector<1x512xf32>
    %c4_651 = arith.constant 4 : index
    %c512_652 = arith.constant 512 : index
    %589 = vector.load %arg6[%c4_651, %c512_652] : memref<8x1024xf32, #tpu.memory_space<vmem>>, vector<1x512xf32>
    tpu.vector_store %arg6[%c4_651, %c512_652], %588 {strides = array<i32>} : memref<8x1024xf32, #tpu.memory_space<vmem>>, vector<1x512xf32>,
    %c8_i32_653 = arith.constant 8 : i32
    %590 = arith.muli %arg0, %c8_i32_653 : i32
    %c6_i32_654 = arith.constant 6 : i32
    %591 = arith.addi %590, %c6_i32_654 : i32
    %592 = arith.index_cast %591 : i32 to index
    %c0_655 = arith.constant 0 : index
    %593 = memref.load %arg1[%592, %c0_655] : memref<8x8xi32, #tpu.memory_space<smem>>
    %c0_i32_656 = arith.constant 0 : i32
    %c0_i32_657 = arith.constant 0 : i32
    %c0_i32_658 = arith.constant 0 : i32
    %c0_i32_659 = arith.constant 0 : i32
    %594 = tpu.memref_slice %arg5[%593, %c0_i32_659] : memref<16x512xf32, #tpu.memory_space<any>> -> memref<1x512xf32, #tpu.memory_space<any>>
    %c0_i32_660 = arith.constant 0 : i32
    %c0_i32_661 = arith.constant 0 : i32
    %595 = tpu.memref_slice %arg7[%c0_i32_656, %c0_i32_660, %c0_i32_661] : memref<2x8x512xf32, #tpu.memory_space<vmem>> -> memref<1x1x512xf32, #tpu.memory_space<vmem>>
    %596 = tpu.memref_squeeze %595 : memref<1x1x512xf32, #tpu.memory_space<vmem>> -> memref<1x512xf32, #tpu.memory_space<vmem>>
    %597 = tpu.memref_slice %arg8[%c0_i32_657, %c0_i32_658] : memref<2x8x!tpu.dma_semaphore, #tpu.memory_space<semaphore_mem>> -> memref<1x1x!tpu.dma_semaphore, #tpu.memory_space<semaphore_mem>>
    %598 = tpu.memref_squeeze %597 : memref<1x1x!tpu.dma_semaphore, #tpu.memory_space<semaphore_mem>> -> memref<!tpu.dma_semaphore, #tpu.memory_space<semaphore_mem>>
    tpu.enqueue_dma source(%594 : memref<1x512xf32, #tpu.memory_space<any>>) target(%596 : memref<1x512xf32, #tpu.memory_space<vmem>>) target_semaphore(%598 : memref<!tpu.dma_semaphore, #tpu.memory_space<semaphore_mem>>)
    %599 = arith.index_cast %591 : i32 to index
    %c1_662 = arith.constant 1 : index
    %600 = memref.load %arg1[%599, %c1_662] : memref<8x8xi32, #tpu.memory_space<smem>>
    %c0_i32_663 = arith.constant 0 : i32
    %c0_i32_664 = arith.constant 0 : i32
    %c1_i32_665 = arith.constant 1 : i32
    %c0_i32_666 = arith.constant 0 : i32
    %601 = tpu.memref_slice %arg5[%600, %c0_i32_666] : memref<16x512xf32, #tpu.memory_space<any>> -> memref<1x512xf32, #tpu.memory_space<any>>
    %c1_i32_667 = arith.constant 1 : i32
    %c0_i32_668 = arith.constant 0 : i32
    %602 = tpu.memref_slice %arg7[%c0_i32_663, %c1_i32_667, %c0_i32_668] : memref<2x8x512xf32, #tpu.memory_space<vmem>> -> memref<1x1x512xf32, #tpu.memory_space<vmem>>
    %603 = tpu.memref_squeeze %602 : memref<1x1x512xf32, #tpu.memory_space<vmem>> -> memref<1x512xf32, #tpu.memory_space<vmem>>
    %604 = tpu.memref_slice %arg8[%c0_i32_664, %c1_i32_665] : memref<2x8x!tpu.dma_semaphore, #tpu.memory_space<semaphore_mem>> -> memref<1x1x!tpu.dma_semaphore, #tpu.memory_space<semaphore_mem>>
    %605 = tpu.memref_squeeze %604 : memref<1x1x!tpu.dma_semaphore, #tpu.memory_space<semaphore_mem>> -> memref<!tpu.dma_semaphore, #tpu.memory_space<semaphore_mem>>
    tpu.enqueue_dma source(%601 : memref<1x512xf32, #tpu.memory_space<any>>) target(%603 : memref<1x512xf32, #tpu.memory_space<vmem>>) target_semaphore(%605 : memref<!tpu.dma_semaphore, #tpu.memory_space<semaphore_mem>>)
    %606 = arith.index_cast %591 : i32 to index
    %c2_669 = arith.constant 2 : index
    %607 = memref.load %arg1[%606, %c2_669] : memref<8x8xi32, #tpu.memory_space<smem>>
    %c0_i32_670 = arith.constant 0 : i32
    %c0_i32_671 = arith.constant 0 : i32
    %c2_i32_672 = arith.constant 2 : i32
    %c0_i32_673 = arith.constant 0 : i32
    %608 = tpu.memref_slice %arg5[%607, %c0_i32_673] : memref<16x512xf32, #tpu.memory_space<any>> -> memref<1x512xf32, #tpu.memory_space<any>>
    %c2_i32_674 = arith.constant 2 : i32
    %c0_i32_675 = arith.constant 0 : i32
    %609 = tpu.memref_slice %arg7[%c0_i32_670, %c2_i32_674, %c0_i32_675] : memref<2x8x512xf32, #tpu.memory_space<vmem>> -> memref<1x1x512xf32, #tpu.memory_space<vmem>>
    %610 = tpu.memref_squeeze %609 : memref<1x1x512xf32, #tpu.memory_space<vmem>> -> memref<1x512xf32, #tpu.memory_space<vmem>>
    %611 = tpu.memref_slice %arg8[%c0_i32_671, %c2_i32_672] : memref<2x8x!tpu.dma_semaphore, #tpu.memory_space<semaphore_mem>> -> memref<1x1x!tpu.dma_semaphore, #tpu.memory_space<semaphore_mem>>
    %612 = tpu.memref_squeeze %611 : memref<1x1x!tpu.dma_semaphore, #tpu.memory_space<semaphore_mem>> -> memref<!tpu.dma_semaphore, #tpu.memory_space<semaphore_mem>>
    tpu.enqueue_dma source(%608 : memref<1x512xf32, #tpu.memory_space<any>>) target(%610 : memref<1x512xf32, #tpu.memory_space<vmem>>) target_semaphore(%612 : memref<!tpu.dma_semaphore, #tpu.memory_space<semaphore_mem>>)
    %613 = arith.index_cast %591 : i32 to index
    %c3_676 = arith.constant 3 : index
    %614 = memref.load %arg1[%613, %c3_676] : memref<8x8xi32, #tpu.memory_space<smem>>
    %c0_i32_677 = arith.constant 0 : i32
    %c0_i32_678 = arith.constant 0 : i32
    %c3_i32_679 = arith.constant 3 : i32
    %c0_i32_680 = arith.constant 0 : i32
    %615 = tpu.memref_slice %arg5[%614, %c0_i32_680] : memref<16x512xf32, #tpu.memory_space<any>> -> memref<1x512xf32, #tpu.memory_space<any>>
    %c3_i32_681 = arith.constant 3 : i32
    %c0_i32_682 = arith.constant 0 : i32
    %616 = tpu.memref_slice %arg7[%c0_i32_677, %c3_i32_681, %c0_i32_682] : memref<2x8x512xf32, #tpu.memory_space<vmem>> -> memref<1x1x512xf32, #tpu.memory_space<vmem>>
    %617 = tpu.memref_squeeze %616 : memref<1x1x512xf32, #tpu.memory_space<vmem>> -> memref<1x512xf32, #tpu.memory_space<vmem>>
    %618 = tpu.memref_slice %arg8[%c0_i32_678, %c3_i32_679] : memref<2x8x!tpu.dma_semaphore, #tpu.memory_space<semaphore_mem>> -> memref<1x1x!tpu.dma_semaphore, #tpu.memory_space<semaphore_mem>>
    %619 = tpu.memref_squeeze %618 : memref<1x1x!tpu.dma_semaphore, #tpu.memory_space<semaphore_mem>> -> memref<!tpu.dma_semaphore, #tpu.memory_space<semaphore_mem>>
    tpu.enqueue_dma source(%615 : memref<1x512xf32, #tpu.memory_space<any>>) target(%617 : memref<1x512xf32, #tpu.memory_space<vmem>>) target_semaphore(%619 : memref<!tpu.dma_semaphore, #tpu.memory_space<semaphore_mem>>)
    %620 = arith.index_cast %591 : i32 to index
    %c4_683 = arith.constant 4 : index
    %621 = memref.load %arg1[%620, %c4_683] : memref<8x8xi32, #tpu.memory_space<smem>>
    %c0_i32_684 = arith.constant 0 : i32
    %c0_i32_685 = arith.constant 0 : i32
    %c4_i32_686 = arith.constant 4 : i32
    %c0_i32_687 = arith.constant 0 : i32
    %622 = tpu.memref_slice %arg5[%621, %c0_i32_687] : memref<16x512xf32, #tpu.memory_space<any>> -> memref<1x512xf32, #tpu.memory_space<any>>
    %c4_i32_688 = arith.constant 4 : i32
    %c0_i32_689 = arith.constant 0 : i32
    %623 = tpu.memref_slice %arg7[%c0_i32_684, %c4_i32_688, %c0_i32_689] : memref<2x8x512xf32, #tpu.memory_space<vmem>> -> memref<1x1x512xf32, #tpu.memory_space<vmem>>
    %624 = tpu.memref_squeeze %623 : memref<1x1x512xf32, #tpu.memory_space<vmem>> -> memref<1x512xf32, #tpu.memory_space<vmem>>
    %625 = tpu.memref_slice %arg8[%c0_i32_685, %c4_i32_686] : memref<2x8x!tpu.dma_semaphore, #tpu.memory_space<semaphore_mem>> -> memref<1x1x!tpu.dma_semaphore, #tpu.memory_space<semaphore_mem>>
    %626 = tpu.memref_squeeze %625 : memref<1x1x!tpu.dma_semaphore, #tpu.memory_space<semaphore_mem>> -> memref<!tpu.dma_semaphore, #tpu.memory_space<semaphore_mem>>
    tpu.enqueue_dma source(%622 : memref<1x512xf32, #tpu.memory_space<any>>) target(%624 : memref<1x512xf32, #tpu.memory_space<vmem>>) target_semaphore(%626 : memref<!tpu.dma_semaphore, #tpu.memory_space<semaphore_mem>>)
    %627 = arith.index_cast %591 : i32 to index
    %c5_690 = arith.constant 5 : index
    %628 = memref.load %arg1[%627, %c5_690] : memref<8x8xi32, #tpu.memory_space<smem>>
    %c0_i32_691 = arith.constant 0 : i32
    %c0_i32_692 = arith.constant 0 : i32
    %c5_i32_693 = arith.constant 5 : i32
    %c0_i32_694 = arith.constant 0 : i32
    %629 = tpu.memref_slice %arg5[%628, %c0_i32_694] : memref<16x512xf32, #tpu.memory_space<any>> -> memref<1x512xf32, #tpu.memory_space<any>>
    %c5_i32_695 = arith.constant 5 : i32
    %c0_i32_696 = arith.constant 0 : i32
    %630 = tpu.memref_slice %arg7[%c0_i32_691, %c5_i32_695, %c0_i32_696] : memref<2x8x512xf32, #tpu.memory_space<vmem>> -> memref<1x1x512xf32, #tpu.memory_space<vmem>>
    %631 = tpu.memref_squeeze %630 : memref<1x1x512xf32, #tpu.memory_space<vmem>> -> memref<1x512xf32, #tpu.memory_space<vmem>>
    %632 = tpu.memref_slice %arg8[%c0_i32_692, %c5_i32_693] : memref<2x8x!tpu.dma_semaphore, #tpu.memory_space<semaphore_mem>> -> memref<1x1x!tpu.dma_semaphore, #tpu.memory_space<semaphore_mem>>
    %633 = tpu.memref_squeeze %632 : memref<1x1x!tpu.dma_semaphore, #tpu.memory_space<semaphore_mem>> -> memref<!tpu.dma_semaphore, #tpu.memory_space<semaphore_mem>>
    tpu.enqueue_dma source(%629 : memref<1x512xf32, #tpu.memory_space<any>>) target(%631 : memref<1x512xf32, #tpu.memory_space<vmem>>) target_semaphore(%633 : memref<!tpu.dma_semaphore, #tpu.memory_space<semaphore_mem>>)
    %634 = arith.index_cast %591 : i32 to index
    %c6_697 = arith.constant 6 : index
    %635 = memref.load %arg1[%634, %c6_697] : memref<8x8xi32, #tpu.memory_space<smem>>
    %c0_i32_698 = arith.constant 0 : i32
    %c0_i32_699 = arith.constant 0 : i32
    %c6_i32_700 = arith.constant 6 : i32
    %c0_i32_701 = arith.constant 0 : i32
    %636 = tpu.memref_slice %arg5[%635, %c0_i32_701] : memref<16x512xf32, #tpu.memory_space<any>> -> memref<1x512xf32, #tpu.memory_space<any>>
    %c6_i32_702 = arith.constant 6 : i32
    %c0_i32_703 = arith.constant 0 : i32
    %637 = tpu.memref_slice %arg7[%c0_i32_698, %c6_i32_702, %c0_i32_703] : memref<2x8x512xf32, #tpu.memory_space<vmem>> -> memref<1x1x512xf32, #tpu.memory_space<vmem>>
    %638 = tpu.memref_squeeze %637 : memref<1x1x512xf32, #tpu.memory_space<vmem>> -> memref<1x512xf32, #tpu.memory_space<vmem>>
    %639 = tpu.memref_slice %arg8[%c0_i32_699, %c6_i32_700] : memref<2x8x!tpu.dma_semaphore, #tpu.memory_space<semaphore_mem>> -> memref<1x1x!tpu.dma_semaphore, #tpu.memory_space<semaphore_mem>>
    %640 = tpu.memref_squeeze %639 : memref<1x1x!tpu.dma_semaphore, #tpu.memory_space<semaphore_mem>> -> memref<!tpu.dma_semaphore, #tpu.memory_space<semaphore_mem>>
    tpu.enqueue_dma source(%636 : memref<1x512xf32, #tpu.memory_space<any>>) target(%638 : memref<1x512xf32, #tpu.memory_space<vmem>>) target_semaphore(%640 : memref<!tpu.dma_semaphore, #tpu.memory_space<semaphore_mem>>)
    %641 = arith.index_cast %591 : i32 to index
    %c7_704 = arith.constant 7 : index
    %642 = memref.load %arg1[%641, %c7_704] : memref<8x8xi32, #tpu.memory_space<smem>>
    %c0_i32_705 = arith.constant 0 : i32
    %c0_i32_706 = arith.constant 0 : i32
    %c7_i32_707 = arith.constant 7 : i32
    %c0_i32_708 = arith.constant 0 : i32
    %643 = tpu.memref_slice %arg5[%642, %c0_i32_708] : memref<16x512xf32, #tpu.memory_space<any>> -> memref<1x512xf32, #tpu.memory_space<any>>
    %c7_i32_709 = arith.constant 7 : i32
    %c0_i32_710 = arith.constant 0 : i32
    %644 = tpu.memref_slice %arg7[%c0_i32_705, %c7_i32_709, %c0_i32_710] : memref<2x8x512xf32, #tpu.memory_space<vmem>> -> memref<1x1x512xf32, #tpu.memory_space<vmem>>
    %645 = tpu.memref_squeeze %644 : memref<1x1x512xf32, #tpu.memory_space<vmem>> -> memref<1x512xf32, #tpu.memory_space<vmem>>
    %646 = tpu.memref_slice %arg8[%c0_i32_706, %c7_i32_707] : memref<2x8x!tpu.dma_semaphore, #tpu.memory_space<semaphore_mem>> -> memref<1x1x!tpu.dma_semaphore, #tpu.memory_space<semaphore_mem>>
    %647 = tpu.memref_squeeze %646 : memref<1x1x!tpu.dma_semaphore, #tpu.memory_space<semaphore_mem>> -> memref<!tpu.dma_semaphore, #tpu.memory_space<semaphore_mem>>
    tpu.enqueue_dma source(%643 : memref<1x512xf32, #tpu.memory_space<any>>) target(%645 : memref<1x512xf32, #tpu.memory_space<vmem>>) target_semaphore(%647 : memref<!tpu.dma_semaphore, #tpu.memory_space<semaphore_mem>>)
    %c1_i32_711 = arith.constant 1 : i32
    %c1_i32_712 = arith.constant 1 : i32
    %c0_i32_713 = arith.constant 0 : i32
    %c0_i32_714 = arith.constant 0 : i32
    %c0_i32_715 = arith.constant 0 : i32
    %648 = tpu.memref_slice %arg5[%c0_i32_714, %c0_i32_715] : memref<16x512xf32, #tpu.memory_space<any>> -> memref<1x512xf32, #tpu.memory_space<any>>
    %c0_i32_716 = arith.constant 0 : i32
    %c0_i32_717 = arith.constant 0 : i32
    %649 = tpu.memref_slice %arg7[%c1_i32_711, %c0_i32_716, %c0_i32_717] : memref<2x8x512xf32, #tpu.memory_space<vmem>> -> memref<1x1x512xf32, #tpu.memory_space<vmem>>
    %650 = tpu.memref_squeeze %649 : memref<1x1x512xf32, #tpu.memory_space<vmem>> -> memref<1x512xf32, #tpu.memory_space<vmem>>
    %651 = tpu.memref_slice %arg8[%c1_i32_712, %c0_i32_713] : memref<2x8x!tpu.dma_semaphore, #tpu.memory_space<semaphore_mem>> -> memref<1x1x!tpu.dma_semaphore, #tpu.memory_space<semaphore_mem>>
    %652 = tpu.memref_squeeze %651 : memref<1x1x!tpu.dma_semaphore, #tpu.memory_space<semaphore_mem>> -> memref<!tpu.dma_semaphore, #tpu.memory_space<semaphore_mem>>
    tpu.wait_dma2 semaphore(%652 : memref<!tpu.dma_semaphore, #tpu.memory_space<semaphore_mem>>) src(%648 : memref<1x512xf32, #tpu.memory_space<any>>) dst(%650 : memref<1x512xf32, #tpu.memory_space<vmem>>)
    %c1_i32_718 = arith.constant 1 : i32
    %c1_i32_719 = arith.constant 1 : i32
    %c1_i32_720 = arith.constant 1 : i32
    %c0_i32_721 = arith.constant 0 : i32
    %c0_i32_722 = arith.constant 0 : i32
    %653 = tpu.memref_slice %arg5[%c0_i32_721, %c0_i32_722] : memref<16x512xf32, #tpu.memory_space<any>> -> memref<1x512xf32, #tpu.memory_space<any>>
    %c1_i32_723 = arith.constant 1 : i32
    %c0_i32_724 = arith.constant 0 : i32
    %654 = tpu.memref_slice %arg7[%c1_i32_718, %c1_i32_723, %c0_i32_724] : memref<2x8x512xf32, #tpu.memory_space<vmem>> -> memref<1x1x512xf32, #tpu.memory_space<vmem>>
    %655 = tpu.memref_squeeze %654 : memref<1x1x512xf32, #tpu.memory_space<vmem>> -> memref<1x512xf32, #tpu.memory_space<vmem>>
    %656 = tpu.memref_slice %arg8[%c1_i32_719, %c1_i32_720] : memref<2x8x!tpu.dma_semaphore, #tpu.memory_space<semaphore_mem>> -> memref<1x1x!tpu.dma_semaphore, #tpu.memory_space<semaphore_mem>>
    %657 = tpu.memref_squeeze %656 : memref<1x1x!tpu.dma_semaphore, #tpu.memory_space<semaphore_mem>> -> memref<!tpu.dma_semaphore, #tpu.memory_space<semaphore_mem>>
    tpu.wait_dma2 semaphore(%657 : memref<!tpu.dma_semaphore, #tpu.memory_space<semaphore_mem>>) src(%653 : memref<1x512xf32, #tpu.memory_space<any>>) dst(%655 : memref<1x512xf32, #tpu.memory_space<vmem>>)
    %c1_i32_725 = arith.constant 1 : i32
    %c1_i32_726 = arith.constant 1 : i32
    %c2_i32_727 = arith.constant 2 : i32
    %c0_i32_728 = arith.constant 0 : i32
    %c0_i32_729 = arith.constant 0 : i32
    %658 = tpu.memref_slice %arg5[%c0_i32_728, %c0_i32_729] : memref<16x512xf32, #tpu.memory_space<any>> -> memref<1x512xf32, #tpu.memory_space<any>>
    %c2_i32_730 = arith.constant 2 : i32
    %c0_i32_731 = arith.constant 0 : i32
    %659 = tpu.memref_slice %arg7[%c1_i32_725, %c2_i32_730, %c0_i32_731] : memref<2x8x512xf32, #tpu.memory_space<vmem>> -> memref<1x1x512xf32, #tpu.memory_space<vmem>>
    %660 = tpu.memref_squeeze %659 : memref<1x1x512xf32, #tpu.memory_space<vmem>> -> memref<1x512xf32, #tpu.memory_space<vmem>>
    %661 = tpu.memref_slice %arg8[%c1_i32_726, %c2_i32_727] : memref<2x8x!tpu.dma_semaphore, #tpu.memory_space<semaphore_mem>> -> memref<1x1x!tpu.dma_semaphore, #tpu.memory_space<semaphore_mem>>
    %662 = tpu.memref_squeeze %661 : memref<1x1x!tpu.dma_semaphore, #tpu.memory_space<semaphore_mem>> -> memref<!tpu.dma_semaphore, #tpu.memory_space<semaphore_mem>>
    tpu.wait_dma2 semaphore(%662 : memref<!tpu.dma_semaphore, #tpu.memory_space<semaphore_mem>>) src(%658 : memref<1x512xf32, #tpu.memory_space<any>>) dst(%660 : memref<1x512xf32, #tpu.memory_space<vmem>>)
    %c1_i32_732 = arith.constant 1 : i32
    %c1_i32_733 = arith.constant 1 : i32
    %c3_i32_734 = arith.constant 3 : i32
    %c0_i32_735 = arith.constant 0 : i32
    %c0_i32_736 = arith.constant 0 : i32
    %663 = tpu.memref_slice %arg5[%c0_i32_735, %c0_i32_736] : memref<16x512xf32, #tpu.memory_space<any>> -> memref<1x512xf32, #tpu.memory_space<any>>
    %c3_i32_737 = arith.constant 3 : i32
    %c0_i32_738 = arith.constant 0 : i32
    %664 = tpu.memref_slice %arg7[%c1_i32_732, %c3_i32_737, %c0_i32_738] : memref<2x8x512xf32, #tpu.memory_space<vmem>> -> memref<1x1x512xf32, #tpu.memory_space<vmem>>
    %665 = tpu.memref_squeeze %664 : memref<1x1x512xf32, #tpu.memory_space<vmem>> -> memref<1x512xf32, #tpu.memory_space<vmem>>
    %666 = tpu.memref_slice %arg8[%c1_i32_733, %c3_i32_734] : memref<2x8x!tpu.dma_semaphore, #tpu.memory_space<semaphore_mem>> -> memref<1x1x!tpu.dma_semaphore, #tpu.memory_space<semaphore_mem>>
    %667 = tpu.memref_squeeze %666 : memref<1x1x!tpu.dma_semaphore, #tpu.memory_space<semaphore_mem>> -> memref<!tpu.dma_semaphore, #tpu.memory_space<semaphore_mem>>
    tpu.wait_dma2 semaphore(%667 : memref<!tpu.dma_semaphore, #tpu.memory_space<semaphore_mem>>) src(%663 : memref<1x512xf32, #tpu.memory_space<any>>) dst(%665 : memref<1x512xf32, #tpu.memory_space<vmem>>)
    %c1_i32_739 = arith.constant 1 : i32
    %c1_i32_740 = arith.constant 1 : i32
    %c4_i32_741 = arith.constant 4 : i32
    %c0_i32_742 = arith.constant 0 : i32
    %c0_i32_743 = arith.constant 0 : i32
    %668 = tpu.memref_slice %arg5[%c0_i32_742, %c0_i32_743] : memref<16x512xf32, #tpu.memory_space<any>> -> memref<1x512xf32, #tpu.memory_space<any>>
    %c4_i32_744 = arith.constant 4 : i32
    %c0_i32_745 = arith.constant 0 : i32
    %669 = tpu.memref_slice %arg7[%c1_i32_739, %c4_i32_744, %c0_i32_745] : memref<2x8x512xf32, #tpu.memory_space<vmem>> -> memref<1x1x512xf32, #tpu.memory_space<vmem>>
    %670 = tpu.memref_squeeze %669 : memref<1x1x512xf32, #tpu.memory_space<vmem>> -> memref<1x512xf32, #tpu.memory_space<vmem>>
    %671 = tpu.memref_slice %arg8[%c1_i32_740, %c4_i32_741] : memref<2x8x!tpu.dma_semaphore, #tpu.memory_space<semaphore_mem>> -> memref<1x1x!tpu.dma_semaphore, #tpu.memory_space<semaphore_mem>>
    %672 = tpu.memref_squeeze %671 : memref<1x1x!tpu.dma_semaphore, #tpu.memory_space<semaphore_mem>> -> memref<!tpu.dma_semaphore, #tpu.memory_space<semaphore_mem>>
    tpu.wait_dma2 semaphore(%672 : memref<!tpu.dma_semaphore, #tpu.memory_space<semaphore_mem>>) src(%668 : memref<1x512xf32, #tpu.memory_space<any>>) dst(%670 : memref<1x512xf32, #tpu.memory_space<vmem>>)
    %c1_i32_746 = arith.constant 1 : i32
    %c1_i32_747 = arith.constant 1 : i32
    %c5_i32_748 = arith.constant 5 : i32
    %c0_i32_749 = arith.constant 0 : i32
    %c0_i32_750 = arith.constant 0 : i32
    %673 = tpu.memref_slice %arg5[%c0_i32_749, %c0_i32_750] : memref<16x512xf32, #tpu.memory_space<any>> -> memref<1x512xf32, #tpu.memory_space<any>>
    %c5_i32_751 = arith.constant 5 : i32
    %c0_i32_752 = arith.constant 0 : i32
    %674 = tpu.memref_slice %arg7[%c1_i32_746, %c5_i32_751, %c0_i32_752] : memref<2x8x512xf32, #tpu.memory_space<vmem>> -> memref<1x1x512xf32, #tpu.memory_space<vmem>>
    %675 = tpu.memref_squeeze %674 : memref<1x1x512xf32, #tpu.memory_space<vmem>> -> memref<1x512xf32, #tpu.memory_space<vmem>>
    %676 = tpu.memref_slice %arg8[%c1_i32_747, %c5_i32_748] : memref<2x8x!tpu.dma_semaphore, #tpu.memory_space<semaphore_mem>> -> memref<1x1x!tpu.dma_semaphore, #tpu.memory_space<semaphore_mem>>
    %677 = tpu.memref_squeeze %676 : memref<1x1x!tpu.dma_semaphore, #tpu.memory_space<semaphore_mem>> -> memref<!tpu.dma_semaphore, #tpu.memory_space<semaphore_mem>>
    tpu.wait_dma2 semaphore(%677 : memref<!tpu.dma_semaphore, #tpu.memory_space<semaphore_mem>>) src(%673 : memref<1x512xf32, #tpu.memory_space<any>>) dst(%675 : memref<1x512xf32, #tpu.memory_space<vmem>>)
    %c1_i32_753 = arith.constant 1 : i32
    %c1_i32_754 = arith.constant 1 : i32
    %c6_i32_755 = arith.constant 6 : i32
    %c0_i32_756 = arith.constant 0 : i32
    %c0_i32_757 = arith.constant 0 : i32
    %678 = tpu.memref_slice %arg5[%c0_i32_756, %c0_i32_757] : memref<16x512xf32, #tpu.memory_space<any>> -> memref<1x512xf32, #tpu.memory_space<any>>
    %c6_i32_758 = arith.constant 6 : i32
    %c0_i32_759 = arith.constant 0 : i32
    %679 = tpu.memref_slice %arg7[%c1_i32_753, %c6_i32_758, %c0_i32_759] : memref<2x8x512xf32, #tpu.memory_space<vmem>> -> memref<1x1x512xf32, #tpu.memory_space<vmem>>
    %680 = tpu.memref_squeeze %679 : memref<1x1x512xf32, #tpu.memory_space<vmem>> -> memref<1x512xf32, #tpu.memory_space<vmem>>
    %681 = tpu.memref_slice %arg8[%c1_i32_754, %c6_i32_755] : memref<2x8x!tpu.dma_semaphore, #tpu.memory_space<semaphore_mem>> -> memref<1x1x!tpu.dma_semaphore, #tpu.memory_space<semaphore_mem>>
    %682 = tpu.memref_squeeze %681 : memref<1x1x!tpu.dma_semaphore, #tpu.memory_space<semaphore_mem>> -> memref<!tpu.dma_semaphore, #tpu.memory_space<semaphore_mem>>
    tpu.wait_dma2 semaphore(%682 : memref<!tpu.dma_semaphore, #tpu.memory_space<semaphore_mem>>) src(%678 : memref<1x512xf32, #tpu.memory_space<any>>) dst(%680 : memref<1x512xf32, #tpu.memory_space<vmem>>)
    %c1_i32_760 = arith.constant 1 : i32
    %c1_i32_761 = arith.constant 1 : i32
    %c7_i32_762 = arith.constant 7 : i32
    %c0_i32_763 = arith.constant 0 : i32
    %c0_i32_764 = arith.constant 0 : i32
    %683 = tpu.memref_slice %arg5[%c0_i32_763, %c0_i32_764] : memref<16x512xf32, #tpu.memory_space<any>> -> memref<1x512xf32, #tpu.memory_space<any>>
    %c7_i32_765 = arith.constant 7 : i32
    %c0_i32_766 = arith.constant 0 : i32
    %684 = tpu.memref_slice %arg7[%c1_i32_760, %c7_i32_765, %c0_i32_766] : memref<2x8x512xf32, #tpu.memory_space<vmem>> -> memref<1x1x512xf32, #tpu.memory_space<vmem>>
    %685 = tpu.memref_squeeze %684 : memref<1x1x512xf32, #tpu.memory_space<vmem>> -> memref<1x512xf32, #tpu.memory_space<vmem>>
    %686 = tpu.memref_slice %arg8[%c1_i32_761, %c7_i32_762] : memref<2x8x!tpu.dma_semaphore, #tpu.memory_space<semaphore_mem>> -> memref<1x1x!tpu.dma_semaphore, #tpu.memory_space<semaphore_mem>>
    %687 = tpu.memref_squeeze %686 : memref<1x1x!tpu.dma_semaphore, #tpu.memory_space<semaphore_mem>> -> memref<!tpu.dma_semaphore, #tpu.memory_space<semaphore_mem>>
    tpu.wait_dma2 semaphore(%687 : memref<!tpu.dma_semaphore, #tpu.memory_space<semaphore_mem>>) src(%683 : memref<1x512xf32, #tpu.memory_space<any>>) dst(%685 : memref<1x512xf32, #tpu.memory_space<vmem>>)
    %c1_767 = arith.constant 1 : index
    %c0_768 = arith.constant 0 : index
    %c0_769 = arith.constant 0 : index
    %688 = vector.load %arg7[%c1_767, %c0_768, %c0_769] : memref<2x8x512xf32, #tpu.memory_space<vmem>>, vector<1x8x512xf32>
    %689 = vector.shape_cast %688 : vector<1x8x512xf32> to vector<8x512xf32>
    %cst_770 = arith.constant dense<0.000000e+00> : vector<512xf32>
    %690 = vector.multi_reduction <add>, %689, %cst_770 [0] : vector<8x512xf32> to vector<512xf32>
    %691 = vector.shape_cast %690 : vector<512xf32> to vector<1x512xf32>
    %cst_771 = arith.constant 1.250000e-01 : f32
    %692 = vector.broadcast %cst_771 : f32 to vector<1x512xf32>
    %693 = arith.mulf %691, %692 : vector<1x512xf32>
    %c5_772 = arith.constant 5 : index
    %c512_773 = arith.constant 512 : index
    %694 = vector.load %arg6[%c5_772, %c512_773] : memref<8x1024xf32, #tpu.memory_space<vmem>>, vector<1x512xf32>
    tpu.vector_store %arg6[%c5_772, %c512_773], %693 {strides = array<i32>} : memref<8x1024xf32, #tpu.memory_space<vmem>>, vector<1x512xf32>,
    %c8_i32_774 = arith.constant 8 : i32
    %695 = arith.muli %arg0, %c8_i32_774 : i32
    %c7_i32_775 = arith.constant 7 : i32
    %696 = arith.addi %695, %c7_i32_775 : i32
    %697 = arith.index_cast %696 : i32 to index
    %c0_776 = arith.constant 0 : index
    %698 = memref.load %arg1[%697, %c0_776] : memref<8x8xi32, #tpu.memory_space<smem>>
    %c1_i32_777 = arith.constant 1 : i32
    %c1_i32_778 = arith.constant 1 : i32
    %c0_i32_779 = arith.constant 0 : i32
    %c0_i32_780 = arith.constant 0 : i32
    %699 = tpu.memref_slice %arg5[%698, %c0_i32_780] : memref<16x512xf32, #tpu.memory_space<any>> -> memref<1x512xf32, #tpu.memory_space<any>>
    %c0_i32_781 = arith.constant 0 : i32
    %c0_i32_782 = arith.constant 0 : i32
    %700 = tpu.memref_slice %arg7[%c1_i32_777, %c0_i32_781, %c0_i32_782] : memref<2x8x512xf32, #tpu.memory_space<vmem>> -> memref<1x1x512xf32, #tpu.memory_space<vmem>>
    %701 = tpu.memref_squeeze %700 : memref<1x1x512xf32, #tpu.memory_space<vmem>> -> memref<1x512xf32, #tpu.memory_space<vmem>>
    %702 = tpu.memref_slice %arg8[%c1_i32_778, %c0_i32_779] : memref<2x8x!tpu.dma_semaphore, #tpu.memory_space<semaphore_mem>> -> memref<1x1x!tpu.dma_semaphore, #tpu.memory_space<semaphore_mem>>
    %703 = tpu.memref_squeeze %702 : memref<1x1x!tpu.dma_semaphore, #tpu.memory_space<semaphore_mem>> -> memref<!tpu.dma_semaphore, #tpu.memory_space<semaphore_mem>>
    tpu.enqueue_dma source(%699 : memref<1x512xf32, #tpu.memory_space<any>>) target(%701 : memref<1x512xf32, #tpu.memory_space<vmem>>) target_semaphore(%703 : memref<!tpu.dma_semaphore, #tpu.memory_space<semaphore_mem>>)
    %704 = arith.index_cast %696 : i32 to index
    %c1_783 = arith.constant 1 : index
    %705 = memref.load %arg1[%704, %c1_783] : memref<8x8xi32, #tpu.memory_space<smem>>
    %c1_i32_784 = arith.constant 1 : i32
    %c1_i32_785 = arith.constant 1 : i32
    %c1_i32_786 = arith.constant 1 : i32
    %c0_i32_787 = arith.constant 0 : i32
    %706 = tpu.memref_slice %arg5[%705, %c0_i32_787] : memref<16x512xf32, #tpu.memory_space<any>> -> memref<1x512xf32, #tpu.memory_space<any>>
    %c1_i32_788 = arith.constant 1 : i32
    %c0_i32_789 = arith.constant 0 : i32
    %707 = tpu.memref_slice %arg7[%c1_i32_784, %c1_i32_788, %c0_i32_789] : memref<2x8x512xf32, #tpu.memory_space<vmem>> -> memref<1x1x512xf32, #tpu.memory_space<vmem>>
    %708 = tpu.memref_squeeze %707 : memref<1x1x512xf32, #tpu.memory_space<vmem>> -> memref<1x512xf32, #tpu.memory_space<vmem>>
    %709 = tpu.memref_slice %arg8[%c1_i32_785, %c1_i32_786] : memref<2x8x!tpu.dma_semaphore, #tpu.memory_space<semaphore_mem>> -> memref<1x1x!tpu.dma_semaphore, #tpu.memory_space<semaphore_mem>>
    %710 = tpu.memref_squeeze %709 : memref<1x1x!tpu.dma_semaphore, #tpu.memory_space<semaphore_mem>> -> memref<!tpu.dma_semaphore, #tpu.memory_space<semaphore_mem>>
    tpu.enqueue_dma source(%706 : memref<1x512xf32, #tpu.memory_space<any>>) target(%708 : memref<1x512xf32, #tpu.memory_space<vmem>>) target_semaphore(%710 : memref<!tpu.dma_semaphore, #tpu.memory_space<semaphore_mem>>)
    %711 = arith.index_cast %696 : i32 to index
    %c2_790 = arith.constant 2 : index
    %712 = memref.load %arg1[%711, %c2_790] : memref<8x8xi32, #tpu.memory_space<smem>>
    %c1_i32_791 = arith.constant 1 : i32
    %c1_i32_792 = arith.constant 1 : i32
    %c2_i32_793 = arith.constant 2 : i32
    %c0_i32_794 = arith.constant 0 : i32
    %713 = tpu.memref_slice %arg5[%712, %c0_i32_794] : memref<16x512xf32, #tpu.memory_space<any>> -> memref<1x512xf32, #tpu.memory_space<any>>
    %c2_i32_795 = arith.constant 2 : i32
    %c0_i32_796 = arith.constant 0 : i32
    %714 = tpu.memref_slice %arg7[%c1_i32_791, %c2_i32_795, %c0_i32_796] : memref<2x8x512xf32, #tpu.memory_space<vmem>> -> memref<1x1x512xf32, #tpu.memory_space<vmem>>
    %715 = tpu.memref_squeeze %714 : memref<1x1x512xf32, #tpu.memory_space<vmem>> -> memref<1x512xf32, #tpu.memory_space<vmem>>
    %716 = tpu.memref_slice %arg8[%c1_i32_792, %c2_i32_793] : memref<2x8x!tpu.dma_semaphore, #tpu.memory_space<semaphore_mem>> -> memref<1x1x!tpu.dma_semaphore, #tpu.memory_space<semaphore_mem>>
    %717 = tpu.memref_squeeze %716 : memref<1x1x!tpu.dma_semaphore, #tpu.memory_space<semaphore_mem>> -> memref<!tpu.dma_semaphore, #tpu.memory_space<semaphore_mem>>
    tpu.enqueue_dma source(%713 : memref<1x512xf32, #tpu.memory_space<any>>) target(%715 : memref<1x512xf32, #tpu.memory_space<vmem>>) target_semaphore(%717 : memref<!tpu.dma_semaphore, #tpu.memory_space<semaphore_mem>>)
    %718 = arith.index_cast %696 : i32 to index
    %c3_797 = arith.constant 3 : index
    %719 = memref.load %arg1[%718, %c3_797] : memref<8x8xi32, #tpu.memory_space<smem>>
    %c1_i32_798 = arith.constant 1 : i32
    %c1_i32_799 = arith.constant 1 : i32
    %c3_i32_800 = arith.constant 3 : i32
    %c0_i32_801 = arith.constant 0 : i32
    %720 = tpu.memref_slice %arg5[%719, %c0_i32_801] : memref<16x512xf32, #tpu.memory_space<any>> -> memref<1x512xf32, #tpu.memory_space<any>>
    %c3_i32_802 = arith.constant 3 : i32
    %c0_i32_803 = arith.constant 0 : i32
    %721 = tpu.memref_slice %arg7[%c1_i32_798, %c3_i32_802, %c0_i32_803] : memref<2x8x512xf32, #tpu.memory_space<vmem>> -> memref<1x1x512xf32, #tpu.memory_space<vmem>>
    %722 = tpu.memref_squeeze %721 : memref<1x1x512xf32, #tpu.memory_space<vmem>> -> memref<1x512xf32, #tpu.memory_space<vmem>>
    %723 = tpu.memref_slice %arg8[%c1_i32_799, %c3_i32_800] : memref<2x8x!tpu.dma_semaphore, #tpu.memory_space<semaphore_mem>> -> memref<1x1x!tpu.dma_semaphore, #tpu.memory_space<semaphore_mem>>
    %724 = tpu.memref_squeeze %723 : memref<1x1x!tpu.dma_semaphore, #tpu.memory_space<semaphore_mem>> -> memref<!tpu.dma_semaphore, #tpu.memory_space<semaphore_mem>>
    tpu.enqueue_dma source(%720 : memref<1x512xf32, #tpu.memory_space<any>>) target(%722 : memref<1x512xf32, #tpu.memory_space<vmem>>) target_semaphore(%724 : memref<!tpu.dma_semaphore, #tpu.memory_space<semaphore_mem>>)
    %725 = arith.index_cast %696 : i32 to index
    %c4_804 = arith.constant 4 : index
    %726 = memref.load %arg1[%725, %c4_804] : memref<8x8xi32, #tpu.memory_space<smem>>
    %c1_i32_805 = arith.constant 1 : i32
    %c1_i32_806 = arith.constant 1 : i32
    %c4_i32_807 = arith.constant 4 : i32
    %c0_i32_808 = arith.constant 0 : i32
    %727 = tpu.memref_slice %arg5[%726, %c0_i32_808] : memref<16x512xf32, #tpu.memory_space<any>> -> memref<1x512xf32, #tpu.memory_space<any>>
    %c4_i32_809 = arith.constant 4 : i32
    %c0_i32_810 = arith.constant 0 : i32
    %728 = tpu.memref_slice %arg7[%c1_i32_805, %c4_i32_809, %c0_i32_810] : memref<2x8x512xf32, #tpu.memory_space<vmem>> -> memref<1x1x512xf32, #tpu.memory_space<vmem>>
    %729 = tpu.memref_squeeze %728 : memref<1x1x512xf32, #tpu.memory_space<vmem>> -> memref<1x512xf32, #tpu.memory_space<vmem>>
    %730 = tpu.memref_slice %arg8[%c1_i32_806, %c4_i32_807] : memref<2x8x!tpu.dma_semaphore, #tpu.memory_space<semaphore_mem>> -> memref<1x1x!tpu.dma_semaphore, #tpu.memory_space<semaphore_mem>>
    %731 = tpu.memref_squeeze %730 : memref<1x1x!tpu.dma_semaphore, #tpu.memory_space<semaphore_mem>> -> memref<!tpu.dma_semaphore, #tpu.memory_space<semaphore_mem>>
    tpu.enqueue_dma source(%727 : memref<1x512xf32, #tpu.memory_space<any>>) target(%729 : memref<1x512xf32, #tpu.memory_space<vmem>>) target_semaphore(%731 : memref<!tpu.dma_semaphore, #tpu.memory_space<semaphore_mem>>)
    %732 = arith.index_cast %696 : i32 to index
    %c5_811 = arith.constant 5 : index
    %733 = memref.load %arg1[%732, %c5_811] : memref<8x8xi32, #tpu.memory_space<smem>>
    %c1_i32_812 = arith.constant 1 : i32
    %c1_i32_813 = arith.constant 1 : i32
    %c5_i32_814 = arith.constant 5 : i32
    %c0_i32_815 = arith.constant 0 : i32
    %734 = tpu.memref_slice %arg5[%733, %c0_i32_815] : memref<16x512xf32, #tpu.memory_space<any>> -> memref<1x512xf32, #tpu.memory_space<any>>
    %c5_i32_816 = arith.constant 5 : i32
    %c0_i32_817 = arith.constant 0 : i32
    %735 = tpu.memref_slice %arg7[%c1_i32_812, %c5_i32_816, %c0_i32_817] : memref<2x8x512xf32, #tpu.memory_space<vmem>> -> memref<1x1x512xf32, #tpu.memory_space<vmem>>
    %736 = tpu.memref_squeeze %735 : memref<1x1x512xf32, #tpu.memory_space<vmem>> -> memref<1x512xf32, #tpu.memory_space<vmem>>
    %737 = tpu.memref_slice %arg8[%c1_i32_813, %c5_i32_814] : memref<2x8x!tpu.dma_semaphore, #tpu.memory_space<semaphore_mem>> -> memref<1x1x!tpu.dma_semaphore, #tpu.memory_space<semaphore_mem>>
    %738 = tpu.memref_squeeze %737 : memref<1x1x!tpu.dma_semaphore, #tpu.memory_space<semaphore_mem>> -> memref<!tpu.dma_semaphore, #tpu.memory_space<semaphore_mem>>
    tpu.enqueue_dma source(%734 : memref<1x512xf32, #tpu.memory_space<any>>) target(%736 : memref<1x512xf32, #tpu.memory_space<vmem>>) target_semaphore(%738 : memref<!tpu.dma_semaphore, #tpu.memory_space<semaphore_mem>>)
    %739 = arith.index_cast %696 : i32 to index
    %c6_818 = arith.constant 6 : index
    %740 = memref.load %arg1[%739, %c6_818] : memref<8x8xi32, #tpu.memory_space<smem>>
    %c1_i32_819 = arith.constant 1 : i32
    %c1_i32_820 = arith.constant 1 : i32
    %c6_i32_821 = arith.constant 6 : i32
    %c0_i32_822 = arith.constant 0 : i32
    %741 = tpu.memref_slice %arg5[%740, %c0_i32_822] : memref<16x512xf32, #tpu.memory_space<any>> -> memref<1x512xf32, #tpu.memory_space<any>>
    %c6_i32_823 = arith.constant 6 : i32
    %c0_i32_824 = arith.constant 0 : i32
    %742 = tpu.memref_slice %arg7[%c1_i32_819, %c6_i32_823, %c0_i32_824] : memref<2x8x512xf32, #tpu.memory_space<vmem>> -> memref<1x1x512xf32, #tpu.memory_space<vmem>>
    %743 = tpu.memref_squeeze %742 : memref<1x1x512xf32, #tpu.memory_space<vmem>> -> memref<1x512xf32, #tpu.memory_space<vmem>>
    %744 = tpu.memref_slice %arg8[%c1_i32_820, %c6_i32_821] : memref<2x8x!tpu.dma_semaphore, #tpu.memory_space<semaphore_mem>> -> memref<1x1x!tpu.dma_semaphore, #tpu.memory_space<semaphore_mem>>
    %745 = tpu.memref_squeeze %744 : memref<1x1x!tpu.dma_semaphore, #tpu.memory_space<semaphore_mem>> -> memref<!tpu.dma_semaphore, #tpu.memory_space<semaphore_mem>>
    tpu.enqueue_dma source(%741 : memref<1x512xf32, #tpu.memory_space<any>>) target(%743 : memref<1x512xf32, #tpu.memory_space<vmem>>) target_semaphore(%745 : memref<!tpu.dma_semaphore, #tpu.memory_space<semaphore_mem>>)
    %746 = arith.index_cast %696 : i32 to index
    %c7_825 = arith.constant 7 : index
    %747 = memref.load %arg1[%746, %c7_825] : memref<8x8xi32, #tpu.memory_space<smem>>
    %c1_i32_826 = arith.constant 1 : i32
    %c1_i32_827 = arith.constant 1 : i32
    %c7_i32_828 = arith.constant 7 : i32
    %c0_i32_829 = arith.constant 0 : i32
    %748 = tpu.memref_slice %arg5[%747, %c0_i32_829] : memref<16x512xf32, #tpu.memory_space<any>> -> memref<1x512xf32, #tpu.memory_space<any>>
    %c7_i32_830 = arith.constant 7 : i32
    %c0_i32_831 = arith.constant 0 : i32
    %749 = tpu.memref_slice %arg7[%c1_i32_826, %c7_i32_830, %c0_i32_831] : memref<2x8x512xf32, #tpu.memory_space<vmem>> -> memref<1x1x512xf32, #tpu.memory_space<vmem>>
    %750 = tpu.memref_squeeze %749 : memref<1x1x512xf32, #tpu.memory_space<vmem>> -> memref<1x512xf32, #tpu.memory_space<vmem>>
    %751 = tpu.memref_slice %arg8[%c1_i32_827, %c7_i32_828] : memref<2x8x!tpu.dma_semaphore, #tpu.memory_space<semaphore_mem>> -> memref<1x1x!tpu.dma_semaphore, #tpu.memory_space<semaphore_mem>>
    %752 = tpu.memref_squeeze %751 : memref<1x1x!tpu.dma_semaphore, #tpu.memory_space<semaphore_mem>> -> memref<!tpu.dma_semaphore, #tpu.memory_space<semaphore_mem>>
    tpu.enqueue_dma source(%748 : memref<1x512xf32, #tpu.memory_space<any>>) target(%750 : memref<1x512xf32, #tpu.memory_space<vmem>>) target_semaphore(%752 : memref<!tpu.dma_semaphore, #tpu.memory_space<semaphore_mem>>)
    %c0_i32_832 = arith.constant 0 : i32
    %c0_i32_833 = arith.constant 0 : i32
    %c0_i32_834 = arith.constant 0 : i32
    %c0_i32_835 = arith.constant 0 : i32
    %c0_i32_836 = arith.constant 0 : i32
    %753 = tpu.memref_slice %arg5[%c0_i32_835, %c0_i32_836] : memref<16x512xf32, #tpu.memory_space<any>> -> memref<1x512xf32, #tpu.memory_space<any>>
    %c0_i32_837 = arith.constant 0 : i32
    %c0_i32_838 = arith.constant 0 : i32
    %754 = tpu.memref_slice %arg7[%c0_i32_832, %c0_i32_837, %c0_i32_838] : memref<2x8x512xf32, #tpu.memory_space<vmem>> -> memref<1x1x512xf32, #tpu.memory_space<vmem>>
    %755 = tpu.memref_squeeze %754 : memref<1x1x512xf32, #tpu.memory_space<vmem>> -> memref<1x512xf32, #tpu.memory_space<vmem>>
    %756 = tpu.memref_slice %arg8[%c0_i32_833, %c0_i32_834] : memref<2x8x!tpu.dma_semaphore, #tpu.memory_space<semaphore_mem>> -> memref<1x1x!tpu.dma_semaphore, #tpu.memory_space<semaphore_mem>>
    %757 = tpu.memref_squeeze %756 : memref<1x1x!tpu.dma_semaphore, #tpu.memory_space<semaphore_mem>> -> memref<!tpu.dma_semaphore, #tpu.memory_space<semaphore_mem>>
    tpu.wait_dma2 semaphore(%757 : memref<!tpu.dma_semaphore, #tpu.memory_space<semaphore_mem>>) src(%753 : memref<1x512xf32, #tpu.memory_space<any>>) dst(%755 : memref<1x512xf32, #tpu.memory_space<vmem>>)
    %c0_i32_839 = arith.constant 0 : i32
    %c0_i32_840 = arith.constant 0 : i32
    %c1_i32_841 = arith.constant 1 : i32
    %c0_i32_842 = arith.constant 0 : i32
    %c0_i32_843 = arith.constant 0 : i32
    %758 = tpu.memref_slice %arg5[%c0_i32_842, %c0_i32_843] : memref<16x512xf32, #tpu.memory_space<any>> -> memref<1x512xf32, #tpu.memory_space<any>>
    %c1_i32_844 = arith.constant 1 : i32
    %c0_i32_845 = arith.constant 0 : i32
    %759 = tpu.memref_slice %arg7[%c0_i32_839, %c1_i32_844, %c0_i32_845] : memref<2x8x512xf32, #tpu.memory_space<vmem>> -> memref<1x1x512xf32, #tpu.memory_space<vmem>>
    %760 = tpu.memref_squeeze %759 : memref<1x1x512xf32, #tpu.memory_space<vmem>> -> memref<1x512xf32, #tpu.memory_space<vmem>>
    %761 = tpu.memref_slice %arg8[%c0_i32_840, %c1_i32_841] : memref<2x8x!tpu.dma_semaphore, #tpu.memory_space<semaphore_mem>> -> memref<1x1x!tpu.dma_semaphore, #tpu.memory_space<semaphore_mem>>
    %762 = tpu.memref_squeeze %761 : memref<1x1x!tpu.dma_semaphore, #tpu.memory_space<semaphore_mem>> -> memref<!tpu.dma_semaphore, #tpu.memory_space<semaphore_mem>>
    tpu.wait_dma2 semaphore(%762 : memref<!tpu.dma_semaphore, #tpu.memory_space<semaphore_mem>>) src(%758 : memref<1x512xf32, #tpu.memory_space<any>>) dst(%760 : memref<1x512xf32, #tpu.memory_space<vmem>>)
    %c0_i32_846 = arith.constant 0 : i32
    %c0_i32_847 = arith.constant 0 : i32
    %c2_i32_848 = arith.constant 2 : i32
    %c0_i32_849 = arith.constant 0 : i32
    %c0_i32_850 = arith.constant 0 : i32
    %763 = tpu.memref_slice %arg5[%c0_i32_849, %c0_i32_850] : memref<16x512xf32, #tpu.memory_space<any>> -> memref<1x512xf32, #tpu.memory_space<any>>
    %c2_i32_851 = arith.constant 2 : i32
    %c0_i32_852 = arith.constant 0 : i32
    %764 = tpu.memref_slice %arg7[%c0_i32_846, %c2_i32_851, %c0_i32_852] : memref<2x8x512xf32, #tpu.memory_space<vmem>> -> memref<1x1x512xf32, #tpu.memory_space<vmem>>
    %765 = tpu.memref_squeeze %764 : memref<1x1x512xf32, #tpu.memory_space<vmem>> -> memref<1x512xf32, #tpu.memory_space<vmem>>
    %766 = tpu.memref_slice %arg8[%c0_i32_847, %c2_i32_848] : memref<2x8x!tpu.dma_semaphore, #tpu.memory_space<semaphore_mem>> -> memref<1x1x!tpu.dma_semaphore, #tpu.memory_space<semaphore_mem>>
    %767 = tpu.memref_squeeze %766 : memref<1x1x!tpu.dma_semaphore, #tpu.memory_space<semaphore_mem>> -> memref<!tpu.dma_semaphore, #tpu.memory_space<semaphore_mem>>
    tpu.wait_dma2 semaphore(%767 : memref<!tpu.dma_semaphore, #tpu.memory_space<semaphore_mem>>) src(%763 : memref<1x512xf32, #tpu.memory_space<any>>) dst(%765 : memref<1x512xf32, #tpu.memory_space<vmem>>)
    %c0_i32_853 = arith.constant 0 : i32
    %c0_i32_854 = arith.constant 0 : i32
    %c3_i32_855 = arith.constant 3 : i32
    %c0_i32_856 = arith.constant 0 : i32
    %c0_i32_857 = arith.constant 0 : i32
    %768 = tpu.memref_slice %arg5[%c0_i32_856, %c0_i32_857] : memref<16x512xf32, #tpu.memory_space<any>> -> memref<1x512xf32, #tpu.memory_space<any>>
    %c3_i32_858 = arith.constant 3 : i32
    %c0_i32_859 = arith.constant 0 : i32
    %769 = tpu.memref_slice %arg7[%c0_i32_853, %c3_i32_858, %c0_i32_859] : memref<2x8x512xf32, #tpu.memory_space<vmem>> -> memref<1x1x512xf32, #tpu.memory_space<vmem>>
    %770 = tpu.memref_squeeze %769 : memref<1x1x512xf32, #tpu.memory_space<vmem>> -> memref<1x512xf32, #tpu.memory_space<vmem>>
    %771 = tpu.memref_slice %arg8[%c0_i32_854, %c3_i32_855] : memref<2x8x!tpu.dma_semaphore, #tpu.memory_space<semaphore_mem>> -> memref<1x1x!tpu.dma_semaphore, #tpu.memory_space<semaphore_mem>>
    %772 = tpu.memref_squeeze %771 : memref<1x1x!tpu.dma_semaphore, #tpu.memory_space<semaphore_mem>> -> memref<!tpu.dma_semaphore, #tpu.memory_space<semaphore_mem>>
    tpu.wait_dma2 semaphore(%772 : memref<!tpu.dma_semaphore, #tpu.memory_space<semaphore_mem>>) src(%768 : memref<1x512xf32, #tpu.memory_space<any>>) dst(%770 : memref<1x512xf32, #tpu.memory_space<vmem>>)
    %c0_i32_860 = arith.constant 0 : i32
    %c0_i32_861 = arith.constant 0 : i32
    %c4_i32_862 = arith.constant 4 : i32
    %c0_i32_863 = arith.constant 0 : i32
    %c0_i32_864 = arith.constant 0 : i32
    %773 = tpu.memref_slice %arg5[%c0_i32_863, %c0_i32_864] : memref<16x512xf32, #tpu.memory_space<any>> -> memref<1x512xf32, #tpu.memory_space<any>>
    %c4_i32_865 = arith.constant 4 : i32
    %c0_i32_866 = arith.constant 0 : i32
    %774 = tpu.memref_slice %arg7[%c0_i32_860, %c4_i32_865, %c0_i32_866] : memref<2x8x512xf32, #tpu.memory_space<vmem>> -> memref<1x1x512xf32, #tpu.memory_space<vmem>>
    %775 = tpu.memref_squeeze %774 : memref<1x1x512xf32, #tpu.memory_space<vmem>> -> memref<1x512xf32, #tpu.memory_space<vmem>>
    %776 = tpu.memref_slice %arg8[%c0_i32_861, %c4_i32_862] : memref<2x8x!tpu.dma_semaphore, #tpu.memory_space<semaphore_mem>> -> memref<1x1x!tpu.dma_semaphore, #tpu.memory_space<semaphore_mem>>
    %777 = tpu.memref_squeeze %776 : memref<1x1x!tpu.dma_semaphore, #tpu.memory_space<semaphore_mem>> -> memref<!tpu.dma_semaphore, #tpu.memory_space<semaphore_mem>>
    tpu.wait_dma2 semaphore(%777 : memref<!tpu.dma_semaphore, #tpu.memory_space<semaphore_mem>>) src(%773 : memref<1x512xf32, #tpu.memory_space<any>>) dst(%775 : memref<1x512xf32, #tpu.memory_space<vmem>>)
    %c0_i32_867 = arith.constant 0 : i32
    %c0_i32_868 = arith.constant 0 : i32
    %c5_i32_869 = arith.constant 5 : i32
    %c0_i32_870 = arith.constant 0 : i32
    %c0_i32_871 = arith.constant 0 : i32
    %778 = tpu.memref_slice %arg5[%c0_i32_870, %c0_i32_871] : memref<16x512xf32, #tpu.memory_space<any>> -> memref<1x512xf32, #tpu.memory_space<any>>
    %c5_i32_872 = arith.constant 5 : i32
    %c0_i32_873 = arith.constant 0 : i32
    %779 = tpu.memref_slice %arg7[%c0_i32_867, %c5_i32_872, %c0_i32_873] : memref<2x8x512xf32, #tpu.memory_space<vmem>> -> memref<1x1x512xf32, #tpu.memory_space<vmem>>
    %780 = tpu.memref_squeeze %779 : memref<1x1x512xf32, #tpu.memory_space<vmem>> -> memref<1x512xf32, #tpu.memory_space<vmem>>
    %781 = tpu.memref_slice %arg8[%c0_i32_868, %c5_i32_869] : memref<2x8x!tpu.dma_semaphore, #tpu.memory_space<semaphore_mem>> -> memref<1x1x!tpu.dma_semaphore, #tpu.memory_space<semaphore_mem>>
    %782 = tpu.memref_squeeze %781 : memref<1x1x!tpu.dma_semaphore, #tpu.memory_space<semaphore_mem>> -> memref<!tpu.dma_semaphore, #tpu.memory_space<semaphore_mem>>
    tpu.wait_dma2 semaphore(%782 : memref<!tpu.dma_semaphore, #tpu.memory_space<semaphore_mem>>) src(%778 : memref<1x512xf32, #tpu.memory_space<any>>) dst(%780 : memref<1x512xf32, #tpu.memory_space<vmem>>)
    %c0_i32_874 = arith.constant 0 : i32
    %c0_i32_875 = arith.constant 0 : i32
    %c6_i32_876 = arith.constant 6 : i32
    %c0_i32_877 = arith.constant 0 : i32
    %c0_i32_878 = arith.constant 0 : i32
    %783 = tpu.memref_slice %arg5[%c0_i32_877, %c0_i32_878] : memref<16x512xf32, #tpu.memory_space<any>> -> memref<1x512xf32, #tpu.memory_space<any>>
    %c6_i32_879 = arith.constant 6 : i32
    %c0_i32_880 = arith.constant 0 : i32
    %784 = tpu.memref_slice %arg7[%c0_i32_874, %c6_i32_879, %c0_i32_880] : memref<2x8x512xf32, #tpu.memory_space<vmem>> -> memref<1x1x512xf32, #tpu.memory_space<vmem>>
    %785 = tpu.memref_squeeze %784 : memref<1x1x512xf32, #tpu.memory_space<vmem>> -> memref<1x512xf32, #tpu.memory_space<vmem>>
    %786 = tpu.memref_slice %arg8[%c0_i32_875, %c6_i32_876] : memref<2x8x!tpu.dma_semaphore, #tpu.memory_space<semaphore_mem>> -> memref<1x1x!tpu.dma_semaphore, #tpu.memory_space<semaphore_mem>>
    %787 = tpu.memref_squeeze %786 : memref<1x1x!tpu.dma_semaphore, #tpu.memory_space<semaphore_mem>> -> memref<!tpu.dma_semaphore, #tpu.memory_space<semaphore_mem>>
    tpu.wait_dma2 semaphore(%787 : memref<!tpu.dma_semaphore, #tpu.memory_space<semaphore_mem>>) src(%783 : memref<1x512xf32, #tpu.memory_space<any>>) dst(%785 : memref<1x512xf32, #tpu.memory_space<vmem>>)
    %c0_i32_881 = arith.constant 0 : i32
    %c0_i32_882 = arith.constant 0 : i32
    %c7_i32_883 = arith.constant 7 : i32
    %c0_i32_884 = arith.constant 0 : i32
    %c0_i32_885 = arith.constant 0 : i32
    %788 = tpu.memref_slice %arg5[%c0_i32_884, %c0_i32_885] : memref<16x512xf32, #tpu.memory_space<any>> -> memref<1x512xf32, #tpu.memory_space<any>>
    %c7_i32_886 = arith.constant 7 : i32
    %c0_i32_887 = arith.constant 0 : i32
    %789 = tpu.memref_slice %arg7[%c0_i32_881, %c7_i32_886, %c0_i32_887] : memref<2x8x512xf32, #tpu.memory_space<vmem>> -> memref<1x1x512xf32, #tpu.memory_space<vmem>>
    %790 = tpu.memref_squeeze %789 : memref<1x1x512xf32, #tpu.memory_space<vmem>> -> memref<1x512xf32, #tpu.memory_space<vmem>>
    %791 = tpu.memref_slice %arg8[%c0_i32_882, %c7_i32_883] : memref<2x8x!tpu.dma_semaphore, #tpu.memory_space<semaphore_mem>> -> memref<1x1x!tpu.dma_semaphore, #tpu.memory_space<semaphore_mem>>
    %792 = tpu.memref_squeeze %791 : memref<1x1x!tpu.dma_semaphore, #tpu.memory_space<semaphore_mem>> -> memref<!tpu.dma_semaphore, #tpu.memory_space<semaphore_mem>>
    tpu.wait_dma2 semaphore(%792 : memref<!tpu.dma_semaphore, #tpu.memory_space<semaphore_mem>>) src(%788 : memref<1x512xf32, #tpu.memory_space<any>>) dst(%790 : memref<1x512xf32, #tpu.memory_space<vmem>>)
    %c0_888 = arith.constant 0 : index
    %c0_889 = arith.constant 0 : index
    %c0_890 = arith.constant 0 : index
    %793 = vector.load %arg7[%c0_888, %c0_889, %c0_890] : memref<2x8x512xf32, #tpu.memory_space<vmem>>, vector<1x8x512xf32>
    %794 = vector.shape_cast %793 : vector<1x8x512xf32> to vector<8x512xf32>
    %cst_891 = arith.constant dense<0.000000e+00> : vector<512xf32>
    %795 = vector.multi_reduction <add>, %794, %cst_891 [0] : vector<8x512xf32> to vector<512xf32>
    %796 = vector.shape_cast %795 : vector<512xf32> to vector<1x512xf32>
    %cst_892 = arith.constant 1.250000e-01 : f32
    %797 = vector.broadcast %cst_892 : f32 to vector<1x512xf32>
    %798 = arith.mulf %796, %797 : vector<1x512xf32>
    %c6_893 = arith.constant 6 : index
    %c512_894 = arith.constant 512 : index
    %799 = vector.load %arg6[%c6_893, %c512_894] : memref<8x1024xf32, #tpu.memory_space<vmem>>, vector<1x512xf32>
    tpu.vector_store %arg6[%c6_893, %c512_894], %798 {strides = array<i32>} : memref<8x1024xf32, #tpu.memory_space<vmem>>, vector<1x512xf32>,
    %c1_i32_895 = arith.constant 1 : i32
    %c1_i32_896 = arith.constant 1 : i32
    %c0_i32_897 = arith.constant 0 : i32
    %c0_i32_898 = arith.constant 0 : i32
    %c0_i32_899 = arith.constant 0 : i32
    %800 = tpu.memref_slice %arg5[%c0_i32_898, %c0_i32_899] : memref<16x512xf32, #tpu.memory_space<any>> -> memref<1x512xf32, #tpu.memory_space<any>>
    %c0_i32_900 = arith.constant 0 : i32
    %c0_i32_901 = arith.constant 0 : i32
    %801 = tpu.memref_slice %arg7[%c1_i32_895, %c0_i32_900, %c0_i32_901] : memref<2x8x512xf32, #tpu.memory_space<vmem>> -> memref<1x1x512xf32, #tpu.memory_space<vmem>>
    %802 = tpu.memref_squeeze %801 : memref<1x1x512xf32, #tpu.memory_space<vmem>> -> memref<1x512xf32, #tpu.memory_space<vmem>>
    %803 = tpu.memref_slice %arg8[%c1_i32_896, %c0_i32_897] : memref<2x8x!tpu.dma_semaphore, #tpu.memory_space<semaphore_mem>> -> memref<1x1x!tpu.dma_semaphore, #tpu.memory_space<semaphore_mem>>
    %804 = tpu.memref_squeeze %803 : memref<1x1x!tpu.dma_semaphore, #tpu.memory_space<semaphore_mem>> -> memref<!tpu.dma_semaphore, #tpu.memory_space<semaphore_mem>>
    tpu.wait_dma2 semaphore(%804 : memref<!tpu.dma_semaphore, #tpu.memory_space<semaphore_mem>>) src(%800 : memref<1x512xf32, #tpu.memory_space<any>>) dst(%802 : memref<1x512xf32, #tpu.memory_space<vmem>>)
    %c1_i32_902 = arith.constant 1 : i32
    %c1_i32_903 = arith.constant 1 : i32
    %c1_i32_904 = arith.constant 1 : i32
    %c0_i32_905 = arith.constant 0 : i32
    %c0_i32_906 = arith.constant 0 : i32
    %805 = tpu.memref_slice %arg5[%c0_i32_905, %c0_i32_906] : memref<16x512xf32, #tpu.memory_space<any>> -> memref<1x512xf32, #tpu.memory_space<any>>
    %c1_i32_907 = arith.constant 1 : i32
    %c0_i32_908 = arith.constant 0 : i32
    %806 = tpu.memref_slice %arg7[%c1_i32_902, %c1_i32_907, %c0_i32_908] : memref<2x8x512xf32, #tpu.memory_space<vmem>> -> memref<1x1x512xf32, #tpu.memory_space<vmem>>
    %807 = tpu.memref_squeeze %806 : memref<1x1x512xf32, #tpu.memory_space<vmem>> -> memref<1x512xf32, #tpu.memory_space<vmem>>
    %808 = tpu.memref_slice %arg8[%c1_i32_903, %c1_i32_904] : memref<2x8x!tpu.dma_semaphore, #tpu.memory_space<semaphore_mem>> -> memref<1x1x!tpu.dma_semaphore, #tpu.memory_space<semaphore_mem>>
    %809 = tpu.memref_squeeze %808 : memref<1x1x!tpu.dma_semaphore, #tpu.memory_space<semaphore_mem>> -> memref<!tpu.dma_semaphore, #tpu.memory_space<semaphore_mem>>
    tpu.wait_dma2 semaphore(%809 : memref<!tpu.dma_semaphore, #tpu.memory_space<semaphore_mem>>) src(%805 : memref<1x512xf32, #tpu.memory_space<any>>) dst(%807 : memref<1x512xf32, #tpu.memory_space<vmem>>)
    %c1_i32_909 = arith.constant 1 : i32
    %c1_i32_910 = arith.constant 1 : i32
    %c2_i32_911 = arith.constant 2 : i32
    %c0_i32_912 = arith.constant 0 : i32
    %c0_i32_913 = arith.constant 0 : i32
    %810 = tpu.memref_slice %arg5[%c0_i32_912, %c0_i32_913] : memref<16x512xf32, #tpu.memory_space<any>> -> memref<1x512xf32, #tpu.memory_space<any>>
    %c2_i32_914 = arith.constant 2 : i32
    %c0_i32_915 = arith.constant 0 : i32
    %811 = tpu.memref_slice %arg7[%c1_i32_909, %c2_i32_914, %c0_i32_915] : memref<2x8x512xf32, #tpu.memory_space<vmem>> -> memref<1x1x512xf32, #tpu.memory_space<vmem>>
    %812 = tpu.memref_squeeze %811 : memref<1x1x512xf32, #tpu.memory_space<vmem>> -> memref<1x512xf32, #tpu.memory_space<vmem>>
    %813 = tpu.memref_slice %arg8[%c1_i32_910, %c2_i32_911] : memref<2x8x!tpu.dma_semaphore, #tpu.memory_space<semaphore_mem>> -> memref<1x1x!tpu.dma_semaphore, #tpu.memory_space<semaphore_mem>>
    %814 = tpu.memref_squeeze %813 : memref<1x1x!tpu.dma_semaphore, #tpu.memory_space<semaphore_mem>> -> memref<!tpu.dma_semaphore, #tpu.memory_space<semaphore_mem>>
    tpu.wait_dma2 semaphore(%814 : memref<!tpu.dma_semaphore, #tpu.memory_space<semaphore_mem>>) src(%810 : memref<1x512xf32, #tpu.memory_space<any>>) dst(%812 : memref<1x512xf32, #tpu.memory_space<vmem>>)
    %c1_i32_916 = arith.constant 1 : i32
    %c1_i32_917 = arith.constant 1 : i32
    %c3_i32_918 = arith.constant 3 : i32
    %c0_i32_919 = arith.constant 0 : i32
    %c0_i32_920 = arith.constant 0 : i32
    %815 = tpu.memref_slice %arg5[%c0_i32_919, %c0_i32_920] : memref<16x512xf32, #tpu.memory_space<any>> -> memref<1x512xf32, #tpu.memory_space<any>>
    %c3_i32_921 = arith.constant 3 : i32
    %c0_i32_922 = arith.constant 0 : i32
    %816 = tpu.memref_slice %arg7[%c1_i32_916, %c3_i32_921, %c0_i32_922] : memref<2x8x512xf32, #tpu.memory_space<vmem>> -> memref<1x1x512xf32, #tpu.memory_space<vmem>>
    %817 = tpu.memref_squeeze %816 : memref<1x1x512xf32, #tpu.memory_space<vmem>> -> memref<1x512xf32, #tpu.memory_space<vmem>>
    %818 = tpu.memref_slice %arg8[%c1_i32_917, %c3_i32_918] : memref<2x8x!tpu.dma_semaphore, #tpu.memory_space<semaphore_mem>> -> memref<1x1x!tpu.dma_semaphore, #tpu.memory_space<semaphore_mem>>
    %819 = tpu.memref_squeeze %818 : memref<1x1x!tpu.dma_semaphore, #tpu.memory_space<semaphore_mem>> -> memref<!tpu.dma_semaphore, #tpu.memory_space<semaphore_mem>>
    tpu.wait_dma2 semaphore(%819 : memref<!tpu.dma_semaphore, #tpu.memory_space<semaphore_mem>>) src(%815 : memref<1x512xf32, #tpu.memory_space<any>>) dst(%817 : memref<1x512xf32, #tpu.memory_space<vmem>>)
    %c1_i32_923 = arith.constant 1 : i32
    %c1_i32_924 = arith.constant 1 : i32
    %c4_i32_925 = arith.constant 4 : i32
    %c0_i32_926 = arith.constant 0 : i32
    %c0_i32_927 = arith.constant 0 : i32
    %820 = tpu.memref_slice %arg5[%c0_i32_926, %c0_i32_927] : memref<16x512xf32, #tpu.memory_space<any>> -> memref<1x512xf32, #tpu.memory_space<any>>
    %c4_i32_928 = arith.constant 4 : i32
    %c0_i32_929 = arith.constant 0 : i32
    %821 = tpu.memref_slice %arg7[%c1_i32_923, %c4_i32_928, %c0_i32_929] : memref<2x8x512xf32, #tpu.memory_space<vmem>> -> memref<1x1x512xf32, #tpu.memory_space<vmem>>
    %822 = tpu.memref_squeeze %821 : memref<1x1x512xf32, #tpu.memory_space<vmem>> -> memref<1x512xf32, #tpu.memory_space<vmem>>
    %823 = tpu.memref_slice %arg8[%c1_i32_924, %c4_i32_925] : memref<2x8x!tpu.dma_semaphore, #tpu.memory_space<semaphore_mem>> -> memref<1x1x!tpu.dma_semaphore, #tpu.memory_space<semaphore_mem>>
    %824 = tpu.memref_squeeze %823 : memref<1x1x!tpu.dma_semaphore, #tpu.memory_space<semaphore_mem>> -> memref<!tpu.dma_semaphore, #tpu.memory_space<semaphore_mem>>
    tpu.wait_dma2 semaphore(%824 : memref<!tpu.dma_semaphore, #tpu.memory_space<semaphore_mem>>) src(%820 : memref<1x512xf32, #tpu.memory_space<any>>) dst(%822 : memref<1x512xf32, #tpu.memory_space<vmem>>)
    %c1_i32_930 = arith.constant 1 : i32
    %c1_i32_931 = arith.constant 1 : i32
    %c5_i32_932 = arith.constant 5 : i32
    %c0_i32_933 = arith.constant 0 : i32
    %c0_i32_934 = arith.constant 0 : i32
    %825 = tpu.memref_slice %arg5[%c0_i32_933, %c0_i32_934] : memref<16x512xf32, #tpu.memory_space<any>> -> memref<1x512xf32, #tpu.memory_space<any>>
    %c5_i32_935 = arith.constant 5 : i32
    %c0_i32_936 = arith.constant 0 : i32
    %826 = tpu.memref_slice %arg7[%c1_i32_930, %c5_i32_935, %c0_i32_936] : memref<2x8x512xf32, #tpu.memory_space<vmem>> -> memref<1x1x512xf32, #tpu.memory_space<vmem>>
    %827 = tpu.memref_squeeze %826 : memref<1x1x512xf32, #tpu.memory_space<vmem>> -> memref<1x512xf32, #tpu.memory_space<vmem>>
    %828 = tpu.memref_slice %arg8[%c1_i32_931, %c5_i32_932] : memref<2x8x!tpu.dma_semaphore, #tpu.memory_space<semaphore_mem>> -> memref<1x1x!tpu.dma_semaphore, #tpu.memory_space<semaphore_mem>>
    %829 = tpu.memref_squeeze %828 : memref<1x1x!tpu.dma_semaphore, #tpu.memory_space<semaphore_mem>> -> memref<!tpu.dma_semaphore, #tpu.memory_space<semaphore_mem>>
    tpu.wait_dma2 semaphore(%829 : memref<!tpu.dma_semaphore, #tpu.memory_space<semaphore_mem>>) src(%825 : memref<1x512xf32, #tpu.memory_space<any>>) dst(%827 : memref<1x512xf32, #tpu.memory_space<vmem>>)
    %c1_i32_937 = arith.constant 1 : i32
    %c1_i32_938 = arith.constant 1 : i32
    %c6_i32_939 = arith.constant 6 : i32
    %c0_i32_940 = arith.constant 0 : i32
    %c0_i32_941 = arith.constant 0 : i32
    %830 = tpu.memref_slice %arg5[%c0_i32_940, %c0_i32_941] : memref<16x512xf32, #tpu.memory_space<any>> -> memref<1x512xf32, #tpu.memory_space<any>>
    %c6_i32_942 = arith.constant 6 : i32
    %c0_i32_943 = arith.constant 0 : i32
    %831 = tpu.memref_slice %arg7[%c1_i32_937, %c6_i32_942, %c0_i32_943] : memref<2x8x512xf32, #tpu.memory_space<vmem>> -> memref<1x1x512xf32, #tpu.memory_space<vmem>>
    %832 = tpu.memref_squeeze %831 : memref<1x1x512xf32, #tpu.memory_space<vmem>> -> memref<1x512xf32, #tpu.memory_space<vmem>>
    %833 = tpu.memref_slice %arg8[%c1_i32_938, %c6_i32_939] : memref<2x8x!tpu.dma_semaphore, #tpu.memory_space<semaphore_mem>> -> memref<1x1x!tpu.dma_semaphore, #tpu.memory_space<semaphore_mem>>
    %834 = tpu.memref_squeeze %833 : memref<1x1x!tpu.dma_semaphore, #tpu.memory_space<semaphore_mem>> -> memref<!tpu.dma_semaphore, #tpu.memory_space<semaphore_mem>>
    tpu.wait_dma2 semaphore(%834 : memref<!tpu.dma_semaphore, #tpu.memory_space<semaphore_mem>>) src(%830 : memref<1x512xf32, #tpu.memory_space<any>>) dst(%832 : memref<1x512xf32, #tpu.memory_space<vmem>>)
    %c1_i32_944 = arith.constant 1 : i32
    %c1_i32_945 = arith.constant 1 : i32
    %c7_i32_946 = arith.constant 7 : i32
    %c0_i32_947 = arith.constant 0 : i32
    %c0_i32_948 = arith.constant 0 : i32
    %835 = tpu.memref_slice %arg5[%c0_i32_947, %c0_i32_948] : memref<16x512xf32, #tpu.memory_space<any>> -> memref<1x512xf32, #tpu.memory_space<any>>
    %c7_i32_949 = arith.constant 7 : i32
    %c0_i32_950 = arith.constant 0 : i32
    %836 = tpu.memref_slice %arg7[%c1_i32_944, %c7_i32_949, %c0_i32_950] : memref<2x8x512xf32, #tpu.memory_space<vmem>> -> memref<1x1x512xf32, #tpu.memory_space<vmem>>
    %837 = tpu.memref_squeeze %836 : memref<1x1x512xf32, #tpu.memory_space<vmem>> -> memref<1x512xf32, #tpu.memory_space<vmem>>
    %838 = tpu.memref_slice %arg8[%c1_i32_945, %c7_i32_946] : memref<2x8x!tpu.dma_semaphore, #tpu.memory_space<semaphore_mem>> -> memref<1x1x!tpu.dma_semaphore, #tpu.memory_space<semaphore_mem>>
    %839 = tpu.memref_squeeze %838 : memref<1x1x!tpu.dma_semaphore, #tpu.memory_space<semaphore_mem>> -> memref<!tpu.dma_semaphore, #tpu.memory_space<semaphore_mem>>
    tpu.wait_dma2 semaphore(%839 : memref<!tpu.dma_semaphore, #tpu.memory_space<semaphore_mem>>) src(%835 : memref<1x512xf32, #tpu.memory_space<any>>) dst(%837 : memref<1x512xf32, #tpu.memory_space<vmem>>)
    %c1_951 = arith.constant 1 : index
    %c0_952 = arith.constant 0 : index
    %c0_953 = arith.constant 0 : index
    %840 = vector.load %arg7[%c1_951, %c0_952, %c0_953] : memref<2x8x512xf32, #tpu.memory_space<vmem>>, vector<1x8x512xf32>
    %841 = vector.shape_cast %840 : vector<1x8x512xf32> to vector<8x512xf32>
    %cst_954 = arith.constant dense<0.000000e+00> : vector<512xf32>
    %842 = vector.multi_reduction <add>, %841, %cst_954 [0] : vector<8x512xf32> to vector<512xf32>
    %843 = vector.shape_cast %842 : vector<512xf32> to vector<1x512xf32>
    %cst_955 = arith.constant 1.250000e-01 : f32
    %844 = vector.broadcast %cst_955 : f32 to vector<1x512xf32>
    %845 = arith.mulf %843, %844 : vector<1x512xf32>
    %c7_956 = arith.constant 7 : index
    %c512_957 = arith.constant 512 : index
    %846 = vector.load %arg6[%c7_956, %c512_957] : memref<8x1024xf32, #tpu.memory_space<vmem>>, vector<1x512xf32>
    tpu.vector_store %arg6[%c7_956, %c512_957], %845 {strides = array<i32>} : memref<8x1024xf32, #tpu.memory_space<vmem>>, vector<1x512xf32>,
    return
  }
  func.func @transform_0(%arg0: i32, %arg1: memref<8x8xi32, #tpu.memory_space<smem>>) -> (i32, i32) {
    %c0_i32 = arith.constant 0 : i32
    %c0_i32_0 = arith.constant 0 : i32
    return %arg0, %c0_i32 : i32, i32
  }
  func.func @transform_1(%arg0: i32, %arg1: memref<8x8xi32, #tpu.memory_space<smem>>) -> (i32, i32) {
    %c0_i32 = arith.constant 0 : i32
    %c0_i32_0 = arith.constant 0 : i32
    %c0_i32_1 = arith.constant 0 : i32
    return %c0_i32, %c0_i32_0 : i32, i32
  }
  func.func @transform_2(%arg0: i32, %arg1: memref<8x8xi32, #tpu.memory_space<smem>>) -> (i32, i32) {
    %c0_i32 = arith.constant 0 : i32
    %c0_i32_0 = arith.constant 0 : i32
    %c0_i32_1 = arith.constant 0 : i32
    return %c0_i32, %c0_i32_0 : i32, i32
  }
  func.func @transform_4(%arg0: i32, %arg1: memref<8x8xi32, #tpu.memory_space<smem>>) -> (i32, i32) {
    %c0_i32 = arith.constant 0 : i32
    %c0_i32_0 = arith.constant 0 : i32
    return %arg0, %c0_i32 : i32, i32
  }
}

</mosaic_0001>

<bundles_post_ra>
// kernel: tpu_custom_call.1
= control target key start
LH: loop header
LB: loop body
LE: loop exit
PB: predicated region body
PF: predicated region fallthrough
CT: control target
= control target key end

     0   :  { %s3982_s18 = smov [#allocation5]   ;;  %s5269_s0 = inlined_call_operand.hbm [shape: s32[8,8], index: 0, kind: input, shape index: {}]   ;;  %s5270_s1 = inlined_call_operand.hbm [shape: f32[8,32], index: 1, kind: input, shape index: {}]   ;;  %s5271_s2 = inlined_call_operand.hbm [shape: f32[32,512], index: 2, kind: input, shape index: {}]   ;;  %s5272_s3 = inlined_call_operand.vmem [shape: f32[1,512], index: 3, kind: input, shape index: {}]   ;;  %s5273_s4 = inlined_call_operand.hbm [shape: f32[16,512], index: 4, kind: input, shape index: {}]   ;;  %s5274_s5 = inlined_call_operand.hbm [shape: f32[8,1024], index: 5, kind: output, shape index: {}]  }
   0x1   :  { %5358 = sst [smem:[#allocation173_spill]] %s5274_s5 }
   0x2   :  { %11 = dma.hbm_to_smem %s5269_s0, 128, %s3982_s18, [#allocation4] }
   0x3   :  { %3846 = dma.done.wait [#allocation4], 128 }
   0x4   :  { %3847 = vsyncadd [#allocation4], 4294967168 }
   0x5   :  { %13 = sfence }
   0x6   :  { %14 = vsyncpa [#allocation7], 0 }
   0x7   :  { %15 = vsyncpa [#allocation10], 0 }
   0x8   :  { %16 = vsyncpa [#allocation8], 0  ;;  %s3983_s21 = smov [#allocation6]   ;;  %s3984_s23 = smov [#allocation9]  }
   0x9   :  { %s23_s22 = sshll.u32 %s3983_s21, 4  ;;  %s32_s24 = sshll.u32 %s3984_s23, 4  ;;  %s24_s22 = int_to_ptr.vmem [resolvable:$true] %s23_s22  ;;  %s33_s24 = int_to_ptr.vmem [resolvable:$true] %s32_s24 }
   0xa   :  { %s2386_s25 = scalar_lea.vmem %s24_s22, 128  ;;  %p2391_p1 = scmp.lt.s32.totalorder %s24_s22, %s24_s22 }
   0xb   :  { %p2387_p0 = scmp.ne.s32.totalorder %s24_s22, %s2386_s25  ;;  %p2392_p2 = scmp.lt.s32.totalorder %s2386_s25, %s2386_s25 }
   0xd   :  { %p2393_p3 = por %p2392_p2, %p2391_p1 }
   0xf   :  { %p2394_p4 = pnand %p2393_p3, %p2387_p0 }
  0x11   :  { %2397 = shalt.err (!%p2394_p4)
}
  0x12   :  { %26 = dma.hbm_to_vmem [thread:$0]  %s5270_s1, 128, %s24_s22, [#allocation7]  }
  0x13   :  { %s2406_s27 = scalar_lea.vmem %s33_s24, 2048  ;;  %p2411_p6 = scmp.lt.s32.totalorder %s33_s24, %s33_s24 }
  0x14   :  { %p2407_p5 = scmp.ne.s32.totalorder %s33_s24, %s2406_s27  ;;  %p2412_p7 = scmp.lt.s32.totalorder %s2406_s27, %s2406_s27 }
  0x16   :  { %p2413_p8 = por %p2412_p7, %p2411_p6 }
  0x18   :  { %p2414_p9 = pnand %p2413_p8, %p2407_p5 }
  0x1a   :  { %2417 = shalt.err (!%p2414_p9)
}
  0x1b   :  { %s3985_s28 = smov 512   ;;  %s3986_s29 = smov 32  }
  0x1c   :  { %38 = dma.hbm_to_vmem [thread:$0]  %s5271_s2, 2048, %s33_s24, [#allocation10], %s3985_s28, %s3985_s28, %s3986_s29  }
  0x1d   :  { %3848 = dma.done.wait [#allocation7], 128  }
  0x1e   :  { %3849 = vsyncadd [#allocation7], 4294967168 }
  0x1f   :  { %3850 = dma.done.wait [#allocation10], 2048  }
  0x20   :  { %3851 = vsyncadd [#allocation10], 4294965248  ;;  %v3987_v0 = vmov 0.0   ;;  %s4047_s1 = sld [smem:[#allocation5]]  ;;  %s3988_s7 = smov [#allocation2]   ;;  %v61_v1 = vld [vmem:[#allocation9 + $0x68] sm:$0xff] }
  0x21   :  { %154 = vmatprep.mubr.f32.mxu0 %v3987_v0  ;;  %225 = vmatprep.mubr.f32.mxu1 %v3987_v0  ;;  %s246_s8 = sshll.u32 %s3988_s7, 4  ;;  %s4051_s9 = sld [smem:[#allocation5 + $0x1]]  ;;  %v63_v2 = vld [vmem:[#allocation9 + $0x78] sm:$0xff]  ;;  %v60_v3 = vld [vmem:[#allocation9 + $0x60] sm:$0xff]  ;;  %v62_v4 = vld [vmem:[#allocation9 + $0x70] sm:$0xff]  ;;  %s4049_s8 = int_to_ptr.vmem [resolvable:$true] %s246_s8 }
  0x22   :  { %s3989_s10 = smov [#allocation2 + $0x1]   ;;  %s4053_s2 = sld [smem:[#allocation5 + $0x2]]  ;;  %114 = vmatprep.subr.mxu0 %v61_v1  ;;  %185 = vmatprep.subr.mxu1 %v63_v2  ;;  %v57_v5 = vld [vmem:[#allocation9 + $0x48] sm:$0xff]  ;;  %v59_v6 = vld [vmem:[#allocation9 + $0x58] sm:$0xff]  ;;  %v56_v7 = vld [vmem:[#allocation9 + $0x40] sm:$0xff] }
  0x23   :  { %s261_s11 = sshll.u32 %s3989_s10, 4  ;;  %s3990_s12 = smov [#allocation2 + $0x2]   ;;  %115 = vmatpush1.msra.mxu0 %v60_v3  ;;  %186 = vmatpush1.msra.mxu1 %v62_v4  ;;  %v58_v8 = vld [vmem:[#allocation9 + $0x50] sm:$0xff]  ;;  %v53_v9 = vld [vmem:[#allocation9 + $0x28] sm:$0xff]  ;;  %v55_v10 = vld [vmem:[#allocation9 + $0x38] sm:$0xff]  ;;  %s4055_s11 = int_to_ptr.vmem [resolvable:$true] %s261_s11 }
  0x24   :  { %5359 = sst [smem:[#allocation144_spill]] %s4055_s11  ;;  %s276_s13 = sshll.u32 %s3990_s12, 4  ;;  %116 = vmatprep.subr.mxu0 %v57_v5  ;;  %187 = vmatprep.subr.mxu1 %v59_v6  ;;  %v52_v11 = vld [vmem:[#allocation9 + $0x20] sm:$0xff]  ;;  %v54_v12 = vld [vmem:[#allocation9 + $0x30] sm:$0xff]  ;;  %v49_v13 = vld [vmem:[#allocation9 + $0x8] sm:$0xff]  ;;  %s4061_s13 = int_to_ptr.vmem [resolvable:$true] %s276_s13 }
  0x25   :  { %s4057_s14 = sld [smem:[#allocation5 + $0x3]]  ;;  %117 = vmatpush1.msra.mxu0 %v56_v7  ;;  %188 = vmatpush1.msra.mxu1 %v58_v8  ;;  %v51_v14 = vld [vmem:[#allocation9 + $0x18] sm:$0xff]  ;;  %v48_v15 = vld [vmem:[#allocation9] sm:$0xff]  ;;  %v50_v16 = vld [vmem:[#allocation9 + $0x10] sm:$0xff]  ;;  %s4071_s28 = scalar_lea.hbm %s5273_s4, 1024 }
  0x26   :  { %s239_s15 = sshrl.u32 %s4047_s1, 3  ;;  %s240_s16 = sand.u32 7, %s4047_s1   ;;  %118 = vmatprep.subr.mxu0 %v53_v9  ;;  %189 = vmatprep.subr.mxu1 %v55_v10 }
  0x27   :  { %s2137_s17 = sshll.u32 %s239_s15, 5  ;;  %5360 = sst [smem:[#allocation145_spill]] %s4061_s13 }
  0x28   :  { %s242_s18 = sadd.s32 %s2137_s17, %s240_s16  ;;  %s252_s19 = sshrl.u32 %s4051_s9, 3 }
  0x29   :  { %s2138_s20 = sshll.u32 %s242_s18, 4  ;;  %s253_s21 = sand.u32 7, %s4051_s9  }
  0x2a   :  { %s244_s24 = scalar_lea.hbm %s5273_s4, %s2138_s20  ;;  %s2140_s25 = sshll.u32 %s252_s19, 5 }
  0x2b   :  { %s2418_s0 = scalar_lea.hbm %s244_s24, 64  ;;  %p2421_p11 = scmp.lt.s32.totalorder %s244_s24, %s5273_s4 }
  0x2c   :  { %p2419_p10 = scmp.ne.s32.totalorder %s244_s24, %s2418_s0  ;;  %p2422_p12 = scmp.lt.s32.totalorder %s4071_s28, %s2418_s0 }
  0x2e   :  { %p2423_p13 = por %p2422_p12, %p2421_p11 }
  0x30   :  { %p2424_p0 = pnand %p2423_p13, %p2419_p10 }
  0x32   :  { %2427 = shalt.err (!%p2424_p0)  }
  0x33   :  { %s2428_s6 = scalar_lea.vmem %s4049_s8, 64  ;;  %s4080_s1 = scalar_lea.vmem %s4049_s8, 1024 }
  0x34   :  { %p2429_p1 = scmp.ne.s32.totalorder %s4049_s8, %s2428_s6  ;;  %p2433_p2 = scmp.lt.s32.totalorder %s4049_s8, %s4049_s8 }
  0x35   :  { %p2434_p3 = scmp.lt.s32.totalorder %s4080_s1, %s2428_s6 }
  0x37   :  { %p2435_p4 = por %p2434_p3, %p2433_p2 }
  0x39   :  { %p4085_p5 = pnand %p2435_p4, %p2429_p1 }
  0x3b   :  { %2439 = shalt.err (!%p4085_p5)  }
  0x3c   :  { %s5275_s10 = smov 128   ;;  %s5277_s12 = smov 1   ;;  %119 = vmatpush1.msra.mxu0 %v52_v11  ;;  %190 = vmatpush1.msra.mxu1 %v54_v12  ;;  %v47_v17 = vld [vmem:[#allocation6] sm:$0xff]  ;;  %vm86_vm0 = vcmask 261120  }
  0x3d   :  { %249 = dma.hbm_to_vmem [thread:$0]  %s244_s24, 64, %s4049_s8, [#allocation3], %s5275_s10, %s5275_s10, %s5277_s12  ;;  %120 = vmatprep.subr.mxu0 %v49_v13  ;;  %191 = vmatprep.subr.mxu1 %v51_v14 }
  0x3e   :  { %s255_s15 = sadd.s32 %s2140_s25, %s253_s21  ;;  %s267_s16 = sshrl.u32 %s4053_s2, 3  ;;  %121 = vmatpush1.msra.mxu0 %v48_v15  ;;  %192 = vmatpush1.msra.mxu1 %v50_v16 }
  0x3f   :  { %s2141_s17 = sshll.u32 %s255_s15, 4  ;;  %s268_s18 = sand.u32 7, %s4053_s2   ;;  %2135 = vmatmul.mubr.msk.f32.vlgmr.msra.gmra.mxu0 %vm86_vm0, %v47_v17  ;;  %2136 = vmatmul.mubr.msk.f32.vlgmr.msra.gmra.mxu1 %vm86_vm0, %v47_v17 }
  0x40   :  { %s257_s22 = scalar_lea.hbm %s5273_s4, %s2141_s17  ;;  %s2143_s23 = sshll.u32 %s267_s16, 5 }
  0x41   :  { %s2440_s24 = scalar_lea.hbm %s257_s22, 64  ;;  %p2443_p7 = scmp.lt.s32.totalorder %s257_s22, %s5273_s4 }
  0x42   :  { %p2441_p6 = scmp.ne.s32.totalorder %s257_s22, %s2440_s24  ;;  %p2444_p8 = scmp.lt.s32.totalorder %s4071_s28, %s2440_s24 }
  0x44   :  { %p2445_p9 = por %p2444_p8, %p2443_p7 }
  0x46   :  { %p2446_p10 = pnand %p2445_p9, %p2441_p6 }
  0x48   :  { %2449 = shalt.err (!%p2446_p10)  }
  0x49   :  { %s2450_s2 = scalar_lea.vmem %s4055_s11, 64  ;;  %p2455_p12 = scmp.lt.s32.totalorder %s4055_s11, %s4049_s8 }
  0x4a   :  { %p2451_p11 = scmp.ne.s32.totalorder %s4055_s11, %s2450_s2  ;;  %p2456_p13 = scmp.lt.s32.totalorder %s4080_s1, %s2450_s2 }
  0x4c   :  { %p2457_p0 = por %p2456_p13, %p2455_p12 }
  0x4e   :  { %p4111_p1 = pnand %p2457_p0, %p2451_p11 }
  0x50   :  { %2461 = shalt.err (!%p4111_p1)  }
  0x51   :  { %264 = dma.hbm_to_vmem [thread:$0]  %s257_s22, 64, %s4055_s11, [#allocation3 + $0x1], %s5275_s10, %s5275_s10, %s5277_s12 }
  0x52   :  { %s270_s25 = sadd.s32 %s2143_s23, %s268_s18  ;;  %s282_s26 = sshrl.u32 %s4057_s14, 3 }
  0x53   :  { %s2144_s27 = sshll.u32 %s270_s25, 4  ;;  %s283_s29 = sand.u32 7, %s4057_s14  }
  0x54   :  { %s272_s15 = scalar_lea.hbm %s5273_s4, %s2144_s27  ;;  %s2146_s16 = sshll.u32 %s282_s26, 5 }
  0x55   :  { %s2462_s17 = scalar_lea.hbm %s272_s15, 64  ;;  %p2465_p3 = scmp.lt.s32.totalorder %s272_s15, %s5273_s4 }
  0x56   :  { %p2463_p2 = scmp.ne.s32.totalorder %s272_s15, %s2462_s17  ;;  %p2466_p4 = scmp.lt.s32.totalorder %s4071_s28, %s2462_s17 }
  0x58   :  { %p2467_p6 = por %p2466_p4, %p2465_p3 }
  0x5a   :  { %p2468_p7 = pnand %p2467_p6, %p2463_p2 }
  0x5c   :  { %2471 = shalt.err (!%p2468_p7)  }
  0x5d   :  { %s2472_s14 = scalar_lea.vmem %s4061_s13, 64  ;;  %p2477_p9 = scmp.lt.s32.totalorder %s4061_s13, %s4049_s8 }
  0x5e   :  { %p2473_p8 = scmp.ne.s32.totalorder %s4061_s13, %s2472_s14  ;;  %p2478_p10 = scmp.lt.s32.totalorder %s4080_s1, %s2472_s14 }
  0x60   :  { %p2479_p11 = por %p2478_p10, %p2477_p9 }
  0x62   :  { %p4135_p12 = pnand %p2479_p11, %p2473_p8 }
  0x64   :  { %s5363_s18 = scalar_select %p4135_p12, 1, 0 }
  0x66   :  { %5364 = sst [smem:[#allocation146_spill]] %s5363_s18 }
  0x67   :  { %2483 = shalt.err (!%p4135_p12)  }
  0x68   :  { %279 = dma.hbm_to_vmem [thread:$0]  %s272_s15, 64, %s4061_s13, [#allocation3 + $0x2], %s5275_s10, %s5275_s10, %s5277_s12 }
  0x69   :  { %s285_s22 = sadd.s32 %s2146_s16, %s283_s29  ;;  %s3993_s24 = smov [#allocation2 + $0x3]  }
  0x6a   :  { %s2147_s23 = sshll.u32 %s285_s22, 4  ;;  %s291_s0 = sshll.u32 %s3993_s24, 4  ;;  %s4148_s0 = int_to_ptr.vmem [resolvable:$true] %s291_s0 }
  0x6b   :  { %s287_s25 = scalar_lea.hbm %s5273_s4, %s2147_s23  ;;  %5365 = sst [smem:[#allocation147_spill]] %s4148_s0 }
  0x6c   :  { %s2484_s26 = scalar_lea.hbm %s287_s25, 64  ;;  %p2487_p0 = scmp.lt.s32.totalorder %s287_s25, %s5273_s4 }
  0x6d   :  { %p2485_p13 = scmp.ne.s32.totalorder %s287_s25, %s2484_s26  ;;  %p2488_p2 = scmp.lt.s32.totalorder %s4071_s28, %s2484_s26 }
  0x6f   :  { %p2489_p3 = por %p2488_p2, %p2487_p0 }
  0x71   :  { %p2490_p4 = pnand %p2489_p3, %p2485_p13 }
  0x73   :  { %2493 = shalt.err (!%p2490_p4)  }
  0x74   :  { %s2494_s29 = scalar_lea.vmem %s4148_s0, 64  ;;  %p2499_p7 = scmp.lt.s32.totalorder %s4148_s0, %s4049_s8 }
  0x75   :  { %p2495_p6 = scmp.ne.s32.totalorder %s4148_s0, %s2494_s29  ;;  %p2500_p8 = scmp.lt.s32.totalorder %s4080_s1, %s2494_s29 }
  0x77   :  { %p2501_p9 = por %p2500_p8, %p2499_p7 }
  0x79   :  { %p4159_p10 = pnand %p2501_p9, %p2495_p6 }
  0x7b   :  { %s5366_s6 = scalar_select %p4159_p10, 1, 0 }
  0x7d   :  { %5367 = sst [smem:[#allocation148_spill]] %s5366_s6 }
  0x7e   :  { %2505 = shalt.err (!%p4159_p10)  }
  0x7f   :  { %294 = dma.hbm_to_vmem [thread:$0]  %s287_s25, 64, %s4148_s0, [#allocation3 + $0x3], %s5275_s10, %s5275_s10, %s5277_s12 }
  0x80   :  { %s2148_s15 = sld [smem:[#allocation5 + $0x4]]  ;;  %s3994_s16 = smov [#allocation2 + $0x4]  }
  0x81   :  { %s306_s17 = sshll.u32 %s3994_s16, 4  ;;  %s2151_s19 = sld [smem:[#allocation5 + $0x5]]  ;;  %s4169_s17 = int_to_ptr.vmem [resolvable:$true] %s306_s17 }
  0x82   :  { %5368 = sst [smem:[#allocation149_spill]] %s4169_s17  ;;  %s3995_s20 = smov [#allocation2 + $0x5]  }
  0x83   :  { %s321_s14 = sshll.u32 %s3995_s20, 4  ;;  %s4171_s22 = sld [smem:[#allocation5 + $0x6]]  ;;  %s4173_s14 = int_to_ptr.vmem [resolvable:$true] %s321_s14 }
  0x84   :  { %5369 = sst [smem:[#allocation150_spill]] %s4173_s14  ;;  %s3996_s23 = smov [#allocation2 + $0x6]  }
  0x85   :  { %s4175_s24 = sshll.u32 %s3996_s23, 4  ;;  %s4177_s9 = sld [smem:[#allocation5 + $0x7]]  ;;  %s4226_s24 = int_to_ptr.vmem [resolvable:$true] %s4175_s24 }
  0x86   :  { %s297_s2 = sshrl.u32 %s2148_s15, 3  ;;  %s298_s25 = sand.u32 7, %s2148_s15  }
  0x87   :  { %s2149_s26 = sshll.u32 %s297_s2, 5  ;;  %s312_s27 = sshrl.u32 %s2151_s19, 3 }
  0x88   :  { %s300_s30 = sadd.s32 %s2149_s26, %s298_s25  ;;  %s313_s29 = sand.u32 7, %s2151_s19  }
  0x89   :  { %s2150_s16 = sshll.u32 %s300_s30, 4  ;;  %s2152_s10 = sshll.u32 %s312_s27, 5 }
  0x8a   :  { %s302_s5 = scalar_lea.hbm %s5273_s4, %s2150_s16  ;;  %s315_s0 = sadd.s32 %s2152_s10, %s313_s29 }
  0x8b   :  { %s2506_s6 = scalar_lea.hbm %s302_s5, 64  ;;  %p2509_p13 = scmp.lt.s32.totalorder %s302_s5, %s5273_s4 }
  0x8c   :  { %p2507_p11 = scmp.ne.s32.totalorder %s302_s5, %s2506_s6  ;;  %p2510_p0 = scmp.lt.s32.totalorder %s4071_s28, %s2506_s6 }
  0x8e   :  { %p2511_p2 = por %p2510_p0, %p2509_p13 }
  0x90   :  { %p2512_p3 = pnand %p2511_p2, %p2507_p11 }
  0x92   :  { %2515 = shalt.err (!%p2512_p3)  }
  0x93   :  { %s2516_s15 = scalar_lea.vmem %s4169_s17, 64  ;;  %p2521_p6 = scmp.lt.s32.totalorder %s4169_s17, %s4049_s8 }
  0x94   :  { %p2517_p4 = scmp.ne.s32.totalorder %s4169_s17, %s2516_s15  ;;  %p2522_p7 = scmp.lt.s32.totalorder %s4080_s1, %s2516_s15 }
  0x96   :  { %p2523_p8 = por %p2522_p7, %p2521_p6 }
  0x98   :  { %p4191_p9 = pnand %p2523_p8, %p2517_p4 }
  0x9a   :  { %s5370_s10 = scalar_select %p4191_p9, 1, 0 }
  0x9c   :  { %5371 = sst [smem:[#allocation151_spill]] %s5370_s10 }
  0x9d   :  { %2527 = shalt.err (!%p4191_p9)  }
  0x9e   :  { %s5372_s13 = smov 1   ;;  %s5373_s12 = smov 128  }
  0x9f   :  { %309 = dma.hbm_to_vmem [thread:$0]  %s302_s5, 64, %s4169_s17, [#allocation3 + $0x4], %s5373_s12, %s5373_s12, %s5372_s13 }
  0xa0   :  { %s2153_s6 = sshll.u32 %s315_s0, 4  ;;  %s327_s19 = sshrl.u32 %s4171_s22, 3 }
  0xa1   :  { %s317_s26 = scalar_lea.hbm %s5273_s4, %s2153_s6  ;;  %s328_s27 = sand.u32 7, %s4171_s22  }
  0xa2   :  { %s2528_s30 = scalar_lea.hbm %s317_s26, 64  ;;  %p2531_p13 = scmp.lt.s32.totalorder %s317_s26, %s5273_s4 }
  0xa3   :  { %p2529_p11 = scmp.ne.s32.totalorder %s317_s26, %s2528_s30  ;;  %p2532_p0 = scmp.lt.s32.totalorder %s4071_s28, %s2528_s30 }
  0xa5   :  { %p2533_p2 = por %p2532_p0, %p2531_p13 }
  0xa7   :  { %p2534_p3 = pnand %p2533_p2, %p2529_p11 }
  0xa9   :  { %2537 = shalt.err (!%p2534_p3)  }
  0xaa   :  { %s2538_s5 = scalar_lea.vmem %s4173_s14, 64  ;;  %p2543_p6 = scmp.lt.s32.totalorder %s4173_s14, %s4049_s8 }
  0xab   :  { %p2539_p4 = scmp.ne.s32.totalorder %s4173_s14, %s2538_s5  ;;  %p2544_p7 = scmp.lt.s32.totalorder %s4080_s1, %s2538_s5 }
  0xad   :  { %p2545_p8 = por %p2544_p7, %p2543_p6 }
  0xaf   :  { %p4215_p9 = pnand %p2545_p8, %p2539_p4 }
  0xb1   :  { %s5374_s0 = scalar_select %p4215_p9, 1, 0 }
  0xb3   :  { %5375 = sst [smem:[#allocation152_spill]] %s5374_s0 }
  0xb4   :  { %2549 = shalt.err (!%p4215_p9)  }
  0xb5   :  { %324 = dma.hbm_to_vmem [thread:$0]  %s317_s26, 64, %s4173_s14, [#allocation3 + $0x5], %s5373_s12, %s5373_s12, %s5372_s13 }
  0xb6   :  { %s2155_s22 = sshll.u32 %s327_s19, 5  ;;  %5376 = sst [smem:[#allocation153_spill]] %s4226_s24 }
  0xb7   :  { %s330_s20 = sadd.s32 %s2155_s22, %s328_s27  ;;  %s342_s23 = sshrl.u32 %s4177_s9, 3 }
  0xb8   :  { %s2156_s15 = sshll.u32 %s330_s20, 4  ;;  %s343_s6 = sand.u32 7, %s4177_s9  }
  0xb9   :  { %s332_s30 = scalar_lea.hbm %s5273_s4, %s2156_s15  ;;  %s2158_s29 = sshll.u32 %s342_s23, 5 }
  0xba   :  { %s2550_s16 = scalar_lea.hbm %s332_s30, 64  ;;  %p2553_p13 = scmp.lt.s32.totalorder %s332_s30, %s5273_s4 }
  0xbb   :  { %p2551_p11 = scmp.ne.s32.totalorder %s332_s30, %s2550_s16  ;;  %p2554_p0 = scmp.lt.s32.totalorder %s4071_s28, %s2550_s16 }
  0xbd   :  { %p2555_p2 = por %p2554_p0, %p2553_p13 }
  0xbf   :  { %p2556_p3 = pnand %p2555_p2, %p2551_p11 }
  0xc1   :  { %2559 = shalt.err (!%p2556_p3)  }
  0xc2   :  { %s2560_s9 = scalar_lea.vmem %s4226_s24, 64  ;;  %p2565_p6 = scmp.lt.s32.totalorder %s4226_s24, %s4049_s8 }
  0xc3   :  { %p2561_p4 = scmp.ne.s32.totalorder %s4226_s24, %s2560_s9  ;;  %p2566_p7 = scmp.lt.s32.totalorder %s4080_s1, %s2560_s9 }
  0xc5   :  { %p2567_p8 = por %p2566_p7, %p2565_p6 }
  0xc7   :  { %p4242_p9 = pnand %p2567_p8, %p2561_p4 }
  0xc9   :  { %s5377_s19 = scalar_select %p4242_p9, 1, 0 }
  0xcb   :  { %5378 = sst [smem:[#allocation154_spill]] %s5377_s19 }
  0xcc   :  { %2571 = shalt.err (!%p4242_p9)  }
  0xcd   :  { %339 = dma.hbm_to_vmem [thread:$0]  %s332_s30, 64, %s4226_s24, [#allocation3 + $0x6], %s5373_s12, %s5373_s12, %s5372_s13 }
  0xce   :  { %s345_s26 = sadd.s32 %s2158_s29, %s343_s6  ;;  %s3997_s0 = smov [#allocation2 + $0x7]  }
  0xcf   :  { %s2159_s27 = sshll.u32 %s345_s26, 4  ;;  %s351_s22 = sshll.u32 %s3997_s0, 4  ;;  %s4255_s22 = int_to_ptr.vmem [resolvable:$true] %s351_s22 }
  0xd0   :  { %s347_s15 = scalar_lea.hbm %s5273_s4, %s2159_s27  ;;  %5379 = sst [smem:[#allocation155_spill]] %s4255_s22 }
  0xd1   :  { %s2572_s2 = scalar_lea.hbm %s347_s15, 64  ;;  %p2575_p13 = scmp.lt.s32.totalorder %s347_s15, %s5273_s4 }
  0xd2   :  { %p2573_p11 = scmp.ne.s32.totalorder %s347_s15, %s2572_s2  ;;  %p2576_p0 = scmp.lt.s32.totalorder %s4071_s28, %s2572_s2 }
  0xd4   :  { %p2577_p2 = por %p2576_p0, %p2575_p13 }
  0xd6   :  { %p2578_p3 = pnand %p2577_p2, %p2573_p11 }
  0xd8   :  { %2581 = shalt.err (!%p2578_p3)  }
  0xd9   :  { %s2582_s6 = scalar_lea.vmem %s4255_s22, 64  ;;  %p2587_p6 = scmp.lt.s32.totalorder %s4255_s22, %s4049_s8 }
  0xda   :  { %p2583_p4 = scmp.ne.s32.totalorder %s4255_s22, %s2582_s6  ;;  %p2588_p7 = scmp.lt.s32.totalorder %s4080_s1, %s2582_s6 }
  0xdc   :  { %p2589_p8 = por %p2588_p7, %p2587_p6 }
  0xde   :  { %p4266_p9 = pnand %p2589_p8, %p2583_p4 }
  0xe0   :  { %s5380_s30 = scalar_select %p4266_p9, 1, 0 }
  0xe2   :  { %5381 = sst [smem:[#allocation156_spill]] %s5380_s30 }
  0xe3   :  { %2593 = shalt.err (!%p4266_p9)  }
  0xe4   :  { %354 = dma.hbm_to_vmem [thread:$0]  %s347_s15, 64, %s4255_s22, [#allocation3 + $0x7], %s5373_s12, %s5373_s12, %s5372_s13 }
  0xe5   :  { %s2160_s29 = sld [smem:[#allocation5 + $0x80]]  ;;  %s3998_s9 = smov [#allocation2 + $0x20]  }
  0xe6   :  { %s2163_s5 = sld [smem:[#allocation5 + $0x81]]  ;;  %s367_s26 = sshll.u32 %s3998_s9, 4  ;;  %s4276_s26 = int_to_ptr.vmem [resolvable:$true] %s367_s26 }
  0xe7   :  { %s3999_s27 = smov [#allocation2 + $0x21]   ;;  %5382 = sst [smem:[#allocation157_spill]] %s4276_s26 }
  0xe8   :  { %s382_s0 = sshll.u32 %s3999_s27, 4  ;;  %s4278_s0 = int_to_ptr.vmem [resolvable:$true] %s382_s0 }
  0xe9   :  { %5383 = sst [smem:[#allocation158_spill]] %s4278_s0 }
  0xeb   :  { %s358_s20 = sshrl.u32 %s2160_s29, 3  ;;  %s359_s23 = sand.u32 7, %s2160_s29  }
  0xec   :  { %s2161_s2 = sshll.u32 %s358_s20, 5  ;;  %s373_s25 = sshrl.u32 %s2163_s5, 3 }
  0xed   :  { %s361_s16 = sadd.s32 %s2161_s2, %s359_s23  ;;  %s374_s6 = sand.u32 7, %s2163_s5  }
  0xee   :  { %s2162_s30 = sshll.u32 %s361_s16, 4  ;;  %s2164_s24 = sshll.u32 %s373_s25, 5 }
  0xef   :  { %s363_s19 = scalar_lea.hbm %s5273_s4, %s2162_s30  ;;  %s376_s9 = sadd.s32 %s2164_s24, %s374_s6 }
  0xf0   :  { %s2594_s14 = scalar_lea.hbm %s363_s19, 64  ;;  %p2597_p13 = scmp.lt.s32.totalorder %s363_s19, %s5273_s4 }
  0xf1   :  { %p2595_p11 = scmp.ne.s32.totalorder %s363_s19, %s2594_s14  ;;  %p2598_p0 = scmp.lt.s32.totalorder %s4071_s28, %s2594_s14 }
  0xf3   :  { %p2599_p2 = por %p2598_p0, %p2597_p13 }
  0xf5   :  { %p2600_p3 = pnand %p2599_p2, %p2595_p11 }
  0xf7   :  { %2603 = shalt.err (!%p2600_p3)  }
  0xf8   :  { %s2604_s29 = scalar_lea.vmem %s4276_s26, 64  ;;  %p2609_p6 = scmp.lt.s32.totalorder %s4276_s26, %s4049_s8 }
  0xf9   :  { %p2605_p4 = scmp.ne.s32.totalorder %s4276_s26, %s2604_s29  ;;  %p2610_p7 = scmp.lt.s32.totalorder %s4080_s1, %s2604_s29 }
  0xfb   :  { %p2611_p8 = por %p2610_p7, %p2609_p6 }
  0xfd   :  { %p4292_p9 = pnand %p2611_p8, %p2605_p4 }
  0xff   :  { %s5384_s24 = scalar_select %p4292_p9, 1, 0 }
 0x101   :  { %5385 = sst [smem:[#allocation159_spill]] %s5384_s24 }
 0x102   :  { %2615 = shalt.err (!%p4292_p9)  }
 0x103   :  { %370 = dma.hbm_to_vmem [thread:$0]  %s363_s19, 64, %s4276_s26, [#allocation3 + $0x8], %s5373_s12, %s5373_s12, %s5372_s13 }
 0x104   :  { %s2165_s17 = sshll.u32 %s376_s9, 4 }
 0x105   :  { %s378_s30 = scalar_lea.hbm %s5273_s4, %s2165_s17 }
 0x106   :  { %s2616_s5 = scalar_lea.hbm %s378_s30, 64  ;;  %p2619_p13 = scmp.lt.s32.totalorder %s378_s30, %s5273_s4 }
 0x107   :  { %p2617_p11 = scmp.ne.s32.totalorder %s378_s30, %s2616_s5  ;;  %p2620_p0 = scmp.lt.s32.totalorder %s4071_s28, %s2616_s5 }
 0x109   :  { %p2621_p2 = por %p2620_p0, %p2619_p13 }
 0x10b   :  { %p2622_p3 = pnand %p2621_p2, %p2617_p11 }
 0x10d   :  { %2625 = shalt.err (!%p2622_p3)  }
 0x10e   :  { %s2626_s19 = scalar_lea.vmem %s4278_s0, 64  ;;  %p2631_p6 = scmp.lt.s32.totalorder %s4278_s0, %s4049_s8 }
 0x10f   :  { %p2627_p4 = scmp.ne.s32.totalorder %s4278_s0, %s2626_s19  ;;  %p2632_p7 = scmp.lt.s32.totalorder %s4080_s1, %s2626_s19 }
 0x111   :  { %p2633_p8 = por %p2632_p7, %p2631_p6 }
 0x113   :  { %p4314_p9 = pnand %p2633_p8, %p2627_p4 }
 0x115   :  { %s5386_s2 = scalar_select %p4314_p9, 1, 0 }
 0x117   :  { %5387 = sst [smem:[#allocation160_spill]] %s5386_s2 }
 0x118   :  { %2637 = shalt.err (!%p4314_p9)  }
 0x119   :  { %385 = dma.hbm_to_vmem [thread:$0]  %s378_s30, 64, %s4278_s0, [#allocation3 + $0x9], %s5373_s12, %s5373_s12, %s5372_s13 }
 0x11a   :  { %s2166_s25 = sld [smem:[#allocation5 + $0x82]]  ;;  %s4000_s20 = smov [#allocation2 + $0x22]  }
 0x11b   :  { %s4324_s16 = sld [smem:[#allocation5 + $0x83]]  ;;  %s397_s23 = sshll.u32 %s4000_s20, 4  ;;  %s4337_s23 = int_to_ptr.vmem [resolvable:$true] %s397_s23 }
 0x11c   :  { %s4326_s6 = sld [smem:[#allocation5 + $0x84]] }
 0x11d   :  { %s4328_s15 = sld [smem:[#allocation5 + $0x85]] }
 0x11e   :  { %s4330_s9 = sld [smem:[#allocation5 + $0x86]] }
 0x11f   :  { %s4332_s29 = sld [smem:[#allocation5 + $0x87]] }
 0x120   :  { %s388_s27 = sshrl.u32 %s2166_s25, 3  ;;  %s389_s17 = sand.u32 7, %s2166_s25  }
 0x121   :  { %s2167_s14 = sshll.u32 %s388_s27, 5  ;;  %5388 = sst [smem:[#allocation161_spill]] %s4337_s23 }
 0x122   :  { %s391_s22 = sadd.s32 %s2167_s14, %s389_s17 }
 0x123   :  { %s2168_s5 = sshll.u32 %s391_s22, 4 }
 0x124   :  { %s393_s0 = scalar_lea.hbm %s5273_s4, %s2168_s5 }
 0x125   :  { %s2638_s2 = scalar_lea.hbm %s393_s0, 64  ;;  %p2641_p13 = scmp.lt.s32.totalorder %s393_s0, %s5273_s4 }
 0x126   :  { %p2639_p11 = scmp.ne.s32.totalorder %s393_s0, %s2638_s2  ;;  %p2642_p0 = scmp.lt.s32.totalorder %s4071_s28, %s2638_s2 }
 0x128   :  { %p2643_p2 = por %p2642_p0, %p2641_p13 }
 0x12a   :  { %p2644_p3 = pnand %p2643_p2, %p2639_p11 }
 0x12c   :  { %2647 = shalt.err (!%p2644_p3)  }
 0x12d   :  { %s2648_s25 = scalar_lea.vmem %s4337_s23, 64  ;;  %p2653_p6 = scmp.lt.s32.totalorder %s4337_s23, %s4049_s8 }
 0x12e   :  { %p2649_p4 = scmp.ne.s32.totalorder %s4337_s23, %s2648_s25  ;;  %p2654_p7 = scmp.lt.s32.totalorder %s4080_s1, %s2648_s25 }
 0x130   :  { %p2655_p8 = por %p2654_p7, %p2653_p6 }
 0x132   :  { %p4348_p9 = pnand %p2655_p8, %p2649_p4 }
 0x134   :  { %s5389_s27 = scalar_select %p4348_p9, 1, 0 }
 0x136   :  { %5390 = sst [smem:[#allocation162_spill]] %s5389_s27 }
 0x137   :  { %2659 = shalt.err (!%p4348_p9)  }
 0x138   :  { %400 = dma.hbm_to_vmem [thread:$0]  %s393_s0, 64, %s4337_s23, [#allocation3 + $0xa], %s5373_s12, %s5373_s12, %s5372_s13 }
 0x139   :  { %s403_s26 = sshrl.u32 %s4324_s16, 3  ;;  %s404_s24 = sand.u32 7, %s4324_s16  }
 0x13a   :  { %s2170_s2 = sshll.u32 %s403_s26, 5  ;;  %s4001_s14 = smov [#allocation2 + $0x23]  }
 0x13b   :  { %s406_s17 = sadd.s32 %s2170_s2, %s404_s24  ;;  %s412_s22 = sshll.u32 %s4001_s14, 4  ;;  %s4360_s22 = int_to_ptr.vmem [resolvable:$true] %s412_s22 }
 0x13c   :  { %s2171_s5 = sshll.u32 %s406_s17, 4  ;;  %5391 = sst [smem:[#allocation163_spill]] %s4360_s22 }
 0x13d   :  { %s408_s19 = scalar_lea.hbm %s5273_s4, %s2171_s5  ;;  %s418_s25 = sshrl.u32 %s4326_s6, 3 }
 0x13e   :  { %s2660_s27 = scalar_lea.hbm %s408_s19, 64  ;;  %p2663_p13 = scmp.lt.s32.totalorder %s408_s19, %s5273_s4 }
 0x13f   :  { %p2661_p11 = scmp.ne.s32.totalorder %s408_s19, %s2660_s27  ;;  %p2664_p0 = scmp.lt.s32.totalorder %s4071_s28, %s2660_s27 }
 0x141   :  { %p2665_p2 = por %p2664_p0, %p2663_p13 }
 0x143   :  { %p2666_p3 = pnand %p2665_p2, %p2661_p11 }
 0x145   :  { %2669 = shalt.err (!%p2666_p3)  }
 0x146   :  { %s2670_s0 = scalar_lea.vmem %s4360_s22, 64  ;;  %p2675_p6 = scmp.lt.s32.totalorder %s4360_s22, %s4049_s8 }
 0x147   :  { %p2671_p4 = scmp.ne.s32.totalorder %s4360_s22, %s2670_s0  ;;  %p2676_p7 = scmp.lt.s32.totalorder %s4080_s1, %s2670_s0 }
 0x149   :  { %p2677_p8 = por %p2676_p7, %p2675_p6 }
 0x14b   :  { %p4375_p9 = pnand %p2677_p8, %p2671_p4 }
 0x14d   :  { %s5392_s16 = scalar_select %p4375_p9, 1, 0 }
 0x14f   :  { %5393 = sst [smem:[#allocation164_spill]] %s5392_s16 }
 0x150   :  { %2681 = shalt.err (!%p4375_p9)  }
 0x151   :  { %415 = dma.hbm_to_vmem [thread:$0]  %s408_s19, 64, %s4360_s22, [#allocation3 + $0xb], %s5373_s12, %s5373_s12, %s5372_s13 }
 0x152   :  { %s419_s18 = sand.u32 7, %s4326_s6   ;;  %s2173_s10 = sshll.u32 %s418_s25, 5 }
 0x153   :  { %s421_s27 = sadd.s32 %s2173_s10, %s419_s18  ;;  %s4002_s24 = smov [#allocation2 + $0x24]  }
 0x154   :  { %s2174_s26 = sshll.u32 %s421_s27, 4  ;;  %s427_s2 = sshll.u32 %s4002_s24, 4  ;;  %s4389_s2 = int_to_ptr.vmem [resolvable:$true] %s427_s2 }
 0x155   :  { %s423_s5 = scalar_lea.hbm %s5273_s4, %s2174_s26  ;;  %5394 = sst [smem:[#allocation165_spill]] %s4389_s2 }
 0x156   :  { %s2682_s20 = scalar_lea.hbm %s423_s5, 64  ;;  %p2685_p13 = scmp.lt.s32.totalorder %s423_s5, %s5273_s4 }
 0x157   :  { %p2683_p11 = scmp.ne.s32.totalorder %s423_s5, %s2682_s20  ;;  %p2686_p0 = scmp.lt.s32.totalorder %s4071_s28, %s2682_s20 }
 0x159   :  { %p2687_p2 = por %p2686_p0, %p2685_p13 }
 0x15b   :  { %p2688_p3 = pnand %p2687_p2, %p2683_p11 }
 0x15d   :  { %2691 = shalt.err (!%p2688_p3)  }
 0x15e   :  { %s2692_s6 = scalar_lea.vmem %s4389_s2, 64  ;;  %p2697_p6 = scmp.lt.s32.totalorder %s4389_s2, %s4049_s8 }
 0x15f   :  { %p2693_p4 = scmp.ne.s32.totalorder %s4389_s2, %s2692_s6  ;;  %p2698_p7 = scmp.lt.s32.totalorder %s4080_s1, %s2692_s6 }
 0x161   :  { %p2699_p8 = por %p2698_p7, %p2697_p6 }
 0x163   :  { %p4400_p9 = pnand %p2699_p8, %p2693_p4 }
 0x165   :  { %s5395_s19 = scalar_select %p4400_p9, 1, 0 }
 0x167   :  { %5396 = sst [smem:[#allocation166_spill]] %s5395_s19 }
 0x168   :  { %2703 = shalt.err (!%p4400_p9)  }
 0x169   :  { %430 = dma.hbm_to_vmem [thread:$0]  %s423_s5, 64, %s4389_s2, [#allocation3 + $0xc], %s5373_s12, %s5373_s12, %s5372_s13 }
 0x16a   :  { %s433_s25 = sshrl.u32 %s4328_s15, 3  ;;  %s434_s18 = sand.u32 7, %s4328_s15  }
 0x16b   :  { %s2176_s10 = sshll.u32 %s433_s25, 5  ;;  %s4003_s26 = smov [#allocation2 + $0x25]  }
 0x16c   :  { %s436_s27 = sadd.s32 %s2176_s10, %s434_s18  ;;  %s442_s24 = sshll.u32 %s4003_s26, 4  ;;  %s4412_s24 = int_to_ptr.vmem [resolvable:$true] %s442_s24 }
 0x16d   :  { %s2177_s17 = sshll.u32 %s436_s27, 4  ;;  %5397 = sst [smem:[#allocation167_spill]] %s4412_s24 }
 0x16e   :  { %s438_s30 = scalar_lea.hbm %s5273_s4, %s2177_s17  ;;  %s448_s0 = sshrl.u32 %s4330_s9, 3 }
 0x16f   :  { %s2704_s6 = scalar_lea.hbm %s438_s30, 64  ;;  %p2707_p13 = scmp.lt.s32.totalorder %s438_s30, %s5273_s4 }
 0x170   :  { %p2705_p11 = scmp.ne.s32.totalorder %s438_s30, %s2704_s6  ;;  %p2708_p0 = scmp.lt.s32.totalorder %s4071_s28, %s2704_s6 }
 0x172   :  { %p2709_p2 = por %p2708_p0, %p2707_p13 }
 0x174   :  { %p2710_p3 = pnand %p2709_p2, %p2705_p11 }
 0x176   :  { %2713 = shalt.err (!%p2710_p3)  }
 0x177   :  { %s2714_s15 = scalar_lea.vmem %s4412_s24, 64  ;;  %p2719_p6 = scmp.lt.s32.totalorder %s4412_s24, %s4049_s8 }
 0x178   :  { %p2715_p4 = scmp.ne.s32.totalorder %s4412_s24, %s2714_s15  ;;  %p2720_p7 = scmp.lt.s32.totalorder %s4080_s1, %s2714_s15 }
 0x17a   :  { %p2721_p8 = por %p2720_p7, %p2719_p6 }
 0x17c   :  { %p4427_p9 = pnand %p2721_p8, %p2715_p4 }
 0x17e   :  { %s5398_s5 = scalar_select %p4427_p9, 1, 0 }
 0x180   :  { %5399 = sst [smem:[#allocation168_spill]] %s5398_s5 }
 0x181   :  { %2725 = shalt.err (!%p4427_p9)  }
 0x182   :  { %445 = dma.hbm_to_vmem [thread:$0]  %s438_s30, 64, %s4412_s24, [#allocation3 + $0xd], %s5373_s12, %s5373_s12, %s5372_s13 }
 0x183   :  { %s449_s22 = sand.u32 7, %s4330_s9   ;;  %s2179_s19 = sshll.u32 %s448_s0, 5 }
 0x184   :  { %s451_s25 = sadd.s32 %s2179_s19, %s449_s22  ;;  %s4004_s10 = smov [#allocation2 + $0x26]  }
 0x185   :  { %s2180_s18 = sshll.u32 %s451_s25, 4  ;;  %s457_s27 = sshll.u32 %s4004_s10, 4  ;;  %s4441_s27 = int_to_ptr.vmem [resolvable:$true] %s457_s27 }
 0x186   :  { %s453_s14 = scalar_lea.hbm %s5273_s4, %s2180_s18  ;;  %5400 = sst [smem:[#allocation169_spill]] %s4441_s27 }
 0x187   :  { %s2726_s20 = scalar_lea.hbm %s453_s14, 64  ;;  %p2729_p13 = scmp.lt.s32.totalorder %s453_s14, %s5273_s4 }
 0x188   :  { %p2727_p11 = scmp.ne.s32.totalorder %s453_s14, %s2726_s20  ;;  %p2730_p0 = scmp.lt.s32.totalorder %s4071_s28, %s2726_s20 }
 0x18a   :  { %p2731_p2 = por %p2730_p0, %p2729_p13 }
 0x18c   :  { %p2732_p3 = pnand %p2731_p2, %p2727_p11 }
 0x18e   :  { %2735 = shalt.err (!%p2732_p3)  }
 0x18f   :  { %s2736_s9 = scalar_lea.vmem %s4441_s27, 64  ;;  %p2741_p6 = scmp.lt.s32.totalorder %s4441_s27, %s4049_s8 }
 0x190   :  { %p2737_p4 = scmp.ne.s32.totalorder %s4441_s27, %s2736_s9  ;;  %p2742_p7 = scmp.lt.s32.totalorder %s4080_s1, %s2736_s9 }
 0x192   :  { %p2743_p8 = por %p2742_p7, %p2741_p6 }
 0x194   :  { %p4452_p9 = pnand %p2743_p8, %p2737_p4 }
 0x196   :  { %s5401_s30 = scalar_select %p4452_p9, 1, 0 }
 0x198   :  { %5402 = sst [smem:[#allocation170_spill]] %s5401_s30 }
 0x199   :  { %2747 = shalt.err (!%p4452_p9)  }
 0x19a   :  { %460 = dma.hbm_to_vmem [thread:$0]  %s453_s14, 64, %s4441_s27, [#allocation3 + $0xe], %s5373_s12, %s5373_s12, %s5372_s13 }
 0x19b   :  { %s463_s0 = sshrl.u32 %s4332_s29, 3  ;;  %s464_s22 = sand.u32 7, %s4332_s29  }
 0x19c   :  { %s2182_s19 = sshll.u32 %s463_s0, 5  ;;  %s4005_s18 = smov [#allocation2 + $0x27]  }
 0x19d   :  { %s466_s25 = sadd.s32 %s2182_s19, %s464_s22  ;;  %s472_s10 = sshll.u32 %s4005_s18, 4  ;;  %s4464_s10 = int_to_ptr.vmem [resolvable:$true] %s472_s10 }
 0x19e   :  { %s2183_s26 = sshll.u32 %s466_s25, 4  ;;  %5403 = sst [smem:[#allocation171_spill]] %s4464_s10 }
 0x19f   :  { %s468_s6 = scalar_lea.hbm %s5273_s4, %s2183_s26 }
 0x1a0   :  { %s2748_s15 = scalar_lea.hbm %s468_s6, 64  ;;  %p2751_p13 = scmp.lt.s32.totalorder %s468_s6, %s5273_s4 }
 0x1a1   :  { %p2749_p11 = scmp.ne.s32.totalorder %s468_s6, %s2748_s15  ;;  %p2752_p0 = scmp.lt.s32.totalorder %s4071_s28, %s2748_s15 }
 0x1a3   :  { %p2753_p2 = por %p2752_p0, %p2751_p13 }
 0x1a5   :  { %p2754_p3 = pnand %p2753_p2, %p2749_p11 }
 0x1a7   :  { %2757 = shalt.err (!%p2754_p3)  }
 0x1a8   :  { %s2758_s29 = scalar_lea.vmem %s4464_s10, 64  ;;  %p2763_p6 = scmp.lt.s32.totalorder %s4464_s10, %s4049_s8 }
 0x1a9   :  { %p2759_p4 = scmp.ne.s32.totalorder %s4464_s10, %s2758_s29  ;;  %p2764_p7 = scmp.lt.s32.totalorder %s4080_s1, %s2758_s29 }
 0x1ab   :  { %p2765_p8 = por %p2764_p7, %p2763_p6 }
 0x1ad   :  { %p4478_p9 = pnand %p2765_p8, %p2759_p4 }
 0x1af   :  { %s5404_s14 = scalar_select %p4478_p9, 1, 0 }
 0x1b1   :  { %5405 = sst [smem:[#allocation172_spill]] %s5404_s14 }
 0x1b2   :  { %2769 = shalt.err (!%p4478_p9)  }
 0x1b3   :  { %475 = dma.hbm_to_vmem [thread:$0]  %s468_s6, 64, %s4464_s10, [#allocation3 + $0xf], %s5373_s12, %s5373_s12, %s5372_s13  ;;  %v66_v18 = vlaneseq  ;;  %v156_v29 = vpop.f32.mrf.mxu0  ;;  %v227_v30 = vpop.f32.mrf.mxu1 }
 0x1b4   :  { %v64_v22 = vld [vmem:[%s5272_s3] sm:$0xf] }
 0x1b5   :  { %v4489_v19 = vshrl.u32 %v66_v18, 7  ;;  %v158_v33 = vpop.f32.mrf.mxu0  ;;  %v229_v34 = vpop.f32.mrf.mxu1 }
 0x1b7   :  { %v68_v20 = vsub.s32 0, %v4489_v19  ;;  %v76_v21 = vsub.s32 2, %v4489_v19  ;;  %v72_v23 = vsub.s32 1, %v4489_v19  ;;  %v80_v24 = vsub.s32 3, %v4489_v19 }
 0x1b9   :  { %v69_v25 = vrot.slane %v64_v22, %v68_v20  ;;  %v77_v26 = vrot.slane %v64_v22, %v76_v21  ;;  %v73_v27 = vrot.slane %v64_v22, %v72_v23  ;;  %v81_v28 = vrot.slane %v64_v22, %v80_v24 }
 0x1bb   :  { %v157_v31 = vadd.f32 %v156_v29, %v69_v25  ;;  %v228_v32 = vadd.f32 %v227_v30, %v77_v26  ;;  %v159_v35 = vadd.f32 %v158_v33, %v73_v27  ;;  %v230_v36 = vadd.f32 %v229_v34, %v81_v28 }
 0x1bd   :  { %232 = vst [vmem:[#allocation11] sm:$0xff] %v157_v31  ;;  %234 = vst [vmem:[#allocation11 + $0x10] sm:$0xff] %v228_v32 }
 0x1be   :  { %233 = vst [vmem:[#allocation11 + $0x8] sm:$0xff] %v159_v35  ;;  %235 = vst [vmem:[#allocation11 + $0x18] sm:$0xff] %v230_v36 }
 0x1bf   :  { %3852 = dma.done.wait [#allocation3], 64 }
 0x1c0   :  { %3853 = vsyncadd [#allocation3], 4294967232 }
 0x1c1   :  { %3854 = dma.done.wait [#allocation3 + $0x1], 64 }
 0x1c2   :  { %3855 = vsyncadd [#allocation3 + $0x1], 4294967232 }
 0x1c3   :  { %3856 = dma.done.wait [#allocation3 + $0x2], 64 }
 0x1c4   :  { %3857 = vsyncadd [#allocation3 + $0x2], 4294967232 }
 0x1c5   :  { %3858 = dma.done.wait [#allocation3 + $0x3], 64 }
 0x1c6   :  { %3859 = vsyncadd [#allocation3 + $0x3], 4294967232 }
 0x1c7   :  { %3860 = dma.done.wait [#allocation3 + $0x4], 64 }
 0x1c8   :  { %3861 = vsyncadd [#allocation3 + $0x4], 4294967232 }
 0x1c9   :  { %3862 = dma.done.wait [#allocation3 + $0x5], 64 }
 0x1ca   :  { %3863 = vsyncadd [#allocation3 + $0x5], 4294967232 }
 0x1cb   :  { %3864 = dma.done.wait [#allocation3 + $0x6], 64 }
 0x1cc   :  { %3865 = vsyncadd [#allocation3 + $0x6], 4294967232 }
 0x1cd   :  { %3866 = dma.done.wait [#allocation3 + $0x7], 64 }
 0x1ce   :  { %3867 = vsyncadd [#allocation3 + $0x7], 4294967232  ;;  %s2184_s3 = sld [smem:[#allocation5 + $0x100]]  ;;  %v493_v37 = vld [vmem:[#allocation2] sm:$0xff]  ;;  %v494_v38 = vld [vmem:[#allocation2 + $0x8] sm:$0xff] }
 0x1cf   :  { %s2187_s0 = sld [smem:[#allocation5 + $0x101]]  ;;  %v495_v39 = vld [vmem:[#allocation2 + $0x10] sm:$0xff]  ;;  %v496_v40 = vld [vmem:[#allocation2 + $0x18] sm:$0xff]  ;;  %v497_v41 = vrot.slane %v493_v37, 4  ;;  %v503_v42 = vrot.slane %v494_v38, 4 }
 0x1d0   :  { %s4498_s22 = sld [smem:[#allocation5 + $0x102]]  ;;  %v509_v43 = vrot.slane %v495_v39, 4  ;;  %v515_v44 = vrot.slane %v496_v40, 4 }
 0x1d1   :  { %s4500_s19 = sld [smem:[#allocation5 + $0x103]]  ;;  %v498_v45 = vadd.f32 %v497_v41, %v493_v37  ;;  %v504_v46 = vadd.f32 %v503_v42, %v494_v38 }
 0x1d2   :  { %s4502_s25 = sld [smem:[#allocation5 + $0x104]]  ;;  %v510_v47 = vadd.f32 %v509_v43, %v495_v39  ;;  %v516_v48 = vadd.f32 %v515_v44, %v496_v40 }
 0x1d3   :  { %s4504_s18 = sld [smem:[#allocation5 + $0x105]]  ;;  %v499_v49 = vrot.slane %v498_v45, 2  ;;  %v505_v50 = vrot.slane %v504_v46, 2 }
 0x1d4   :  { %s564_s26 = sshrl.u32 %s2184_s3, 3  ;;  %s565_s17 = sand.u32 7, %s2184_s3   ;;  %v511_v51 = vrot.slane %v510_v47, 2 }
 0x1d5   :  { %s2185_s20 = sshll.u32 %s564_s26, 5  ;;  %s577_s6 = sshrl.u32 %s2187_s0, 3 }
 0x1d6   :  { %s567_s15 = sadd.s32 %s2185_s20, %s565_s17  ;;  %s578_s9 = sand.u32 7, %s2187_s0  }
 0x1d7   :  { %s2186_s29 = sshll.u32 %s567_s15, 4  ;;  %s2188_s1 = sshll.u32 %s577_s6, 5 }
 0x1d8   :  { %s569_s3 = scalar_lea.hbm %s5273_s4, %s2186_s29  ;;  %s580_s14 = sadd.s32 %s2188_s1, %s578_s9 }
 0x1d9   :  { %s2770_s26 = scalar_lea.hbm %s569_s3, 64  ;;  %p2773_p13 = scmp.lt.s32.totalorder %s569_s3, %s5273_s4 }
 0x1da   :  { %p2771_p11 = scmp.ne.s32.totalorder %s569_s3, %s2770_s26  ;;  %p2774_p0 = scmp.lt.s32.totalorder %s4071_s28, %s2770_s26 }
 0x1dc   :  { %p2775_p2 = por %p2774_p0, %p2773_p13 }
 0x1de   :  { %p2776_p3 = pnand %p2775_p2, %p2771_p11 }
 0x1e0   :  { %2779 = shalt.err (!%p2776_p3)  }
 0x1e1   :  { %2791 = shalt.err (!%p4085_p5)  }
 0x1e2   :  { %574 = dma.hbm_to_vmem [thread:$0]  %s569_s3, 64, %s4049_s8, [#allocation3], %s5373_s12, %s5373_s12, %s5372_s13  ;;  %v4006_v52 = vmov 1966171168   ;;  %v517_v54 = vrot.slane %v516_v48, 2  ;;  %v500_v55 = vadd.f32 %v499_v49, %v498_v45  ;;  %v506_v56 = vadd.f32 %v505_v50, %v504_v46 }
 0x1e3   :  { %v532_v53 = vunpack.c.l.s4 %v4006_v52  ;;  %s2189_s27 = sshll.u32 %s580_s14, 4  ;;  %s590_s10 = sshrl.u32 %s4498_s22, 3  ;;  %v512_v57 = vadd.f32 %v511_v51, %v510_v47 }
 0x1e4   :  { %s582_s6 = scalar_lea.hbm %s5273_s4, %s2189_s27  ;;  %s591_s15 = sand.u32 7, %s4498_s22   ;;  %v518_v58 = vadd.f32 %v517_v54, %v516_v48 }
 0x1e5   :  { %s2792_s9 = scalar_lea.hbm %s582_s6, 64  ;;  %p2795_p6 = scmp.lt.s32.totalorder %s582_s6, %s5273_s4 }
 0x1e6   :  { %p2793_p4 = scmp.ne.s32.totalorder %s582_s6, %s2792_s9  ;;  %p2796_p7 = scmp.lt.s32.totalorder %s4071_s28, %s2792_s9 }
 0x1e8   :  { %p2797_p8 = por %p2796_p7, %p2795_p6 }
 0x1ea   :  { %p2798_p11 = pnand %p2797_p8, %p2793_p4 }
 0x1ec   :  { %2801 = shalt.err (!%p2798_p11)  }
 0x1ed   :  { %2813 = shalt.err (!%p4111_p1)  }
 0x1ee   :  { %587 = dma.hbm_to_vmem [thread:$0]  %s582_s6, 64, %s4055_s11, [#allocation3 + $0x1], %s5373_s12, %s5373_s12, %s5372_s13  ;;  %v501_v59 = vrot.slane %v500_v55, 1  ;;  %v507_v60 = vrot.slane %v506_v56, 1  ;;  %v513_v61 = vrot.slane %v512_v57, 1  ;;  %v533_v62 = vunpack.c.0.s8 %v532_v53 }
 0x1ef   :  { %s2191_s14 = sshll.u32 %s590_s10, 5  ;;  %s603_s22 = sshrl.u32 %s4500_s19, 3  ;;  %v519_v63 = vrot.slane %v518_v58, 1 }
 0x1f0   :  { %s593_s30 = sadd.s32 %s2191_s14, %s591_s15  ;;  %s604_s3 = sand.u32 7, %s4500_s19   ;;  %v502_v0 = vadd.f32 %v501_v59, %v500_v55  ;;  %v508_v1 = vadd.f32 %v507_v60, %v506_v56  ;;  %v514_v2 = vadd.f32 %v513_v61, %v512_v57 }
 0x1f1   :  { %s2192_s26 = sshll.u32 %s593_s30, 4  ;;  %s2194_s17 = sshll.u32 %s603_s22, 5  ;;  %v520_v3 = vadd.f32 %v519_v63, %v518_v58 }
 0x1f2   :  { %s595_s20 = scalar_lea.hbm %s5273_s4, %s2192_s26  ;;  %s606_s6 = sadd.s32 %s2194_s17, %s604_s3 }
 0x1f3   :  { %s2814_s10 = scalar_lea.hbm %s595_s20, 64  ;;  %p2817_p0 = scmp.lt.s32.totalorder %s595_s20, %s5273_s4 }
 0x1f4   :  { %p2815_p13 = scmp.ne.s32.totalorder %s595_s20, %s2814_s10  ;;  %p2818_p2 = scmp.lt.s32.totalorder %s4071_s28, %s2814_s10 }
 0x1f6   :  { %p2819_p3 = por %p2818_p2, %p2817_p0 }
 0x1f8   :  { %p2820_p4 = pnand %p2819_p3, %p2815_p13 }
 0x1fa   :  { %2823 = shalt.err (!%p2820_p4)  }
 0x1fb   :  { %2835 = shalt.err (!%p4135_p12)  }
 0x1fc   :  { %s5407_s15 = sld [smem:[#allocation145_spill]]  ;;  %v521_v4 = vmul.f32 0.125, %v502_v0  ;;  %v522_v5 = vmul.f32 0.125, %v508_v1  ;;  %v523_v6 = vmul.f32 0.125, %v514_v2  ;;  %v4550_v7 = vsub.s32 %v533_v62, %v4489_v19  ;;  %s2195_s1 = sshll.u32 %s606_s6, 4 }
 0x1fd   :  { %s616_s14 = sshrl.u32 %s4502_s25, 3  ;;  %v524_v8 = vmul.f32 0.125, %v520_v3  ;;  %s608_s3 = scalar_lea.hbm %s5273_s4, %s2195_s1 }
 0x1fe   :  { %s617_s26 = sand.u32 7, %s4502_s25   ;;  %v529_v9 = vcombine.low %v521_v4, %v522_v5  ;;  %s2836_s17 = scalar_lea.hbm %s608_s3, 64 }
 0x1ff   :  { %p2837_p6 = scmp.ne.s32.totalorder %s608_s3, %s2836_s17  ;;  %p2839_p7 = scmp.lt.s32.totalorder %s608_s3, %s5273_s4 }
 0x200   :  { %p2840_p8 = scmp.lt.s32.totalorder %s4071_s28, %s2836_s17 }
 0x202   :  { %600 = dma.hbm_to_vmem [thread:$0]  %s595_s20, 64, %s5407_s15, [#allocation3 + $0x2], %s5373_s12, %s5373_s12, %s5372_s13 }
 0x203   :  { %p2841_p11 = por %p2840_p8, %p2839_p7 }
 0x205   :  { %p2842_p13 = pnand %p2841_p11, %p2837_p6 }
 0x207   :  { %2845 = shalt.err (!%p2842_p13)  }
 0x208   :  { %2857 = shalt.err (!%p4159_p10)  }
 0x209   :  { %s5409_s6 = sld [smem:[#allocation147_spill]]  ;;  %v530_v10 = vcombine.low %v523_v6, %v524_v8  ;;  %s2197_s25 = sshll.u32 %s616_s14, 5  ;;  %v537_v11 = vrot.slane %v529_v9, %v4550_v7 }
 0x20a   :  { %s629_s10 = sshrl.u32 %s4504_s18, 3  ;;  %s619_s9 = sadd.s32 %s2197_s25, %s617_s26 }
 0x20b   :  { %s630_s29 = sand.u32 7, %s4504_s18   ;;  %v544_v12 = vrot.slane %v530_v10, %v4550_v7  ;;  %s2198_s1 = sshll.u32 %s619_s9, 4 }
 0x20c   :  { %s2200_s22 = sshll.u32 %s629_s10, 5  ;;  %s621_s27 = scalar_lea.hbm %s5273_s4, %s2198_s1 }
 0x20d   :  { %s632_s0 = sadd.s32 %s2200_s22, %s630_s29  ;;  %v545_v13 = vcombine.low %v537_v11, %v544_v12  ;;  %s2858_s20 = scalar_lea.hbm %s621_s27, 64 }
 0x20e   :  { %p2859_p0 = scmp.ne.s32.totalorder %s621_s27, %s2858_s20  ;;  %p2861_p2 = scmp.lt.s32.totalorder %s621_s27, %s5273_s4 }
 0x20f   :  { %613 = dma.hbm_to_vmem [thread:$0]  %s608_s3, 64, %s5409_s6, [#allocation3 + $0x3], %s5373_s12, %s5373_s12, %s5372_s13 }
 0x210   :  { %p2862_p3 = scmp.lt.s32.totalorder %s4071_s28, %s2858_s20 }
 0x212   :  { %p2863_p4 = por %p2862_p3, %p2861_p2 }
 0x214   :  { %p2864_p6 = pnand %p2863_p4, %p2859_p0 }
 0x216   :  { %2867 = shalt.err (!%p2864_p6)  }
 0x217   :  { %s5410_s18 = sld [smem:[#allocation151_spill]] }
 0x21d   :  { %p5411_p7 = scmp.ne.s32.totalorder %s5410_s18, 0 }
 0x21f   :  { %2879 = shalt.err (!%p5411_p7)  }
 0x220   :  { %s5412_s14 = sld [smem:[#allocation149_spill]]  ;;  %vm4585_vm1 = vcmp.lt.s32.totalorder %v66_v18, 512  ;;  %s2201_s26 = sshll.u32 %s632_s0, 4  ;;  %v552_v15 = vrot.slane %v545_v13, %v4550_v7 }
 0x221   :  { %s2202_s6 = sld [smem:[#allocation5 + $0x106]]  ;;  %s634_s10 = scalar_lea.hbm %s5273_s4, %s2201_s26 }
 0x222   :  { %s2205_s9 = sld [smem:[#allocation5 + $0x107]]  ;;  %s2880_s29 = scalar_lea.hbm %s634_s10, 64 }
 0x223   :  { %p2881_p8 = scmp.ne.s32.totalorder %s634_s10, %s2880_s29  ;;  %p2883_p11 = scmp.lt.s32.totalorder %s634_s10, %s5273_s4 }
 0x224   :  { %p2884_p13 = scmp.lt.s32.totalorder %s4071_s28, %s2880_s29 }
 0x226   :  { %626 = dma.hbm_to_vmem [thread:$0]  %s621_s27, 64, %s5412_s14, [#allocation3 + $0x4], %s5373_s12, %s5373_s12, %s5372_s13 }
 0x227   :  { %p2885_p0 = por %p2884_p13, %p2883_p11 }
 0x229   :  { %p2886_p2 = pnand %p2885_p0, %p2881_p8 }
 0x22b   :  { %2889 = shalt.err (!%p2886_p2)  }
 0x22c   :  { %s5415_s30 = sld [smem:[#allocation152_spill]] }
 0x232   :  { %p5416_p3 = scmp.ne.s32.totalorder %s5415_s30, 0 }
 0x234   :  { %2901 = shalt.err (!%p5416_p3)  }
 0x235   :  { %s5417_s17 = sld [smem:[#allocation150_spill]]  ;;  %559 = vst.msk [vmem:[#allocation11 + $0x20] ss:$8 sm:$0xf] %vm4585_vm1, %v552_v15  ;;  %s642_s27 = sshrl.u32 %s2202_s6, 3 }
 0x236   :  { %s643_s0 = sand.u32 7, %s2202_s6   ;;  %s2203_s3 = sshll.u32 %s642_s27, 5 }
 0x237   :  { %s655_s26 = sshrl.u32 %s2205_s9, 3  ;;  %s645_s20 = sadd.s32 %s2203_s3, %s643_s0 }
 0x238   :  { %s656_s25 = sand.u32 7, %s2205_s9   ;;  %s2204_s29 = sshll.u32 %s645_s20, 4 }
 0x239   :  { %s2206_s1 = sshll.u32 %s655_s26, 5  ;;  %s647_s14 = scalar_lea.hbm %s5273_s4, %s2204_s29 }
 0x23a   :  { %s658_s18 = sadd.s32 %s2206_s1, %s656_s25  ;;  %s2902_s15 = scalar_lea.hbm %s647_s14, 64 }
 0x23b   :  { %639 = dma.hbm_to_vmem [thread:$0]  %s634_s10, 64, %s5417_s17, [#allocation3 + $0x5], %s5373_s12, %s5373_s12, %s5372_s13 }
 0x23c   :  { %p2903_p4 = scmp.ne.s32.totalorder %s647_s14, %s2902_s15  ;;  %p2905_p6 = scmp.lt.s32.totalorder %s647_s14, %s5273_s4 }
 0x23d   :  { %p2906_p8 = scmp.lt.s32.totalorder %s4071_s28, %s2902_s15 }
 0x23f   :  { %p2907_p11 = por %p2906_p8, %p2905_p6 }
 0x241   :  { %p2908_p13 = pnand %p2907_p11, %p2903_p4 }
 0x243   :  { %2911 = shalt.err (!%p2908_p13)  }
 0x244   :  { %s5418_s6 = sld [smem:[#allocation154_spill]] }
 0x24a   :  { %p5419_p0 = scmp.ne.s32.totalorder %s5418_s6, 0 }
 0x24c   :  { %2923 = shalt.err (!%p5419_p0)  }
 0x24d   :  { %s5420_s9 = sld [smem:[#allocation153_spill]]  ;;  %s2207_s30 = sshll.u32 %s658_s18, 4 }
 0x24e   :  { %s660_s3 = scalar_lea.hbm %s5273_s4, %s2207_s30 }
 0x24f   :  { %s2924_s19 = scalar_lea.hbm %s660_s3, 64  ;;  %p2927_p4 = scmp.lt.s32.totalorder %s660_s3, %s5273_s4 }
 0x250   :  { %p2925_p2 = scmp.ne.s32.totalorder %s660_s3, %s2924_s19  ;;  %p2928_p6 = scmp.lt.s32.totalorder %s4071_s28, %s2924_s19 }
 0x252   :  { %p2929_p8 = por %p2928_p6, %p2927_p4 }
 0x253   :  { %652 = dma.hbm_to_vmem [thread:$0]  %s647_s14, 64, %s5420_s9, [#allocation3 + $0x6], %s5373_s12, %s5373_s12, %s5372_s13 }
 0x254   :  { %p2930_p11 = pnand %p2929_p8, %p2925_p2 }
 0x256   :  { %2933 = shalt.err (!%p2930_p11)  }
 0x257   :  { %s5421_s20 = sld [smem:[#allocation156_spill]] }
 0x25d   :  { %p5422_p13 = scmp.ne.s32.totalorder %s5421_s20, 0 }
 0x25f   :  { %2945 = shalt.err (!%p5422_p13)  }
 0x260   :  { %s5423_s18 = sld [smem:[#allocation155_spill]] }
 0x266   :  { %665 = dma.hbm_to_vmem [thread:$0]  %s660_s3, 64, %s5423_s18, [#allocation3 + $0x7], %s5373_s12, %s5373_s12, %s5372_s13 }
 0x267   :  { %3868 = dma.done.wait [#allocation3 + $0x8], 64 }
 0x268   :  { %3869 = vsyncadd [#allocation3 + $0x8], 4294967232 }
 0x269   :  { %3870 = dma.done.wait [#allocation3 + $0x9], 64 }
 0x26a   :  { %3871 = vsyncadd [#allocation3 + $0x9], 4294967232 }
 0x26b   :  { %3872 = dma.done.wait [#allocation3 + $0xa], 64 }
 0x26c   :  { %3873 = vsyncadd [#allocation3 + $0xa], 4294967232 }
 0x26d   :  { %3874 = dma.done.wait [#allocation3 + $0xb], 64 }
 0x26e   :  { %3875 = vsyncadd [#allocation3 + $0xb], 4294967232 }
 0x26f   :  { %3876 = dma.done.wait [#allocation3 + $0xc], 64 }
 0x270   :  { %3877 = vsyncadd [#allocation3 + $0xc], 4294967232 }
 0x271   :  { %3878 = dma.done.wait [#allocation3 + $0xd], 64 }
 0x272   :  { %3879 = vsyncadd [#allocation3 + $0xd], 4294967232 }
 0x273   :  { %3880 = dma.done.wait [#allocation3 + $0xe], 64 }
 0x274   :  { %3881 = vsyncadd [#allocation3 + $0xe], 4294967232 }
 0x275   :  { %3882 = dma.done.wait [#allocation3 + $0xf], 64 }
 0x276   :  { %3883 = vsyncadd [#allocation3 + $0xf], 4294967232  ;;  %s2208_s14 = sld [smem:[#allocation5 + $0x180]]  ;;  %v683_v16 = vld [vmem:[#allocation2 + $0x20] sm:$0xff]  ;;  %v684_v17 = vld [vmem:[#allocation2 + $0x28] sm:$0xff] }
 0x277   :  { %s2211_s25 = sld [smem:[#allocation5 + $0x181]]  ;;  %v685_v18 = vld [vmem:[#allocation2 + $0x30] sm:$0xff]  ;;  %v686_v19 = vld [vmem:[#allocation2 + $0x38] sm:$0xff]  ;;  %v687_v20 = vrot.slane %v683_v16, 4  ;;  %v693_v21 = vrot.slane %v684_v17, 4 }
 0x278   :  { %s4631_s29 = sld [smem:[#allocation5 + $0x182]]  ;;  %v699_v22 = vrot.slane %v685_v18, 4  ;;  %v705_v23 = vrot.slane %v686_v19, 4 }
 0x279   :  { %s4633_s1 = sld [smem:[#allocation5 + $0x183]]  ;;  %v688_v24 = vadd.f32 %v687_v20, %v683_v16  ;;  %v694_v25 = vadd.f32 %v693_v21, %v684_v17 }
 0x27a   :  { %s4635_s22 = sld [smem:[#allocation5 + $0x184]]  ;;  %v700_v26 = vadd.f32 %v699_v22, %v685_v18  ;;  %v706_v27 = vadd.f32 %v705_v23, %v686_v19 }
 0x27b   :  { %s4637_s10 = sld [smem:[#allocation5 + $0x185]] }
 0x27c   :  { %s750_s30 = sshrl.u32 %s2208_s14, 3  ;;  %s751_s27 = sand.u32 7, %s2208_s14  }
 0x27d   :  { %s2209_s0 = sshll.u32 %s750_s30, 5  ;;  %s763_s3 = sshrl.u32 %s2211_s25, 3 }
 0x27e   :  { %s753_s19 = sadd.s32 %s2209_s0, %s751_s27  ;;  %s764_s15 = sand.u32 7, %s2211_s25  }
 0x27f   :  { %s2210_s26 = sshll.u32 %s753_s19, 4  ;;  %s2212_s18 = sshll.u32 %s763_s3, 5 }
 0x280   :  { %s755_s14 = scalar_lea.hbm %s5273_s4, %s2210_s26  ;;  %s766_s6 = sadd.s32 %s2212_s18, %s764_s15 }
 0x281   :  { %s2946_s17 = scalar_lea.hbm %s755_s14, 64  ;;  %p2949_p4 = scmp.lt.s32.totalorder %s755_s14, %s5273_s4 }
 0x282   :  { %p2947_p2 = scmp.ne.s32.totalorder %s755_s14, %s2946_s17  ;;  %p2950_p6 = scmp.lt.s32.totalorder %s4071_s28, %s2946_s17 }
 0x284   :  { %p2951_p8 = por %p2950_p6, %p2949_p4 }
 0x286   :  { %p2952_p11 = pnand %p2951_p8, %p2947_p2 }
 0x288   :  { %2955 = shalt.err (!%p2952_p11)  }
 0x289   :  { %s5424_s25 = sld [smem:[#allocation159_spill]] }
 0x28f   :  { %p5425_p13 = scmp.ne.s32.totalorder %s5424_s25, 0 }
 0x291   :  { %2967 = shalt.err (!%p5425_p13)  }
 0x292   :  { %s5426_s27 = sld [smem:[#allocation157_spill]]  ;;  %v689_v28 = vrot.slane %v688_v24, 2  ;;  %v695_v29 = vrot.slane %v694_v25, 2  ;;  %v701_v30 = vrot.slane %v700_v26, 2  ;;  %s2213_s11 = sshll.u32 %s766_s6, 4  ;;  %v707_v31 = vrot.slane %v706_v27, 2 }
 0x293   :  { %s776_s9 = sshrl.u32 %s4631_s29, 3  ;;  %s768_s18 = scalar_lea.hbm %s5273_s4, %s2213_s11 }
 0x294   :  { %s777_s0 = sand.u32 7, %s4631_s29   ;;  %v690_v32 = vadd.f32 %v689_v28, %v688_v24  ;;  %v696_v33 = vadd.f32 %v695_v29, %v694_v25  ;;  %v702_v34 = vadd.f32 %v701_v30, %v700_v26  ;;  %s2968_s3 = scalar_lea.hbm %s768_s18, 64 }
 0x295   :  { %p2969_p2 = scmp.ne.s32.totalorder %s768_s18, %s2968_s3  ;;  %p2971_p4 = scmp.lt.s32.totalorder %s768_s18, %s5273_s4 }
 0x296   :  { %p2972_p6 = scmp.lt.s32.totalorder %s4071_s28, %s2968_s3 }
 0x298   :  { %760 = dma.hbm_to_vmem [thread:$0]  %s755_s14, 64, %s5426_s27, [#allocation3 + $0x8], %s5373_s12, %s5373_s12, %s5372_s13 }
 0x299   :  { %p2973_p8 = por %p2972_p6, %p2971_p4 }
 0x29b   :  { %p2974_p11 = pnand %p2973_p8, %p2969_p2 }
 0x29d   :  { %2977 = shalt.err (!%p2974_p11)  }
 0x29e   :  { %s5427_s6 = sld [smem:[#allocation160_spill]] }
 0x2a4   :  { %p5428_p13 = scmp.ne.s32.totalorder %s5427_s6, 0 }
 0x2a6   :  { %2989 = shalt.err (!%p5428_p13)  }
 0x2a7   :  { %s5429_s29 = sld [smem:[#allocation158_spill]]  ;;  %v708_v35 = vadd.f32 %v707_v31, %v706_v27  ;;  %s2215_s26 = sshll.u32 %s776_s9, 5  ;;  %v691_v36 = vrot.slane %v690_v32, 1  ;;  %v697_v37 = vrot.slane %v696_v33, 1  ;;  %v703_v38 = vrot.slane %v702_v34, 1 }
 0x2a8   :  { %s789_s14 = sshrl.u32 %s4633_s1, 3  ;;  %s779_s30 = sadd.s32 %s2215_s26, %s777_s0 }
 0x2a9   :  { %s790_s11 = sand.u32 7, %s4633_s1   ;;  %v709_v39 = vrot.slane %v708_v35, 1  ;;  %s2216_s17 = sshll.u32 %s779_s30, 4  ;;  %v692_v40 = vadd.f32 %v691_v36, %v690_v32  ;;  %v698_v41 = vadd.f32 %v697_v37, %v696_v33  ;;  %v704_v42 = vadd.f32 %v703_v38, %v702_v34 }
 0x2aa   :  { %s2218_s20 = sshll.u32 %s789_s14, 5  ;;  %s781_s15 = scalar_lea.hbm %s5273_s4, %s2216_s17 }
 0x2ab   :  { %v710_v43 = vadd.f32 %v709_v39, %v708_v35  ;;  %s2990_s9 = scalar_lea.hbm %s781_s15, 64  ;;  %p2993_p4 = scmp.lt.s32.totalorder %s781_s15, %s5273_s4 }
 0x2ac   :  { %p2991_p2 = scmp.ne.s32.totalorder %s781_s15, %s2990_s9  ;;  %p2994_p6 = scmp.lt.s32.totalorder %s4071_s28, %s2990_s9 }
 0x2ad   :  { %773 = dma.hbm_to_vmem [thread:$0]  %s768_s18, 64, %s5429_s29, [#allocation3 + $0x9], %s5373_s12, %s5373_s12, %s5372_s13 }
 0x2ae   :  { %s792_s18 = sadd.s32 %s2218_s20, %s790_s11  ;;  %p2995_p8 = por %p2994_p6, %p2993_p4 }
 0x2b0   :  { %p2996_p11 = pnand %p2995_p8, %p2991_p2 }
 0x2b2   :  { %2999 = shalt.err (!%p2996_p11)  }
 0x2b3   :  { %s5430_s1 = sld [smem:[#allocation162_spill]] }
 0x2b9   :  { %p5431_p13 = scmp.ne.s32.totalorder %s5430_s1, 0 }
 0x2bb   :  { %3011 = shalt.err (!%p5431_p13)  }
 0x2bc   :  { %786 = dma.hbm_to_vmem [thread:$0]  %s781_s15, 64, %s4337_s23, [#allocation3 + $0xa], %s5373_s12, %s5373_s12, %s5372_s13  ;;  %v711_v44 = vmul.f32 0.125, %v692_v40  ;;  %v712_v45 = vmul.f32 0.125, %v698_v41  ;;  %v713_v46 = vmul.f32 0.125, %v704_v42  ;;  %v714_v47 = vmul.f32 0.125, %v710_v43 }
 0x2bd   :  { %s2219_s0 = sshll.u32 %s792_s18, 4  ;;  %s802_s6 = sshrl.u32 %s4635_s22, 3 }
 0x2be   :  { %s794_s14 = scalar_lea.hbm %s5273_s4, %s2219_s0  ;;  %s803_s30 = sand.u32 7, %s4635_s22   ;;  %v719_v48 = vcombine.low %v711_v44, %v712_v45 }
 0x2bf   :  { %s3012_s11 = scalar_lea.hbm %s794_s14, 64  ;;  %p3015_p4 = scmp.lt.s32.totalorder %s794_s14, %s5273_s4 }
 0x2c0   :  { %p3013_p2 = scmp.ne.s32.totalorder %s794_s14, %s3012_s11  ;;  %p3016_p6 = scmp.lt.s32.totalorder %s4071_s28, %s3012_s11 }
 0x2c2   :  { %p3017_p8 = por %p3016_p6, %p3015_p4 }
 0x2c4   :  { %p3018_p11 = pnand %p3017_p8, %p3013_p2 }
 0x2c6   :  { %3021 = shalt.err (!%p3018_p11)  }
 0x2c7   :  { %p5432_p13 = scmp.ne.s32.totalorder %s5392_s16, 0 }
 0x2c9   :  { %3033 = shalt.err (!%p5432_p13)  }
 0x2ca   :  { %s5433_s3 = sld [smem:[#allocation163_spill]]  ;;  %v720_v49 = vcombine.low %v713_v46, %v714_v47  ;;  %s2221_s22 = sshll.u32 %s802_s6, 5  ;;  %v727_v50 = vrot.slane %v719_v48, %v4550_v7 }
 0x2cb   :  { %s815_s19 = sshrl.u32 %s4637_s10, 3  ;;  %s805_s15 = sadd.s32 %s2221_s22, %s803_s30 }
 0x2cc   :  { %s816_s18 = sand.u32 7, %s4637_s10   ;;  %v734_v51 = vrot.slane %v720_v49, %v4550_v7  ;;  %s2222_s9 = sshll.u32 %s805_s15, 4 }
 0x2cd   :  { %s2224_s0 = sshll.u32 %s815_s19, 5  ;;  %s807_s11 = scalar_lea.hbm %s5273_s4, %s2222_s9 }
 0x2ce   :  { %s818_s17 = sadd.s32 %s2224_s0, %s816_s18  ;;  %v735_v52 = vcombine.low %v727_v50, %v734_v51  ;;  %s3034_s20 = scalar_lea.hbm %s807_s11, 64 }
 0x2cf   :  { %p3035_p2 = scmp.ne.s32.totalorder %s807_s11, %s3034_s20  ;;  %p3037_p4 = scmp.lt.s32.totalorder %s807_s11, %s5273_s4 }
 0x2d0   :  { %799 = dma.hbm_to_vmem [thread:$0]  %s794_s14, 64, %s5433_s3, [#allocation3 + $0xb], %s5373_s12, %s5373_s12, %s5372_s13 }
 0x2d1   :  { %p3038_p6 = scmp.lt.s32.totalorder %s4071_s28, %s3034_s20 }
 0x2d3   :  { %p3039_p8 = por %p3038_p6, %p3037_p4 }
 0x2d5   :  { %p3040_p11 = pnand %p3039_p8, %p3035_p2 }
 0x2d7   :  { %3043 = shalt.err (!%p3040_p11)  }
 0x2d8   :  { %s5434_s10 = sld [smem:[#allocation166_spill]] }
 0x2de   :  { %p5435_p13 = scmp.ne.s32.totalorder %s5434_s10, 0 }
 0x2e0   :  { %3055 = shalt.err (!%p5435_p13)  }
 0x2e1   :  { %812 = dma.hbm_to_vmem [thread:$0]  %s807_s11, 64, %s4389_s2, [#allocation3 + $0xc], %s5373_s12, %s5373_s12, %s5372_s13  ;;  %v742_v53 = vrot.slane %v735_v52, %v4550_v7 }
 0x2e2   :  { %s2225_s6 = sshll.u32 %s818_s17, 4  ;;  %s2226_s30 = sld [smem:[#allocation5 + $0x186]] }
 0x2e3   :  { %s820_s19 = scalar_lea.hbm %s5273_s4, %s2225_s6  ;;  %s2229_s15 = sld [smem:[#allocation5 + $0x187]] }
 0x2e4   :  { %s3056_s18 = scalar_lea.hbm %s820_s19, 64  ;;  %p3059_p4 = scmp.lt.s32.totalorder %s820_s19, %s5273_s4 }
 0x2e5   :  { %p3057_p2 = scmp.ne.s32.totalorder %s820_s19, %s3056_s18  ;;  %p3060_p6 = scmp.lt.s32.totalorder %s4071_s28, %s3056_s18 }
 0x2e7   :  { %p3061_p8 = por %p3060_p6, %p3059_p4 }
 0x2e9   :  { %p3062_p11 = pnand %p3061_p8, %p3057_p2 }
 0x2eb   :  { %3065 = shalt.err (!%p3062_p11)  }
 0x2ec   :  { %p5436_p13 = scmp.ne.s32.totalorder %s5398_s5, 0 }
 0x2ee   :  { %3077 = shalt.err (!%p5436_p13)  }
 0x2ef   :  { %825 = dma.hbm_to_vmem [thread:$0]  %s820_s19, 64, %s4412_s24, [#allocation3 + $0xd], %s5373_s12, %s5373_s12, %s5372_s13  ;;  %745 = vst.msk [vmem:[#allocation11 + $0x21] ss:$8 sm:$0xf] %vm4585_vm1, %v742_v53 }
 0x2f0   :  { %s828_s29 = sshrl.u32 %s2226_s30, 3  ;;  %s829_s26 = sand.u32 7, %s2226_s30  }
 0x2f1   :  { %s2227_s11 = sshll.u32 %s828_s29, 5  ;;  %s841_s17 = sshrl.u32 %s2229_s15, 3 }
 0x2f2   :  { %s831_s20 = sadd.s32 %s2227_s11, %s829_s26  ;;  %s842_s14 = sand.u32 7, %s2229_s15  }
 0x2f3   :  { %s2228_s6 = sshll.u32 %s831_s20, 4  ;;  %s2230_s22 = sshll.u32 %s841_s17, 5 }
 0x2f4   :  { %s833_s9 = scalar_lea.hbm %s5273_s4, %s2228_s6  ;;  %s844_s0 = sadd.s32 %s2230_s22, %s842_s14 }
 0x2f5   :  { %s3078_s5 = scalar_lea.hbm %s833_s9, 64  ;;  %p3081_p4 = scmp.lt.s32.totalorder %s833_s9, %s5273_s4 }
 0x2f6   :  { %p3079_p2 = scmp.ne.s32.totalorder %s833_s9, %s3078_s5  ;;  %p3082_p6 = scmp.lt.s32.totalorder %s4071_s28, %s3078_s5 }
 0x2f8   :  { %p3083_p8 = por %p3082_p6, %p3081_p4 }
 0x2fa   :  { %p3084_p11 = pnand %p3083_p8, %p3079_p2 }
 0x2fc   :  { %3087 = shalt.err (!%p3084_p11)  }
 0x2fd   :  { %s5437_s30 = sld [smem:[#allocation170_spill]] }
 0x303   :  { %p5438_p13 = scmp.ne.s32.totalorder %s5437_s30, 0 }
 0x305   :  { %3099 = shalt.err (!%p5438_p13)  }
 0x306   :  { %s5439_s15 = sld [smem:[#allocation169_spill]]  ;;  %s2231_s29 = sshll.u32 %s844_s0, 4 }
 0x307   :  { %s846_s17 = scalar_lea.hbm %s5273_s4, %s2231_s29 }
 0x308   :  { %s3100_s2 = scalar_lea.hbm %s846_s17, 64  ;;  %p3103_p2 = scmp.lt.s32.totalorder %s846_s17, %s5273_s4 }
 0x309   :  { %p3101_p0 = scmp.ne.s32.totalorder %s846_s17, %s3100_s2  ;;  %p3104_p4 = scmp.lt.s32.totalorder %s4071_s28, %s3100_s2 }
 0x30b   :  { %p3105_p6 = por %p3104_p4, %p3103_p2 }
 0x30c   :  { %838 = dma.hbm_to_vmem [thread:$0]  %s833_s9, 64, %s5439_s15, [#allocation3 + $0xe], %s5373_s12, %s5373_s12, %s5372_s13 }
 0x30d   :  { %p3106_p8 = pnand %p3105_p6, %p3101_p0 }
 0x30f   :  { %3109 = shalt.err (!%p3106_p8)  }
 0x310   :  { %3121 = shalt.err (!%p4478_p9)  }
 0x311   :  { %s5441_s6 = sld [smem:[#allocation171_spill]] }
 0x317   :  { %851 = dma.hbm_to_vmem [thread:$0]  %s846_s17, 64, %s5441_s6, [#allocation3 + $0xf], %s5373_s12, %s5373_s12, %s5372_s13 }
 0x318   :  { %3884 = dma.done.wait [#allocation3], 64 }
 0x319   :  { %3885 = vsyncadd [#allocation3], 4294967232 }
 0x31a   :  { %3886 = dma.done.wait [#allocation3 + $0x1], 64 }
 0x31b   :  { %3887 = vsyncadd [#allocation3 + $0x1], 4294967232 }
 0x31c   :  { %3888 = dma.done.wait [#allocation3 + $0x2], 64 }
 0x31d   :  { %3889 = vsyncadd [#allocation3 + $0x2], 4294967232 }
 0x31e   :  { %3890 = dma.done.wait [#allocation3 + $0x3], 64 }
 0x31f   :  { %3891 = vsyncadd [#allocation3 + $0x3], 4294967232 }
 0x320   :  { %3892 = dma.done.wait [#allocation3 + $0x4], 64 }
 0x321   :  { %3893 = vsyncadd [#allocation3 + $0x4], 4294967232 }
 0x322   :  { %3894 = dma.done.wait [#allocation3 + $0x5], 64 }
 0x323   :  { %3895 = vsyncadd [#allocation3 + $0x5], 4294967232 }
 0x324   :  { %3896 = dma.done.wait [#allocation3 + $0x6], 64 }
 0x325   :  { %3897 = vsyncadd [#allocation3 + $0x6], 4294967232 }
 0x326   :  { %3898 = dma.done.wait [#allocation3 + $0x7], 64 }
 0x327   :  { %3899 = vsyncadd [#allocation3 + $0x7], 4294967232  ;;  %s2232_s22 = sld [smem:[#allocation5 + $0x200]]  ;;  %v868_v54 = vld [vmem:[#allocation2] sm:$0xff]  ;;  %v869_v55 = vld [vmem:[#allocation2 + $0x8] sm:$0xff] }
 0x328   :  { %s2235_s3 = sld [smem:[#allocation5 + $0x201]]  ;;  %v870_v56 = vld [vmem:[#allocation2 + $0x10] sm:$0xff]  ;;  %v871_v57 = vld [vmem:[#allocation2 + $0x18] sm:$0xff]  ;;  %v872_v58 = vrot.slane %v868_v54, 4  ;;  %v878_v59 = vrot.slane %v869_v55, 4 }
 0x329   :  { %s4756_s18 = sld [smem:[#allocation5 + $0x202]]  ;;  %v884_v60 = vrot.slane %v870_v56, 4  ;;  %v890_v61 = vrot.slane %v871_v57, 4 }
 0x32a   :  { %s4758_s9 = sld [smem:[#allocation5 + $0x203]]  ;;  %v873_v62 = vadd.f32 %v872_v58, %v868_v54  ;;  %v879_v63 = vadd.f32 %v878_v59, %v869_v55 }
 0x32b   :  { %s4760_s0 = sld [smem:[#allocation5 + $0x204]]  ;;  %v885_v0 = vadd.f32 %v884_v60, %v870_v56  ;;  %v891_v1 = vadd.f32 %v890_v61, %v871_v57 }
 0x32c   :  { %s4762_s19 = sld [smem:[#allocation5 + $0x205]] }
 0x32d   :  { %s935_s29 = sshrl.u32 %s2232_s22, 3  ;;  %s936_s26 = sand.u32 7, %s2232_s22  }
 0x32e   :  { %s2233_s11 = sshll.u32 %s935_s29, 5  ;;  %s948_s17 = sshrl.u32 %s2235_s3, 3 }
 0x32f   :  { %s938_s2 = sadd.s32 %s2233_s11, %s936_s26  ;;  %s949_s5 = sand.u32 7, %s2235_s3  }
 0x330   :  { %s2234_s20 = sshll.u32 %s938_s2, 4  ;;  %s2236_s6 = sshll.u32 %s948_s17, 5 }
 0x331   :  { %s940_s22 = scalar_lea.hbm %s5273_s4, %s2234_s20  ;;  %s951_s30 = sadd.s32 %s2236_s6, %s949_s5 }
 0x332   :  { %s3122_s24 = scalar_lea.hbm %s940_s22, 64  ;;  %p3125_p11 = scmp.lt.s32.totalorder %s940_s22, %s5273_s4 }
 0x333   :  { %p3123_p0 = scmp.ne.s32.totalorder %s940_s22, %s3122_s24  ;;  %p3126_p2 = scmp.lt.s32.totalorder %s4071_s28, %s3122_s24 }
 0x335   :  { %p3127_p4 = por %p3126_p2, %p3125_p11 }
 0x337   :  { %p3128_p6 = pnand %p3127_p4, %p3123_p0 }
 0x339   :  { %3131 = shalt.err (!%p3128_p6)  }
 0x33a   :  { %3143 = shalt.err (!%p4085_p5)  }
 0x33b   :  { %945 = dma.hbm_to_vmem [thread:$0]  %s940_s22, 64, %s4049_s8, [#allocation3], %s5373_s12, %s5373_s12, %s5372_s13  ;;  %v874_v2 = vrot.slane %v873_v62, 2  ;;  %v880_v3 = vrot.slane %v879_v63, 2  ;;  %v886_v4 = vrot.slane %v885_v0, 2  ;;  %v892_v5 = vrot.slane %v891_v1, 2 }
 0x33c   :  { %s2237_s10 = sshll.u32 %s951_s30, 4  ;;  %s961_s15 = sshrl.u32 %s4756_s18, 3 }
 0x33d   :  { %s953_s6 = scalar_lea.hbm %s5273_s4, %s2237_s10  ;;  %s962_s3 = sand.u32 7, %s4756_s18   ;;  %v875_v6 = vadd.f32 %v874_v2, %v873_v62  ;;  %v881_v8 = vadd.f32 %v880_v3, %v879_v63  ;;  %v887_v9 = vadd.f32 %v886_v4, %v885_v0 }
 0x33e   :  { %s3144_s26 = scalar_lea.hbm %s953_s6, 64  ;;  %p3147_p0 = scmp.lt.s32.totalorder %s953_s6, %s5273_s4 }
 0x33f   :  { %p3145_p8 = scmp.ne.s32.totalorder %s953_s6, %s3144_s26  ;;  %p3148_p11 = scmp.lt.s32.totalorder %s4071_s28, %s3144_s26 }
 0x341   :  { %p3149_p2 = por %p3148_p11, %p3147_p0 }
 0x343   :  { %p3150_p4 = pnand %p3149_p2, %p3145_p8 }
 0x345   :  { %3153 = shalt.err (!%p3150_p4)  }
 0x346   :  { %3165 = shalt.err (!%p4111_p1)  }
 0x347   :  { %s5442_s30 = sld [smem:[#allocation144_spill]]  ;;  %v893_v10 = vadd.f32 %v892_v5, %v891_v1  ;;  %s2239_s18 = sshll.u32 %s961_s15, 5  ;;  %v876_v11 = vrot.slane %v875_v6, 1  ;;  %v882_v12 = vrot.slane %v881_v8, 1  ;;  %v888_v13 = vrot.slane %v887_v9, 1 }
 0x348   :  { %s974_s2 = sshrl.u32 %s4758_s9, 3  ;;  %s964_s5 = sadd.s32 %s2239_s18, %s962_s3 }
 0x349   :  { %s975_s20 = sand.u32 7, %s4758_s9   ;;  %v894_v15 = vrot.slane %v893_v10, 1  ;;  %s2240_s22 = sshll.u32 %s964_s5, 4  ;;  %v877_v16 = vadd.f32 %v876_v11, %v875_v6  ;;  %v883_v17 = vadd.f32 %v882_v12, %v881_v8  ;;  %v889_v18 = vadd.f32 %v888_v13, %v887_v9 }
 0x34a   :  { %s2242_s29 = sshll.u32 %s974_s2, 5  ;;  %s966_s14 = scalar_lea.hbm %s5273_s4, %s2240_s22 }
 0x34b   :  { %v895_v19 = vadd.f32 %v894_v15, %v893_v10  ;;  %s3166_s15 = scalar_lea.hbm %s966_s14, 64  ;;  %p3169_p8 = scmp.lt.s32.totalorder %s966_s14, %s5273_s4 }
 0x34c   :  { %p3167_p6 = scmp.ne.s32.totalorder %s966_s14, %s3166_s15  ;;  %p3170_p0 = scmp.lt.s32.totalorder %s4071_s28, %s3166_s15 }
 0x34d   :  { %958 = dma.hbm_to_vmem [thread:$0]  %s953_s6, 64, %s5442_s30, [#allocation3 + $0x1], %s5373_s12, %s5373_s12, %s5372_s13 }
 0x34e   :  { %s977_s6 = sadd.s32 %s2242_s29, %s975_s20  ;;  %p3171_p11 = por %p3170_p0, %p3169_p8 }
 0x350   :  { %p3172_p2 = pnand %p3171_p11, %p3167_p6 }
 0x352   :  { %3175 = shalt.err (!%p3172_p2)  }
 0x353   :  { %3187 = shalt.err (!%p4135_p12)  }
 0x354   :  { %s5444_s3 = sld [smem:[#allocation145_spill]]  ;;  %v896_v20 = vmul.f32 0.125, %v877_v16  ;;  %v897_v21 = vmul.f32 0.125, %v883_v17  ;;  %v898_v22 = vmul.f32 0.125, %v889_v18  ;;  %s2243_s17 = sshll.u32 %s977_s6, 4  ;;  %v899_v23 = vmul.f32 0.125, %v895_v19 }
 0x355   :  { %s987_s18 = sshrl.u32 %s4760_s0, 3  ;;  %s979_s20 = scalar_lea.hbm %s5273_s4, %s2243_s17 }
 0x356   :  { %s988_s22 = sand.u32 7, %s4760_s0   ;;  %v904_v24 = vcombine.low %v896_v20, %v897_v21  ;;  %s3188_s29 = scalar_lea.hbm %s979_s20, 64 }
 0x357   :  { %p3189_p4 = scmp.ne.s32.totalorder %s979_s20, %s3188_s29  ;;  %p3191_p6 = scmp.lt.s32.totalorder %s979_s20, %s5273_s4 }
 0x358   :  { %p3192_p8 = scmp.lt.s32.totalorder %s4071_s28, %s3188_s29 }
 0x35a   :  { %971 = dma.hbm_to_vmem [thread:$0]  %s966_s14, 64, %s5444_s3, [#allocation3 + $0x2], %s5373_s12, %s5373_s12, %s5372_s13 }
 0x35b   :  { %p3193_p0 = por %p3192_p8, %p3191_p6 }
 0x35d   :  { %p3194_p11 = pnand %p3193_p0, %p3189_p4 }
 0x35f   :  { %3197 = shalt.err (!%p3194_p11)  }
 0x360   :  { %3209 = shalt.err (!%p4159_p10)  }
 0x361   :  { %s5446_s6 = sld [smem:[#allocation147_spill]]  ;;  %v905_v25 = vcombine.low %v898_v22, %v899_v23  ;;  %s2245_s0 = sshll.u32 %s987_s18, 5  ;;  %v912_v26 = vrot.slane %v904_v24, %v4550_v7 }
 0x362   :  { %s1000_s15 = sshrl.u32 %s4762_s19, 3  ;;  %s990_s26 = sadd.s32 %s2245_s0, %s988_s22 }
 0x363   :  { %s1001_s11 = sand.u32 7, %s4762_s19   ;;  %v919_v27 = vrot.slane %v905_v25, %v4550_v7  ;;  %s2246_s17 = sshll.u32 %s990_s26, 4 }
 0x364   :  { %s2248_s2 = sshll.u32 %s1000_s15, 5  ;;  %s992_s10 = scalar_lea.hbm %s5273_s4, %s2246_s17 }
 0x365   :  { %s1003_s24 = sadd.s32 %s2248_s2, %s1001_s11  ;;  %v920_v28 = vcombine.low %v912_v26, %v919_v27  ;;  %s3210_s14 = scalar_lea.hbm %s992_s10, 64 }
 0x366   :  { %p3211_p2 = scmp.ne.s32.totalorder %s992_s10, %s3210_s14  ;;  %p3213_p4 = scmp.lt.s32.totalorder %s992_s10, %s5273_s4 }
 0x367   :  { %984 = dma.hbm_to_vmem [thread:$0]  %s979_s20, 64, %s5446_s6, [#allocation3 + $0x3], %s5373_s12, %s5373_s12, %s5372_s13 }
 0x368   :  { %p3214_p6 = scmp.lt.s32.totalorder %s4071_s28, %s3210_s14 }
 0x36a   :  { %p3215_p8 = por %p3214_p6, %p3213_p4 }
 0x36c   :  { %p3216_p0 = pnand %p3215_p8, %p3211_p2 }
 0x36e   :  { %3219 = shalt.err (!%p3216_p0)  }
 0x36f   :  { %3231 = shalt.err (!%p5411_p7)  }
 0x370   :  { %s5448_s18 = sld [smem:[#allocation149_spill]]  ;;  %s2249_s22 = sshll.u32 %s1003_s24, 4  ;;  %v927_v29 = vrot.slane %v920_v28, %v4550_v7 }
 0x371   :  { %s2250_s0 = sld [smem:[#allocation5 + $0x206]]  ;;  %s1005_s14 = scalar_lea.hbm %s5273_s4, %s2249_s22 }
 0x372   :  { %s2253_s26 = sld [smem:[#allocation5 + $0x207]]  ;;  %s3232_s11 = scalar_lea.hbm %s1005_s14, 64 }
 0x373   :  { %p3233_p11 = scmp.ne.s32.totalorder %s1005_s14, %s3232_s11  ;;  %p3235_p2 = scmp.lt.s32.totalorder %s1005_s14, %s5273_s4 }
 0x374   :  { %p3236_p4 = scmp.lt.s32.totalorder %s4071_s28, %s3232_s11 }
 0x376   :  { %997 = dma.hbm_to_vmem [thread:$0]  %s992_s10, 64, %s5448_s18, [#allocation3 + $0x4], %s5373_s12, %s5373_s12, %s5372_s13 }
 0x377   :  { %p3237_p6 = por %p3236_p4, %p3235_p2 }
 0x379   :  { %p3238_p8 = pnand %p3237_p6, %p3233_p11 }
 0x37b   :  { %3241 = shalt.err (!%p3238_p8)  }
 0x37c   :  { %3253 = shalt.err (!%p5416_p3)  }
 0x37d   :  { %s5450_s29 = sld [smem:[#allocation150_spill]]  ;;  %930 = vst.msk [vmem:[#allocation11 + $0x22] ss:$8 sm:$0xf] %vm4585_vm1, %v927_v29  ;;  %s1013_s10 = sshrl.u32 %s2250_s0, 3 }
 0x37e   :  { %s1014_s24 = sand.u32 7, %s2250_s0   ;;  %s2251_s20 = sshll.u32 %s1013_s10, 5 }
 0x37f   :  { %s1026_s22 = sshrl.u32 %s2253_s26, 3  ;;  %s1016_s15 = sadd.s32 %s2251_s20, %s1014_s24 }
 0x380   :  { %s1027_s6 = sand.u32 7, %s2253_s26   ;;  %s2252_s11 = sshll.u32 %s1016_s15, 4 }
 0x381   :  { %s2254_s17 = sshll.u32 %s1026_s22, 5  ;;  %s1018_s18 = scalar_lea.hbm %s5273_s4, %s2252_s11 }
 0x382   :  { %s1029_s19 = sadd.s32 %s2254_s17, %s1027_s6  ;;  %s3254_s3 = scalar_lea.hbm %s1018_s18, 64 }
 0x383   :  { %1010 = dma.hbm_to_vmem [thread:$0]  %s1005_s14, 64, %s5450_s29, [#allocation3 + $0x5], %s5373_s12, %s5373_s12, %s5372_s13 }
 0x384   :  { %p3255_p0 = scmp.ne.s32.totalorder %s1018_s18, %s3254_s3  ;;  %p3257_p11 = scmp.lt.s32.totalorder %s1018_s18, %s5273_s4 }
 0x385   :  { %p3258_p2 = scmp.lt.s32.totalorder %s4071_s28, %s3254_s3 }
 0x387   :  { %p3259_p4 = por %p3258_p2, %p3257_p11 }
 0x389   :  { %p3260_p6 = pnand %p3259_p4, %p3255_p0 }
 0x38b   :  { %3263 = shalt.err (!%p3260_p6)  }
 0x38c   :  { %s5451_s0 = sld [smem:[#allocation154_spill]] }
 0x392   :  { %p5452_p8 = scmp.ne.s32.totalorder %s5451_s0, 0 }
 0x394   :  { %3275 = shalt.err (!%p5452_p8)  }
 0x395   :  { %s5453_s26 = sld [smem:[#allocation153_spill]]  ;;  %s2255_s5 = sshll.u32 %s1029_s19, 4 }
 0x396   :  { %s1031_s20 = scalar_lea.hbm %s5273_s4, %s2255_s5 }
 0x397   :  { %s3276_s9 = scalar_lea.hbm %s1031_s20, 64  ;;  %p3279_p0 = scmp.lt.s32.totalorder %s1031_s20, %s5273_s4 }
 0x398   :  { %p3277_p3 = scmp.ne.s32.totalorder %s1031_s20, %s3276_s9  ;;  %p3280_p11 = scmp.lt.s32.totalorder %s4071_s28, %s3276_s9 }
 0x39a   :  { %p3281_p2 = por %p3280_p11, %p3279_p0 }
 0x39b   :  { %1023 = dma.hbm_to_vmem [thread:$0]  %s1018_s18, 64, %s5453_s26, [#allocation3 + $0x6], %s5373_s12, %s5373_s12, %s5372_s13 }
 0x39c   :  { %p3282_p4 = pnand %p3281_p2, %p3277_p3 }
 0x39e   :  { %3285 = shalt.err (!%p3282_p4)  }
 0x39f   :  { %s5454_s15 = sld [smem:[#allocation156_spill]] }
 0x3a5   :  { %p5455_p6 = scmp.ne.s32.totalorder %s5454_s15, 0 }
 0x3a7   :  { %3297 = shalt.err (!%p5455_p6)  }
 0x3a8   :  { %s5456_s19 = sld [smem:[#allocation155_spill]] }
 0x3ae   :  { %1036 = dma.hbm_to_vmem [thread:$0]  %s1031_s20, 64, %s5456_s19, [#allocation3 + $0x7], %s5373_s12, %s5373_s12, %s5372_s13 }
 0x3af   :  { %3900 = dma.done.wait [#allocation3 + $0x8], 64 }
 0x3b0   :  { %3901 = vsyncadd [#allocation3 + $0x8], 4294967232 }
 0x3b1   :  { %3902 = dma.done.wait [#allocation3 + $0x9], 64 }
 0x3b2   :  { %3903 = vsyncadd [#allocation3 + $0x9], 4294967232 }
 0x3b3   :  { %3904 = dma.done.wait [#allocation3 + $0xa], 64 }
 0x3b4   :  { %3905 = vsyncadd [#allocation3 + $0xa], 4294967232 }
 0x3b5   :  { %3906 = dma.done.wait [#allocation3 + $0xb], 64 }
 0x3b6   :  { %3907 = vsyncadd [#allocation3 + $0xb], 4294967232 }
 0x3b7   :  { %3908 = dma.done.wait [#allocation3 + $0xc], 64 }
 0x3b8   :  { %3909 = vsyncadd [#allocation3 + $0xc], 4294967232 }
 0x3b9   :  { %3910 = dma.done.wait [#allocation3 + $0xd], 64 }
 0x3ba   :  { %3911 = vsyncadd [#allocation3 + $0xd], 4294967232 }
 0x3bb   :  { %3912 = dma.done.wait [#allocation3 + $0xe], 64 }
 0x3bc   :  { %3913 = vsyncadd [#allocation3 + $0xe], 4294967232 }
 0x3bd   :  { %3914 = dma.done.wait [#allocation3 + $0xf], 64 }
 0x3be   :  { %3915 = vsyncadd [#allocation3 + $0xf], 4294967232  ;;  %s2256_s18 = sld [smem:[#allocation5 + $0x280]]  ;;  %v1053_v30 = vld [vmem:[#allocation2 + $0x20] sm:$0xff]  ;;  %v1054_v31 = vld [vmem:[#allocation2 + $0x28] sm:$0xff] }
 0x3bf   :  { %s2259_s6 = sld [smem:[#allocation5 + $0x281]]  ;;  %v1055_v32 = vld [vmem:[#allocation2 + $0x30] sm:$0xff]  ;;  %v1056_v33 = vld [vmem:[#allocation2 + $0x38] sm:$0xff]  ;;  %v1057_v34 = vrot.slane %v1053_v30, 4  ;;  %v1063_v35 = vrot.slane %v1054_v31, 4 }
 0x3c0   :  { %s4881_s11 = sld [smem:[#allocation5 + $0x282]]  ;;  %v1069_v36 = vrot.slane %v1055_v32, 4  ;;  %v1075_v37 = vrot.slane %v1056_v33, 4 }
 0x3c1   :  { %s4883_s17 = sld [smem:[#allocation5 + $0x283]]  ;;  %v1058_v38 = vadd.f32 %v1057_v34, %v1053_v30  ;;  %v1064_v39 = vadd.f32 %v1063_v35, %v1054_v31 }
 0x3c2   :  { %s4885_s2 = sld [smem:[#allocation5 + $0x284]]  ;;  %v1070_v40 = vadd.f32 %v1069_v36, %v1055_v32  ;;  %v1076_v41 = vadd.f32 %v1075_v37, %v1056_v33 }
 0x3c3   :  { %s4887_s14 = sld [smem:[#allocation5 + $0x285]] }
 0x3c4   :  { %s1120_s5 = sshrl.u32 %s2256_s18, 3  ;;  %s1121_s10 = sand.u32 7, %s2256_s18  }
 0x3c5   :  { %s2257_s24 = sshll.u32 %s1120_s5, 5  ;;  %s1133_s20 = sshrl.u32 %s2259_s6, 3 }
 0x3c6   :  { %s1123_s9 = sadd.s32 %s2257_s24, %s1121_s10  ;;  %s1134_s3 = sand.u32 7, %s2259_s6  }
 0x3c7   :  { %s2258_s22 = sshll.u32 %s1123_s9, 4  ;;  %s2260_s19 = sshll.u32 %s1133_s20, 5 }
 0x3c8   :  { %s1125_s18 = scalar_lea.hbm %s5273_s4, %s2258_s22  ;;  %s1136_s0 = sadd.s32 %s2260_s19, %s1134_s3 }
 0x3c9   :  { %s3298_s29 = scalar_lea.hbm %s1125_s18, 64  ;;  %p3301_p0 = scmp.lt.s32.totalorder %s1125_s18, %s5273_s4 }
 0x3ca   :  { %p3299_p3 = scmp.ne.s32.totalorder %s1125_s18, %s3298_s29  ;;  %p3302_p11 = scmp.lt.s32.totalorder %s4071_s28, %s3298_s29 }
 0x3cc   :  { %p3303_p2 = por %p3302_p11, %p3301_p0 }
 0x3ce   :  { %p3304_p4 = pnand %p3303_p2, %p3299_p3 }
 0x3d0   :  { %3307 = shalt.err (!%p3304_p4)  }
 0x3d1   :  { %p5457_p6 = scmp.ne.s32.totalorder %s5424_s25, 0 }
 0x3d3   :  { %3319 = shalt.err (!%p5457_p6)  }
 0x3d4   :  { %1130 = dma.hbm_to_vmem [thread:$0]  %s1125_s18, 64, %s5426_s27, [#allocation3 + $0x8], %s5373_s12, %s5373_s12, %s5372_s13  ;;  %v1059_v42 = vrot.slane %v1058_v38, 2  ;;  %v1065_v43 = vrot.slane %v1064_v39, 2  ;;  %v1071_v44 = vrot.slane %v1070_v40, 2  ;;  %v1077_v45 = vrot.slane %v1076_v41, 2 }
 0x3d5   :  { %s2261_s30 = sshll.u32 %s1136_s0, 4  ;;  %s1146_s26 = sshrl.u32 %s4881_s11, 3 }
 0x3d6   :  { %s1138_s19 = scalar_lea.hbm %s5273_s4, %s2261_s30  ;;  %s1147_s6 = sand.u32 7, %s4881_s11   ;;  %v1060_v46 = vadd.f32 %v1059_v42, %v1058_v38  ;;  %v1066_v47 = vadd.f32 %v1065_v43, %v1064_v39  ;;  %v1072_v48 = vadd.f32 %v1071_v44, %v1070_v40 }
 0x3d7   :  { %s3320_s10 = scalar_lea.hbm %s1138_s19, 64  ;;  %p3323_p0 = scmp.lt.s32.totalorder %s1138_s19, %s5273_s4 }
 0x3d8   :  { %p3321_p3 = scmp.ne.s32.totalorder %s1138_s19, %s3320_s10  ;;  %p3324_p11 = scmp.lt.s32.totalorder %s4071_s28, %s3320_s10 }
 0x3da   :  { %p3325_p2 = por %p3324_p11, %p3323_p0 }
 0x3dc   :  { %p3326_p4 = pnand %p3325_p2, %p3321_p3 }
 0x3de   :  { %3329 = shalt.err (!%p3326_p4)  }
 0x3df   :  { %s5458_s0 = sld [smem:[#allocation160_spill]] }
 0x3e5   :  { %p5459_p6 = scmp.ne.s32.totalorder %s5458_s0, 0 }
 0x3e7   :  { %3341 = shalt.err (!%p5459_p6)  }
 0x3e8   :  { %s5460_s11 = sld [smem:[#allocation158_spill]]  ;;  %v1078_v49 = vadd.f32 %v1077_v45, %v1076_v41  ;;  %s2263_s9 = sshll.u32 %s1146_s26, 5  ;;  %v1061_v50 = vrot.slane %v1060_v46, 1  ;;  %v1067_v51 = vrot.slane %v1066_v47, 1  ;;  %v1073_v52 = vrot.slane %v1072_v48, 1 }
 0x3e9   :  { %s1159_s3 = sshrl.u32 %s4883_s17, 3  ;;  %s1149_s22 = sadd.s32 %s2263_s9, %s1147_s6 }
 0x3ea   :  { %s1160_s18 = sand.u32 7, %s4883_s17   ;;  %v1079_v53 = vrot.slane %v1078_v49, 1  ;;  %s2264_s5 = sshll.u32 %s1149_s22, 4  ;;  %v1062_v54 = vadd.f32 %v1061_v50, %v1060_v46  ;;  %v1068_v55 = vadd.f32 %v1067_v51, %v1066_v47  ;;  %v1074_v56 = vadd.f32 %v1073_v52, %v1072_v48 }
 0x3eb   :  { %s2266_s30 = sshll.u32 %s1159_s3, 5  ;;  %s1151_s10 = scalar_lea.hbm %s5273_s4, %s2264_s5 }
 0x3ec   :  { %v1080_v57 = vadd.f32 %v1079_v53, %v1078_v49  ;;  %s3342_s26 = scalar_lea.hbm %s1151_s10, 64  ;;  %p3345_p0 = scmp.lt.s32.totalorder %s1151_s10, %s5273_s4 }
 0x3ed   :  { %p3343_p3 = scmp.ne.s32.totalorder %s1151_s10, %s3342_s26  ;;  %p3346_p11 = scmp.lt.s32.totalorder %s4071_s28, %s3342_s26 }
 0x3ee   :  { %1143 = dma.hbm_to_vmem [thread:$0]  %s1138_s19, 64, %s5460_s11, [#allocation3 + $0x9], %s5373_s12, %s5373_s12, %s5372_s13 }
 0x3ef   :  { %s1162_s19 = sadd.s32 %s2266_s30, %s1160_s18  ;;  %p3347_p2 = por %p3346_p11, %p3345_p0 }
 0x3f1   :  { %p3348_p4 = pnand %p3347_p2, %p3343_p3 }
 0x3f3   :  { %3351 = shalt.err (!%p3348_p4)  }
 0x3f4   :  { %p5461_p6 = scmp.ne.s32.totalorder %s5430_s1, 0 }
 0x3f6   :  { %3363 = shalt.err (!%p5461_p6)  }
 0x3f7   :  { %1156 = dma.hbm_to_vmem [thread:$0]  %s1151_s10, 64, %s4337_s23, [#allocation3 + $0xa], %s5373_s12, %s5373_s12, %s5372_s13  ;;  %v1081_v58 = vmul.f32 0.125, %v1062_v54  ;;  %v1082_v59 = vmul.f32 0.125, %v1068_v55  ;;  %v1083_v60 = vmul.f32 0.125, %v1074_v56  ;;  %v1084_v61 = vmul.f32 0.125, %v1080_v57 }
 0x3f8   :  { %s2267_s17 = sshll.u32 %s1162_s19, 4  ;;  %s1172_s6 = sshrl.u32 %s4885_s2, 3 }
 0x3f9   :  { %s1164_s22 = scalar_lea.hbm %s5273_s4, %s2267_s17  ;;  %s1173_s18 = sand.u32 7, %s4885_s2   ;;  %v1089_v62 = vcombine.low %v1081_v58, %v1082_v59 }
 0x3fa   :  { %s3364_s5 = scalar_lea.hbm %s1164_s22, 64  ;;  %p3367_p0 = scmp.lt.s32.totalorder %s1164_s22, %s5273_s4 }
 0x3fb   :  { %p3365_p3 = scmp.ne.s32.totalorder %s1164_s22, %s3364_s5  ;;  %p3368_p11 = scmp.lt.s32.totalorder %s4071_s28, %s3364_s5 }
 0x3fd   :  { %p3369_p2 = por %p3368_p11, %p3367_p0 }
 0x3ff   :  { %p3370_p4 = pnand %p3369_p2, %p3365_p3 }
 0x401   :  { %3373 = shalt.err (!%p3370_p4)  }
 0x402   :  { %p5462_p6 = scmp.ne.s32.totalorder %s5392_s16, 0 }
 0x404   :  { %3385 = shalt.err (!%p5462_p6)  }
 0x405   :  { %s5463_s15 = sld [smem:[#allocation163_spill]]  ;;  %v1090_v63 = vcombine.low %v1083_v60, %v1084_v61  ;;  %s2269_s2 = sshll.u32 %s1172_s6, 5  ;;  %v1097_v0 = vrot.slane %v1089_v62, %v4550_v7 }
 0x406   :  { %s1185_s10 = sshrl.u32 %s4887_s14, 3  ;;  %s1175_s19 = sadd.s32 %s2269_s2, %s1173_s18 }
 0x407   :  { %s1186_s26 = sand.u32 7, %s4887_s14   ;;  %v1104_v1 = vrot.slane %v1090_v63, %v4550_v7  ;;  %s2270_s24 = sshll.u32 %s1175_s19, 4 }
 0x408   :  { %s2272_s20 = sshll.u32 %s1185_s10, 5  ;;  %s1177_s3 = scalar_lea.hbm %s5273_s4, %s2270_s24 }
 0x409   :  { %s1188_s5 = sadd.s32 %s2272_s20, %s1186_s26  ;;  %v1105_v2 = vcombine.low %v1097_v0, %v1104_v1  ;;  %s3386_s30 = scalar_lea.hbm %s1177_s3, 64 }
 0x40a   :  { %p3387_p3 = scmp.ne.s32.totalorder %s1177_s3, %s3386_s30  ;;  %p3389_p0 = scmp.lt.s32.totalorder %s1177_s3, %s5273_s4 }
 0x40b   :  { %1169 = dma.hbm_to_vmem [thread:$0]  %s1164_s22, 64, %s5463_s15, [#allocation3 + $0xb], %s5373_s12, %s5373_s12, %s5372_s13 }
 0x40c   :  { %p3390_p11 = scmp.lt.s32.totalorder %s4071_s28, %s3386_s30 }
 0x40e   :  { %p3391_p2 = por %p3390_p11, %p3389_p0 }
 0x410   :  { %p3392_p4 = pnand %p3391_p2, %p3387_p3 }
 0x412   :  { %3395 = shalt.err (!%p3392_p4)  }
 0x413   :  { %s5464_s14 = sld [smem:[#allocation166_spill]] }
 0x419   :  { %p5465_p6 = scmp.ne.s32.totalorder %s5464_s14, 0 }
 0x41b   :  { %3407 = shalt.err (!%p5465_p6)  }
 0x41c   :  { %s5466_s6 = sld [smem:[#allocation165_spill]]  ;;  %s2273_s18 = sshll.u32 %s1188_s5, 4  ;;  %v1112_v3 = vrot.slane %v1105_v2, %v4550_v7 }
 0x41d   :  { %s2274_s2 = sld [smem:[#allocation5 + $0x286]]  ;;  %s1190_s26 = scalar_lea.hbm %s5273_s4, %s2273_s18 }
 0x41e   :  { %s2277_s24 = sld [smem:[#allocation5 + $0x287]]  ;;  %s3408_s20 = scalar_lea.hbm %s1190_s26, 64 }
 0x41f   :  { %p3409_p3 = scmp.ne.s32.totalorder %s1190_s26, %s3408_s20  ;;  %p3411_p0 = scmp.lt.s32.totalorder %s1190_s26, %s5273_s4 }
 0x420   :  { %p3412_p11 = scmp.lt.s32.totalorder %s4071_s28, %s3408_s20 }
 0x422   :  { %1182 = dma.hbm_to_vmem [thread:$0]  %s1177_s3, 64, %s5466_s6, [#allocation3 + $0xc], %s5373_s12, %s5373_s12, %s5372_s13 }
 0x423   :  { %p3413_p2 = por %p3412_p11, %p3411_p0 }
 0x425   :  { %p3414_p4 = pnand %p3413_p2, %p3409_p3 }
 0x427   :  { %3417 = shalt.err (!%p3414_p4)  }
 0x428   :  { %s5467_s3 = sld [smem:[#allocation168_spill]] }
 0x42e   :  { %p5468_p6 = scmp.ne.s32.totalorder %s5467_s3, 0 }
 0x430   :  { %3429 = shalt.err (!%p5468_p6)  }
 0x431   :  { %s5469_s5 = sld [smem:[#allocation167_spill]]  ;;  %1115 = vst.msk [vmem:[#allocation11 + $0x23] ss:$8 sm:$0xf] %vm4585_vm1, %v1112_v3  ;;  %s1198_s30 = sshrl.u32 %s2274_s2, 3 }
 0x432   :  { %s1199_s22 = sand.u32 7, %s2274_s2   ;;  %s2275_s29 = sshll.u32 %s1198_s30, 5 }
 0x433   :  { %s1211_s18 = sshrl.u32 %s2277_s24, 3  ;;  %s1201_s10 = sadd.s32 %s2275_s29, %s1199_s22 }
 0x434   :  { %s1212_s19 = sand.u32 7, %s2277_s24   ;;  %s2276_s20 = sshll.u32 %s1201_s10, 4 }
 0x435   :  { %s2278_s17 = sshll.u32 %s1211_s18, 5  ;;  %s1203_s6 = scalar_lea.hbm %s5273_s4, %s2276_s20 }
 0x436   :  { %s1214_s14 = sadd.s32 %s2278_s17, %s1212_s19  ;;  %s3430_s15 = scalar_lea.hbm %s1203_s6, 64 }
 0x437   :  { %1195 = dma.hbm_to_vmem [thread:$0]  %s1190_s26, 64, %s5469_s5, [#allocation3 + $0xd], %s5373_s12, %s5373_s12, %s5372_s13 }
 0x438   :  { %p3431_p3 = scmp.ne.s32.totalorder %s1203_s6, %s3430_s15  ;;  %p3433_p0 = scmp.lt.s32.totalorder %s1203_s6, %s5273_s4 }
 0x439   :  { %p3434_p11 = scmp.lt.s32.totalorder %s4071_s28, %s3430_s15 }
 0x43b   :  { %p3435_p2 = por %p3434_p11, %p3433_p0 }
 0x43d   :  { %p3436_p4 = pnand %p3435_p2, %p3431_p3 }
 0x43f   :  { %3439 = shalt.err (!%p3436_p4)  }
 0x440   :  { %3451 = shalt.err (!%p5438_p13)  }
 0x441   :  { %s5471_s24 = sld [smem:[#allocation169_spill]]  ;;  %s2279_s3 = sshll.u32 %s1214_s14, 4 }
 0x442   :  { %s1216_s29 = scalar_lea.hbm %s5273_s4, %s2279_s3 }
 0x443   :  { %s3452_s16 = scalar_lea.hbm %s1216_s29, 64  ;;  %p3455_p3 = scmp.lt.s32.totalorder %s1216_s29, %s5273_s4 }
 0x444   :  { %p3453_p6 = scmp.ne.s32.totalorder %s1216_s29, %s3452_s16  ;;  %p3456_p0 = scmp.lt.s32.totalorder %s4071_s28, %s3452_s16 }
 0x446   :  { %p3457_p11 = por %p3456_p0, %p3455_p3 }
 0x447   :  { %1208 = dma.hbm_to_vmem [thread:$0]  %s1203_s6, 64, %s5471_s24, [#allocation3 + $0xe], %s5373_s12, %s5373_s12, %s5372_s13 }
 0x448   :  { %p3458_p2 = pnand %p3457_p11, %p3453_p6 }
 0x44a   :  { %3461 = shalt.err (!%p3458_p2)  }
 0x44b   :  { %3473 = shalt.err (!%p4478_p9)  }
 0x44c   :  { %s5473_s14 = sld [smem:[#allocation171_spill]] }
 0x452   :  { %1221 = dma.hbm_to_vmem [thread:$0]  %s1216_s29, 64, %s5473_s14, [#allocation3 + $0xf], %s5373_s12, %s5373_s12, %s5372_s13 }
 0x453   :  { %3916 = dma.done.wait [#allocation3], 64 }
 0x454   :  { %3917 = vsyncadd [#allocation3], 4294967232 }
 0x455   :  { %3918 = dma.done.wait [#allocation3 + $0x1], 64 }
 0x456   :  { %3919 = vsyncadd [#allocation3 + $0x1], 4294967232 }
 0x457   :  { %3920 = dma.done.wait [#allocation3 + $0x2], 64 }
 0x458   :  { %3921 = vsyncadd [#allocation3 + $0x2], 4294967232 }
 0x459   :  { %3922 = dma.done.wait [#allocation3 + $0x3], 64 }
 0x45a   :  { %3923 = vsyncadd [#allocation3 + $0x3], 4294967232 }
 0x45b   :  { %3924 = dma.done.wait [#allocation3 + $0x4], 64 }
 0x45c   :  { %3925 = vsyncadd [#allocation3 + $0x4], 4294967232 }
 0x45d   :  { %3926 = dma.done.wait [#allocation3 + $0x5], 64 }
 0x45e   :  { %3927 = vsyncadd [#allocation3 + $0x5], 4294967232 }
 0x45f   :  { %3928 = dma.done.wait [#allocation3 + $0x6], 64 }
 0x460   :  { %3929 = vsyncadd [#allocation3 + $0x6], 4294967232 }
 0x461   :  { %3930 = dma.done.wait [#allocation3 + $0x7], 64 }
 0x462   :  { %3931 = vsyncadd [#allocation3 + $0x7], 4294967232  ;;  %s2280_s6 = sld [smem:[#allocation5 + $0x300]]  ;;  %v1238_v4 = vld [vmem:[#allocation2] sm:$0xff]  ;;  %v1239_v5 = vld [vmem:[#allocation2 + $0x8] sm:$0xff] }
 0x463   :  { %s2283_s19 = sld [smem:[#allocation5 + $0x301]]  ;;  %v1240_v6 = vld [vmem:[#allocation2 + $0x10] sm:$0xff]  ;;  %v1241_v8 = vld [vmem:[#allocation2 + $0x18] sm:$0xff]  ;;  %v1242_v9 = vrot.slane %v1238_v4, 4  ;;  %v1248_v10 = vrot.slane %v1239_v5, 4 }
 0x464   :  { %s5006_s20 = sld [smem:[#allocation5 + $0x302]]  ;;  %v1254_v11 = vrot.slane %v1240_v6, 4  ;;  %v1260_v12 = vrot.slane %v1241_v8, 4 }
 0x465   :  { %s5008_s17 = sld [smem:[#allocation5 + $0x303]]  ;;  %v1243_v13 = vadd.f32 %v1242_v9, %v1238_v4  ;;  %v1249_v15 = vadd.f32 %v1248_v10, %v1239_v5 }
 0x466   :  { %s5010_s9 = sld [smem:[#allocation5 + $0x304]]  ;;  %v1255_v16 = vadd.f32 %v1254_v11, %v1240_v6  ;;  %v1261_v17 = vadd.f32 %v1260_v12, %v1241_v8 }
 0x467   :  { %s5012_s26 = sld [smem:[#allocation5 + $0x305]] }
 0x468   :  { %s1305_s3 = sshrl.u32 %s2280_s6, 3  ;;  %s1306_s30 = sand.u32 7, %s2280_s6  }
 0x469   :  { %s2281_s22 = sshll.u32 %s1305_s3, 5  ;;  %s1318_s29 = sshrl.u32 %s2283_s19, 3 }
 0x46a   :  { %s1308_s16 = sadd.s32 %s2281_s22, %s1306_s30  ;;  %s1319_s15 = sand.u32 7, %s2283_s19  }
 0x46b   :  { %s2282_s18 = sshll.u32 %s1308_s16, 4  ;;  %s2284_s14 = sshll.u32 %s1318_s29, 5 }
 0x46c   :  { %s1310_s6 = scalar_lea.hbm %s5273_s4, %s2282_s18  ;;  %s1321_s2 = sadd.s32 %s2284_s14, %s1319_s15 }
 0x46d   :  { %s3474_s5 = scalar_lea.hbm %s1310_s6, 64  ;;  %p3477_p4 = scmp.lt.s32.totalorder %s1310_s6, %s5273_s4 }
 0x46e   :  { %p3475_p6 = scmp.ne.s32.totalorder %s1310_s6, %s3474_s5  ;;  %p3478_p3 = scmp.lt.s32.totalorder %s4071_s28, %s3474_s5 }
 0x470   :  { %p3479_p0 = por %p3478_p3, %p3477_p4 }
 0x472   :  { %p3480_p11 = pnand %p3479_p0, %p3475_p6 }
 0x474   :  { %3483 = shalt.err (!%p3480_p11)  }
 0x475   :  { %3495 = shalt.err (!%p4085_p5)  }
 0x476   :  { %1315 = dma.hbm_to_vmem [thread:$0]  %s1310_s6, 64, %s4049_s8, [#allocation3], %s5373_s12, %s5373_s12, %s5372_s13  ;;  %v1244_v18 = vrot.slane %v1243_v13, 2  ;;  %v1250_v19 = vrot.slane %v1249_v15, 2  ;;  %v1256_v20 = vrot.slane %v1255_v16, 2  ;;  %v1262_v21 = vrot.slane %v1261_v17, 2 }
 0x477   :  { %s2285_s23 = sshll.u32 %s1321_s2, 4  ;;  %s1331_s24 = sshrl.u32 %s5006_s20, 3 }
 0x478   :  { %s1323_s14 = scalar_lea.hbm %s5273_s4, %s2285_s23  ;;  %s1332_s7 = sand.u32 7, %s5006_s20   ;;  %v1245_v22 = vadd.f32 %v1244_v18, %v1243_v13  ;;  %v1251_v23 = vadd.f32 %v1250_v19, %v1249_v15  ;;  %v1257_v24 = vadd.f32 %v1256_v20, %v1255_v16 }
 0x479   :  { %s3496_s19 = scalar_lea.hbm %s1323_s14, 64  ;;  %p3499_p2 = scmp.lt.s32.totalorder %s1323_s14, %s5273_s4 }
 0x47a   :  { %p3497_p5 = scmp.ne.s32.totalorder %s1323_s14, %s3496_s19  ;;  %p3500_p6 = scmp.lt.s32.totalorder %s4071_s28, %s3496_s19 }
 0x47c   :  { %p3501_p4 = por %p3500_p6, %p3499_p2 }
 0x47e   :  { %p3502_p3 = pnand %p3501_p4, %p3497_p5 }
 0x480   :  { %3505 = shalt.err (!%p3502_p3)  }
 0x481   :  { %3517 = shalt.err (!%p4111_p1)  }
 0x482   :  { %s5474_s8 = sld [smem:[#allocation144_spill]]  ;;  %v1263_v25 = vadd.f32 %v1262_v21, %v1261_v17  ;;  %s2287_s2 = sshll.u32 %s1331_s24, 5  ;;  %v1246_v26 = vrot.slane %v1245_v22, 1  ;;  %v1252_v27 = vrot.slane %v1251_v23, 1  ;;  %v1258_v28 = vrot.slane %v1257_v24, 1 }
 0x483   :  { %s1344_s20 = sshrl.u32 %s5008_s17, 3  ;;  %s1334_s29 = sadd.s32 %s2287_s2, %s1332_s7 }
 0x484   :  { %s1345_s16 = sand.u32 7, %s5008_s17   ;;  %v1264_v29 = vrot.slane %v1263_v25, 1  ;;  %s2288_s15 = sshll.u32 %s1334_s29, 4  ;;  %v1247_v30 = vadd.f32 %v1246_v26, %v1245_v22  ;;  %v1253_v31 = vadd.f32 %v1252_v27, %v1251_v23  ;;  %v1259_v32 = vadd.f32 %v1258_v28, %v1257_v24 }
 0x485   :  { %s2290_s21 = sshll.u32 %s1344_s20, 5  ;;  %s1336_s3 = scalar_lea.hbm %s5273_s4, %s2288_s15 }
 0x486   :  { %s1347_s23 = sadd.s32 %s2290_s21, %s1345_s16  ;;  %v1265_v33 = vadd.f32 %v1264_v29, %v1263_v25  ;;  %s3518_s24 = scalar_lea.hbm %s1336_s3, 64 }
 0x487   :  { %p3519_p1 = scmp.ne.s32.totalorder %s1336_s3, %s3518_s24  ;;  %p3521_p0 = scmp.lt.s32.totalorder %s1336_s3, %s5273_s4 }
 0x488   :  { %1328 = dma.hbm_to_vmem [thread:$0]  %s1323_s14, 64, %s5474_s8, [#allocation3 + $0x1], %s5373_s12, %s5373_s12, %s5372_s13 }
 0x489   :  { %p3522_p11 = scmp.lt.s32.totalorder %s4071_s28, %s3518_s24 }
 0x48b   :  { %p3523_p5 = por %p3522_p11, %p3521_p0 }
 0x48d   :  { %p3524_p2 = pnand %p3523_p5, %p3519_p1 }
 0x48f   :  { %3527 = shalt.err (!%p3524_p2)  }
 0x490   :  { %3539 = shalt.err (!%p4135_p12)  }
 0x491   :  { %s5476_s14 = sld [smem:[#allocation145_spill]]  ;;  %v1266_v34 = vmul.f32 0.125, %v1247_v30  ;;  %v1267_v35 = vmul.f32 0.125, %v1253_v31  ;;  %v1268_v36 = vmul.f32 0.125, %v1259_v32  ;;  %s2291_s7 = sshll.u32 %s1347_s23, 4  ;;  %v1269_v37 = vmul.f32 0.125, %v1265_v33 }
 0x492   :  { %s1357_s19 = sshrl.u32 %s5010_s9, 3  ;;  %s1349_s8 = scalar_lea.hbm %s5273_s4, %s2291_s7 }
 0x493   :  { %s1358_s2 = sand.u32 7, %s5010_s9   ;;  %v1274_v38 = vcombine.low %v1266_v34, %v1267_v35  ;;  %s3540_s20 = scalar_lea.hbm %s1349_s8, 64 }
 0x494   :  { %p3541_p12 = scmp.ne.s32.totalorder %s1349_s8, %s3540_s20  ;;  %p3543_p6 = scmp.lt.s32.totalorder %s1349_s8, %s5273_s4 }
 0x495   :  { %p3544_p4 = scmp.lt.s32.totalorder %s4071_s28, %s3540_s20 }
 0x497   :  { %1341 = dma.hbm_to_vmem [thread:$0]  %s1336_s3, 64, %s5476_s14, [#allocation3 + $0x2], %s5373_s12, %s5373_s12, %s5372_s13 }
 0x498   :  { %p3545_p3 = por %p3544_p4, %p3543_p6 }
 0x49a   :  { %p3546_p1 = pnand %p3545_p3, %p3541_p12 }
 0x49c   :  { %3549 = shalt.err (!%p3546_p1)  }
 0x49d   :  { %3561 = shalt.err (!%p4159_p10)  }
 0x49e   :  { %s5478_s21 = sld [smem:[#allocation147_spill]]  ;;  %v1275_v39 = vcombine.low %v1268_v36, %v1269_v37  ;;  %s2293_s9 = sshll.u32 %s1357_s19, 5  ;;  %v1282_v40 = vrot.slane %v1274_v38, %v4550_v7 }
 0x49f   :  { %s1370_s18 = sshrl.u32 %s5012_s26, 3  ;;  %s1360_s6 = sadd.s32 %s2293_s9, %s1358_s2 }
 0x4a0   :  { %s1371_s3 = sand.u32 7, %s5012_s26   ;;  %v1289_v41 = vrot.slane %v1275_v39, %v4550_v7  ;;  %s2294_s23 = sshll.u32 %s1360_s6, 4 }
 0x4a1   :  { %s2296_s24 = sshll.u32 %s1370_s18, 5  ;;  %s1362_s17 = scalar_lea.hbm %s5273_s4, %s2294_s23 }
 0x4a2   :  { %s1373_s14 = sadd.s32 %s2296_s24, %s1371_s3  ;;  %v1290_v42 = vcombine.low %v1282_v40, %v1289_v41  ;;  %s3562_s7 = scalar_lea.hbm %s1362_s17, 64 }
 0x4a3   :  { %p3563_p10 = scmp.ne.s32.totalorder %s1362_s17, %s3562_s7  ;;  %p3565_p0 = scmp.lt.s32.totalorder %s1362_s17, %s5273_s4 }
 0x4a4   :  { %1354 = dma.hbm_to_vmem [thread:$0]  %s1349_s8, 64, %s5478_s21, [#allocation3 + $0x3], %s5373_s12, %s5373_s12, %s5372_s13 }
 0x4a5   :  { %p3566_p11 = scmp.lt.s32.totalorder %s4071_s28, %s3562_s7 }
 0x4a7   :  { %p3567_p5 = por %p3566_p11, %p3565_p0 }
 0x4a9   :  { %p3568_p2 = pnand %p3567_p5, %p3563_p10 }
 0x4ab   :  { %3571 = shalt.err (!%p3568_p2)  }
 0x4ac   :  { %3583 = shalt.err (!%p5411_p7)  }
 0x4ad   :  { %s5480_s19 = sld [smem:[#allocation149_spill]]  ;;  %s2297_s8 = sshll.u32 %s1373_s14, 4  ;;  %v1297_v43 = vrot.slane %v1290_v42, %v4550_v7 }
 0x4ae   :  { %s2298_s2 = sld [smem:[#allocation5 + $0x306]]  ;;  %s1375_s16 = scalar_lea.hbm %s5273_s4, %s2297_s8 }
 0x4af   :  { %s2301_s15 = sld [smem:[#allocation5 + $0x307]]  ;;  %s3584_s21 = scalar_lea.hbm %s1375_s16, 64 }
 0x4b0   :  { %p3585_p12 = scmp.ne.s32.totalorder %s1375_s16, %s3584_s21  ;;  %p3587_p7 = scmp.lt.s32.totalorder %s1375_s16, %s5273_s4 }
 0x4b1   :  { %p3588_p6 = scmp.lt.s32.totalorder %s4071_s28, %s3584_s21 }
 0x4b3   :  { %1367 = dma.hbm_to_vmem [thread:$0]  %s1362_s17, 64, %s5480_s19, [#allocation3 + $0x4], %s5373_s12, %s5373_s12, %s5372_s13 }
 0x4b4   :  { %p3589_p4 = por %p3588_p6, %p3587_p7 }
 0x4b6   :  { %p3590_p3 = pnand %p3589_p4, %p3585_p12 }
 0x4b8   :  { %3593 = shalt.err (!%p3590_p3)  }
 0x4b9   :  { %s5481_s6 = sld [smem:[#allocation152_spill]] }
 0x4bf   :  { %p5482_p1 = scmp.ne.s32.totalorder %s5481_s6, 0 }
 0x4c1   :  { %3605 = shalt.err (!%p5482_p1)  }
 0x4c2   :  { %s5483_s3 = sld [smem:[#allocation150_spill]]  ;;  %1300 = vst.msk [vmem:[#allocation11 + $0x24] ss:$8 sm:$0xf] %vm4585_vm1, %v1297_v43  ;;  %s1383_s23 = sshrl.u32 %s2298_s2, 3 }
 0x4c3   :  { %s1384_s24 = sand.u32 7, %s2298_s2   ;;  %s2299_s5 = sshll.u32 %s1383_s23, 5 }
 0x4c4   :  { %s1396_s10 = sshrl.u32 %s2301_s15, 3  ;;  %s1386_s17 = sadd.s32 %s2299_s5, %s1384_s24 }
 0x4c5   :  { %s1397_s14 = sand.u32 7, %s2301_s15   ;;  %s2300_s7 = sshll.u32 %s1386_s17, 4 }
 0x4c6   :  { %s2302_s30 = sshll.u32 %s1396_s10, 5  ;;  %s1388_s19 = scalar_lea.hbm %s5273_s4, %s2300_s7 }
 0x4c7   :  { %s1399_s8 = sadd.s32 %s2302_s30, %s1397_s14  ;;  %s3606_s20 = scalar_lea.hbm %s1388_s19, 64 }
 0x4c8   :  { %1380 = dma.hbm_to_vmem [thread:$0]  %s1375_s16, 64, %s5483_s3, [#allocation3 + $0x5], %s5373_s12, %s5373_s12, %s5372_s13 }
 0x4c9   :  { %p3607_p10 = scmp.ne.s32.totalorder %s1388_s19, %s3606_s20  ;;  %p3609_p0 = scmp.lt.s32.totalorder %s1388_s19, %s5273_s4 }
 0x4ca   :  { %p3610_p11 = scmp.lt.s32.totalorder %s4071_s28, %s3606_s20 }
 0x4cc   :  { %p3611_p5 = por %p3610_p11, %p3609_p0 }
 0x4ce   :  { %p3612_p2 = pnand %p3611_p5, %p3607_p10 }
 0x4d0   :  { %3615 = shalt.err (!%p3612_p2)  }
 0x4d1   :  { %3627 = shalt.err (!%p5452_p8)  }
 0x4d2   :  { %s5485_s15 = sld [smem:[#allocation153_spill]]  ;;  %s2303_s21 = sshll.u32 %s1399_s8, 4 }
 0x4d3   :  { %s1401_s6 = scalar_lea.hbm %s5273_s4, %s2303_s21 }
 0x4d4   :  { %s3628_s3 = scalar_lea.hbm %s1401_s6, 64  ;;  %p3631_p7 = scmp.lt.s32.totalorder %s1401_s6, %s5273_s4 }
 0x4d5   :  { %p3629_p12 = scmp.ne.s32.totalorder %s1401_s6, %s3628_s3  ;;  %p3632_p6 = scmp.lt.s32.totalorder %s4071_s28, %s3628_s3 }
 0x4d7   :  { %p3633_p4 = por %p3632_p6, %p3631_p7 }
 0x4d8   :  { %1393 = dma.hbm_to_vmem [thread:$0]  %s1388_s19, 64, %s5485_s15, [#allocation3 + $0x6], %s5373_s12, %s5373_s12, %s5372_s13 }
 0x4d9   :  { %p3634_p8 = pnand %p3633_p4, %p3629_p12 }
 0x4db   :  { %3637 = shalt.err (!%p3634_p8)  }
 0x4dc   :  { %s5486_s5 = sld [smem:[#allocation156_spill]] }
 0x4e2   :  { %p5487_p3 = scmp.ne.s32.totalorder %s5486_s5, 0 }
 0x4e4   :  { %3649 = shalt.err (!%p5487_p3)  }
 0x4e5   :  { %s5488_s10 = sld [smem:[#allocation155_spill]] }
 0x4eb   :  { %1406 = dma.hbm_to_vmem [thread:$0]  %s1401_s6, 64, %s5488_s10, [#allocation3 + $0x7], %s5373_s12, %s5373_s12, %s5372_s13 }
 0x4ec   :  { %3932 = dma.done.wait [#allocation3 + $0x8], 64 }
 0x4ed   :  { %3933 = vsyncadd [#allocation3 + $0x8], 4294967232 }
 0x4ee   :  { %3934 = dma.done.wait [#allocation3 + $0x9], 64 }
 0x4ef   :  { %3935 = vsyncadd [#allocation3 + $0x9], 4294967232 }
 0x4f0   :  { %3936 = dma.done.wait [#allocation3 + $0xa], 64 }
 0x4f1   :  { %3937 = vsyncadd [#allocation3 + $0xa], 4294967232 }
 0x4f2   :  { %3938 = dma.done.wait [#allocation3 + $0xb], 64 }
 0x4f3   :  { %3939 = vsyncadd [#allocation3 + $0xb], 4294967232 }
 0x4f4   :  { %3940 = dma.done.wait [#allocation3 + $0xc], 64 }
 0x4f5   :  { %3941 = vsyncadd [#allocation3 + $0xc], 4294967232 }
 0x4f6   :  { %3942 = dma.done.wait [#allocation3 + $0xd], 64 }
 0x4f7   :  { %3943 = vsyncadd [#allocation3 + $0xd], 4294967232 }
 0x4f8   :  { %3944 = dma.done.wait [#allocation3 + $0xe], 64 }
 0x4f9   :  { %3945 = vsyncadd [#allocation3 + $0xe], 4294967232 }
 0x4fa   :  { %3946 = dma.done.wait [#allocation3 + $0xf], 64 }
 0x4fb   :  { %3947 = vsyncadd [#allocation3 + $0xf], 4294967232  ;;  %s2304_s17 = sld [smem:[#allocation5 + $0x380]]  ;;  %v1423_v44 = vld [vmem:[#allocation2 + $0x20] sm:$0xff]  ;;  %v1424_v45 = vld [vmem:[#allocation2 + $0x28] sm:$0xff] }
 0x4fc   :  { %s2307_s14 = sld [smem:[#allocation5 + $0x381]]  ;;  %v1425_v46 = vld [vmem:[#allocation2 + $0x30] sm:$0xff]  ;;  %v1426_v47 = vld [vmem:[#allocation2 + $0x38] sm:$0xff]  ;;  %v1427_v48 = vrot.slane %v1423_v44, 4  ;;  %v1433_v49 = vrot.slane %v1424_v45, 4 }
 0x4fd   :  { %s5131_s7 = sld [smem:[#allocation5 + $0x382]]  ;;  %v1439_v50 = vrot.slane %v1425_v46, 4  ;;  %v1445_v51 = vrot.slane %v1426_v47, 4 }
 0x4fe   :  { %s5133_s30 = sld [smem:[#allocation5 + $0x383]]  ;;  %v1428_v52 = vadd.f32 %v1427_v48, %v1423_v44  ;;  %v1434_v53 = vadd.f32 %v1433_v49, %v1424_v45 }
 0x4ff   :  { %s5135_s22 = sld [smem:[#allocation5 + $0x384]]  ;;  %v1440_v54 = vadd.f32 %v1439_v50, %v1425_v46  ;;  %v1446_v55 = vadd.f32 %v1445_v51, %v1426_v47 }
 0x500   :  { %s5137_s26 = sld [smem:[#allocation5 + $0x385]] }
 0x501   :  { %s1490_s19 = sshrl.u32 %s2304_s17, 3  ;;  %s1491_s8 = sand.u32 7, %s2304_s17  }
 0x502   :  { %s2305_s20 = sshll.u32 %s1490_s19, 5  ;;  %s1503_s29 = sshrl.u32 %s2307_s14, 3 }
 0x503   :  { %s1493_s16 = sadd.s32 %s2305_s20, %s1491_s8  ;;  %s1504_s2 = sand.u32 7, %s2307_s14  }
 0x504   :  { %s2306_s15 = sshll.u32 %s1493_s16, 4  ;;  %s2308_s21 = sshll.u32 %s1503_s29, 5 }
 0x505   :  { %s1495_s6 = scalar_lea.hbm %s5273_s4, %s2306_s15  ;;  %s1506_s3 = sadd.s32 %s2308_s21, %s1504_s2 }
 0x506   :  { %s3650_s23 = scalar_lea.hbm %s1495_s6, 64  ;;  %p3653_p10 = scmp.lt.s32.totalorder %s1495_s6, %s5273_s4 }
 0x507   :  { %p3651_p1 = scmp.ne.s32.totalorder %s1495_s6, %s3650_s23  ;;  %p3654_p0 = scmp.lt.s32.totalorder %s4071_s28, %s3650_s23 }
 0x509   :  { %p3655_p11 = por %p3654_p0, %p3653_p10 }
 0x50b   :  { %p3656_p5 = pnand %p3655_p11, %p3651_p1 }
 0x50d   :  { %3659 = shalt.err (!%p3656_p5)  }
 0x50e   :  { %p5489_p2 = scmp.ne.s32.totalorder %s5424_s25, 0 }
 0x510   :  { %3671 = shalt.err (!%p5489_p2)  }
 0x511   :  { %1500 = dma.hbm_to_vmem [thread:$0]  %s1495_s6, 64, %s5426_s27, [#allocation3 + $0x8], %s5373_s12, %s5373_s12, %s5372_s13  ;;  %v1429_v56 = vrot.slane %v1428_v52, 2  ;;  %v1435_v57 = vrot.slane %v1434_v53, 2  ;;  %v1441_v58 = vrot.slane %v1440_v54, 2  ;;  %v1447_v59 = vrot.slane %v1446_v55, 2 }
 0x512   :  { %s2309_s10 = sshll.u32 %s1506_s3, 4  ;;  %s1516_s17 = sshrl.u32 %s5131_s7, 3 }
 0x513   :  { %s1508_s8 = scalar_lea.hbm %s5273_s4, %s2309_s10  ;;  %s1517_s25 = sand.u32 7, %s5131_s7   ;;  %v1430_v60 = vadd.f32 %v1429_v56, %v1428_v52  ;;  %v1436_v61 = vadd.f32 %v1435_v57, %v1434_v53  ;;  %v1442_v62 = vadd.f32 %v1441_v58, %v1440_v54 }
 0x514   :  { %s3672_s20 = scalar_lea.hbm %s1508_s8, 64  ;;  %p3675_p7 = scmp.lt.s32.totalorder %s1508_s8, %s5273_s4 }
 0x515   :  { %p3673_p12 = scmp.ne.s32.totalorder %s1508_s8, %s3672_s20  ;;  %p3676_p6 = scmp.lt.s32.totalorder %s4071_s28, %s3672_s20 }
 0x517   :  { %p3677_p4 = por %p3676_p6, %p3675_p7 }
 0x519   :  { %p3678_p8 = pnand %p3677_p4, %p3673_p12 }
 0x51b   :  { %3681 = shalt.err (!%p3678_p8)  }
 0x51c   :  { %p5490_p3 = scmp.ne.s32.totalorder %s5458_s0, 0 }
 0x51e   :  { %3693 = shalt.err (!%p5490_p3)  }
 0x51f   :  { %1513 = dma.hbm_to_vmem [thread:$0]  %s1508_s8, 64, %s5460_s11, [#allocation3 + $0x9], %s5373_s12, %s5373_s12, %s5372_s13  ;;  %v1448_v63 = vadd.f32 %v1447_v59, %v1446_v55  ;;  %v1431_v0 = vrot.slane %v1430_v60, 1  ;;  %v1437_v1 = vrot.slane %v1436_v61, 1  ;;  %v1443_v2 = vrot.slane %v1442_v62, 1 }
 0x520   :  { %s2311_s27 = sshll.u32 %s1516_s17, 5  ;;  %s1529_s7 = sshrl.u32 %s5133_s30, 3 }
 0x521   :  { %s1519_s2 = sadd.s32 %s2311_s27, %s1517_s25  ;;  %s1530_s15 = sand.u32 7, %s5133_s30   ;;  %v1449_v3 = vrot.slane %v1448_v63, 1  ;;  %v1432_v4 = vadd.f32 %v1431_v0, %v1430_v60  ;;  %v1438_v5 = vadd.f32 %v1437_v1, %v1436_v61  ;;  %v1444_v6 = vadd.f32 %v1443_v2, %v1442_v62 }
 0x522   :  { %s2312_s21 = sshll.u32 %s1519_s2, 4  ;;  %s2314_s0 = sshll.u32 %s1529_s7, 5 }
 0x523   :  { %s1521_s6 = scalar_lea.hbm %s5273_s4, %s2312_s21  ;;  %s1532_s11 = sadd.s32 %s2314_s0, %s1530_s15  ;;  %v1450_v8 = vadd.f32 %v1449_v3, %v1448_v63 }
 0x524   :  { %s3694_s3 = scalar_lea.hbm %s1521_s6, 64  ;;  %p3697_p10 = scmp.lt.s32.totalorder %s1521_s6, %s5273_s4 }
 0x525   :  { %p3695_p1 = scmp.ne.s32.totalorder %s1521_s6, %s3694_s3  ;;  %p3698_p0 = scmp.lt.s32.totalorder %s4071_s28, %s3694_s3 }
 0x527   :  { %p3699_p11 = por %p3698_p0, %p3697_p10 }
 0x529   :  { %p3700_p5 = pnand %p3699_p11, %p3695_p1 }
 0x52b   :  { %3703 = shalt.err (!%p3700_p5)  }
 0x52c   :  { %p5491_p2 = scmp.ne.s32.totalorder %s5430_s1, 0 }
 0x52e   :  { %3715 = shalt.err (!%p5491_p2)  }
 0x52f   :  { %s5492_s30 = sld [smem:[#allocation161_spill]]  ;;  %v1451_v9 = vmul.f32 0.125, %v1432_v4  ;;  %v1452_v10 = vmul.f32 0.125, %v1438_v5  ;;  %v1453_v11 = vmul.f32 0.125, %v1444_v6  ;;  %s2315_s5 = sshll.u32 %s1532_s11, 4  ;;  %v1454_v12 = vmul.f32 0.125, %v1450_v8 }
 0x530   :  { %s1542_s10 = sshrl.u32 %s5135_s22, 3  ;;  %s1534_s19 = scalar_lea.hbm %s5273_s4, %s2315_s5 }
 0x531   :  { %s1543_s1 = sand.u32 7, %s5135_s22   ;;  %v1459_v13 = vcombine.low %v1451_v9, %v1452_v10  ;;  %s3716_s8 = scalar_lea.hbm %s1534_s19, 64 }
 0x532   :  { %p3717_p12 = scmp.ne.s32.totalorder %s1534_s19, %s3716_s8  ;;  %p3719_p7 = scmp.lt.s32.totalorder %s1534_s19, %s5273_s4 }
 0x533   :  { %p3720_p6 = scmp.lt.s32.totalorder %s4071_s28, %s3716_s8 }
 0x535   :  { %1526 = dma.hbm_to_vmem [thread:$0]  %s1521_s6, 64, %s5492_s30, [#allocation3 + $0xa], %s5373_s12, %s5373_s12, %s5372_s13 }
 0x536   :  { %p3721_p4 = por %p3720_p6, %p3719_p7 }
 0x538   :  { %p3722_p8 = pnand %p3721_p4, %p3717_p12 }
 0x53a   :  { %3725 = shalt.err (!%p3722_p8)  }
 0x53b   :  { %s5493_s29 = sld [smem:[#allocation164_spill]] }
 0x541   :  { %p5494_p3 = scmp.ne.s32.totalorder %s5493_s29, 0 }
 0x543   :  { %3737 = shalt.err (!%p5494_p3)  }
 0x544   :  { %s5495_s16 = sld [smem:[#allocation163_spill]]  ;;  %v1460_v15 = vcombine.low %v1453_v11, %v1454_v12  ;;  %s2317_s22 = sshll.u32 %s1542_s10, 5  ;;  %v1467_v16 = vrot.slane %v1459_v13, %v4550_v7 }
 0x545   :  { %s1555_s27 = sshrl.u32 %s5137_s26, 3  ;;  %s1545_s7 = sadd.s32 %s2317_s22, %s1543_s1 }
 0x546   :  { %s1556_s2 = sand.u32 7, %s5137_s26   ;;  %v1474_v17 = vrot.slane %v1460_v15, %v4550_v7  ;;  %s2318_s15 = sshll.u32 %s1545_s7, 4 }
 0x547   :  { %s2320_s21 = sshll.u32 %s1555_s27, 5  ;;  %s1547_s18 = scalar_lea.hbm %s5273_s4, %s2318_s15 }
 0x548   :  { %s1558_s6 = sadd.s32 %s2320_s21, %s1556_s2  ;;  %v1475_v18 = vcombine.low %v1467_v16, %v1474_v17  ;;  %s3738_s11 = scalar_lea.hbm %s1547_s18, 64 }
 0x549   :  { %p3739_p1 = scmp.ne.s32.totalorder %s1547_s18, %s3738_s11  ;;  %p3741_p10 = scmp.lt.s32.totalorder %s1547_s18, %s5273_s4 }
 0x54a   :  { %1539 = dma.hbm_to_vmem [thread:$0]  %s1534_s19, 64, %s5495_s16, [#allocation3 + $0xb], %s5373_s12, %s5373_s12, %s5372_s13 }
 0x54b   :  { %p3742_p0 = scmp.lt.s32.totalorder %s4071_s28, %s3738_s11 }
 0x54d   :  { %p3743_p11 = por %p3742_p0, %p3741_p10 }
 0x54f   :  { %p3744_p5 = pnand %p3743_p11, %p3739_p1 }
 0x551   :  { %3747 = shalt.err (!%p3744_p5)  }
 0x552   :  { %s5496_s26 = sld [smem:[#allocation166_spill]] }
 0x558   :  { %p5497_p2 = scmp.ne.s32.totalorder %s5496_s26, 0 }
 0x55a   :  { %3759 = shalt.err (!%p5497_p2)  }
 0x55b   :  { %s5498_s24 = sld [smem:[#allocation165_spill]]  ;;  %s2321_s30 = sshll.u32 %s1558_s6, 4  ;;  %v1482_v19 = vrot.slane %v1475_v18, %v4550_v7 }
 0x55c   :  { %s2322_s5 = sld [smem:[#allocation5 + $0x386]]  ;;  %s1560_s14 = scalar_lea.hbm %s5273_s4, %s2321_s30 }
 0x55d   :  { %s2325_s19 = sld [smem:[#allocation5 + $0x387]]  ;;  %s3760_s1 = scalar_lea.hbm %s1560_s14, 64 }
 0x55e   :  { %p3761_p12 = scmp.ne.s32.totalorder %s1560_s14, %s3760_s1  ;;  %p3763_p7 = scmp.lt.s32.totalorder %s1560_s14, %s5273_s4 }
 0x55f   :  { %p3764_p6 = scmp.lt.s32.totalorder %s4071_s28, %s3760_s1 }
 0x561   :  { %1552 = dma.hbm_to_vmem [thread:$0]  %s1547_s18, 64, %s5498_s24, [#allocation3 + $0xc], %s5373_s12, %s5373_s12, %s5372_s13 }
 0x562   :  { %p3765_p4 = por %p3764_p6, %p3763_p7 }
 0x564   :  { %p3766_p8 = pnand %p3765_p4, %p3761_p12 }
 0x566   :  { %3769 = shalt.err (!%p3766_p8)  }
 0x567   :  { %s5499_s20 = sld [smem:[#allocation168_spill]] }
 0x56d   :  { %p5500_p3 = scmp.ne.s32.totalorder %s5499_s20, 0 }
 0x56f   :  { %3781 = shalt.err (!%p5500_p3)  }
 0x570   :  { %s5501_s29 = sld [smem:[#allocation167_spill]]  ;;  %1485 = vst.msk [vmem:[#allocation11 + $0x25] ss:$8 sm:$0xf] %vm4585_vm1, %v1482_v19  ;;  %s1568_s16 = sshrl.u32 %s2322_s5, 3 }
 0x571   :  { %s1569_s22 = sand.u32 7, %s2322_s5   ;;  %s2323_s27 = sshll.u32 %s1568_s16, 5 }
 0x572   :  { %s1581_s7 = sshrl.u32 %s2325_s19, 3  ;;  %s1571_s2 = sadd.s32 %s2323_s27, %s1569_s22 }
 0x573   :  { %s1582_s15 = sand.u32 7, %s2325_s19   ;;  %s2324_s21 = sshll.u32 %s1571_s2, 4 }
 0x574   :  { %s2326_s0 = sshll.u32 %s1581_s7, 5  ;;  %s1573_s6 = scalar_lea.hbm %s5273_s4, %s2324_s21 }
 0x575   :  { %s1584_s11 = sadd.s32 %s2326_s0, %s1582_s15  ;;  %s3782_s3 = scalar_lea.hbm %s1573_s6, 64 }
 0x576   :  { %1565 = dma.hbm_to_vmem [thread:$0]  %s1560_s14, 64, %s5501_s29, [#allocation3 + $0xd], %s5373_s12, %s5373_s12, %s5372_s13 }
 0x577   :  { %p3783_p1 = scmp.ne.s32.totalorder %s1573_s6, %s3782_s3  ;;  %p3785_p10 = scmp.lt.s32.totalorder %s1573_s6, %s5273_s4 }
 0x578   :  { %p3786_p0 = scmp.lt.s32.totalorder %s4071_s28, %s3782_s3 }
 0x57a   :  { %p3787_p11 = por %p3786_p0, %p3785_p10 }
 0x57c   :  { %p3788_p5 = pnand %p3787_p11, %p3783_p1 }
 0x57e   :  { %3791 = shalt.err (!%p3788_p5)  }
 0x57f   :  { %3803 = shalt.err (!%p5438_p13)  }
 0x580   :  { %s5503_s30 = sld [smem:[#allocation169_spill]]  ;;  %s2327_s5 = sshll.u32 %s1584_s11, 4 }
 0x581   :  { %s1586_s14 = scalar_lea.hbm %s5273_s4, %s2327_s5 }
 0x582   :  { %s3804_s19 = scalar_lea.hbm %s1586_s14, 64  ;;  %p3807_p12 = scmp.lt.s32.totalorder %s1586_s14, %s5273_s4 }
 0x583   :  { %p3805_p2 = scmp.ne.s32.totalorder %s1586_s14, %s3804_s19  ;;  %p3808_p7 = scmp.lt.s32.totalorder %s4071_s28, %s3804_s19 }
 0x585   :  { %p3809_p6 = por %p3808_p7, %p3807_p12 }
 0x586   :  { %1578 = dma.hbm_to_vmem [thread:$0]  %s1573_s6, 64, %s5503_s30, [#allocation3 + $0xe], %s5373_s12, %s5373_s12, %s5372_s13 }
 0x587   :  { %p3810_p13 = pnand %p3809_p6, %p3805_p2 }
 0x589   :  { %3813 = shalt.err (!%p3810_p13)  }
 0x58a   :  { %3825 = shalt.err (!%p4478_p9)  }
 0x58b   :  { %s5505_s20 = sld [smem:[#allocation171_spill]] }
 0x591   :  { %1591 = dma.hbm_to_vmem [thread:$0]  %s1586_s14, 64, %s5505_s20, [#allocation3 + $0xf], %s5373_s12, %s5373_s12, %s5372_s13 }
 0x592   :  { %3948 = dma.done.wait [#allocation3], 64 }
 0x593   :  { %3949 = vsyncadd [#allocation3], 4294967232 }
 0x594   :  { %3950 = dma.done.wait [#allocation3 + $0x1], 64 }
 0x595   :  { %3951 = vsyncadd [#allocation3 + $0x1], 4294967232 }
 0x596   :  { %3952 = dma.done.wait [#allocation3 + $0x2], 64 }
 0x597   :  { %3953 = vsyncadd [#allocation3 + $0x2], 4294967232 }
 0x598   :  { %3954 = dma.done.wait [#allocation3 + $0x3], 64 }
 0x599   :  { %3955 = vsyncadd [#allocation3 + $0x3], 4294967232 }
 0x59a   :  { %3956 = dma.done.wait [#allocation3 + $0x4], 64 }
 0x59b   :  { %3957 = vsyncadd [#allocation3 + $0x4], 4294967232 }
 0x59c   :  { %3958 = dma.done.wait [#allocation3 + $0x5], 64 }
 0x59d   :  { %3959 = vsyncadd [#allocation3 + $0x5], 4294967232 }
 0x59e   :  { %3960 = dma.done.wait [#allocation3 + $0x6], 64 }
 0x59f   :  { %3961 = vsyncadd [#allocation3 + $0x6], 4294967232 }
 0x5a0   :  { %3962 = dma.done.wait [#allocation3 + $0x7], 64 }
 0x5a1   :  { %3963 = vsyncadd [#allocation3 + $0x7], 4294967232  ;;  %v1608_v20 = vld [vmem:[#allocation2] sm:$0xff]  ;;  %v1609_v21 = vld [vmem:[#allocation2 + $0x8] sm:$0xff] }
 0x5a2   :  { %v1610_v22 = vld [vmem:[#allocation2 + $0x10] sm:$0xff]  ;;  %v1611_v23 = vld [vmem:[#allocation2 + $0x18] sm:$0xff]  ;;  %v1612_v24 = vrot.slane %v1608_v20, 4  ;;  %v1618_v25 = vrot.slane %v1609_v21, 4 }
 0x5a3   :  { %v1624_v26 = vrot.slane %v1610_v22, 4  ;;  %v1630_v27 = vrot.slane %v1611_v23, 4 }
 0x5a4   :  { %v1613_v28 = vadd.f32 %v1612_v24, %v1608_v20  ;;  %v1619_v29 = vadd.f32 %v1618_v25, %v1609_v21 }
 0x5a5   :  { %v1625_v30 = vadd.f32 %v1624_v26, %v1610_v22  ;;  %v1631_v31 = vadd.f32 %v1630_v27, %v1611_v23 }
 0x5a6   :  { %v1614_v32 = vrot.slane %v1613_v28, 2  ;;  %v1620_v33 = vrot.slane %v1619_v29, 2 }
 0x5a7   :  { %v1626_v34 = vrot.slane %v1625_v30, 2  ;;  %v1632_v35 = vrot.slane %v1631_v31, 2 }
 0x5a8   :  { %v1615_v36 = vadd.f32 %v1614_v32, %v1613_v28  ;;  %v1621_v37 = vadd.f32 %v1620_v33, %v1619_v29 }
 0x5a9   :  { %v1627_v38 = vadd.f32 %v1626_v34, %v1625_v30  ;;  %v1633_v39 = vadd.f32 %v1632_v35, %v1631_v31 }
 0x5aa   :  { %v1616_v40 = vrot.slane %v1615_v36, 1  ;;  %v1622_v41 = vrot.slane %v1621_v37, 1 }
 0x5ab   :  { %v1628_v42 = vrot.slane %v1627_v38, 1  ;;  %v1634_v43 = vrot.slane %v1633_v39, 1 }
 0x5ac   :  { %v1617_v44 = vadd.f32 %v1616_v40, %v1615_v36  ;;  %v1623_v45 = vadd.f32 %v1622_v41, %v1621_v37 }
 0x5ad   :  { %v1629_v46 = vadd.f32 %v1628_v42, %v1627_v38  ;;  %v1635_v47 = vadd.f32 %v1634_v43, %v1633_v39 }
 0x5ae   :  { %v1636_v48 = vmul.f32 0.125, %v1617_v44  ;;  %v1637_v49 = vmul.f32 0.125, %v1623_v45 }
 0x5af   :  { %v1638_v50 = vmul.f32 0.125, %v1629_v46  ;;  %v1639_v51 = vmul.f32 0.125, %v1635_v47 }
 0x5b0   :  { %v1644_v52 = vcombine.low %v1636_v48, %v1637_v49 }
 0x5b1   :  { %v1645_v53 = vcombine.low %v1638_v50, %v1639_v51 }
 0x5b2   :  { %v1652_v54 = vrot.slane %v1644_v52, %v4550_v7 }
 0x5b3   :  { %v1659_v55 = vrot.slane %v1645_v53, %v4550_v7 }
 0x5b5   :  { %v1660_v56 = vcombine.low %v1652_v54, %v1659_v55 }
 0x5b7   :  { %v1667_v57 = vrot.slane %v1660_v56, %v4550_v7 }
 0x5b9   :  { %1670 = vst.msk [vmem:[#allocation11 + $0x26] ss:$8 sm:$0xf] %vm4585_vm1, %v1667_v57 }
 0x5ba   :  { %3964 = dma.done.wait [#allocation3 + $0x8], 64 }
 0x5bb   :  { %3965 = vsyncadd [#allocation3 + $0x8], 4294967232 }
 0x5bc   :  { %3966 = dma.done.wait [#allocation3 + $0x9], 64 }
 0x5bd   :  { %3967 = vsyncadd [#allocation3 + $0x9], 4294967232 }
 0x5be   :  { %3968 = dma.done.wait [#allocation3 + $0xa], 64 }
 0x5bf   :  { %3969 = vsyncadd [#allocation3 + $0xa], 4294967232 }
 0x5c0   :  { %3970 = dma.done.wait [#allocation3 + $0xb], 64 }
 0x5c1   :  { %3971 = vsyncadd [#allocation3 + $0xb], 4294967232 }
 0x5c2   :  { %3972 = dma.done.wait [#allocation3 + $0xc], 64 }
 0x5c3   :  { %3973 = vsyncadd [#allocation3 + $0xc], 4294967232 }
 0x5c4   :  { %3974 = dma.done.wait [#allocation3 + $0xd], 64 }
 0x5c5   :  { %3975 = vsyncadd [#allocation3 + $0xd], 4294967232 }
 0x5c6   :  { %3976 = dma.done.wait [#allocation3 + $0xe], 64 }
 0x5c7   :  { %3977 = vsyncadd [#allocation3 + $0xe], 4294967232 }
 0x5c8   :  { %3978 = dma.done.wait [#allocation3 + $0xf], 64 }
 0x5c9   :  { %3979 = vsyncadd [#allocation3 + $0xf], 4294967232  ;;  %v1688_v58 = vld [vmem:[#allocation2 + $0x20] sm:$0xff]  ;;  %v1689_v59 = vld [vmem:[#allocation2 + $0x28] sm:$0xff]  ;;  %s4007_s4 = smov [#allocation11]  }
 0x5ca   :  { %v1690_v60 = vld [vmem:[#allocation2 + $0x30] sm:$0xff]  ;;  %v1691_v61 = vld [vmem:[#allocation2 + $0x38] sm:$0xff]  ;;  %v1692_v62 = vrot.slane %v1688_v58, 4  ;;  %v1698_v63 = vrot.slane %v1689_v59, 4  ;;  %s1758_s28 = sshll.u32 %s4007_s4, 4  ;;  %s1759_s28 = int_to_ptr.vmem [resolvable:$true] %s1758_s28 }
 0x5cb   :  { %v1704_v0 = vrot.slane %v1690_v60, 4  ;;  %v1710_v1 = vrot.slane %v1691_v61, 4  ;;  %s3826_s13 = scalar_lea.vmem %s1759_s28, 1024  ;;  %p3831_p4 = scmp.lt.s32.totalorder %s1759_s28, %s1759_s28 }
 0x5cc   :  { %v1693_v2 = vadd.f32 %v1692_v62, %v1688_v58  ;;  %v1699_v3 = vadd.f32 %v1698_v63, %v1689_v59  ;;  %p3827_p9 = scmp.ne.s32.totalorder %s1759_s28, %s3826_s13  ;;  %p3832_p8 = scmp.lt.s32.totalorder %s3826_s13, %s3826_s13 }
 0x5cd   :  { %v1705_v4 = vadd.f32 %v1704_v0, %v1690_v60  ;;  %v1711_v5 = vadd.f32 %v1710_v1, %v1691_v61 }
 0x5ce   :  { %v1694_v6 = vrot.slane %v1693_v2, 2  ;;  %v1700_v8 = vrot.slane %v1699_v3, 2  ;;  %p3833_p3 = por %p3832_p8, %p3831_p4 }
 0x5cf   :  { %v1706_v9 = vrot.slane %v1705_v4, 2  ;;  %v1712_v10 = vrot.slane %v1711_v5, 2 }
 0x5d0   :  { %v1695_v11 = vadd.f32 %v1694_v6, %v1693_v2  ;;  %v1701_v12 = vadd.f32 %v1700_v8, %v1699_v3  ;;  %p3834_p1 = pnand %p3833_p3, %p3827_p9 }
 0x5d1   :  { %v1707_v13 = vadd.f32 %v1706_v9, %v1705_v4  ;;  %v1713_v15 = vadd.f32 %v1712_v10, %v1711_v5 }
 0x5d2   :  { %v1696_v16 = vrot.slane %v1695_v11, 1  ;;  %v1702_v17 = vrot.slane %v1701_v12, 1 }
 0x5d3   :  { %v1708_v18 = vrot.slane %v1707_v13, 1  ;;  %v1714_v19 = vrot.slane %v1713_v15, 1 }
 0x5d4   :  { %v1697_v20 = vadd.f32 %v1696_v16, %v1695_v11  ;;  %v1703_v21 = vadd.f32 %v1702_v17, %v1701_v12 }
 0x5d5   :  { %v1709_v22 = vadd.f32 %v1708_v18, %v1707_v13  ;;  %v1715_v23 = vadd.f32 %v1714_v19, %v1713_v15 }
 0x5d6   :  { %v1716_v24 = vmul.f32 0.125, %v1697_v20  ;;  %v1717_v25 = vmul.f32 0.125, %v1703_v21 }
 0x5d7   :  { %v1718_v26 = vmul.f32 0.125, %v1709_v22  ;;  %v1719_v27 = vmul.f32 0.125, %v1715_v23 }
 0x5d8   :  { %v1724_v28 = vcombine.low %v1716_v24, %v1717_v25 }
 0x5d9   :  { %v1725_v29 = vcombine.low %v1718_v26, %v1719_v27 }
 0x5da   :  { %v1732_v30 = vrot.slane %v1724_v28, %v4550_v7 }
 0x5db   :  { %v1739_v31 = vrot.slane %v1725_v29, %v4550_v7 }
 0x5dd   :  { %v1740_v32 = vcombine.low %v1732_v30, %v1739_v31 }
 0x5df   :  { %v1747_v33 = vrot.slane %v1740_v32, %v4550_v7 }
 0x5e1   :  { %1750 = vst.msk [vmem:[#allocation11 + $0x27] ss:$8 sm:$0xf] %vm4585_vm1, %v1747_v33 }
 0x5e2   :  { %3837 = shalt.err (!%p3834_p1)
}
 0x5e3   :  { %s5506_s16 = sld [smem:[#allocation173_spill]] }
 0x5e9   :  { %1761 = dma.vmem_to_hbm [thread:$0]  %s1759_s28, 1024, %s5506_s16, [#allocation8]  }
 0x5ea   :  { %3980 = dma.done.wait [#allocation8], 1024  }
 0x5eb   :  { %3981 = vsyncadd [#allocation8], 4294966272 }
 0x5ec   :  { %1765 = vsyncpa [#allocation7], 1 }
 0x5ed   :  { %1766 = vsyncpa [#allocation10], 1 }
 0x5ee   :  { %1767 = vsyncpa [#allocation8], 1 }
 0x5ef   :  { %1768 = vsyncmov [#allocation3] }
 0x5f2   :  { %s1769_s22 = vpop.sfrf %1768 }
 0x5f3   :  { %p2328_p10 = scmp.ne.s32.totalorder %s1769_s22, 0 }
 0x5f5   :  { %1773 = shalt.err (%p2328_p10)  }
 0x5f6   :  { %1775 = vsyncmov [#allocation3 + $0x1] }
 0x5f9   :  { %s1776_s27 = vpop.sfrf %1775 }
 0x5fa   :  { %p2329_p0 = scmp.ne.s32.totalorder %s1776_s27, 0 }
 0x5fc   :  { %1780 = shalt.err (%p2329_p0)  }
 0x5fd   :  { %1782 = vsyncmov [#allocation3 + $0x2] }
 0x600   :  { %s1783_s7 = vpop.sfrf %1782 }
 0x601   :  { %p2330_p11 = scmp.ne.s32.totalorder %s1783_s7, 0 }
 0x603   :  { %1787 = shalt.err (%p2330_p11)  }
 0x604   :  { %1789 = vsyncmov [#allocation3 + $0x3] }
 0x607   :  { %s1790_s2 = vpop.sfrf %1789 }
 0x608   :  { %p2331_p5 = scmp.ne.s32.totalorder %s1790_s2, 0 }
 0x60a   :  { %1794 = shalt.err (%p2331_p5)  }
 0x60b   :  { %1796 = vsyncmov [#allocation3 + $0x4] }
 0x60e   :  { %s1797_s15 = vpop.sfrf %1796 }
 0x60f   :  { %p2332_p2 = scmp.ne.s32.totalorder %s1797_s15, 0 }
 0x611   :  { %1801 = shalt.err (%p2332_p2)  }
 0x612   :  { %1803 = vsyncmov [#allocation3 + $0x5] }
 0x615   :  { %s1804_s21 = vpop.sfrf %1803 }
 0x616   :  { %p2333_p12 = scmp.ne.s32.totalorder %s1804_s21, 0 }
 0x618   :  { %1808 = shalt.err (%p2333_p12)  }
 0x619   :  { %1810 = vsyncmov [#allocation3 + $0x6] }
 0x61c   :  { %s1811_s0 = vpop.sfrf %1810 }
 0x61d   :  { %p2334_p7 = scmp.ne.s32.totalorder %s1811_s0, 0 }
 0x61f   :  { %1815 = shalt.err (%p2334_p7)  }
 0x620   :  { %1817 = vsyncmov [#allocation3 + $0x7] }
 0x623   :  { %s1818_s9 = vpop.sfrf %1817 }
 0x624   :  { %p2335_p6 = scmp.ne.s32.totalorder %s1818_s9, 0 }
 0x626   :  { %1822 = shalt.err (%p2335_p6)  }
 0x627   :  { %1824 = vsyncmov [#allocation3 + $0x8] }
 0x62a   :  { %s1825_s18 = vpop.sfrf %1824 }
 0x62b   :  { %p2336_p13 = scmp.ne.s32.totalorder %s1825_s18, 0 }
 0x62d   :  { %1829 = shalt.err (%p2336_p13)  }
 0x62e   :  { %1831 = vsyncmov [#allocation3 + $0x9] }
 0x631   :  { %s1832_s6 = vpop.sfrf %1831 }
 0x632   :  { %p2337_p9 = scmp.ne.s32.totalorder %s1832_s6, 0 }
 0x634   :  { %1836 = shalt.err (%p2337_p9)  }
 0x635   :  { %1838 = vsyncmov [#allocation3 + $0xa] }
 0x638   :  { %s1839_s11 = vpop.sfrf %1838 }
 0x639   :  { %p2338_p4 = scmp.ne.s32.totalorder %s1839_s11, 0 }
 0x63b   :  { %1843 = shalt.err (%p2338_p4)  }
 0x63c   :  { %1845 = vsyncmov [#allocation3 + $0xb] }
 0x63f   :  { %s1846_s3 = vpop.sfrf %1845 }
 0x640   :  { %p2339_p8 = scmp.ne.s32.totalorder %s1846_s3, 0 }
 0x642   :  { %1850 = shalt.err (%p2339_p8)  }
 0x643   :  { %1852 = vsyncmov [#allocation3 + $0xc] }
 0x646   :  { %s1853_s23 = vpop.sfrf %1852 }
 0x647   :  { %p2340_p3 = scmp.ne.s32.totalorder %s1853_s23, 0 }
 0x649   :  { %1857 = shalt.err (%p2340_p3)  }
 0x64a   :  { %1859 = vsyncmov [#allocation3 + $0xd] }
 0x64d   :  { %s1860_s26 = vpop.sfrf %1859 }
 0x64e   :  { %p2341_p1 = scmp.ne.s32.totalorder %s1860_s26, 0 }
 0x650   :  { %1864 = shalt.err (%p2341_p1)  }
 0x651   :  { %1866 = vsyncmov [#allocation3 + $0xe] }
 0x654   :  { %s1867_s24 = vpop.sfrf %1866 }
 0x655   :  { %p2342_p10 = scmp.ne.s32.totalorder %s1867_s24, 0 }
 0x657   :  { %1871 = shalt.err (%p2342_p10)  }
 0x658   :  { %1873 = vsyncmov [#allocation3 + $0xf] }
 0x65b   :  { %s1874_s30 = vpop.sfrf %1873 }
 0x65c   :  { %p2343_p0 = scmp.ne.s32.totalorder %s1874_s30, 0 }
 0x65e   :  { %1878 = shalt.err (%p2343_p0)  }

</bundles_post_ra>
